<compile_context>
chip_gen: v5e
topology: v5e:2x2
jax: 0.10.0
libtpu: 0.0.40
codegen_flags: <defaults>
</compile_context>

<pallas_src>
import jax
import jax.numpy as jnp
from jax.experimental import pallas as pl
from jax.experimental.pallas import tpu as pltpu


# ----------------------------------------------------------------------------
# Fused Pallas kernel
# ----------------------------------------------------------------------------
def _make_decoder_kernel(num_layers, T, BN):
    """Build the fused decoder kernel for static layer count / horizon."""

    def kernel(*refs):
        x_ref = refs[0]
        layer_refs = refs[1:1 + 10 * num_layers]
        w_out_ref = refs[1 + 10 * num_layers]
        b_out_ref = refs[2 + 10 * num_layers]
        out_ref = refs[3 + 10 * num_layers]

        cur = x_ref[...]                       # (T*BN, Din) current layer input

        for l in range(num_layers):
            (h0_ref, wzx_ref, wzh_ref, bz_ref,
             wrx_ref, wrh_ref, br_ref,
             wcx_ref, wch_ref, bc_ref) = layer_refs[10 * l:10 * (l + 1)]

            # Hoisted x-side matmuls: one big (T*BN, Din) @ (Din, H) per gate,
            # computed once for the whole horizon (bias folded in here).
            xz = jnp.dot(cur, wzx_ref[...],
                         preferred_element_type=jnp.float32) + bz_ref[...]
            xr = jnp.dot(cur, wrx_ref[...],
                         preferred_element_type=jnp.float32) + br_ref[...]
            xc = jnp.dot(cur, wcx_ref[...],
                         preferred_element_type=jnp.float32) + bc_ref[...]

            wzh = wzh_ref[...]
            wrh = wrh_ref[...]
            wch = wch_ref[...]

            h = h0_ref[...]                    # (BN, H)
            outs = []
            # T is small & static -> fully unrolled recurrence; only the three
            # tiny h-side matmuls + gates remain per time step.
            for t in range(T):
                lo = t * BN
                hi = lo + BN
                z = jax.nn.sigmoid(
                    xz[lo:hi]
                    + jnp.dot(h, wzh, preferred_element_type=jnp.float32))
                r = jax.nn.sigmoid(
                    xr[lo:hi]
                    + jnp.dot(h, wrh, preferred_element_type=jnp.float32))
                hc = jnp.tanh(
                    xc[lo:hi]
                    + jnp.dot(z * h, wch, preferred_element_type=jnp.float32))
                h = r * h + (1.0 - r) * hc
                outs.append(h)

            cur = jnp.concatenate(outs, axis=0)        # (T*BN, H)

        # Fused end_out Linear applied to the whole sequence in one matmul.
        y = jnp.dot(cur, w_out_ref[...],
                    preferred_element_type=jnp.float32) + b_out_ref[...]
        out_ref[...] = y                               # flat (T*BN, O) slab

    return kernel


# ----------------------------------------------------------------------------
# Wrapper
# ----------------------------------------------------------------------------
def decoder_wog_forward(x, init_states, params):
    """Pallas implementation of Decoder_WOG.forward.

    x:           (B, horizon, node_num, in_dim)
    init_states: list of (B, node_num, rnn_units), one per layer
    """
    B, T, N, Din = x.shape
    H = init_states[0].shape[-1]
    O = params["w_out"].shape[-1]
    BN = B * N
    num_layers = len(params["layers"])

    # (B,T,N,Din) -> (T*B*N, Din): one layout change in XLA, none per step.
    x2d = jnp.transpose(x, (1, 0, 2, 3)).reshape(T * BN, Din)

    flat_inputs = [x2d]
    for layer_params, h0 in zip(params["layers"], init_states):
        wgx, wgh, bg, wux, wuh, bu = layer_params
        flat_inputs += [
            h0.reshape(BN, H),
            wgx[:, :H], wgh[:, :H], bg[:, :H],     # z gate
            wgx[:, H:], wgh[:, H:], bg[:, H:],     # r gate
            wux, wuh, bu,                          # candidate
        ]
    flat_inputs += [params["w_out"], params["b_out"]]

    kernel = _make_decoder_kernel(num_layers, T, BN)

    y = pl.pallas_call(
        kernel,
        out_shape=jax.ShapeDtypeStruct((T * BN, O), jnp.float32),
        grid_spec=pltpu.PrefetchScalarGridSpec(
            num_scalar_prefetch=0,
            grid=(1,),
            in_specs=[pl.BlockSpec(a.shape, lambda i: (0, 0))
                      for a in flat_inputs],
            out_specs=pl.BlockSpec((T * BN, O), lambda i: (0, 0)),
        ),
        compiler_params=pltpu.CompilerParams(
            dimension_semantics=("arbitrary",)),
    )(*flat_inputs)

    # Reshape the lane-flat slab back to PyTorch's (B, T, N, O).
    return jnp.transpose(y.reshape(T, B, N, O), (1, 0, 2, 3))


# ----------------------------------------------------------------------------
# Pure-JAX reference (semantics check)
# ----------------------------------------------------------------------------
def decoder_wog_reference(x, init_states, params):
    current = x
    T = x.shape[1]
    for layer_params, h0 in zip(params["layers"], init_states):
        wgx, wgh, bg, wux, wuh, bu = layer_params
        H = h0.shape[-1]
        h = h0
        outs = []
        for t in range(T):
            xt = current[:, t]                              # (B, N, Din)
            zr = jax.nn.sigmoid(xt @ wgx + h @ wgh + bg)
            z, r = zr[..., :H], zr[..., H:]
            hc = jnp.tanh(xt @ wux + (z * h) @ wuh + bu)
            h = r * h + (1.0 - r) * hc
            outs.append(h)
        current = jnp.stack(outs, axis=1)                   # (B, T, N, H)
    return current @ params["w_out"] + params["b_out"]


# ----------------------------------------------------------------------------
# Deterministic parameter construction
# ----------------------------------------------------------------------------
def make_params(key, in_dim, rnn_units, out_dim, num_layers):
    layers = []
    din = in_dim
    H = rnn_units
    for _ in range(num_layers):
        key, *ks = jax.random.split(key, 7)
        s_in = 1.0 / jnp.sqrt(din + H)
        layers.append((
            jax.random.uniform(ks[0], (din, 2 * H), jnp.float32, -s_in, s_in),
            jax.random.uniform(ks[1], (H, 2 * H), jnp.float32, -s_in, s_in),
            jax.random.uniform(ks[2], (1, 2 * H), jnp.float32, -s_in, s_in),
            jax.random.uniform(ks[3], (din, H), jnp.float32, -s_in, s_in),
            jax.random.uniform(ks[4], (H, H), jnp.float32, -s_in, s_in),
            jax.random.uniform(ks[5], (1, H), jnp.float32, -s_in, s_in),
        ))
        din = H
    key, k_w, k_b = jax.random.split(key, 3)
    s_out = 1.0 / jnp.sqrt(H)
    return {
        "layers": layers,
        "w_out": jax.random.uniform(k_w, (H, out_dim), jnp.float32, -s_out, s_out),
        "b_out": jax.random.uniform(k_b, (1, out_dim), jnp.float32, -s_out, s_out),
    }


# ----------------------------------------------------------------------------
if __name__ == "__main__":
    # Decoder_WOG hyper-parameters (cheb_k / embed_dim unused in WOG variant)
    node_num, horizon, in_dim, rnn_units, out_dim, num_layers = 16, 8, 4, 32, 2, 2
    batch = 2

    key = jax.random.PRNGKey(0)
    key, kx, kh = jax.random.split(key, 3)

    x = jax.random.normal(kx, (batch, horizon, node_num, in_dim), jnp.float32)
    init_state = jax.random.normal(
        kh, (num_layers, batch, node_num, rnn_units), jnp.float32)
    init_states = [init_state[i] for i in range(num_layers)]

    params = make_params(key, in_dim, rnn_units, out_dim, num_layers)

    out = decoder_wog_forward(x, init_states, params)
    out = jax.block_until_ready(out)

    ref = decoder_wog_reference(x, init_states, params)
    assert out.shape == (batch, horizon, node_num, out_dim)
    # Tolerance allows for the (intentional) reassociation of the bias add /
    # hoisted x-side matmuls relative to the per-step reference.
    max_diff = float(jnp.max(jnp.abs(out - ref)))
    assert jnp.allclose(out, ref, atol=1e-4, rtol=1e-4), max_diff

    print("KERNEL_OK")
</pallas_src>

<mosaic_0001>
module attributes {stable_mosaic.version = 11 : i64} {
  func.func @kernel(%arg0: i32, %arg1: memref<256x4xf32, #tpu.memory_space<vmem>>, %arg2: memref<32x32xf32, #tpu.memory_space<vmem>>, %arg3: memref<4x32xf32, #tpu.memory_space<vmem>>, %arg4: memref<32x32xf32, #tpu.memory_space<vmem>>, %arg5: memref<1x32xf32, #tpu.memory_space<vmem>>, %arg6: memref<4x32xf32, #tpu.memory_space<vmem>>, %arg7: memref<32x32xf32, #tpu.memory_space<vmem>>, %arg8: memref<1x32xf32, #tpu.memory_space<vmem>>, %arg9: memref<4x32xf32, #tpu.memory_space<vmem>>, %arg10: memref<32x32xf32, #tpu.memory_space<vmem>>, %arg11: memref<1x32xf32, #tpu.memory_space<vmem>>, %arg12: memref<32x32xf32, #tpu.memory_space<vmem>>, %arg13: memref<32x32xf32, #tpu.memory_space<vmem>>, %arg14: memref<32x32xf32, #tpu.memory_space<vmem>>, %arg15: memref<1x32xf32, #tpu.memory_space<vmem>>, %arg16: memref<32x32xf32, #tpu.memory_space<vmem>>, %arg17: memref<32x32xf32, #tpu.memory_space<vmem>>, %arg18: memref<1x32xf32, #tpu.memory_space<vmem>>, %arg19: memref<32x32xf32, #tpu.memory_space<vmem>>, %arg20: memref<32x32xf32, #tpu.memory_space<vmem>>, %arg21: memref<1x32xf32, #tpu.memory_space<vmem>>, %arg22: memref<32x2xf32, #tpu.memory_space<vmem>>, %arg23: memref<1x2xf32, #tpu.memory_space<vmem>>, %arg24: memref<256x2xf32, #tpu.memory_space<vmem>>) attributes {dimension_semantics = [#tpu.dimension_semantics<arbitrary>], iteration_bounds = array<i64: 1>, scalar_prefetch = 0 : i64, scratch_operands = 0 : i64, tpu.core_type = #tpu.core_type<tc>, window_params = [{pipeline_mode = #tpu.pipeline_mode<synchronous>, transform_indices = @transform_0, window_bounds = array<i64: 256, 4>}, {pipeline_mode = #tpu.pipeline_mode<synchronous>, transform_indices = @transform_1, window_bounds = array<i64: 32, 32>}, {pipeline_mode = #tpu.pipeline_mode<synchronous>, transform_indices = @transform_2, window_bounds = array<i64: 4, 32>}, {pipeline_mode = #tpu.pipeline_mode<synchronous>, transform_indices = @transform_3, window_bounds = array<i64: 32, 32>}, {pipeline_mode = #tpu.pipeline_mode<synchronous>, transform_indices = @transform_4, window_bounds = array<i64: 1, 32>}, {pipeline_mode = #tpu.pipeline_mode<synchronous>, transform_indices = @transform_5, window_bounds = array<i64: 4, 32>}, {pipeline_mode = #tpu.pipeline_mode<synchronous>, transform_indices = @transform_6, window_bounds = array<i64: 32, 32>}, {pipeline_mode = #tpu.pipeline_mode<synchronous>, transform_indices = @transform_7, window_bounds = array<i64: 1, 32>}, {pipeline_mode = #tpu.pipeline_mode<synchronous>, transform_indices = @transform_8, window_bounds = array<i64: 4, 32>}, {pipeline_mode = #tpu.pipeline_mode<synchronous>, transform_indices = @transform_9, window_bounds = array<i64: 32, 32>}, {pipeline_mode = #tpu.pipeline_mode<synchronous>, transform_indices = @transform_10, window_bounds = array<i64: 1, 32>}, {pipeline_mode = #tpu.pipeline_mode<synchronous>, transform_indices = @transform_11, window_bounds = array<i64: 32, 32>}, {pipeline_mode = #tpu.pipeline_mode<synchronous>, transform_indices = @transform_12, window_bounds = array<i64: 32, 32>}, {pipeline_mode = #tpu.pipeline_mode<synchronous>, transform_indices = @transform_13, window_bounds = array<i64: 32, 32>}, {pipeline_mode = #tpu.pipeline_mode<synchronous>, transform_indices = @transform_14, window_bounds = array<i64: 1, 32>}, {pipeline_mode = #tpu.pipeline_mode<synchronous>, transform_indices = @transform_15, window_bounds = array<i64: 32, 32>}, {pipeline_mode = #tpu.pipeline_mode<synchronous>, transform_indices = @transform_16, window_bounds = array<i64: 32, 32>}, {pipeline_mode = #tpu.pipeline_mode<synchronous>, transform_indices = @transform_17, window_bounds = array<i64: 1, 32>}, {pipeline_mode = #tpu.pipeline_mode<synchronous>, transform_indices = @transform_18, window_bounds = array<i64: 32, 32>}, {pipeline_mode = #tpu.pipeline_mode<synchronous>, transform_indices = @transform_19, window_bounds = array<i64: 32, 32>}, {pipeline_mode = #tpu.pipeline_mode<synchronous>, transform_indices = @transform_20, window_bounds = array<i64: 1, 32>}, {pipeline_mode = #tpu.pipeline_mode<synchronous>, transform_indices = @transform_21, window_bounds = array<i64: 32, 2>}, {pipeline_mode = #tpu.pipeline_mode<synchronous>, transform_indices = @transform_22, window_bounds = array<i64: 1, 2>}, {pipeline_mode = #tpu.pipeline_mode<synchronous>, transform_indices = @transform_23, window_bounds = array<i64: 256, 2>}]} {
    %c0 = arith.constant 0 : index
    %c0_0 = arith.constant 0 : index
    %0 = vector.load %arg1[%c0, %c0_0] : memref<256x4xf32, #tpu.memory_space<vmem>>, vector<256x4xf32>
    %c0_1 = arith.constant 0 : index
    %c0_2 = arith.constant 0 : index
    %1 = vector.load %arg3[%c0_1, %c0_2] : memref<4x32xf32, #tpu.memory_space<vmem>>, vector<4x32xf32>
    %cst = arith.constant dense<0.000000e+00> : vector<256x32xf32>
    %2 = tpu.matmul %0, %1, %cst {dimension_numbers = #tpu.dot_dimension_numbers<[1], [0], [0], [1], [0, 0, 1, 1], [], []>} : vector<256x4xf32>, vector<4x32xf32>, vector<256x32xf32> -> vector<256x32xf32>
    %c0_3 = arith.constant 0 : index
    %c0_4 = arith.constant 0 : index
    %3 = vector.load %arg5[%c0_3, %c0_4] : memref<1x32xf32, #tpu.memory_space<vmem>>, vector<1x32xf32>
    %4 = vector.broadcast %3 : vector<1x32xf32> to vector<256x32xf32>
    %5 = arith.addf %2, %4 : vector<256x32xf32>
    %c0_5 = arith.constant 0 : index
    %c0_6 = arith.constant 0 : index
    %6 = vector.load %arg6[%c0_5, %c0_6] : memref<4x32xf32, #tpu.memory_space<vmem>>, vector<4x32xf32>
    %cst_7 = arith.constant dense<0.000000e+00> : vector<256x32xf32>
    %7 = tpu.matmul %0, %6, %cst_7 {dimension_numbers = #tpu.dot_dimension_numbers<[1], [0], [0], [1], [0, 0, 1, 1], [], []>} : vector<256x4xf32>, vector<4x32xf32>, vector<256x32xf32> -> vector<256x32xf32>
    %c0_8 = arith.constant 0 : index
    %c0_9 = arith.constant 0 : index
    %8 = vector.load %arg8[%c0_8, %c0_9] : memref<1x32xf32, #tpu.memory_space<vmem>>, vector<1x32xf32>
    %9 = vector.broadcast %8 : vector<1x32xf32> to vector<256x32xf32>
    %10 = arith.addf %7, %9 : vector<256x32xf32>
    %c0_10 = arith.constant 0 : index
    %c0_11 = arith.constant 0 : index
    %11 = vector.load %arg9[%c0_10, %c0_11] : memref<4x32xf32, #tpu.memory_space<vmem>>, vector<4x32xf32>
    %cst_12 = arith.constant dense<0.000000e+00> : vector<256x32xf32>
    %12 = tpu.matmul %0, %11, %cst_12 {dimension_numbers = #tpu.dot_dimension_numbers<[1], [0], [0], [1], [0, 0, 1, 1], [], []>} : vector<256x4xf32>, vector<4x32xf32>, vector<256x32xf32> -> vector<256x32xf32>
    %c0_13 = arith.constant 0 : index
    %c0_14 = arith.constant 0 : index
    %13 = vector.load %arg11[%c0_13, %c0_14] : memref<1x32xf32, #tpu.memory_space<vmem>>, vector<1x32xf32>
    %14 = vector.broadcast %13 : vector<1x32xf32> to vector<256x32xf32>
    %15 = arith.addf %12, %14 : vector<256x32xf32>
    %c0_15 = arith.constant 0 : index
    %c0_16 = arith.constant 0 : index
    %16 = vector.load %arg4[%c0_15, %c0_16] : memref<32x32xf32, #tpu.memory_space<vmem>>, vector<32x32xf32>
    %c0_17 = arith.constant 0 : index
    %c0_18 = arith.constant 0 : index
    %17 = vector.load %arg7[%c0_17, %c0_18] : memref<32x32xf32, #tpu.memory_space<vmem>>, vector<32x32xf32>
    %c0_19 = arith.constant 0 : index
    %c0_20 = arith.constant 0 : index
    %18 = vector.load %arg10[%c0_19, %c0_20] : memref<32x32xf32, #tpu.memory_space<vmem>>, vector<32x32xf32>
    %c0_21 = arith.constant 0 : index
    %c0_22 = arith.constant 0 : index
    %19 = vector.load %arg2[%c0_21, %c0_22] : memref<32x32xf32, #tpu.memory_space<vmem>>, vector<32x32xf32>
    %20 = vector.extract_strided_slice %5 {offsets = [0, 0], sizes = [32, 32], strides = [1, 1]} : vector<256x32xf32> to vector<32x32xf32>
    %cst_23 = arith.constant dense<0.000000e+00> : vector<32x32xf32>
    %21 = tpu.matmul %19, %16, %cst_23 {dimension_numbers = #tpu.dot_dimension_numbers<[1], [0], [0], [1], [0, 0, 1, 1], [], []>} : vector<32x32xf32>, vector<32x32xf32>, vector<32x32xf32> -> vector<32x32xf32>
    %22 = arith.addf %20, %21 : vector<32x32xf32>
    %23 = arith.negf %22 : vector<32x32xf32>
    %24 = math.exp %23 : vector<32x32xf32>
    %cst_24 = arith.constant 1.000000e+00 : f32
    %25 = vector.broadcast %cst_24 : f32 to vector<32x32xf32>
    %26 = arith.addf %25, %24 : vector<32x32xf32>
    %27 = arith.divf %25, %26 : vector<32x32xf32>
    %28 = vector.extract_strided_slice %10 {offsets = [0, 0], sizes = [32, 32], strides = [1, 1]} : vector<256x32xf32> to vector<32x32xf32>
    %cst_25 = arith.constant dense<0.000000e+00> : vector<32x32xf32>
    %29 = tpu.matmul %19, %17, %cst_25 {dimension_numbers = #tpu.dot_dimension_numbers<[1], [0], [0], [1], [0, 0, 1, 1], [], []>} : vector<32x32xf32>, vector<32x32xf32>, vector<32x32xf32> -> vector<32x32xf32>
    %30 = arith.addf %28, %29 : vector<32x32xf32>
    %31 = arith.negf %30 : vector<32x32xf32>
    %32 = math.exp %31 : vector<32x32xf32>
    %cst_26 = arith.constant 1.000000e+00 : f32
    %33 = vector.broadcast %cst_26 : f32 to vector<32x32xf32>
    %34 = arith.addf %33, %32 : vector<32x32xf32>
    %35 = arith.divf %33, %34 : vector<32x32xf32>
    %36 = vector.extract_strided_slice %15 {offsets = [0, 0], sizes = [32, 32], strides = [1, 1]} : vector<256x32xf32> to vector<32x32xf32>
    %37 = arith.mulf %27, %19 : vector<32x32xf32>
    %cst_27 = arith.constant dense<0.000000e+00> : vector<32x32xf32>
    %38 = tpu.matmul %37, %18, %cst_27 {dimension_numbers = #tpu.dot_dimension_numbers<[1], [0], [0], [1], [0, 0, 1, 1], [], []>} : vector<32x32xf32>, vector<32x32xf32>, vector<32x32xf32> -> vector<32x32xf32>
    %39 = arith.addf %36, %38 : vector<32x32xf32>
    %40 = math.tanh %39 : vector<32x32xf32>
    %41 = arith.mulf %35, %19 : vector<32x32xf32>
    %cst_28 = arith.constant 1.000000e+00 : f32
    %42 = vector.broadcast %cst_28 : f32 to vector<32x32xf32>
    %43 = arith.subf %42, %35 : vector<32x32xf32>
    %44 = arith.mulf %43, %40 : vector<32x32xf32>
    %45 = arith.addf %41, %44 : vector<32x32xf32>
    %46 = vector.extract_strided_slice %5 {offsets = [32, 0], sizes = [32, 32], strides = [1, 1]} : vector<256x32xf32> to vector<32x32xf32>
    %cst_29 = arith.constant dense<0.000000e+00> : vector<32x32xf32>
    %47 = tpu.matmul %45, %16, %cst_29 {dimension_numbers = #tpu.dot_dimension_numbers<[1], [0], [0], [1], [0, 0, 1, 1], [], []>} : vector<32x32xf32>, vector<32x32xf32>, vector<32x32xf32> -> vector<32x32xf32>
    %48 = arith.addf %46, %47 : vector<32x32xf32>
    %49 = arith.negf %48 : vector<32x32xf32>
    %50 = math.exp %49 : vector<32x32xf32>
    %cst_30 = arith.constant 1.000000e+00 : f32
    %51 = vector.broadcast %cst_30 : f32 to vector<32x32xf32>
    %52 = arith.addf %51, %50 : vector<32x32xf32>
    %53 = arith.divf %51, %52 : vector<32x32xf32>
    %54 = vector.extract_strided_slice %10 {offsets = [32, 0], sizes = [32, 32], strides = [1, 1]} : vector<256x32xf32> to vector<32x32xf32>
    %cst_31 = arith.constant dense<0.000000e+00> : vector<32x32xf32>
    %55 = tpu.matmul %45, %17, %cst_31 {dimension_numbers = #tpu.dot_dimension_numbers<[1], [0], [0], [1], [0, 0, 1, 1], [], []>} : vector<32x32xf32>, vector<32x32xf32>, vector<32x32xf32> -> vector<32x32xf32>
    %56 = arith.addf %54, %55 : vector<32x32xf32>
    %57 = arith.negf %56 : vector<32x32xf32>
    %58 = math.exp %57 : vector<32x32xf32>
    %cst_32 = arith.constant 1.000000e+00 : f32
    %59 = vector.broadcast %cst_32 : f32 to vector<32x32xf32>
    %60 = arith.addf %59, %58 : vector<32x32xf32>
    %61 = arith.divf %59, %60 : vector<32x32xf32>
    %62 = vector.extract_strided_slice %15 {offsets = [32, 0], sizes = [32, 32], strides = [1, 1]} : vector<256x32xf32> to vector<32x32xf32>
    %63 = arith.mulf %53, %45 : vector<32x32xf32>
    %cst_33 = arith.constant dense<0.000000e+00> : vector<32x32xf32>
    %64 = tpu.matmul %63, %18, %cst_33 {dimension_numbers = #tpu.dot_dimension_numbers<[1], [0], [0], [1], [0, 0, 1, 1], [], []>} : vector<32x32xf32>, vector<32x32xf32>, vector<32x32xf32> -> vector<32x32xf32>
    %65 = arith.addf %62, %64 : vector<32x32xf32>
    %66 = math.tanh %65 : vector<32x32xf32>
    %67 = arith.mulf %61, %45 : vector<32x32xf32>
    %cst_34 = arith.constant 1.000000e+00 : f32
    %68 = vector.broadcast %cst_34 : f32 to vector<32x32xf32>
    %69 = arith.subf %68, %61 : vector<32x32xf32>
    %70 = arith.mulf %69, %66 : vector<32x32xf32>
    %71 = arith.addf %67, %70 : vector<32x32xf32>
    %72 = vector.extract_strided_slice %5 {offsets = [64, 0], sizes = [32, 32], strides = [1, 1]} : vector<256x32xf32> to vector<32x32xf32>
    %cst_35 = arith.constant dense<0.000000e+00> : vector<32x32xf32>
    %73 = tpu.matmul %71, %16, %cst_35 {dimension_numbers = #tpu.dot_dimension_numbers<[1], [0], [0], [1], [0, 0, 1, 1], [], []>} : vector<32x32xf32>, vector<32x32xf32>, vector<32x32xf32> -> vector<32x32xf32>
    %74 = arith.addf %72, %73 : vector<32x32xf32>
    %75 = arith.negf %74 : vector<32x32xf32>
    %76 = math.exp %75 : vector<32x32xf32>
    %cst_36 = arith.constant 1.000000e+00 : f32
    %77 = vector.broadcast %cst_36 : f32 to vector<32x32xf32>
    %78 = arith.addf %77, %76 : vector<32x32xf32>
    %79 = arith.divf %77, %78 : vector<32x32xf32>
    %80 = vector.extract_strided_slice %10 {offsets = [64, 0], sizes = [32, 32], strides = [1, 1]} : vector<256x32xf32> to vector<32x32xf32>
    %cst_37 = arith.constant dense<0.000000e+00> : vector<32x32xf32>
    %81 = tpu.matmul %71, %17, %cst_37 {dimension_numbers = #tpu.dot_dimension_numbers<[1], [0], [0], [1], [0, 0, 1, 1], [], []>} : vector<32x32xf32>, vector<32x32xf32>, vector<32x32xf32> -> vector<32x32xf32>
    %82 = arith.addf %80, %81 : vector<32x32xf32>
    %83 = arith.negf %82 : vector<32x32xf32>
    %84 = math.exp %83 : vector<32x32xf32>
    %cst_38 = arith.constant 1.000000e+00 : f32
    %85 = vector.broadcast %cst_38 : f32 to vector<32x32xf32>
    %86 = arith.addf %85, %84 : vector<32x32xf32>
    %87 = arith.divf %85, %86 : vector<32x32xf32>
    %88 = vector.extract_strided_slice %15 {offsets = [64, 0], sizes = [32, 32], strides = [1, 1]} : vector<256x32xf32> to vector<32x32xf32>
    %89 = arith.mulf %79, %71 : vector<32x32xf32>
    %cst_39 = arith.constant dense<0.000000e+00> : vector<32x32xf32>
    %90 = tpu.matmul %89, %18, %cst_39 {dimension_numbers = #tpu.dot_dimension_numbers<[1], [0], [0], [1], [0, 0, 1, 1], [], []>} : vector<32x32xf32>, vector<32x32xf32>, vector<32x32xf32> -> vector<32x32xf32>
    %91 = arith.addf %88, %90 : vector<32x32xf32>
    %92 = math.tanh %91 : vector<32x32xf32>
    %93 = arith.mulf %87, %71 : vector<32x32xf32>
    %cst_40 = arith.constant 1.000000e+00 : f32
    %94 = vector.broadcast %cst_40 : f32 to vector<32x32xf32>
    %95 = arith.subf %94, %87 : vector<32x32xf32>
    %96 = arith.mulf %95, %92 : vector<32x32xf32>
    %97 = arith.addf %93, %96 : vector<32x32xf32>
    %98 = vector.extract_strided_slice %5 {offsets = [96, 0], sizes = [32, 32], strides = [1, 1]} : vector<256x32xf32> to vector<32x32xf32>
    %cst_41 = arith.constant dense<0.000000e+00> : vector<32x32xf32>
    %99 = tpu.matmul %97, %16, %cst_41 {dimension_numbers = #tpu.dot_dimension_numbers<[1], [0], [0], [1], [0, 0, 1, 1], [], []>} : vector<32x32xf32>, vector<32x32xf32>, vector<32x32xf32> -> vector<32x32xf32>
    %100 = arith.addf %98, %99 : vector<32x32xf32>
    %101 = arith.negf %100 : vector<32x32xf32>
    %102 = math.exp %101 : vector<32x32xf32>
    %cst_42 = arith.constant 1.000000e+00 : f32
    %103 = vector.broadcast %cst_42 : f32 to vector<32x32xf32>
    %104 = arith.addf %103, %102 : vector<32x32xf32>
    %105 = arith.divf %103, %104 : vector<32x32xf32>
    %106 = vector.extract_strided_slice %10 {offsets = [96, 0], sizes = [32, 32], strides = [1, 1]} : vector<256x32xf32> to vector<32x32xf32>
    %cst_43 = arith.constant dense<0.000000e+00> : vector<32x32xf32>
    %107 = tpu.matmul %97, %17, %cst_43 {dimension_numbers = #tpu.dot_dimension_numbers<[1], [0], [0], [1], [0, 0, 1, 1], [], []>} : vector<32x32xf32>, vector<32x32xf32>, vector<32x32xf32> -> vector<32x32xf32>
    %108 = arith.addf %106, %107 : vector<32x32xf32>
    %109 = arith.negf %108 : vector<32x32xf32>
    %110 = math.exp %109 : vector<32x32xf32>
    %cst_44 = arith.constant 1.000000e+00 : f32
    %111 = vector.broadcast %cst_44 : f32 to vector<32x32xf32>
    %112 = arith.addf %111, %110 : vector<32x32xf32>
    %113 = arith.divf %111, %112 : vector<32x32xf32>
    %114 = vector.extract_strided_slice %15 {offsets = [96, 0], sizes = [32, 32], strides = [1, 1]} : vector<256x32xf32> to vector<32x32xf32>
    %115 = arith.mulf %105, %97 : vector<32x32xf32>
    %cst_45 = arith.constant dense<0.000000e+00> : vector<32x32xf32>
    %116 = tpu.matmul %115, %18, %cst_45 {dimension_numbers = #tpu.dot_dimension_numbers<[1], [0], [0], [1], [0, 0, 1, 1], [], []>} : vector<32x32xf32>, vector<32x32xf32>, vector<32x32xf32> -> vector<32x32xf32>
    %117 = arith.addf %114, %116 : vector<32x32xf32>
    %118 = math.tanh %117 : vector<32x32xf32>
    %119 = arith.mulf %113, %97 : vector<32x32xf32>
    %cst_46 = arith.constant 1.000000e+00 : f32
    %120 = vector.broadcast %cst_46 : f32 to vector<32x32xf32>
    %121 = arith.subf %120, %113 : vector<32x32xf32>
    %122 = arith.mulf %121, %118 : vector<32x32xf32>
    %123 = arith.addf %119, %122 : vector<32x32xf32>
    %124 = vector.extract_strided_slice %5 {offsets = [128, 0], sizes = [32, 32], strides = [1, 1]} : vector<256x32xf32> to vector<32x32xf32>
    %cst_47 = arith.constant dense<0.000000e+00> : vector<32x32xf32>
    %125 = tpu.matmul %123, %16, %cst_47 {dimension_numbers = #tpu.dot_dimension_numbers<[1], [0], [0], [1], [0, 0, 1, 1], [], []>} : vector<32x32xf32>, vector<32x32xf32>, vector<32x32xf32> -> vector<32x32xf32>
    %126 = arith.addf %124, %125 : vector<32x32xf32>
    %127 = arith.negf %126 : vector<32x32xf32>
    %128 = math.exp %127 : vector<32x32xf32>
    %cst_48 = arith.constant 1.000000e+00 : f32
    %129 = vector.broadcast %cst_48 : f32 to vector<32x32xf32>
    %130 = arith.addf %129, %128 : vector<32x32xf32>
    %131 = arith.divf %129, %130 : vector<32x32xf32>
    %132 = vector.extract_strided_slice %10 {offsets = [128, 0], sizes = [32, 32], strides = [1, 1]} : vector<256x32xf32> to vector<32x32xf32>
    %cst_49 = arith.constant dense<0.000000e+00> : vector<32x32xf32>
    %133 = tpu.matmul %123, %17, %cst_49 {dimension_numbers = #tpu.dot_dimension_numbers<[1], [0], [0], [1], [0, 0, 1, 1], [], []>} : vector<32x32xf32>, vector<32x32xf32>, vector<32x32xf32> -> vector<32x32xf32>
    %134 = arith.addf %132, %133 : vector<32x32xf32>
    %135 = arith.negf %134 : vector<32x32xf32>
    %136 = math.exp %135 : vector<32x32xf32>
    %cst_50 = arith.constant 1.000000e+00 : f32
    %137 = vector.broadcast %cst_50 : f32 to vector<32x32xf32>
    %138 = arith.addf %137, %136 : vector<32x32xf32>
    %139 = arith.divf %137, %138 : vector<32x32xf32>
    %140 = vector.extract_strided_slice %15 {offsets = [128, 0], sizes = [32, 32], strides = [1, 1]} : vector<256x32xf32> to vector<32x32xf32>
    %141 = arith.mulf %131, %123 : vector<32x32xf32>
    %cst_51 = arith.constant dense<0.000000e+00> : vector<32x32xf32>
    %142 = tpu.matmul %141, %18, %cst_51 {dimension_numbers = #tpu.dot_dimension_numbers<[1], [0], [0], [1], [0, 0, 1, 1], [], []>} : vector<32x32xf32>, vector<32x32xf32>, vector<32x32xf32> -> vector<32x32xf32>
    %143 = arith.addf %140, %142 : vector<32x32xf32>
    %144 = math.tanh %143 : vector<32x32xf32>
    %145 = arith.mulf %139, %123 : vector<32x32xf32>
    %cst_52 = arith.constant 1.000000e+00 : f32
    %146 = vector.broadcast %cst_52 : f32 to vector<32x32xf32>
    %147 = arith.subf %146, %139 : vector<32x32xf32>
    %148 = arith.mulf %147, %144 : vector<32x32xf32>
    %149 = arith.addf %145, %148 : vector<32x32xf32>
    %150 = vector.extract_strided_slice %5 {offsets = [160, 0], sizes = [32, 32], strides = [1, 1]} : vector<256x32xf32> to vector<32x32xf32>
    %cst_53 = arith.constant dense<0.000000e+00> : vector<32x32xf32>
    %151 = tpu.matmul %149, %16, %cst_53 {dimension_numbers = #tpu.dot_dimension_numbers<[1], [0], [0], [1], [0, 0, 1, 1], [], []>} : vector<32x32xf32>, vector<32x32xf32>, vector<32x32xf32> -> vector<32x32xf32>
    %152 = arith.addf %150, %151 : vector<32x32xf32>
    %153 = arith.negf %152 : vector<32x32xf32>
    %154 = math.exp %153 : vector<32x32xf32>
    %cst_54 = arith.constant 1.000000e+00 : f32
    %155 = vector.broadcast %cst_54 : f32 to vector<32x32xf32>
    %156 = arith.addf %155, %154 : vector<32x32xf32>
    %157 = arith.divf %155, %156 : vector<32x32xf32>
    %158 = vector.extract_strided_slice %10 {offsets = [160, 0], sizes = [32, 32], strides = [1, 1]} : vector<256x32xf32> to vector<32x32xf32>
    %cst_55 = arith.constant dense<0.000000e+00> : vector<32x32xf32>
    %159 = tpu.matmul %149, %17, %cst_55 {dimension_numbers = #tpu.dot_dimension_numbers<[1], [0], [0], [1], [0, 0, 1, 1], [], []>} : vector<32x32xf32>, vector<32x32xf32>, vector<32x32xf32> -> vector<32x32xf32>
    %160 = arith.addf %158, %159 : vector<32x32xf32>
    %161 = arith.negf %160 : vector<32x32xf32>
    %162 = math.exp %161 : vector<32x32xf32>
    %cst_56 = arith.constant 1.000000e+00 : f32
    %163 = vector.broadcast %cst_56 : f32 to vector<32x32xf32>
    %164 = arith.addf %163, %162 : vector<32x32xf32>
    %165 = arith.divf %163, %164 : vector<32x32xf32>
    %166 = vector.extract_strided_slice %15 {offsets = [160, 0], sizes = [32, 32], strides = [1, 1]} : vector<256x32xf32> to vector<32x32xf32>
    %167 = arith.mulf %157, %149 : vector<32x32xf32>
    %cst_57 = arith.constant dense<0.000000e+00> : vector<32x32xf32>
    %168 = tpu.matmul %167, %18, %cst_57 {dimension_numbers = #tpu.dot_dimension_numbers<[1], [0], [0], [1], [0, 0, 1, 1], [], []>} : vector<32x32xf32>, vector<32x32xf32>, vector<32x32xf32> -> vector<32x32xf32>
    %169 = arith.addf %166, %168 : vector<32x32xf32>
    %170 = math.tanh %169 : vector<32x32xf32>
    %171 = arith.mulf %165, %149 : vector<32x32xf32>
    %cst_58 = arith.constant 1.000000e+00 : f32
    %172 = vector.broadcast %cst_58 : f32 to vector<32x32xf32>
    %173 = arith.subf %172, %165 : vector<32x32xf32>
    %174 = arith.mulf %173, %170 : vector<32x32xf32>
    %175 = arith.addf %171, %174 : vector<32x32xf32>
    %176 = vector.extract_strided_slice %5 {offsets = [192, 0], sizes = [32, 32], strides = [1, 1]} : vector<256x32xf32> to vector<32x32xf32>
    %cst_59 = arith.constant dense<0.000000e+00> : vector<32x32xf32>
    %177 = tpu.matmul %175, %16, %cst_59 {dimension_numbers = #tpu.dot_dimension_numbers<[1], [0], [0], [1], [0, 0, 1, 1], [], []>} : vector<32x32xf32>, vector<32x32xf32>, vector<32x32xf32> -> vector<32x32xf32>
    %178 = arith.addf %176, %177 : vector<32x32xf32>
    %179 = arith.negf %178 : vector<32x32xf32>
    %180 = math.exp %179 : vector<32x32xf32>
    %cst_60 = arith.constant 1.000000e+00 : f32
    %181 = vector.broadcast %cst_60 : f32 to vector<32x32xf32>
    %182 = arith.addf %181, %180 : vector<32x32xf32>
    %183 = arith.divf %181, %182 : vector<32x32xf32>
    %184 = vector.extract_strided_slice %10 {offsets = [192, 0], sizes = [32, 32], strides = [1, 1]} : vector<256x32xf32> to vector<32x32xf32>
    %cst_61 = arith.constant dense<0.000000e+00> : vector<32x32xf32>
    %185 = tpu.matmul %175, %17, %cst_61 {dimension_numbers = #tpu.dot_dimension_numbers<[1], [0], [0], [1], [0, 0, 1, 1], [], []>} : vector<32x32xf32>, vector<32x32xf32>, vector<32x32xf32> -> vector<32x32xf32>
    %186 = arith.addf %184, %185 : vector<32x32xf32>
    %187 = arith.negf %186 : vector<32x32xf32>
    %188 = math.exp %187 : vector<32x32xf32>
    %cst_62 = arith.constant 1.000000e+00 : f32
    %189 = vector.broadcast %cst_62 : f32 to vector<32x32xf32>
    %190 = arith.addf %189, %188 : vector<32x32xf32>
    %191 = arith.divf %189, %190 : vector<32x32xf32>
    %192 = vector.extract_strided_slice %15 {offsets = [192, 0], sizes = [32, 32], strides = [1, 1]} : vector<256x32xf32> to vector<32x32xf32>
    %193 = arith.mulf %183, %175 : vector<32x32xf32>
    %cst_63 = arith.constant dense<0.000000e+00> : vector<32x32xf32>
    %194 = tpu.matmul %193, %18, %cst_63 {dimension_numbers = #tpu.dot_dimension_numbers<[1], [0], [0], [1], [0, 0, 1, 1], [], []>} : vector<32x32xf32>, vector<32x32xf32>, vector<32x32xf32> -> vector<32x32xf32>
    %195 = arith.addf %192, %194 : vector<32x32xf32>
    %196 = math.tanh %195 : vector<32x32xf32>
    %197 = arith.mulf %191, %175 : vector<32x32xf32>
    %cst_64 = arith.constant 1.000000e+00 : f32
    %198 = vector.broadcast %cst_64 : f32 to vector<32x32xf32>
    %199 = arith.subf %198, %191 : vector<32x32xf32>
    %200 = arith.mulf %199, %196 : vector<32x32xf32>
    %201 = arith.addf %197, %200 : vector<32x32xf32>
    %202 = vector.extract_strided_slice %5 {offsets = [224, 0], sizes = [32, 32], strides = [1, 1]} : vector<256x32xf32> to vector<32x32xf32>
    %cst_65 = arith.constant dense<0.000000e+00> : vector<32x32xf32>
    %203 = tpu.matmul %201, %16, %cst_65 {dimension_numbers = #tpu.dot_dimension_numbers<[1], [0], [0], [1], [0, 0, 1, 1], [], []>} : vector<32x32xf32>, vector<32x32xf32>, vector<32x32xf32> -> vector<32x32xf32>
    %204 = arith.addf %202, %203 : vector<32x32xf32>
    %205 = arith.negf %204 : vector<32x32xf32>
    %206 = math.exp %205 : vector<32x32xf32>
    %cst_66 = arith.constant 1.000000e+00 : f32
    %207 = vector.broadcast %cst_66 : f32 to vector<32x32xf32>
    %208 = arith.addf %207, %206 : vector<32x32xf32>
    %209 = arith.divf %207, %208 : vector<32x32xf32>
    %210 = vector.extract_strided_slice %10 {offsets = [224, 0], sizes = [32, 32], strides = [1, 1]} : vector<256x32xf32> to vector<32x32xf32>
    %cst_67 = arith.constant dense<0.000000e+00> : vector<32x32xf32>
    %211 = tpu.matmul %201, %17, %cst_67 {dimension_numbers = #tpu.dot_dimension_numbers<[1], [0], [0], [1], [0, 0, 1, 1], [], []>} : vector<32x32xf32>, vector<32x32xf32>, vector<32x32xf32> -> vector<32x32xf32>
    %212 = arith.addf %210, %211 : vector<32x32xf32>
    %213 = arith.negf %212 : vector<32x32xf32>
    %214 = math.exp %213 : vector<32x32xf32>
    %cst_68 = arith.constant 1.000000e+00 : f32
    %215 = vector.broadcast %cst_68 : f32 to vector<32x32xf32>
    %216 = arith.addf %215, %214 : vector<32x32xf32>
    %217 = arith.divf %215, %216 : vector<32x32xf32>
    %218 = vector.extract_strided_slice %15 {offsets = [224, 0], sizes = [32, 32], strides = [1, 1]} : vector<256x32xf32> to vector<32x32xf32>
    %219 = arith.mulf %209, %201 : vector<32x32xf32>
    %cst_69 = arith.constant dense<0.000000e+00> : vector<32x32xf32>
    %220 = tpu.matmul %219, %18, %cst_69 {dimension_numbers = #tpu.dot_dimension_numbers<[1], [0], [0], [1], [0, 0, 1, 1], [], []>} : vector<32x32xf32>, vector<32x32xf32>, vector<32x32xf32> -> vector<32x32xf32>
    %221 = arith.addf %218, %220 : vector<32x32xf32>
    %222 = math.tanh %221 : vector<32x32xf32>
    %223 = arith.mulf %217, %201 : vector<32x32xf32>
    %cst_70 = arith.constant 1.000000e+00 : f32
    %224 = vector.broadcast %cst_70 : f32 to vector<32x32xf32>
    %225 = arith.subf %224, %217 : vector<32x32xf32>
    %226 = arith.mulf %225, %222 : vector<32x32xf32>
    %227 = arith.addf %223, %226 : vector<32x32xf32>
    %228 = tpu.concatenate %45, %71, %97, %123, %149, %175, %201, %227 in 0 : vector<32x32xf32>, vector<32x32xf32>, vector<32x32xf32>, vector<32x32xf32>, vector<32x32xf32>, vector<32x32xf32>, vector<32x32xf32>, vector<32x32xf32> -> vector<256x32xf32>
    %c0_71 = arith.constant 0 : index
    %c0_72 = arith.constant 0 : index
    %229 = vector.load %arg13[%c0_71, %c0_72] : memref<32x32xf32, #tpu.memory_space<vmem>>, vector<32x32xf32>
    %cst_73 = arith.constant dense<0.000000e+00> : vector<256x32xf32>
    %230 = tpu.matmul %228, %229, %cst_73 {dimension_numbers = #tpu.dot_dimension_numbers<[1], [0], [0], [1], [0, 0, 1, 1], [], []>} : vector<256x32xf32>, vector<32x32xf32>, vector<256x32xf32> -> vector<256x32xf32>
    %c0_74 = arith.constant 0 : index
    %c0_75 = arith.constant 0 : index
    %231 = vector.load %arg15[%c0_74, %c0_75] : memref<1x32xf32, #tpu.memory_space<vmem>>, vector<1x32xf32>
    %232 = vector.broadcast %231 : vector<1x32xf32> to vector<256x32xf32>
    %233 = arith.addf %230, %232 : vector<256x32xf32>
    %c0_76 = arith.constant 0 : index
    %c0_77 = arith.constant 0 : index
    %234 = vector.load %arg16[%c0_76, %c0_77] : memref<32x32xf32, #tpu.memory_space<vmem>>, vector<32x32xf32>
    %cst_78 = arith.constant dense<0.000000e+00> : vector<256x32xf32>
    %235 = tpu.matmul %228, %234, %cst_78 {dimension_numbers = #tpu.dot_dimension_numbers<[1], [0], [0], [1], [0, 0, 1, 1], [], []>} : vector<256x32xf32>, vector<32x32xf32>, vector<256x32xf32> -> vector<256x32xf32>
    %c0_79 = arith.constant 0 : index
    %c0_80 = arith.constant 0 : index
    %236 = vector.load %arg18[%c0_79, %c0_80] : memref<1x32xf32, #tpu.memory_space<vmem>>, vector<1x32xf32>
    %237 = vector.broadcast %236 : vector<1x32xf32> to vector<256x32xf32>
    %238 = arith.addf %235, %237 : vector<256x32xf32>
    %c0_81 = arith.constant 0 : index
    %c0_82 = arith.constant 0 : index
    %239 = vector.load %arg19[%c0_81, %c0_82] : memref<32x32xf32, #tpu.memory_space<vmem>>, vector<32x32xf32>
    %cst_83 = arith.constant dense<0.000000e+00> : vector<256x32xf32>
    %240 = tpu.matmul %228, %239, %cst_83 {dimension_numbers = #tpu.dot_dimension_numbers<[1], [0], [0], [1], [0, 0, 1, 1], [], []>} : vector<256x32xf32>, vector<32x32xf32>, vector<256x32xf32> -> vector<256x32xf32>
    %c0_84 = arith.constant 0 : index
    %c0_85 = arith.constant 0 : index
    %241 = vector.load %arg21[%c0_84, %c0_85] : memref<1x32xf32, #tpu.memory_space<vmem>>, vector<1x32xf32>
    %242 = vector.broadcast %241 : vector<1x32xf32> to vector<256x32xf32>
    %243 = arith.addf %240, %242 : vector<256x32xf32>
    %c0_86 = arith.constant 0 : index
    %c0_87 = arith.constant 0 : index
    %244 = vector.load %arg14[%c0_86, %c0_87] : memref<32x32xf32, #tpu.memory_space<vmem>>, vector<32x32xf32>
    %c0_88 = arith.constant 0 : index
    %c0_89 = arith.constant 0 : index
    %245 = vector.load %arg17[%c0_88, %c0_89] : memref<32x32xf32, #tpu.memory_space<vmem>>, vector<32x32xf32>
    %c0_90 = arith.constant 0 : index
    %c0_91 = arith.constant 0 : index
    %246 = vector.load %arg20[%c0_90, %c0_91] : memref<32x32xf32, #tpu.memory_space<vmem>>, vector<32x32xf32>
    %c0_92 = arith.constant 0 : index
    %c0_93 = arith.constant 0 : index
    %247 = vector.load %arg12[%c0_92, %c0_93] : memref<32x32xf32, #tpu.memory_space<vmem>>, vector<32x32xf32>
    %248 = vector.extract_strided_slice %233 {offsets = [0, 0], sizes = [32, 32], strides = [1, 1]} : vector<256x32xf32> to vector<32x32xf32>
    %cst_94 = arith.constant dense<0.000000e+00> : vector<32x32xf32>
    %249 = tpu.matmul %247, %244, %cst_94 {dimension_numbers = #tpu.dot_dimension_numbers<[1], [0], [0], [1], [0, 0, 1, 1], [], []>} : vector<32x32xf32>, vector<32x32xf32>, vector<32x32xf32> -> vector<32x32xf32>
    %250 = arith.addf %248, %249 : vector<32x32xf32>
    %251 = arith.negf %250 : vector<32x32xf32>
    %252 = math.exp %251 : vector<32x32xf32>
    %cst_95 = arith.constant 1.000000e+00 : f32
    %253 = vector.broadcast %cst_95 : f32 to vector<32x32xf32>
    %254 = arith.addf %253, %252 : vector<32x32xf32>
    %255 = arith.divf %253, %254 : vector<32x32xf32>
    %256 = vector.extract_strided_slice %238 {offsets = [0, 0], sizes = [32, 32], strides = [1, 1]} : vector<256x32xf32> to vector<32x32xf32>
    %cst_96 = arith.constant dense<0.000000e+00> : vector<32x32xf32>
    %257 = tpu.matmul %247, %245, %cst_96 {dimension_numbers = #tpu.dot_dimension_numbers<[1], [0], [0], [1], [0, 0, 1, 1], [], []>} : vector<32x32xf32>, vector<32x32xf32>, vector<32x32xf32> -> vector<32x32xf32>
    %258 = arith.addf %256, %257 : vector<32x32xf32>
    %259 = arith.negf %258 : vector<32x32xf32>
    %260 = math.exp %259 : vector<32x32xf32>
    %cst_97 = arith.constant 1.000000e+00 : f32
    %261 = vector.broadcast %cst_97 : f32 to vector<32x32xf32>
    %262 = arith.addf %261, %260 : vector<32x32xf32>
    %263 = arith.divf %261, %262 : vector<32x32xf32>
    %264 = vector.extract_strided_slice %243 {offsets = [0, 0], sizes = [32, 32], strides = [1, 1]} : vector<256x32xf32> to vector<32x32xf32>
    %265 = arith.mulf %255, %247 : vector<32x32xf32>
    %cst_98 = arith.constant dense<0.000000e+00> : vector<32x32xf32>
    %266 = tpu.matmul %265, %246, %cst_98 {dimension_numbers = #tpu.dot_dimension_numbers<[1], [0], [0], [1], [0, 0, 1, 1], [], []>} : vector<32x32xf32>, vector<32x32xf32>, vector<32x32xf32> -> vector<32x32xf32>
    %267 = arith.addf %264, %266 : vector<32x32xf32>
    %268 = math.tanh %267 : vector<32x32xf32>
    %269 = arith.mulf %263, %247 : vector<32x32xf32>
    %cst_99 = arith.constant 1.000000e+00 : f32
    %270 = vector.broadcast %cst_99 : f32 to vector<32x32xf32>
    %271 = arith.subf %270, %263 : vector<32x32xf32>
    %272 = arith.mulf %271, %268 : vector<32x32xf32>
    %273 = arith.addf %269, %272 : vector<32x32xf32>
    %274 = vector.extract_strided_slice %233 {offsets = [32, 0], sizes = [32, 32], strides = [1, 1]} : vector<256x32xf32> to vector<32x32xf32>
    %cst_100 = arith.constant dense<0.000000e+00> : vector<32x32xf32>
    %275 = tpu.matmul %273, %244, %cst_100 {dimension_numbers = #tpu.dot_dimension_numbers<[1], [0], [0], [1], [0, 0, 1, 1], [], []>} : vector<32x32xf32>, vector<32x32xf32>, vector<32x32xf32> -> vector<32x32xf32>
    %276 = arith.addf %274, %275 : vector<32x32xf32>
    %277 = arith.negf %276 : vector<32x32xf32>
    %278 = math.exp %277 : vector<32x32xf32>
    %cst_101 = arith.constant 1.000000e+00 : f32
    %279 = vector.broadcast %cst_101 : f32 to vector<32x32xf32>
    %280 = arith.addf %279, %278 : vector<32x32xf32>
    %281 = arith.divf %279, %280 : vector<32x32xf32>
    %282 = vector.extract_strided_slice %238 {offsets = [32, 0], sizes = [32, 32], strides = [1, 1]} : vector<256x32xf32> to vector<32x32xf32>
    %cst_102 = arith.constant dense<0.000000e+00> : vector<32x32xf32>
    %283 = tpu.matmul %273, %245, %cst_102 {dimension_numbers = #tpu.dot_dimension_numbers<[1], [0], [0], [1], [0, 0, 1, 1], [], []>} : vector<32x32xf32>, vector<32x32xf32>, vector<32x32xf32> -> vector<32x32xf32>
    %284 = arith.addf %282, %283 : vector<32x32xf32>
    %285 = arith.negf %284 : vector<32x32xf32>
    %286 = math.exp %285 : vector<32x32xf32>
    %cst_103 = arith.constant 1.000000e+00 : f32
    %287 = vector.broadcast %cst_103 : f32 to vector<32x32xf32>
    %288 = arith.addf %287, %286 : vector<32x32xf32>
    %289 = arith.divf %287, %288 : vector<32x32xf32>
    %290 = vector.extract_strided_slice %243 {offsets = [32, 0], sizes = [32, 32], strides = [1, 1]} : vector<256x32xf32> to vector<32x32xf32>
    %291 = arith.mulf %281, %273 : vector<32x32xf32>
    %cst_104 = arith.constant dense<0.000000e+00> : vector<32x32xf32>
    %292 = tpu.matmul %291, %246, %cst_104 {dimension_numbers = #tpu.dot_dimension_numbers<[1], [0], [0], [1], [0, 0, 1, 1], [], []>} : vector<32x32xf32>, vector<32x32xf32>, vector<32x32xf32> -> vector<32x32xf32>
    %293 = arith.addf %290, %292 : vector<32x32xf32>
    %294 = math.tanh %293 : vector<32x32xf32>
    %295 = arith.mulf %289, %273 : vector<32x32xf32>
    %cst_105 = arith.constant 1.000000e+00 : f32
    %296 = vector.broadcast %cst_105 : f32 to vector<32x32xf32>
    %297 = arith.subf %296, %289 : vector<32x32xf32>
    %298 = arith.mulf %297, %294 : vector<32x32xf32>
    %299 = arith.addf %295, %298 : vector<32x32xf32>
    %300 = vector.extract_strided_slice %233 {offsets = [64, 0], sizes = [32, 32], strides = [1, 1]} : vector<256x32xf32> to vector<32x32xf32>
    %cst_106 = arith.constant dense<0.000000e+00> : vector<32x32xf32>
    %301 = tpu.matmul %299, %244, %cst_106 {dimension_numbers = #tpu.dot_dimension_numbers<[1], [0], [0], [1], [0, 0, 1, 1], [], []>} : vector<32x32xf32>, vector<32x32xf32>, vector<32x32xf32> -> vector<32x32xf32>
    %302 = arith.addf %300, %301 : vector<32x32xf32>
    %303 = arith.negf %302 : vector<32x32xf32>
    %304 = math.exp %303 : vector<32x32xf32>
    %cst_107 = arith.constant 1.000000e+00 : f32
    %305 = vector.broadcast %cst_107 : f32 to vector<32x32xf32>
    %306 = arith.addf %305, %304 : vector<32x32xf32>
    %307 = arith.divf %305, %306 : vector<32x32xf32>
    %308 = vector.extract_strided_slice %238 {offsets = [64, 0], sizes = [32, 32], strides = [1, 1]} : vector<256x32xf32> to vector<32x32xf32>
    %cst_108 = arith.constant dense<0.000000e+00> : vector<32x32xf32>
    %309 = tpu.matmul %299, %245, %cst_108 {dimension_numbers = #tpu.dot_dimension_numbers<[1], [0], [0], [1], [0, 0, 1, 1], [], []>} : vector<32x32xf32>, vector<32x32xf32>, vector<32x32xf32> -> vector<32x32xf32>
    %310 = arith.addf %308, %309 : vector<32x32xf32>
    %311 = arith.negf %310 : vector<32x32xf32>
    %312 = math.exp %311 : vector<32x32xf32>
    %cst_109 = arith.constant 1.000000e+00 : f32
    %313 = vector.broadcast %cst_109 : f32 to vector<32x32xf32>
    %314 = arith.addf %313, %312 : vector<32x32xf32>
    %315 = arith.divf %313, %314 : vector<32x32xf32>
    %316 = vector.extract_strided_slice %243 {offsets = [64, 0], sizes = [32, 32], strides = [1, 1]} : vector<256x32xf32> to vector<32x32xf32>
    %317 = arith.mulf %307, %299 : vector<32x32xf32>
    %cst_110 = arith.constant dense<0.000000e+00> : vector<32x32xf32>
    %318 = tpu.matmul %317, %246, %cst_110 {dimension_numbers = #tpu.dot_dimension_numbers<[1], [0], [0], [1], [0, 0, 1, 1], [], []>} : vector<32x32xf32>, vector<32x32xf32>, vector<32x32xf32> -> vector<32x32xf32>
    %319 = arith.addf %316, %318 : vector<32x32xf32>
    %320 = math.tanh %319 : vector<32x32xf32>
    %321 = arith.mulf %315, %299 : vector<32x32xf32>
    %cst_111 = arith.constant 1.000000e+00 : f32
    %322 = vector.broadcast %cst_111 : f32 to vector<32x32xf32>
    %323 = arith.subf %322, %315 : vector<32x32xf32>
    %324 = arith.mulf %323, %320 : vector<32x32xf32>
    %325 = arith.addf %321, %324 : vector<32x32xf32>
    %326 = vector.extract_strided_slice %233 {offsets = [96, 0], sizes = [32, 32], strides = [1, 1]} : vector<256x32xf32> to vector<32x32xf32>
    %cst_112 = arith.constant dense<0.000000e+00> : vector<32x32xf32>
    %327 = tpu.matmul %325, %244, %cst_112 {dimension_numbers = #tpu.dot_dimension_numbers<[1], [0], [0], [1], [0, 0, 1, 1], [], []>} : vector<32x32xf32>, vector<32x32xf32>, vector<32x32xf32> -> vector<32x32xf32>
    %328 = arith.addf %326, %327 : vector<32x32xf32>
    %329 = arith.negf %328 : vector<32x32xf32>
    %330 = math.exp %329 : vector<32x32xf32>
    %cst_113 = arith.constant 1.000000e+00 : f32
    %331 = vector.broadcast %cst_113 : f32 to vector<32x32xf32>
    %332 = arith.addf %331, %330 : vector<32x32xf32>
    %333 = arith.divf %331, %332 : vector<32x32xf32>
    %334 = vector.extract_strided_slice %238 {offsets = [96, 0], sizes = [32, 32], strides = [1, 1]} : vector<256x32xf32> to vector<32x32xf32>
    %cst_114 = arith.constant dense<0.000000e+00> : vector<32x32xf32>
    %335 = tpu.matmul %325, %245, %cst_114 {dimension_numbers = #tpu.dot_dimension_numbers<[1], [0], [0], [1], [0, 0, 1, 1], [], []>} : vector<32x32xf32>, vector<32x32xf32>, vector<32x32xf32> -> vector<32x32xf32>
    %336 = arith.addf %334, %335 : vector<32x32xf32>
    %337 = arith.negf %336 : vector<32x32xf32>
    %338 = math.exp %337 : vector<32x32xf32>
    %cst_115 = arith.constant 1.000000e+00 : f32
    %339 = vector.broadcast %cst_115 : f32 to vector<32x32xf32>
    %340 = arith.addf %339, %338 : vector<32x32xf32>
    %341 = arith.divf %339, %340 : vector<32x32xf32>
    %342 = vector.extract_strided_slice %243 {offsets = [96, 0], sizes = [32, 32], strides = [1, 1]} : vector<256x32xf32> to vector<32x32xf32>
    %343 = arith.mulf %333, %325 : vector<32x32xf32>
    %cst_116 = arith.constant dense<0.000000e+00> : vector<32x32xf32>
    %344 = tpu.matmul %343, %246, %cst_116 {dimension_numbers = #tpu.dot_dimension_numbers<[1], [0], [0], [1], [0, 0, 1, 1], [], []>} : vector<32x32xf32>, vector<32x32xf32>, vector<32x32xf32> -> vector<32x32xf32>
    %345 = arith.addf %342, %344 : vector<32x32xf32>
    %346 = math.tanh %345 : vector<32x32xf32>
    %347 = arith.mulf %341, %325 : vector<32x32xf32>
    %cst_117 = arith.constant 1.000000e+00 : f32
    %348 = vector.broadcast %cst_117 : f32 to vector<32x32xf32>
    %349 = arith.subf %348, %341 : vector<32x32xf32>
    %350 = arith.mulf %349, %346 : vector<32x32xf32>
    %351 = arith.addf %347, %350 : vector<32x32xf32>
    %352 = vector.extract_strided_slice %233 {offsets = [128, 0], sizes = [32, 32], strides = [1, 1]} : vector<256x32xf32> to vector<32x32xf32>
    %cst_118 = arith.constant dense<0.000000e+00> : vector<32x32xf32>
    %353 = tpu.matmul %351, %244, %cst_118 {dimension_numbers = #tpu.dot_dimension_numbers<[1], [0], [0], [1], [0, 0, 1, 1], [], []>} : vector<32x32xf32>, vector<32x32xf32>, vector<32x32xf32> -> vector<32x32xf32>
    %354 = arith.addf %352, %353 : vector<32x32xf32>
    %355 = arith.negf %354 : vector<32x32xf32>
    %356 = math.exp %355 : vector<32x32xf32>
    %cst_119 = arith.constant 1.000000e+00 : f32
    %357 = vector.broadcast %cst_119 : f32 to vector<32x32xf32>
    %358 = arith.addf %357, %356 : vector<32x32xf32>
    %359 = arith.divf %357, %358 : vector<32x32xf32>
    %360 = vector.extract_strided_slice %238 {offsets = [128, 0], sizes = [32, 32], strides = [1, 1]} : vector<256x32xf32> to vector<32x32xf32>
    %cst_120 = arith.constant dense<0.000000e+00> : vector<32x32xf32>
    %361 = tpu.matmul %351, %245, %cst_120 {dimension_numbers = #tpu.dot_dimension_numbers<[1], [0], [0], [1], [0, 0, 1, 1], [], []>} : vector<32x32xf32>, vector<32x32xf32>, vector<32x32xf32> -> vector<32x32xf32>
    %362 = arith.addf %360, %361 : vector<32x32xf32>
    %363 = arith.negf %362 : vector<32x32xf32>
    %364 = math.exp %363 : vector<32x32xf32>
    %cst_121 = arith.constant 1.000000e+00 : f32
    %365 = vector.broadcast %cst_121 : f32 to vector<32x32xf32>
    %366 = arith.addf %365, %364 : vector<32x32xf32>
    %367 = arith.divf %365, %366 : vector<32x32xf32>
    %368 = vector.extract_strided_slice %243 {offsets = [128, 0], sizes = [32, 32], strides = [1, 1]} : vector<256x32xf32> to vector<32x32xf32>
    %369 = arith.mulf %359, %351 : vector<32x32xf32>
    %cst_122 = arith.constant dense<0.000000e+00> : vector<32x32xf32>
    %370 = tpu.matmul %369, %246, %cst_122 {dimension_numbers = #tpu.dot_dimension_numbers<[1], [0], [0], [1], [0, 0, 1, 1], [], []>} : vector<32x32xf32>, vector<32x32xf32>, vector<32x32xf32> -> vector<32x32xf32>
    %371 = arith.addf %368, %370 : vector<32x32xf32>
    %372 = math.tanh %371 : vector<32x32xf32>
    %373 = arith.mulf %367, %351 : vector<32x32xf32>
    %cst_123 = arith.constant 1.000000e+00 : f32
    %374 = vector.broadcast %cst_123 : f32 to vector<32x32xf32>
    %375 = arith.subf %374, %367 : vector<32x32xf32>
    %376 = arith.mulf %375, %372 : vector<32x32xf32>
    %377 = arith.addf %373, %376 : vector<32x32xf32>
    %378 = vector.extract_strided_slice %233 {offsets = [160, 0], sizes = [32, 32], strides = [1, 1]} : vector<256x32xf32> to vector<32x32xf32>
    %cst_124 = arith.constant dense<0.000000e+00> : vector<32x32xf32>
    %379 = tpu.matmul %377, %244, %cst_124 {dimension_numbers = #tpu.dot_dimension_numbers<[1], [0], [0], [1], [0, 0, 1, 1], [], []>} : vector<32x32xf32>, vector<32x32xf32>, vector<32x32xf32> -> vector<32x32xf32>
    %380 = arith.addf %378, %379 : vector<32x32xf32>
    %381 = arith.negf %380 : vector<32x32xf32>
    %382 = math.exp %381 : vector<32x32xf32>
    %cst_125 = arith.constant 1.000000e+00 : f32
    %383 = vector.broadcast %cst_125 : f32 to vector<32x32xf32>
    %384 = arith.addf %383, %382 : vector<32x32xf32>
    %385 = arith.divf %383, %384 : vector<32x32xf32>
    %386 = vector.extract_strided_slice %238 {offsets = [160, 0], sizes = [32, 32], strides = [1, 1]} : vector<256x32xf32> to vector<32x32xf32>
    %cst_126 = arith.constant dense<0.000000e+00> : vector<32x32xf32>
    %387 = tpu.matmul %377, %245, %cst_126 {dimension_numbers = #tpu.dot_dimension_numbers<[1], [0], [0], [1], [0, 0, 1, 1], [], []>} : vector<32x32xf32>, vector<32x32xf32>, vector<32x32xf32> -> vector<32x32xf32>
    %388 = arith.addf %386, %387 : vector<32x32xf32>
    %389 = arith.negf %388 : vector<32x32xf32>
    %390 = math.exp %389 : vector<32x32xf32>
    %cst_127 = arith.constant 1.000000e+00 : f32
    %391 = vector.broadcast %cst_127 : f32 to vector<32x32xf32>
    %392 = arith.addf %391, %390 : vector<32x32xf32>
    %393 = arith.divf %391, %392 : vector<32x32xf32>
    %394 = vector.extract_strided_slice %243 {offsets = [160, 0], sizes = [32, 32], strides = [1, 1]} : vector<256x32xf32> to vector<32x32xf32>
    %395 = arith.mulf %385, %377 : vector<32x32xf32>
    %cst_128 = arith.constant dense<0.000000e+00> : vector<32x32xf32>
    %396 = tpu.matmul %395, %246, %cst_128 {dimension_numbers = #tpu.dot_dimension_numbers<[1], [0], [0], [1], [0, 0, 1, 1], [], []>} : vector<32x32xf32>, vector<32x32xf32>, vector<32x32xf32> -> vector<32x32xf32>
    %397 = arith.addf %394, %396 : vector<32x32xf32>
    %398 = math.tanh %397 : vector<32x32xf32>
    %399 = arith.mulf %393, %377 : vector<32x32xf32>
    %cst_129 = arith.constant 1.000000e+00 : f32
    %400 = vector.broadcast %cst_129 : f32 to vector<32x32xf32>
    %401 = arith.subf %400, %393 : vector<32x32xf32>
    %402 = arith.mulf %401, %398 : vector<32x32xf32>
    %403 = arith.addf %399, %402 : vector<32x32xf32>
    %404 = vector.extract_strided_slice %233 {offsets = [192, 0], sizes = [32, 32], strides = [1, 1]} : vector<256x32xf32> to vector<32x32xf32>
    %cst_130 = arith.constant dense<0.000000e+00> : vector<32x32xf32>
    %405 = tpu.matmul %403, %244, %cst_130 {dimension_numbers = #tpu.dot_dimension_numbers<[1], [0], [0], [1], [0, 0, 1, 1], [], []>} : vector<32x32xf32>, vector<32x32xf32>, vector<32x32xf32> -> vector<32x32xf32>
    %406 = arith.addf %404, %405 : vector<32x32xf32>
    %407 = arith.negf %406 : vector<32x32xf32>
    %408 = math.exp %407 : vector<32x32xf32>
    %cst_131 = arith.constant 1.000000e+00 : f32
    %409 = vector.broadcast %cst_131 : f32 to vector<32x32xf32>
    %410 = arith.addf %409, %408 : vector<32x32xf32>
    %411 = arith.divf %409, %410 : vector<32x32xf32>
    %412 = vector.extract_strided_slice %238 {offsets = [192, 0], sizes = [32, 32], strides = [1, 1]} : vector<256x32xf32> to vector<32x32xf32>
    %cst_132 = arith.constant dense<0.000000e+00> : vector<32x32xf32>
    %413 = tpu.matmul %403, %245, %cst_132 {dimension_numbers = #tpu.dot_dimension_numbers<[1], [0], [0], [1], [0, 0, 1, 1], [], []>} : vector<32x32xf32>, vector<32x32xf32>, vector<32x32xf32> -> vector<32x32xf32>
    %414 = arith.addf %412, %413 : vector<32x32xf32>
    %415 = arith.negf %414 : vector<32x32xf32>
    %416 = math.exp %415 : vector<32x32xf32>
    %cst_133 = arith.constant 1.000000e+00 : f32
    %417 = vector.broadcast %cst_133 : f32 to vector<32x32xf32>
    %418 = arith.addf %417, %416 : vector<32x32xf32>
    %419 = arith.divf %417, %418 : vector<32x32xf32>
    %420 = vector.extract_strided_slice %243 {offsets = [192, 0], sizes = [32, 32], strides = [1, 1]} : vector<256x32xf32> to vector<32x32xf32>
    %421 = arith.mulf %411, %403 : vector<32x32xf32>
    %cst_134 = arith.constant dense<0.000000e+00> : vector<32x32xf32>
    %422 = tpu.matmul %421, %246, %cst_134 {dimension_numbers = #tpu.dot_dimension_numbers<[1], [0], [0], [1], [0, 0, 1, 1], [], []>} : vector<32x32xf32>, vector<32x32xf32>, vector<32x32xf32> -> vector<32x32xf32>
    %423 = arith.addf %420, %422 : vector<32x32xf32>
    %424 = math.tanh %423 : vector<32x32xf32>
    %425 = arith.mulf %419, %403 : vector<32x32xf32>
    %cst_135 = arith.constant 1.000000e+00 : f32
    %426 = vector.broadcast %cst_135 : f32 to vector<32x32xf32>
    %427 = arith.subf %426, %419 : vector<32x32xf32>
    %428 = arith.mulf %427, %424 : vector<32x32xf32>
    %429 = arith.addf %425, %428 : vector<32x32xf32>
    %430 = vector.extract_strided_slice %233 {offsets = [224, 0], sizes = [32, 32], strides = [1, 1]} : vector<256x32xf32> to vector<32x32xf32>
    %cst_136 = arith.constant dense<0.000000e+00> : vector<32x32xf32>
    %431 = tpu.matmul %429, %244, %cst_136 {dimension_numbers = #tpu.dot_dimension_numbers<[1], [0], [0], [1], [0, 0, 1, 1], [], []>} : vector<32x32xf32>, vector<32x32xf32>, vector<32x32xf32> -> vector<32x32xf32>
    %432 = arith.addf %430, %431 : vector<32x32xf32>
    %433 = arith.negf %432 : vector<32x32xf32>
    %434 = math.exp %433 : vector<32x32xf32>
    %cst_137 = arith.constant 1.000000e+00 : f32
    %435 = vector.broadcast %cst_137 : f32 to vector<32x32xf32>
    %436 = arith.addf %435, %434 : vector<32x32xf32>
    %437 = arith.divf %435, %436 : vector<32x32xf32>
    %438 = vector.extract_strided_slice %238 {offsets = [224, 0], sizes = [32, 32], strides = [1, 1]} : vector<256x32xf32> to vector<32x32xf32>
    %cst_138 = arith.constant dense<0.000000e+00> : vector<32x32xf32>
    %439 = tpu.matmul %429, %245, %cst_138 {dimension_numbers = #tpu.dot_dimension_numbers<[1], [0], [0], [1], [0, 0, 1, 1], [], []>} : vector<32x32xf32>, vector<32x32xf32>, vector<32x32xf32> -> vector<32x32xf32>
    %440 = arith.addf %438, %439 : vector<32x32xf32>
    %441 = arith.negf %440 : vector<32x32xf32>
    %442 = math.exp %441 : vector<32x32xf32>
    %cst_139 = arith.constant 1.000000e+00 : f32
    %443 = vector.broadcast %cst_139 : f32 to vector<32x32xf32>
    %444 = arith.addf %443, %442 : vector<32x32xf32>
    %445 = arith.divf %443, %444 : vector<32x32xf32>
    %446 = vector.extract_strided_slice %243 {offsets = [224, 0], sizes = [32, 32], strides = [1, 1]} : vector<256x32xf32> to vector<32x32xf32>
    %447 = arith.mulf %437, %429 : vector<32x32xf32>
    %cst_140 = arith.constant dense<0.000000e+00> : vector<32x32xf32>
    %448 = tpu.matmul %447, %246, %cst_140 {dimension_numbers = #tpu.dot_dimension_numbers<[1], [0], [0], [1], [0, 0, 1, 1], [], []>} : vector<32x32xf32>, vector<32x32xf32>, vector<32x32xf32> -> vector<32x32xf32>
    %449 = arith.addf %446, %448 : vector<32x32xf32>
    %450 = math.tanh %449 : vector<32x32xf32>
    %451 = arith.mulf %445, %429 : vector<32x32xf32>
    %cst_141 = arith.constant 1.000000e+00 : f32
    %452 = vector.broadcast %cst_141 : f32 to vector<32x32xf32>
    %453 = arith.subf %452, %445 : vector<32x32xf32>
    %454 = arith.mulf %453, %450 : vector<32x32xf32>
    %455 = arith.addf %451, %454 : vector<32x32xf32>
    %456 = tpu.concatenate %273, %299, %325, %351, %377, %403, %429, %455 in 0 : vector<32x32xf32>, vector<32x32xf32>, vector<32x32xf32>, vector<32x32xf32>, vector<32x32xf32>, vector<32x32xf32>, vector<32x32xf32>, vector<32x32xf32> -> vector<256x32xf32>
    %c0_142 = arith.constant 0 : index
    %c0_143 = arith.constant 0 : index
    %457 = vector.load %arg22[%c0_142, %c0_143] : memref<32x2xf32, #tpu.memory_space<vmem>>, vector<32x2xf32>
    %cst_144 = arith.constant dense<0.000000e+00> : vector<256x2xf32>
    %458 = tpu.matmul %456, %457, %cst_144 {dimension_numbers = #tpu.dot_dimension_numbers<[1], [0], [0], [1], [0, 0, 1, 1], [], []>} : vector<256x32xf32>, vector<32x2xf32>, vector<256x2xf32> -> vector<256x2xf32>
    %c0_145 = arith.constant 0 : index
    %c0_146 = arith.constant 0 : index
    %459 = vector.load %arg23[%c0_145, %c0_146] : memref<1x2xf32, #tpu.memory_space<vmem>>, vector<1x2xf32>
    %460 = vector.broadcast %459 : vector<1x2xf32> to vector<256x2xf32>
    %461 = arith.addf %458, %460 : vector<256x2xf32>
    %c0_147 = arith.constant 0 : index
    %c0_148 = arith.constant 0 : index
    %462 = vector.load %arg24[%c0_147, %c0_148] : memref<256x2xf32, #tpu.memory_space<vmem>>, vector<256x2xf32>
    tpu.vector_store %arg24[%c0_147, %c0_148], %461 {strides = array<i32>} : memref<256x2xf32, #tpu.memory_space<vmem>>, vector<256x2xf32>,
    return
  }
  func.func @transform_0(%arg0: i32) -> (i32, i32) {
    %c0_i32 = arith.constant 0 : i32
    %c0_i32_0 = arith.constant 0 : i32
    %c0_i32_1 = arith.constant 0 : i32
    return %c0_i32, %c0_i32_0 : i32, i32
  }
  func.func @transform_1(%arg0: i32) -> (i32, i32) {
    %c0_i32 = arith.constant 0 : i32
    %c0_i32_0 = arith.constant 0 : i32
    %c0_i32_1 = arith.constant 0 : i32
    return %c0_i32, %c0_i32_0 : i32, i32
  }
  func.func @transform_2(%arg0: i32) -> (i32, i32) {
    %c0_i32 = arith.constant 0 : i32
    %c0_i32_0 = arith.constant 0 : i32
    %c0_i32_1 = arith.constant 0 : i32
    return %c0_i32, %c0_i32_0 : i32, i32
  }
  func.func @transform_3(%arg0: i32) -> (i32, i32) {
    %c0_i32 = arith.constant 0 : i32
    %c0_i32_0 = arith.constant 0 : i32
    %c0_i32_1 = arith.constant 0 : i32
    return %c0_i32, %c0_i32_0 : i32, i32
  }
  func.func @transform_4(%arg0: i32) -> (i32, i32) {
    %c0_i32 = arith.constant 0 : i32
    %c0_i32_0 = arith.constant 0 : i32
    %c0_i32_1 = arith.constant 0 : i32
    return %c0_i32, %c0_i32_0 : i32, i32
  }
  func.func @transform_5(%arg0: i32) -> (i32, i32) {
    %c0_i32 = arith.constant 0 : i32
    %c0_i32_0 = arith.constant 0 : i32
    %c0_i32_1 = arith.constant 0 : i32
    return %c0_i32, %c0_i32_0 : i32, i32
  }
  func.func @transform_6(%arg0: i32) -> (i32, i32) {
    %c0_i32 = arith.constant 0 : i32
    %c0_i32_0 = arith.constant 0 : i32
    %c0_i32_1 = arith.constant 0 : i32
    return %c0_i32, %c0_i32_0 : i32, i32
  }
  func.func @transform_7(%arg0: i32) -> (i32, i32) {
    %c0_i32 = arith.constant 0 : i32
    %c0_i32_0 = arith.constant 0 : i32
    %c0_i32_1 = arith.constant 0 : i32
    return %c0_i32, %c0_i32_0 : i32, i32
  }
  func.func @transform_8(%arg0: i32) -> (i32, i32) {
    %c0_i32 = arith.constant 0 : i32
    %c0_i32_0 = arith.constant 0 : i32
    %c0_i32_1 = arith.constant 0 : i32
    return %c0_i32, %c0_i32_0 : i32, i32
  }
  func.func @transform_9(%arg0: i32) -> (i32, i32) {
    %c0_i32 = arith.constant 0 : i32
    %c0_i32_0 = arith.constant 0 : i32
    %c0_i32_1 = arith.constant 0 : i32
    return %c0_i32, %c0_i32_0 : i32, i32
  }
  func.func @transform_10(%arg0: i32) -> (i32, i32) {
    %c0_i32 = arith.constant 0 : i32
    %c0_i32_0 = arith.constant 0 : i32
    %c0_i32_1 = arith.constant 0 : i32
    return %c0_i32, %c0_i32_0 : i32, i32
  }
  func.func @transform_11(%arg0: i32) -> (i32, i32) {
    %c0_i32 = arith.constant 0 : i32
    %c0_i32_0 = arith.constant 0 : i32
    %c0_i32_1 = arith.constant 0 : i32
    return %c0_i32, %c0_i32_0 : i32, i32
  }
  func.func @transform_12(%arg0: i32) -> (i32, i32) {
    %c0_i32 = arith.constant 0 : i32
    %c0_i32_0 = arith.constant 0 : i32
    %c0_i32_1 = arith.constant 0 : i32
    return %c0_i32, %c0_i32_0 : i32, i32
  }
  func.func @transform_13(%arg0: i32) -> (i32, i32) {
    %c0_i32 = arith.constant 0 : i32
    %c0_i32_0 = arith.constant 0 : i32
    %c0_i32_1 = arith.constant 0 : i32
    return %c0_i32, %c0_i32_0 : i32, i32
  }
  func.func @transform_14(%arg0: i32) -> (i32, i32) {
    %c0_i32 = arith.constant 0 : i32
    %c0_i32_0 = arith.constant 0 : i32
    %c0_i32_1 = arith.constant 0 : i32
    return %c0_i32, %c0_i32_0 : i32, i32
  }
  func.func @transform_15(%arg0: i32) -> (i32, i32) {
    %c0_i32 = arith.constant 0 : i32
    %c0_i32_0 = arith.constant 0 : i32
    %c0_i32_1 = arith.constant 0 : i32
    return %c0_i32, %c0_i32_0 : i32, i32
  }
  func.func @transform_16(%arg0: i32) -> (i32, i32) {
    %c0_i32 = arith.constant 0 : i32
    %c0_i32_0 = arith.constant 0 : i32
    %c0_i32_1 = arith.constant 0 : i32
    return %c0_i32, %c0_i32_0 : i32, i32
  }
  func.func @transform_17(%arg0: i32) -> (i32, i32) {
    %c0_i32 = arith.constant 0 : i32
    %c0_i32_0 = arith.constant 0 : i32
    %c0_i32_1 = arith.constant 0 : i32
    return %c0_i32, %c0_i32_0 : i32, i32
  }
  func.func @transform_18(%arg0: i32) -> (i32, i32) {
    %c0_i32 = arith.constant 0 : i32
    %c0_i32_0 = arith.constant 0 : i32
    %c0_i32_1 = arith.constant 0 : i32
    return %c0_i32, %c0_i32_0 : i32, i32
  }
  func.func @transform_19(%arg0: i32) -> (i32, i32) {
    %c0_i32 = arith.constant 0 : i32
    %c0_i32_0 = arith.constant 0 : i32
    %c0_i32_1 = arith.constant 0 : i32
    return %c0_i32, %c0_i32_0 : i32, i32
  }
  func.func @transform_20(%arg0: i32) -> (i32, i32) {
    %c0_i32 = arith.constant 0 : i32
    %c0_i32_0 = arith.constant 0 : i32
    %c0_i32_1 = arith.constant 0 : i32
    return %c0_i32, %c0_i32_0 : i32, i32
  }
  func.func @transform_21(%arg0: i32) -> (i32, i32) {
    %c0_i32 = arith.constant 0 : i32
    %c0_i32_0 = arith.constant 0 : i32
    %c0_i32_1 = arith.constant 0 : i32
    return %c0_i32, %c0_i32_0 : i32, i32
  }
  func.func @transform_22(%arg0: i32) -> (i32, i32) {
    %c0_i32 = arith.constant 0 : i32
    %c0_i32_0 = arith.constant 0 : i32
    %c0_i32_1 = arith.constant 0 : i32
    return %c0_i32, %c0_i32_0 : i32, i32
  }
  func.func @transform_23(%arg0: i32) -> (i32, i32) {
    %c0_i32 = arith.constant 0 : i32
    %c0_i32_0 = arith.constant 0 : i32
    %c0_i32_1 = arith.constant 0 : i32
    return %c0_i32, %c0_i32_0 : i32, i32
  }
}

</mosaic_0001>

<bundles_post_ra>
// kernel: tpu_custom_call.1
= control target key start
LH: loop header
LB: loop body
LE: loop exit
PB: predicated region body
PF: predicated region fallthrough
CT: control target
= control target key end

     0   :  { %s10579_s0 = inlined_call_operand.vmem [shape: f32[256,4], index: 0, kind: input, shape index: {}]   ;;  %s10580_s1 = inlined_call_operand.vmem [shape: f32[32,32], index: 1, kind: input, shape index: {}]   ;;  %s10581_s2 = inlined_call_operand.hbm [shape: f32[4,32], index: 2, kind: input, shape index: {}]   ;;  %s10582_s3 = inlined_call_operand.vmem [shape: f32[32,32], index: 3, kind: input, shape index: {}]   ;;  %s10583_s4 = inlined_call_operand.vmem [shape: f32[1,32], index: 4, kind: input, shape index: {}]   ;;  %s10584_s5 = inlined_call_operand.hbm [shape: f32[4,32], index: 5, kind: input, shape index: {}]   ;;  %s10585_s6 = inlined_call_operand.vmem [shape: f32[32,32], index: 6, kind: input, shape index: {}]   ;;  %s10586_s7 = inlined_call_operand.vmem [shape: f32[1,32], index: 7, kind: input, shape index: {}]   ;;  %s10587_s8 = inlined_call_operand.vmem [shape: f32[4,32], index: 8, kind: input, shape index: {}]   ;;  %s10588_s9 = inlined_call_operand.vmem [shape: f32[32,32], index: 9, kind: input, shape index: {}]   ;;  %s10589_s10 = inlined_call_operand.vmem [shape: f32[1,32], index: 10, kind: input, shape index: {}]   ;;  %s10590_s11 = inlined_call_operand.vmem [shape: f32[32,32], index: 11, kind: input, shape index: {}]   ;;  %s10591_s12 = inlined_call_operand.vmem [shape: f32[32,32], index: 12, kind: input, shape index: {}]   ;;  %s10592_s13 = inlined_call_operand.vmem [shape: f32[32,32], index: 13, kind: input, shape index: {}]   ;;  %s10593_s14 = inlined_call_operand.vmem [shape: f32[1,32], index: 14, kind: input, shape index: {}]   ;;  %s10594_s15 = inlined_call_operand.vmem [shape: f32[32,32], index: 15, kind: input, shape index: {}]   ;;  %s10595_s16 = inlined_call_operand.vmem [shape: f32[32,32], index: 16, kind: input, shape index: {}]   ;;  %s10596_s17 = inlined_call_operand.vmem [shape: f32[1,32], index: 17, kind: input, shape index: {}]   ;;  %s10597_s18 = inlined_call_operand.hbm [shape: f32[32,32], index: 18, kind: input, shape index: {}]   ;;  %s10598_s19 = inlined_call_operand.hbm [shape: f32[32,32], index: 19, kind: input, shape index: {}]   ;;  %s10599_s20 = inlined_call_operand.vmem [shape: f32[1,32], index: 20, kind: input, shape index: {}]   ;;  %s10600_s21 = inlined_call_operand.vmem [shape: f32[32,2], index: 21, kind: input, shape index: {}]   ;;  %s10601_s22 = inlined_call_operand.vmem [shape: f32[1,2], index: 22, kind: input, shape index: {}]   ;;  %s10602_s23 = inlined_call_operand.vmem [shape: f32[256,2], index: 23, kind: output, shape index: {}]  }
   0x1   :  { %10624 = sst [smem:[#allocation44_spill]] %s10579_s0 }
   0x2   :  { %10625 = sst [smem:[#allocation45_spill]] %s10580_s1 }
   0x3   :  { %10626 = sst [smem:[#allocation46_spill]] %s10581_s2 }
   0x4   :  { %10627 = sst [smem:[#allocation47_spill]] %s10582_s3 }
   0x5   :  { %10628 = sst [smem:[#allocation48_spill]] %s10583_s4 }
   0x6   :  { %10629 = sst [smem:[#allocation49_spill]] %s10584_s5 }
   0x7   :  { %10630 = sst [smem:[#allocation50_spill]] %s10585_s6 }
   0x8   :  { %10631 = sst [smem:[#allocation51_spill]] %s10586_s7 }
   0x9   :  { %10632 = sst [smem:[#allocation52_spill]] %s10602_s23 }
   0xa   :  { %28 = vsyncpa [#allocation3], 0 }
   0xb   :  { %29 = vsyncpa [#allocation5], 0  ;;  %s10633_s24 = sld [smem:[#allocation49_spill]] }
  0x11   :  { %s55_s25 = sshll.u32 %s10633_s24, 4  ;;  %s56_s25 = int_to_ptr.hbm [resolvable:$true] %s55_s25 }
  0x12   :  { %30 = vsyncpa [#allocation8], 0  ;;  %s7360_s5 = smov [#allocation4]   ;;  %s10634_s6 = sld [smem:[#allocation46_spill]] }
  0x13   :  { %s57_s1 = sshll.u32 %s7360_s5, 4  ;;  %s7361_s7 = smov [#allocation2]   ;;  %s58_s1 = int_to_ptr.vmem [resolvable:$true] %s57_s1 }
  0x14   :  { %60 = dma.hbm_to_vmem [thread:$0]  %s56_s25, 64, %s58_s1, [#allocation5]  }
  0x15   :  { %s42_s28 = sshll.u32 %s7361_s7, 4  ;;  %s89_s0 = sshll.u32 %s10597_s18, 4  ;;  %s43_s28 = int_to_ptr.vmem [resolvable:$true] %s42_s28  ;;  %s90_s0 = int_to_ptr.hbm [resolvable:$true] %s89_s0 }
  0x16   :  { %s7362_s4 = smov [#allocation6]   ;;  %s102_s23 = sshll.u32 %s10598_s19, 4  ;;  %s103_s23 = int_to_ptr.hbm [resolvable:$true] %s102_s23 }
  0x17   :  { %s91_s30 = sshll.u32 %s7362_s4, 4  ;;  %s7363_s26 = smov 128   ;;  %s92_s30 = int_to_ptr.vmem [resolvable:$true] %s91_s30 }
  0x18   :  { %s40_s27 = sshll.u32 %s10634_s6, 4  ;;  %s7364_s2 = smov 8   ;;  %s41_s27 = int_to_ptr.hbm [resolvable:$true] %s40_s27 }
  0x19   :  { %45 = dma.hbm_to_vmem [thread:$0]  %s41_s27, 64, %s43_s28, [#allocation3]  }
  0x1a   :  { %97 = dma.hbm_to_vmem [thread:$0]  %s90_s0, 512, %s92_s30, [#allocation5], %s7363_s26, %s7363_s26, %s7364_s2  }
  0x1b   :  { %s7365_s25 = smov [#allocation7]  }
  0x1c   :  { %s104_s1 = sshll.u32 %s7365_s25, 4  ;;  %s105_s1 = int_to_ptr.vmem [resolvable:$true] %s104_s1 }
  0x1d   :  { %110 = dma.hbm_to_vmem [thread:$0]  %s103_s23, 512, %s105_s1, [#allocation8], %s7363_s26, %s7363_s26, %s7364_s2  }
  0x1e   :  { %7354 = dma.done.wait [#allocation3], 64  }
  0x1f   :  { %7355 = vsyncadd [#allocation3], 4294967232 }
  0x20   :  { %7356 = dma.done.wait [#allocation5], 576  }
  0x21   :  { %7357 = vsyncadd [#allocation5], 4294966720 }
  0x22   :  { %7358 = dma.done.wait [#allocation8], 512  }
  0x23   :  { %7359 = vsyncadd [#allocation8], 4294966784  ;;  %vm267_vm0 = vcmask 1043456   ;;  %vm170_vm1 = vcmask 31744   ;;  %v165_v0 = vld [vmem:[#allocation2] sm:$0xf] }
  0x24   :  { %s10635_s19 = sld [smem:[#allocation44_spill]]  ;;  %6540 = vmatpush.msk.msra.mxu3 %vm267_vm0, %v165_v0  ;;  %5991 = vmatpush.msk.msra.mxu0 %vm267_vm0, %v165_v0  ;;  %vm642_vm2 = vcmask 261120   ;;  %v384_v24 = vld [vmem:[#allocation4] sm:$0xf]  ;;  %v505_v28 = vld [vmem:[%s10587_s8] sm:$0xf] }
  0x25   :  { %s10636_s28 = sld [smem:[#allocation47_spill]]  ;;  %6538 = vmatpush.msk.msra.mxu1 %vm267_vm0, %v165_v0  ;;  %6539 = vmatpush.msk.msra.mxu2 %vm267_vm0, %v165_v0  ;;  %v7817_v52 = vld [vmem:[%s10588_s9 + $0x18] sm:$0xff]  ;;  %v7822_v53 = vld [vmem:[%s10588_s9 + $0x10] sm:$0xff]  ;;  %v7837_v56 = vld [vmem:[%s10588_s9 + $0x8] sm:$0xff] }
  0x26   :  { %s10637_s23 = sld [smem:[#allocation45_spill]]  ;;  %1499 = vmatpush.msrb.mxu0 %v7817_v52  ;;  %v7844_v58 = vld [vmem:[%s10588_s9] sm:$0xff] }
  0x27   :  { %6024 = vmatpush.msk.msrb.mxu1 %vm267_vm0, %v384_v24  ;;  %6057 = vmatpush.msk.msrb.mxu2 %vm267_vm0, %v505_v28  ;;  %s10639_s5 = sld [smem:[#allocation50_spill]] }
  0x28   :  { %s10647_s30 = sld [smem:[#allocation48_spill]]  ;;  %1500 = vmatpush.msrb.mxu0 %v7822_v53 }
  0x29   :  { %s10660_s18 = sld [smem:[#allocation51_spill]] }
  0x2a   :  { %v7501_v1 = vld [vmem:[%s10635_s19 + $0xc0] sm:$0xff]  ;;  %v7529_v5 = vld [vmem:[%s10635_s19 + $0xc8] sm:$0xff]  ;;  %v7537_v6 = vld [vmem:[%s10635_s19 + $0xd0] sm:$0xff]  ;;  %1501 = vmatpush.msrb.mxu0 %v7837_v56 }
  0x2b   :  { %v7506_v2 = vld [vmem:[%s10636_s28 + $0x18] sm:$0xff]  ;;  %6016 = vmatmul.msk.f32.vlgmr.msra.gmra.mxu3 %vm170_vm1, %v7501_v1  ;;  %v7515_v3 = vld [vmem:[%s10636_s28 + $0x10] sm:$0xff]  ;;  %v7522_v4 = vld [vmem:[%s10636_s28 + $0x8] sm:$0xff] }
  0x2c   :  { %667 = vmatpush.msrb.mxu3 %v7506_v2  ;;  %v7544_v7 = vld [vmem:[%s10636_s28] sm:$0xff]  ;;  %v7550_v8 = vld [vmem:[%s10635_s19 + $0xd8] sm:$0xff]  ;;  %v162_v11 = vld [vmem:[%s10635_s19 + $0xe8] sm:$0xff]  ;;  %1502 = vmatpush.msrb.mxu0 %v7844_v58 }
  0x2d   :  { %v7557_v9 = vld [vmem:[%s10635_s19 + $0xe0] sm:$0xff]  ;;  %v7575_v12 = vld [vmem:[%s10635_s19 + $0x8] sm:$0xff]  ;;  %v163_v13 = vld [vmem:[%s10635_s19 + $0xf0] sm:$0xff] }
  0x2e   :  { %668 = vmatpush.msrb.mxu3 %v7515_v3  ;;  %v7564_v10 = vld [vmem:[%s10635_s19] sm:$0xff]  ;;  %v7586_v14 = vld [vmem:[%s10635_s19 + $0x10] sm:$0xff]  ;;  %v164_v15 = vld [vmem:[%s10635_s19 + $0xf8] sm:$0xff] }
  0x2f   :  { %5992 = vmatmul.msk.f32.vlgmr.msra.gmra.mxu0 %vm170_vm1, %v7564_v10  ;;  %v7597_v16 = vld [vmem:[%s10635_s19 + $0x18] sm:$0xff]  ;;  %v7602_v17 = vld [vmem:[%s10635_s19 + $0x40] sm:$0xff]  ;;  %v7616_v19 = vld [vmem:[%s10635_s19 + $0x48] sm:$0xff] }
  0x30   :  { %669 = vmatpush.msrb.mxu3 %v7522_v4  ;;  %6000 = vmatmul.msk.f32.vlgmr.msra.gmra.mxu1 %vm170_vm1, %v7602_v17  ;;  %v7611_v18 = vld [vmem:[%s10637_s23] sm:$0xff]  ;;  %v7625_v20 = vld [vmem:[%s10637_s23 + $0x8] sm:$0xff]  ;;  %v7632_v21 = vld [vmem:[%s10637_s23 + $0x10] sm:$0xff] }
  0x31   :  { %v7639_v22 = vld [vmem:[%s10637_s23 + $0x18] sm:$0xff]  ;;  %v7646_v23 = vld [vmem:[%s10635_s19 + $0x50] sm:$0xff]  ;;  %1564 = vmatpush.msra.mxu1 %v7506_v2  ;;  %v7664_v26 = vld [vmem:[%s10635_s19 + $0x60] sm:$0xff]  ;;  %1863 = vmatpush.msra.mxu0 %v7506_v2 }
  0x32   :  { %670 = vmatpush.msrb.mxu3 %v7544_v7  ;;  %v7653_v25 = vld [vmem:[%s10635_s19 + $0x58] sm:$0xff]  ;;  %v7672_v27 = vld [vmem:[%s10635_s19 + $0x80] sm:$0xff]  ;;  %v7680_v29 = vld [vmem:[%s10635_s19 + $0x68] sm:$0xff] }
  0x33   :  { %6017 = vmatmul.msk.f32.gmra.mxu3 %vm170_vm1, %v7529_v5  ;;  %1565 = vmatpush.msra.mxu1 %v7515_v3  ;;  %v7692_v31 = vld [vmem:[%s10639_s5 + $0x18] sm:$0xff]  ;;  %v7697_v32 = vld [vmem:[%s10635_s19 + $0x88] sm:$0xff]  ;;  %v7702_v33 = vld [vmem:[%s10635_s19 + $0x70] sm:$0xff] }
  0x34   :  { %6008 = vmatmul.msk.f32.vlgmr.msra.gmra.mxu2 %vm170_vm1, %v7672_v27  ;;  %776 = vmatpush.msra.mxu3 %v7692_v31  ;;  %v7715_v35 = vld [vmem:[%s10639_s5 + $0x10] sm:$0xff]  ;;  %v7725_v37 = vld [vmem:[%s10635_s19 + $0x78] sm:$0xff]  ;;  %v7738_v39 = vld [vmem:[%s10639_s5 + $0x8] sm:$0xff] }
  0x35   :  { %1566 = vmatpush.msra.mxu1 %v7522_v4  ;;  %1673 = vmatpush.msra.mxu2 %v7692_v31  ;;  %v7720_v36 = vld [vmem:[%s10635_s19 + $0x90] sm:$0xff]  ;;  %v7744_v40 = vld [vmem:[%s10639_s5] sm:$0xff]  ;;  %v7749_v41 = vld [vmem:[%s10635_s19 + $0x98] sm:$0xff] }
  0x36   :  { %777 = vmatpush.msra.mxu3 %v7715_v35  ;;  %v7767_v43 = vld [vmem:[%s10635_s19 + $0xa0] sm:$0xff]  ;;  %v7786_v45 = vld [vmem:[%s10635_s19 + $0xa8] sm:$0xff]  ;;  %v7799_v47 = vld [vmem:[%s10635_s19 + $0xb0] sm:$0xff]  ;;  %1864 = vmatpush.msra.mxu0 %v7515_v3 }
  0x37   :  { %5993 = vmatmul.msk.f32.gmra.mxu0 %vm170_vm1, %v7575_v12  ;;  %1567 = vmatpush.msra.mxu1 %v7544_v7  ;;  %v7808_v50 = vld [vmem:[%s10635_s19 + $0xb8] sm:$0xff]  ;;  %v7829_v54 = vld [vmem:[%s10647_s30] ss:$0 sm:$0xff] }
  0x38   :  { %6001 = vmatmul.msk.f32.gmra.mxu1 %vm170_vm1, %v7616_v19  ;;  %1674 = vmatpush.msra.mxu2 %v7715_v35 }
  0x39   :  { %778 = vmatpush.msra.mxu3 %v7738_v39  ;;  %1865 = vmatpush.msra.mxu0 %v7522_v4 }
  0x3a   :  { %1675 = vmatpush.msra.mxu2 %v7738_v39 }
  0x3b   :  { %6018 = vmatmul.msk.f32.gmra.mxu3 %vm170_vm1, %v7537_v6  ;;  %1866 = vmatpush.msra.mxu0 %v7544_v7 }
  0x3c   :  { %6009 = vmatmul.msk.f32.gmra.mxu2 %vm170_vm1, %v7697_v32  ;;  %779 = vmatpush.msra.mxu3 %v7744_v40 }
  0x3d   :  { %1676 = vmatpush.msra.mxu2 %v7744_v40 }
  0x3f   :  { %5994 = vmatmul.msk.f32.gmra.mxu0 %vm170_vm1, %v7586_v14 }
  0x40   :  { %6002 = vmatmul.msk.f32.gmra.mxu1 %vm170_vm1, %v7646_v23 }
  0x43   :  { %6019 = vmatmul.msk.f32.gmra.mxu3 %vm170_vm1, %v7550_v8 }
  0x44   :  { %6010 = vmatmul.msk.f32.gmra.mxu2 %vm170_vm1, %v7720_v36 }
  0x47   :  { %5995 = vmatmul.msk.f32.gmra.mxu0 %vm170_vm1, %v7597_v16 }
  0x48   :  { %6003 = vmatmul.msk.f32.gmra.mxu1 %vm170_vm1, %v7653_v25 }
  0x4b   :  { %6020 = vmatmul.msk.f32.gmra.mxu3 %vm170_vm1, %v7557_v9 }
  0x4c   :  { %6011 = vmatmul.msk.f32.gmra.mxu2 %vm170_vm1, %v7749_v41 }
  0x50   :  { %6004 = vmatmul.msk.f32.gmra.mxu1 %vm170_vm1, %v7664_v26 }
  0x53   :  { %6021 = vmatmul.msk.f32.gmra.mxu3 %vm170_vm1, %v162_v11 }
  0x54   :  { %6012 = vmatmul.msk.f32.gmra.mxu2 %vm170_vm1, %v7767_v43 }
  0x58   :  { %6005 = vmatmul.msk.f32.gmra.mxu1 %vm170_vm1, %v7680_v29 }
  0x5b   :  { %6022 = vmatmul.msk.f32.gmra.mxu3 %vm170_vm1, %v163_v13 }
  0x5c   :  { %6013 = vmatmul.msk.f32.gmra.mxu2 %vm170_vm1, %v7786_v45 }
  0x60   :  { %6006 = vmatmul.msk.f32.gmra.mxu1 %vm170_vm1, %v7702_v33 }
  0x63   :  { %6023 = vmatmul.msk.f32.gmra.mxu3 %vm170_vm1, %v164_v15 }
  0x64   :  { %6014 = vmatmul.msk.f32.gmra.mxu2 %vm170_vm1, %v7799_v47 }
  0x68   :  { %6007 = vmatmul.msk.f32.gmra.mxu1 %vm170_vm1, %v7725_v37 }
  0x6b   :  { %6090 = vmatmul.msk.f32.vlgmr.msrb.gmra.mxu3 %vm642_vm2, %v7611_v18 }
  0x6c   :  { %6015 = vmatmul.msk.f32.gmra.mxu2 %vm170_vm1, %v7808_v50  ;;  %901 = vmatpush.msrb.mxu3 %v7817_v52 }
  0x6e   :  { %902 = vmatpush.msrb.mxu3 %v7822_v53 }
  0x70   :  { %6025 = vmatmul.msk.f32.vlgmr.msrb.gmra.mxu1 %vm170_vm1, %v7564_v10  ;;  %903 = vmatpush.msrb.mxu3 %v7837_v56 }
  0x71   :  { %1972 = vmatpush.msrb.mxu1 %v7692_v31 }
  0x72   :  { %904 = vmatpush.msrb.mxu3 %v7844_v58 }
  0x73   :  { %6091 = vmatmul.msk.f32.gmra.mxu3 %vm642_vm2, %v7625_v20  ;;  %1973 = vmatpush.msrb.mxu1 %v7715_v35 }
  0x74   :  { %6058 = vmatmul.msk.f32.vlgmr.msrb.gmra.mxu2 %vm170_vm1, %v7564_v10 }
  0x75   :  { %1974 = vmatpush.msrb.mxu1 %v7738_v39  ;;  %2097 = vmatpush.msrb.mxu2 %v7817_v52 }
  0x77   :  { %1975 = vmatpush.msrb.mxu1 %v7744_v40  ;;  %2098 = vmatpush.msrb.mxu2 %v7822_v53 }
  0x78   :  { %6026 = vmatmul.msk.f32.gmra.mxu1 %vm170_vm1, %v7575_v12 }
  0x79   :  { %2099 = vmatpush.msrb.mxu2 %v7837_v56 }
  0x7b   :  { %6092 = vmatmul.msk.f32.gmra.mxu3 %vm642_vm2, %v7632_v21  ;;  %2100 = vmatpush.msrb.mxu2 %v7844_v58 }
  0x7c   :  { %6059 = vmatmul.msk.f32.gmra.mxu2 %vm170_vm1, %v7575_v12 }
  0x80   :  { %6027 = vmatmul.msk.f32.gmra.mxu1 %vm170_vm1, %v7586_v14 }
  0x83   :  { %6093 = vmatmul.msk.f32.gmra.mxu3 %vm642_vm2, %v7639_v22 }
  0x84   :  { %6060 = vmatmul.msk.f32.gmra.mxu2 %vm170_vm1, %v7586_v14 }
  0x88   :  { %6028 = vmatmul.msk.f32.gmra.mxu1 %vm170_vm1, %v7597_v16 }
  0x8b   :  { %6098 = vmatmul.msk.f32.vlgmr.msra.gmra.mxu3 %vm642_vm2, %v7611_v18 }
  0x8c   :  { %966 = vmatpush.msra.mxu3 %v7506_v2  ;;  %6061 = vmatmul.msk.f32.gmra.mxu2 %vm170_vm1, %v7597_v16 }
  0x8e   :  { %967 = vmatpush.msra.mxu3 %v7515_v3 }
  0x90   :  { %968 = vmatpush.msra.mxu3 %v7522_v4 }
  0x92   :  { %969 = vmatpush.msra.mxu3 %v7544_v7 }
  0x93   :  { %6099 = vmatmul.msk.f32.gmra.mxu3 %vm642_vm2, %v7625_v20 }
  0x9b   :  { %6100 = vmatmul.msk.f32.gmra.mxu3 %vm642_vm2, %v7632_v21 }
  0xa3   :  { %6101 = vmatmul.msk.f32.gmra.mxu3 %vm642_vm2, %v7639_v22 }
  0xac   :  { %v288_v49 = vpop.f32.mrf.mxu0 }
  0xad   :  { %v289_v55 = vadd.f32 %v7829_v54, %v288_v49 }
  0xae   :  { %v7687_v30 = vpop.f32.mrf.mxu3 }
  0xaf   :  { %10638 = vst [vmem:[#allocation12_spill] sm:$0xff] %v7687_v30 }
  0xb4   :  { %v291_v57 = vpop.f32.mrf.mxu0 }
  0xb5   :  { %v292_v62 = vadd.f32 %v7829_v54, %v291_v57 }
  0xb6   :  { %v7710_v34 = vpop.f32.mrf.mxu3 }
  0xb7   :  { %10640 = vst [vmem:[#allocation13_spill] sm:$0xff] %v7710_v34 }
  0xbc   :  { %v294_v0 = vpop.f32.mrf.mxu0 }
  0xbd   :  { %v295_v24 = vadd.f32 %v7829_v54, %v294_v0 }
  0xbe   :  { %v7733_v38 = vpop.f32.mrf.mxu3 }
  0xbf   :  { %10641 = vst [vmem:[#allocation14_spill] sm:$0xff] %v7733_v38 }
  0xc4   :  { %v297_v49 = vpop.f32.mrf.mxu0 }
  0xc6   :  { %v7762_v42 = vpop.f32.mrf.mxu3 }
  0xc7   :  { %10642 = vst [vmem:[#allocation15_spill] sm:$0xff] %v7762_v42 }
  0xce   :  { %v7777_v44 = vpop.f32.mrf.mxu3 }
  0xcf   :  { %10643 = vst [vmem:[#allocation16_spill] sm:$0xff] %v7777_v44 }
  0xd6   :  { %v7790_v46 = vpop.f32.mrf.mxu3 }
  0xd7   :  { %10644 = vst [vmem:[#allocation17_spill] sm:$0xff] %v7790_v46 }
  0xde   :  { %v7803_v48 = vpop.f32.mrf.mxu3 }
  0xdf   :  { %10645 = vst [vmem:[#allocation18_spill] sm:$0xff] %v7803_v48 }
  0xe6   :  { %v7812_v51 = vpop.f32.mrf.mxu3 }
  0xe7   :  { %10646 = vst [vmem:[#allocation19_spill] sm:$0xff] %v7812_v51 }
  0xee   :  { %v672_v59 = vpop.f32.mrf.mxu3 }
  0xef   :  { %v684_v60 = vadd.f32 %v672_v59, %v289_v55 }
  0xf1   :  { %v6094_v61 = vmul.f32 -1.442695, %v684_v60 }
  0xf3   :  { %6554 = vpow2.f32 %v6094_v61 }
  0xf6   :  { %v675_v63 = vpop.f32.mrf.mxu3 }
  0xf7   :  { %v685_v10 = vadd.f32 %v675_v63, %v292_v62  ;;  %v298_v62 = vadd.f32 %v7829_v54, %v297_v49 }
  0xf9   :  { %v6555_v11 = vpop.eup %6554  ;;  %v6095_v13 = vmul.f32 -1.442695, %v685_v10 }
  0xfa   :  { %v700_v15 = vadd.f32 1.0, %v6555_v11 }
  0xfb   :  { %6556 = vpow2.f32 %v6095_v13 }
  0xfc   :  { %6558 = vrcp.f32 %v700_v15  ;;  %v715_v0 = vand.u32 2147483648, %v700_v15  ;;  %v713_v13 = vand.u32 2147483647, %v700_v15  ;;  %vm709_vm4 = vweird.f32 %v700_v15 }
  0xfe   :  { %v678_v12 = vpop.f32.mrf.mxu3  ;;  %v716_v49 = vor.u32 1.1754944e-38, %v715_v0  ;;  %vm714_vm6 = vcmp.eq.f32.partialorder %v713_v13, 8.507059e+37 }
  0xff   :  { %v686_v28 = vadd.f32 %v678_v12, %v295_v24 }
 0x101   :  { %v6557_v55 = vpop.eup %6556  ;;  %v6096_v57 = vmul.f32 -1.442695, %v686_v28 }
 0x102   :  { %v6559_v59 = vpop.eup %6558  ;;  %v701_v60 = vadd.f32 1.0, %v6557_v55  ;;  %v7871_v55 = vpop.f32.mrf.mxu1 }
 0x103   :  { %v705_v61 = vmul.f32 %v6559_v59, %v700_v15  ;;  %6560 = vpow2.f32 %v6096_v57  ;;  %vm710_vm3 = vweird.f32 %v6559_v59  ;;  %10648 = vst [vmem:[#allocation20_spill] sm:$0xff] %v7871_v55 }
 0x104   :  { %6562 = vrcp.f32 %v701_v60  ;;  %vm711_vm5 = vmor %vm709_vm4, %vm710_vm3  ;;  %vm724_vm8 = vweird.f32 %v701_v60 }
 0x105   :  { %v706_v63 = vsub.f32 1.0, %v705_v61 }
 0x106   :  { %v681_v10 = vpop.f32.mrf.mxu3 }
 0x107   :  { %v707_v11 = vmul.f32 %v6559_v59, %v706_v63  ;;  %v687_v14 = vadd.f32 %v681_v10, %v298_v62  ;;  %v730_v10 = vand.u32 2147483648, %v701_v60 }
 0x109   :  { %v6561_v24 = vpop.eup %6560  ;;  %v6097_v12 = vmul.f32 -1.442695, %v687_v14  ;;  %v708_v28 = vadd.f32 %v6559_v59, %v707_v11  ;;  %v728_v11 = vand.u32 2147483647, %v701_v60  ;;  %v731_v13 = vor.u32 1.1754944e-38, %v730_v10 }
 0x10a   :  { %v6563_v57 = vpop.eup %6562  ;;  %v702_v51 = vadd.f32 1.0, %v6561_v24 }
 0x10b   :  { %6564 = vpow2.f32 %v6097_v12  ;;  %v712_v61 = vsel %vm711_vm5, %v6559_v59, %v708_v28  ;;  %v720_v16 = vmul.f32 %v6563_v57, %v701_v60  ;;  %vm725_vm7 = vweird.f32 %v6563_v57  ;;  %v7877_v28 = vpop.f32.mrf.mxu1 }
 0x10c   :  { %6566 = vrcp.f32 %v702_v51  ;;  %v717_v48 = vsel %vm714_vm6, %v716_v49, %v712_v61  ;;  %vm726_vm9 = vmor %vm724_vm8, %vm725_vm7  ;;  %vm729_vm10 = vcmp.eq.f32.partialorder %v728_v11, 8.507059e+37  ;;  %10649 = vst [vmem:[#allocation21_spill] sm:$0xff] %v7877_v28  ;;  %vm739_vm12 = vweird.f32 %v702_v51 }
 0x10d   :  { %v873_v62 = vmul.f32 %v717_v48, %v7611_v18  ;;  %v721_v63 = vsub.f32 1.0, %v720_v16 }
 0x10f   :  { %6106 = vmatmul.msk.f32.vlgmr.msrb.gmra.mxu3 %vm642_vm2, %v873_v62  ;;  %v722_v15 = vmul.f32 %v6563_v57, %v721_v63  ;;  %v745_v62 = vand.u32 2147483648, %v702_v51  ;;  %v743_v63 = vand.u32 2147483647, %v702_v51 }
 0x110   :  { %1075 = vmatpush.msrb.mxu3 %v7692_v31 }
 0x111   :  { %v6565_v14 = vpop.eup %6564  ;;  %v723_v24 = vadd.f32 %v6563_v57, %v722_v15  ;;  %v746_v15 = vor.u32 1.1754944e-38, %v745_v62  ;;  %vm744_vm14 = vcmp.eq.f32.partialorder %v743_v63, 8.507059e+37 }
 0x112   :  { %v6567_v0 = vpop.eup %6566  ;;  %v703_v59 = vadd.f32 1.0, %v6565_v14  ;;  %1076 = vmatpush.msrb.mxu3 %v7715_v35 }
 0x113   :  { %v727_v12 = vsel %vm726_vm9, %v6563_v57, %v723_v24  ;;  %v735_v48 = vmul.f32 %v6567_v0, %v702_v51  ;;  %vm740_vm11 = vweird.f32 %v6567_v0 }
 0x114   :  { %6568 = vrcp.f32 %v703_v59  ;;  %v732_v49 = vsel %vm729_vm10, %v731_v13, %v727_v12  ;;  %1077 = vmatpush.msrb.mxu3 %v7738_v39  ;;  %vm741_vm13 = vmor %vm739_vm12, %vm740_vm11  ;;  %vm754_vm0 = vweird.f32 %v703_v59 }
 0x115   :  { %v874_v61 = vmul.f32 %v732_v49, %v7625_v20  ;;  %v736_v16 = vsub.f32 1.0, %v735_v48  ;;  %v7884_v48 = vpop.f32.mrf.mxu1  ;;  %v760_v49 = vand.u32 2147483648, %v703_v59 }
 0x116   :  { %1078 = vmatpush.msrb.mxu3 %v7744_v40  ;;  %10650 = vst [vmem:[#allocation22_spill] sm:$0xff] %v7884_v48 }
 0x117   :  { %6107 = vmatmul.msk.f32.gmra.mxu3 %vm642_vm2, %v874_v61  ;;  %v737_v60 = vmul.f32 %v6567_v0, %v736_v16  ;;  %v758_v16 = vand.u32 2147483647, %v703_v59  ;;  %v761_v51 = vor.u32 1.1754944e-38, %v760_v49 }
 0x119   :  { %v738_v57 = vadd.f32 %v6567_v0, %v737_v60  ;;  %vm759_vm4 = vcmp.eq.f32.partialorder %v758_v16, 8.507059e+37  ;;  %v7910_v16 = vld [vmem:[%s10660_s18] ss:$0 sm:$0xff] }
 0x11a   :  { %v6569_v10 = vpop.eup %6568 }
 0x11b   :  { %v742_v11 = vsel %vm741_vm13, %v6567_v0, %v738_v57  ;;  %v750_v14 = vmul.f32 %v6569_v10, %v703_v59  ;;  %vm755_vm15 = vweird.f32 %v6569_v10 }
 0x11c   :  { %v747_v24 = vsel %vm744_vm14, %v746_v15, %v742_v11  ;;  %vm756_vm3 = vmor %vm754_vm0, %vm755_vm15  ;;  %v7893_v11 = vpop.f32.mrf.mxu2 }
 0x11d   :  { %v875_v13 = vmul.f32 %v747_v24, %v7632_v21  ;;  %v751_v12 = vsub.f32 1.0, %v750_v14  ;;  %v7889_v57 = vpop.f32.mrf.mxu1  ;;  %10653 = vst [vmem:[#allocation25_spill] sm:$0xff] %v7893_v11 }
 0x11e   :  { %10651 = vst [vmem:[#allocation23_spill] sm:$0xff] %v7889_v57 }
 0x11f   :  { %6108 = vmatmul.msk.f32.gmra.mxu3 %vm642_vm2, %v875_v13  ;;  %v752_v61 = vmul.f32 %v6569_v10, %v751_v12 }
 0x121   :  { %v753_v60 = vadd.f32 %v6569_v10, %v752_v61  ;;  %v781_v61 = vpop.f32.mrf.mxu3 }
 0x123   :  { %v757_v62 = vsel %vm756_vm3, %v6569_v10, %v753_v60 }
 0x124   :  { %v762_v0 = vsel %vm759_vm4, %v761_v51, %v757_v62  ;;  %v7897_v24 = vpop.f32.mrf.mxu2 }
 0x125   :  { %v876_v63 = vmul.f32 %v762_v0, %v7639_v22  ;;  %v7891_v15 = vpop.f32.mrf.mxu1  ;;  %10655 = vst [vmem:[#allocation27_spill] sm:$0xff] %v7897_v24 }
 0x126   :  { %10652 = vst [vmem:[#allocation24_spill] sm:$0xff] %v7891_v15 }
 0x127   :  { %6109 = vmatmul.msk.f32.gmra.mxu3 %vm642_vm2, %v876_v63 }
 0x129   :  { %v784_v63 = vpop.f32.mrf.mxu3 }
 0x12c   :  { %v7901_v13 = vpop.f32.mrf.mxu2 }
 0x12d   :  { %v7895_v14 = vpop.f32.mrf.mxu1  ;;  %10657 = vst [vmem:[#allocation29_spill] sm:$0xff] %v7901_v13 }
 0x12e   :  { %10654 = vst [vmem:[#allocation26_spill] sm:$0xff] %v7895_v14 }
 0x134   :  { %v7905_v12 = vpop.f32.mrf.mxu2 }
 0x135   :  { %v7899_v59 = vpop.f32.mrf.mxu1  ;;  %10659 = vst [vmem:[#allocation31_spill] sm:$0xff] %v7905_v12  ;;  %v787_v12 = vpop.f32.mrf.mxu3 }
 0x136   :  { %10656 = vst [vmem:[#allocation28_spill] sm:$0xff] %v7899_v59 }
 0x13c   :  { %v7912_v60 = vpop.f32.mrf.mxu2 }
 0x13d   :  { %v7903_v10 = vpop.f32.mrf.mxu1  ;;  %10661 = vst [vmem:[#allocation32_spill] sm:$0xff] %v7912_v60 }
 0x13e   :  { %10658 = vst [vmem:[#allocation30_spill] sm:$0xff] %v7903_v10 }
 0x144   :  { %v7915_v46 = vpop.f32.mrf.mxu2 }
 0x145   :  { %v409_v49 = vpop.f32.mrf.mxu1  ;;  %10662 = vst [vmem:[#allocation33_spill] sm:$0xff] %v7915_v46 }
 0x146   :  { %v410_v51 = vadd.f32 %v7910_v16, %v409_v49 }
 0x148   :  { %v793_v0 = vadd.f32 %v781_v61, %v410_v51 }
 0x14a   :  { %v6102_v42 = vmul.f32 -1.442695, %v793_v0 }
 0x14c   :  { %6570 = vpow2.f32 %v6102_v42  ;;  %v7919_v24 = vpop.f32.mrf.mxu2 }
 0x14d   :  { %v412_v62 = vpop.f32.mrf.mxu1  ;;  %10663 = vst [vmem:[#allocation34_spill] sm:$0xff] %v7919_v24 }
 0x14e   :  { %v413_v44 = vadd.f32 %v7910_v16, %v412_v62  ;;  %v790_v62 = vpop.f32.mrf.mxu3 }
 0x150   :  { %v794_v38 = vadd.f32 %v784_v63, %v413_v44 }
 0x152   :  { %v6103_v30 = vmul.f32 -1.442695, %v794_v38  ;;  %v6571_v60 = vpop.eup %6570 }
 0x153   :  { %v809_v11 = vadd.f32 1.0, %v6571_v60 }
 0x154   :  { %6572 = vpow2.f32 %v6103_v30  ;;  %v7922_v44 = vpop.f32.mrf.mxu2 }
 0x155   :  { %v415_v34 = vpop.f32.mrf.mxu1  ;;  %6574 = vrcp.f32 %v809_v11  ;;  %10664 = vst [vmem:[#allocation35_spill] sm:$0xff] %v7922_v44  ;;  %vm818_vm5 = vweird.f32 %v809_v11 }
 0x156   :  { %v416_v13 = vadd.f32 %v7910_v16, %v415_v34 }
 0x158   :  { %v795_v49 = vadd.f32 %v787_v12, %v416_v13  ;;  %v137_v12 = vld [vmem:[%s10635_s19 + $0x20] sm:$0xff] }
 0x159   :  { %5996 = vmatmul.msk.f32.gmra.mxu0 %vm170_vm1, %v137_v12  ;;  %6029 = vmatmul.msk.f32.gmra.mxu1 %vm170_vm1, %v137_v12 }
 0x15a   :  { %v6104_v51 = vmul.f32 -1.442695, %v795_v49  ;;  %v6573_v10 = vpop.eup %6572  ;;  %6062 = vmatmul.msk.f32.gmra.mxu2 %vm170_vm1, %v137_v12 }
 0x15b   :  { %v7924_v42 = vadd.f32 1.0, %v6573_v10  ;;  %v6575_v34 = vpop.eup %6574 }
 0x15c   :  { %6576 = vpow2.f32 %v6104_v51  ;;  %v814_v13 = vmul.f32 %v6575_v34, %v809_v11  ;;  %v530_v60 = vpop.f32.mrf.mxu2  ;;  %vm819_vm6 = vweird.f32 %v6575_v34 }
 0x15d   :  { %v418_v61 = vpop.f32.mrf.mxu1  ;;  %6578 = vrcp.f32 %v7924_v42  ;;  %vm7956_vm7 = vmor %vm818_vm5, %vm819_vm6  ;;  %vm833_vm9 = vweird.f32 %v7924_v42 }
 0x15e   :  { %v419_v46 = vadd.f32 %v7910_v16, %v418_v61  ;;  %v815_v63 = vsub.f32 1.0, %v814_v13  ;;  %v7943_v61 = vld [vmem:[%s10589_s10] ss:$0 sm:$0xff] }
 0x15f   :  { %v531_v12 = vadd.f32 %v7943_v61, %v530_v60  ;;  %v139_v60 = vld [vmem:[%s10635_s19 + $0x30] sm:$0xff] }
 0x160   :  { %v796_v38 = vadd.f32 %v790_v62, %v419_v46  ;;  %v816_v62 = vmul.f32 %v6575_v34, %v815_v63  ;;  %v822_v63 = vand.u32 2147483647, %v809_v11 }
 0x162   :  { %v6105_v0 = vmul.f32 -1.442695, %v796_v38  ;;  %v6577_v30 = vpop.eup %6576  ;;  %v138_v38 = vld [vmem:[%s10635_s19 + $0x28] sm:$0xff]  ;;  %v817_v44 = vadd.f32 %v6575_v34, %v816_v62  ;;  %vm823_vm8 = vcmp.eq.f32.partialorder %v822_v63, 8.507059e+37 }
 0x163   :  { %v7933_v10 = vadd.f32 1.0, %v6577_v30  ;;  %v7935_v46 = vpop.eup %6578  ;;  %5997 = vmatmul.msk.f32.gmra.mxu0 %vm170_vm1, %v138_v38  ;;  %6030 = vmatmul.msk.f32.gmra.mxu1 %vm170_vm1, %v138_v38 }
 0x164   :  { %6580 = vpow2.f32 %v6105_v0  ;;  %v829_v49 = vmul.f32 %v7935_v46, %v7924_v42  ;;  %6063 = vmatmul.msk.f32.gmra.mxu2 %vm170_vm1, %v138_v38  ;;  %v824_v0 = vand.u32 2147483648, %v809_v11  ;;  %v533_v24 = vpop.f32.mrf.mxu2  ;;  %v821_v11 = vsel %vm7956_vm7, %v6575_v34, %v817_v44 }
 0x165   :  { %6582 = vrcp.f32 %v7933_v10  ;;  %vm834_vm10 = vweird.f32 %v7935_v46  ;;  %v534_v44 = vadd.f32 %v7943_v61, %v533_v24  ;;  %vm848_vm13 = vweird.f32 %v7933_v10 }
 0x166   :  { %v830_v30 = vsub.f32 1.0, %v829_v49  ;;  %v825_v38 = vor.u32 1.1754944e-38, %v824_v0  ;;  %vm7977_vm11 = vmor %vm833_vm9, %vm834_vm10 }
 0x168   :  { %v831_v57 = vmul.f32 %v7935_v46, %v830_v30  ;;  %v826_v14 = vsel %vm823_vm8, %v825_v38, %v821_v11  ;;  %v837_v30 = vand.u32 2147483647, %v7924_v42  ;;  %v140_v38 = vld [vmem:[%s10635_s19 + $0x38] sm:$0xff] }
 0x169   :  { %v930_v63 = vsub.f32 1.0, %v826_v14  ;;  %v926_v24 = vmul.f32 %v826_v14, %v7611_v18 }
 0x16a   :  { %v6581_v51 = vpop.eup %6580  ;;  %v832_v34 = vadd.f32 %v7935_v46, %v831_v57  ;;  %vm838_vm12 = vcmp.eq.f32.partialorder %v837_v30, 8.507059e+37 }
 0x16b   :  { %v7951_v13 = vadd.f32 1.0, %v6581_v51  ;;  %v7954_v59 = vpop.eup %6582  ;;  %5998 = vmatmul.msk.f32.gmra.mxu0 %vm170_vm1, %v139_v60  ;;  %6031 = vmatmul.msk.f32.gmra.mxu1 %vm170_vm1, %v139_v60 }
 0x16c   :  { %v844_v51 = vmul.f32 %v7954_v59, %v7933_v10  ;;  %6064 = vmatmul.msk.f32.gmra.mxu2 %vm170_vm1, %v139_v60  ;;  %v536_v48 = vpop.f32.mrf.mxu2  ;;  %v836_v57 = vsel %vm7977_vm11, %v7935_v46, %v832_v34  ;;  %vm849_vm14 = vweird.f32 %v7954_v59  ;;  %v854_v46 = vand.u32 2147483648, %v7933_v10 }
 0x16d   :  { %6584 = vrcp.f32 %v7951_v13  ;;  %v537_v14 = vadd.f32 %v7943_v61, %v536_v48  ;;  %vm8007_vm15 = vmor %vm848_vm13, %vm849_vm14  ;;  %vm863_vm3 = vweird.f32 %v7951_v13 }
 0x16e   :  { %v845_v62 = vsub.f32 1.0, %v844_v51  ;;  %v855_v48 = vor.u32 1.1754944e-38, %v854_v46 }
 0x173   :  { %5999 = vmatmul.msk.f32.gmra.mxu0 %vm170_vm1, %v140_v38  ;;  %6032 = vmatmul.msk.f32.gmra.mxu1 %vm170_vm1, %v140_v38 }
 0x174   :  { %6065 = vmatmul.msk.f32.gmra.mxu2 %vm170_vm1, %v140_v38 }
 0x17b   :  { %6033 = vmatmul.msk.f32.gmra.mxu1 %vm170_vm1, %v7602_v17 }
 0x17c   :  { %6066 = vmatmul.msk.f32.gmra.mxu2 %vm170_vm1, %v7602_v17 }
 0x183   :  { %6034 = vmatmul.msk.f32.gmra.mxu1 %vm170_vm1, %v7616_v19 }
 0x184   :  { %6067 = vmatmul.msk.f32.gmra.mxu2 %vm170_vm1, %v7616_v19 }
 0x18b   :  { %6035 = vmatmul.msk.f32.gmra.mxu1 %vm170_vm1, %v7646_v23 }
 0x18c   :  { %6068 = vmatmul.msk.f32.gmra.mxu2 %vm170_vm1, %v7646_v23 }
 0x192   :  { %v906_v15 = vpop.f32.mrf.mxu3 }
 0x193   :  { %v918_v49 = vadd.f32 %v906_v15, %v531_v12  ;;  %v839_v15 = vand.u32 2147483648, %v7924_v42  ;;  %v7982_v12 = vpop.eup %6584  ;;  %v846_v42 = vmul.f32 %v7954_v59, %v845_v62  ;;  %v852_v62 = vand.u32 2147483647, %v7933_v10  ;;  %6036 = vmatmul.msk.f32.gmra.mxu1 %vm170_vm1, %v7653_v25 }
 0x194   :  { %v859_v28 = vmul.f32 %v7982_v12, %v7951_v13  ;;  %vm864_vm4 = vweird.f32 %v7982_v12  ;;  %6069 = vmatmul.msk.f32.gmra.mxu2 %vm170_vm1, %v7653_v25 }
 0x195   :  { %6586 = vtanh.f32 %v918_v49  ;;  %v840_v51 = vor.u32 1.1754944e-38, %v839_v15  ;;  %v847_v34 = vadd.f32 %v7954_v59, %v846_v42  ;;  %vm853_vm0 = vcmp.eq.f32.partialorder %v852_v62, 8.507059e+37  ;;  %vm865_vm5 = vmor %vm863_vm3, %vm864_vm4 }
 0x197   :  { %v841_v15 = vsel %vm838_vm12, %v840_v51, %v836_v57  ;;  %v851_v10 = vsel %vm8007_vm15, %v7954_v59, %v847_v34  ;;  %v867_v57 = vand.u32 2147483647, %v7951_v13 }
 0x198   :  { %v931_v0 = vsub.f32 1.0, %v841_v15 }
 0x199   :  { %vm868_vm6 = vcmp.eq.f32.partialorder %v867_v57, 8.507059e+37 }
 0x19a   :  { %v909_v49 = vpop.f32.mrf.mxu3 }
 0x19b   :  { %v6587_v11 = vpop.eup %6586  ;;  %v919_v60 = vadd.f32 %v909_v49, %v534_v44  ;;  %v860_v44 = vsub.f32 1.0, %v859_v28  ;;  %v927_v49 = vmul.f32 %v841_v15, %v7625_v20  ;;  %6037 = vmatmul.msk.f32.gmra.mxu1 %vm170_vm1, %v7664_v26 }
 0x19c   :  { %v934_v55 = vmul.f32 %v6587_v11, %v930_v63  ;;  %6070 = vmatmul.msk.f32.gmra.mxu2 %vm170_vm1, %v7664_v26 }
 0x19d   :  { %6588 = vtanh.f32 %v919_v60  ;;  %v861_v38 = vmul.f32 %v7982_v12, %v860_v44 }
 0x19e   :  { %v7997_v18 = vadd.f32 %v934_v55, %v926_v24  ;;  %v539_v24 = vpop.f32.mrf.mxu2 }
 0x19f   :  { %v540_v59 = vadd.f32 %v7943_v61, %v539_v24 }
 0x1a0   :  { %6110 = vmatmul.msk.f32.vlgmr.msra.gmra.mxu3 %vm642_vm2, %v7997_v18 }
 0x1a1   :  { %1200 = vmatpush.msra.mxu3 %v7817_v52  ;;  %v869_v52 = vand.u32 2147483648, %v7951_v13 }
 0x1a2   :  { %v912_v30 = vpop.f32.mrf.mxu3 }
 0x1a3   :  { %v6589_v63 = vpop.eup %6588  ;;  %v920_v28 = vadd.f32 %v912_v30, %v537_v14  ;;  %1201 = vmatpush.msra.mxu3 %v7822_v53  ;;  %v856_v53 = vsel %vm853_vm0, %v855_v48, %v851_v10  ;;  %v870_v46 = vor.u32 1.1754944e-38, %v869_v52  ;;  %6038 = vmatmul.msk.f32.gmra.mxu1 %vm170_vm1, %v7680_v29 }
 0x1a4   :  { %v935_v11 = vmul.f32 %v6589_v63, %v931_v0  ;;  %v932_v51 = vsub.f32 1.0, %v856_v53  ;;  %v928_v15 = vmul.f32 %v856_v53, %v7632_v21  ;;  %6071 = vmatmul.msk.f32.gmra.mxu2 %vm170_vm1, %v7680_v29 }
 0x1a5   :  { %6590 = vtanh.f32 %v920_v28  ;;  %1202 = vmatpush.msra.mxu3 %v7837_v56  ;;  %v862_v56 = vadd.f32 %v7982_v12, %v861_v38 }
 0x1a6   :  { %v8022_v20 = vadd.f32 %v935_v11, %v927_v49 }
 0x1a7   :  { %1203 = vmatpush.msra.mxu3 %v7844_v58  ;;  %v866_v44 = vsel %vm865_vm5, %v7982_v12, %v862_v56 }
 0x1a8   :  { %6111 = vmatmul.msk.f32.gmra.mxu3 %vm642_vm2, %v8022_v20  ;;  %v871_v13 = vsel %vm868_vm6, %v870_v46, %v866_v44 }
 0x1a9   :  { %v933_v34 = vsub.f32 1.0, %v871_v13  ;;  %v929_v21 = vmul.f32 %v871_v13, %v7639_v22 }
 0x1aa   :  { %v915_v60 = vpop.f32.mrf.mxu3 }
 0x1ab   :  { %v6591_v42 = vpop.eup %6590  ;;  %v921_v17 = vadd.f32 %v915_v60, %v540_v59  ;;  %6039 = vmatmul.msk.f32.gmra.mxu1 %vm170_vm1, %v7702_v33 }
 0x1ac   :  { %v936_v14 = vmul.f32 %v6591_v42, %v932_v51  ;;  %6072 = vmatmul.msk.f32.gmra.mxu2 %vm170_vm1, %v7702_v33 }
 0x1ad   :  { %6592 = vtanh.f32 %v921_v17 }
 0x1ae   :  { %v8038_v58 = vadd.f32 %v936_v14, %v928_v15 }
 0x1b0   :  { %6112 = vmatmul.msk.f32.gmra.mxu3 %vm642_vm2, %v8038_v58 }
 0x1b3   :  { %v6593_v62 = vpop.eup %6592  ;;  %6040 = vmatmul.msk.f32.gmra.mxu1 %vm170_vm1, %v7725_v37 }
 0x1b4   :  { %v937_v55 = vmul.f32 %v6593_v62, %v933_v34  ;;  %6073 = vmatmul.msk.f32.gmra.mxu2 %vm170_vm1, %v7725_v37 }
 0x1b6   :  { %v8047_v12 = vadd.f32 %v937_v55, %v929_v21 }
 0x1b8   :  { %6113 = vmatmul.msk.f32.gmra.mxu3 %vm642_vm2, %v8047_v12 }
 0x1bb   :  { %6041 = vmatmul.msk.f32.gmra.mxu1 %vm170_vm1, %v7672_v27 }
 0x1bc   :  { %6074 = vmatmul.msk.f32.gmra.mxu2 %vm170_vm1, %v7672_v27 }
 0x1c0   :  { %6118 = vmatmul.msk.f32.vlgmr.msrb.gmra.mxu3 %vm642_vm2, %v7997_v18 }
 0x1c1   :  { %1265 = vmatpush.msrb.mxu3 %v7506_v2 }
 0x1c3   :  { %1266 = vmatpush.msrb.mxu3 %v7515_v3  ;;  %6042 = vmatmul.msk.f32.gmra.mxu1 %vm170_vm1, %v7697_v32 }
 0x1c4   :  { %6075 = vmatmul.msk.f32.gmra.mxu2 %vm170_vm1, %v7697_v32 }
 0x1c5   :  { %1267 = vmatpush.msrb.mxu3 %v7522_v4 }
 0x1c7   :  { %1268 = vmatpush.msrb.mxu3 %v7544_v7 }
 0x1c8   :  { %6119 = vmatmul.msk.f32.gmra.mxu3 %vm642_vm2, %v8022_v20 }
 0x1cb   :  { %6043 = vmatmul.msk.f32.gmra.mxu1 %vm170_vm1, %v7720_v36 }
 0x1cc   :  { %6076 = vmatmul.msk.f32.gmra.mxu2 %vm170_vm1, %v7720_v36 }
 0x1d0   :  { %6120 = vmatmul.msk.f32.gmra.mxu3 %vm642_vm2, %v8038_v58 }
 0x1d3   :  { %6044 = vmatmul.msk.f32.gmra.mxu1 %vm170_vm1, %v7749_v41 }
 0x1d4   :  { %6077 = vmatmul.msk.f32.gmra.mxu2 %vm170_vm1, %v7749_v41 }
 0x1d6   :  { %v300_v2 = vpop.f32.mrf.mxu0  ;;  %v8137_v53 = vpop.f32.mrf.mxu1 }
 0x1d7   :  { %v301_v3 = vadd.f32 %v7829_v54, %v300_v2 }
 0x1d8   :  { %6121 = vmatmul.msk.f32.gmra.mxu3 %vm642_vm2, %v8047_v12 }
 0x1db   :  { %6045 = vmatmul.msk.f32.gmra.mxu1 %vm170_vm1, %v7767_v43 }
 0x1dc   :  { %6078 = vmatmul.msk.f32.gmra.mxu2 %vm170_vm1, %v7767_v43 }
 0x1e0   :  { %v303_v4 = vpop.f32.mrf.mxu0  ;;  %v424_v21 = vpop.f32.mrf.mxu1 }
 0x1e1   :  { %v304_v23 = vadd.f32 %v7829_v54, %v303_v4 }
 0x1e3   :  { %6046 = vmatmul.msk.f32.gmra.mxu1 %vm170_vm1, %v7786_v45 }
 0x1e4   :  { %6079 = vmatmul.msk.f32.gmra.mxu2 %vm170_vm1, %v7786_v45 }
 0x1e8   :  { %v306_v26 = vpop.f32.mrf.mxu0 }
 0x1e9   :  { %v307_v36 = vadd.f32 %v7829_v54, %v306_v26 }
 0x1eb   :  { %6047 = vmatmul.msk.f32.gmra.mxu1 %vm170_vm1, %v7799_v47 }
 0x1ec   :  { %6080 = vmatmul.msk.f32.gmra.mxu2 %vm170_vm1, %v7799_v47 }
 0x1f0   :  { %v309_v41 = vpop.f32.mrf.mxu0 }
 0x1f3   :  { %6048 = vmatmul.msk.f32.gmra.mxu1 %vm170_vm1, %v7808_v50 }
 0x1f4   :  { %6081 = vmatmul.msk.f32.gmra.mxu2 %vm170_vm1, %v7808_v50 }
 0x1fb   :  { %6049 = vmatmul.msk.f32.gmra.mxu1 %vm170_vm1, %v7501_v1 }
 0x1fc   :  { %6082 = vmatmul.msk.f32.gmra.mxu2 %vm170_vm1, %v7501_v1 }
 0x203   :  { %6050 = vmatmul.msk.f32.gmra.mxu1 %vm170_vm1, %v7529_v5 }
 0x204   :  { %6083 = vmatmul.msk.f32.gmra.mxu2 %vm170_vm1, %v7529_v5  ;;  %v310_v5 = vadd.f32 %v7829_v54, %v309_v41 }
 0x20b   :  { %6051 = vmatmul.msk.f32.gmra.mxu1 %vm170_vm1, %v7537_v6 }
 0x20c   :  { %6084 = vmatmul.msk.f32.gmra.mxu2 %vm170_vm1, %v7537_v6 }
 0x213   :  { %6052 = vmatmul.msk.f32.gmra.mxu1 %vm170_vm1, %v7550_v8 }
 0x214   :  { %6085 = vmatmul.msk.f32.gmra.mxu2 %vm170_vm1, %v7550_v8 }
 0x21b   :  { %6053 = vmatmul.msk.f32.gmra.mxu1 %vm170_vm1, %v7557_v9 }
 0x223   :  { %v971_v7 = vpop.f32.mrf.mxu3 }
 0x224   :  { %v983_v19 = vadd.f32 %v971_v7, %v301_v3 }
 0x226   :  { %v6114_v22 = vmul.f32 -1.442695, %v983_v19 }
 0x228   :  { %6594 = vpow2.f32 %v6114_v22 }
 0x22b   :  { %v974_v25 = vpop.f32.mrf.mxu3 }
 0x22c   :  { %v984_v27 = vadd.f32 %v974_v25, %v304_v23 }
 0x22e   :  { %v6595_v29 = vpop.eup %6594  ;;  %v6115_v32 = vmul.f32 -1.442695, %v984_v27  ;;  %v427_v27 = vpop.f32.mrf.mxu1 }
 0x22f   :  { %v999_v33 = vadd.f32 1.0, %v6595_v29 }
 0x230   :  { %6596 = vpow2.f32 %v6115_v32 }
 0x231   :  { %6598 = vrcp.f32 %v999_v33  ;;  %v1014_v63 = vand.u32 2147483648, %v999_v33  ;;  %v1012_v28 = vand.u32 2147483647, %v999_v33  ;;  %vm1008_vm8 = vweird.f32 %v999_v33 }
 0x233   :  { %v977_v1 = vpop.f32.mrf.mxu3  ;;  %v1015_v54 = vor.u32 1.1754944e-38, %v1014_v63  ;;  %vm1013_vm10 = vcmp.eq.f32.partialorder %v1012_v28, 8.507059e+37  ;;  %v422_v63 = vadd.f32 %v7910_v16, %v8137_v53 }
 0x234   :  { %v985_v37 = vadd.f32 %v977_v1, %v307_v36  ;;  %v542_v36 = vpop.f32.mrf.mxu2  ;;  %v7195_v1 = vld [vmem:[%s10635_s19 + $0xe0] sm:$0xff] }
 0x235   :  { %6086 = vmatmul.msk.f32.gmra.mxu2 %vm170_vm1, %v7195_v1 }
 0x236   :  { %v6597_v43 = vpop.eup %6596  ;;  %v6116_v45 = vmul.f32 -1.442695, %v985_v37  ;;  %v7196_v37 = vld [vmem:[%s10635_s19 + $0xf0] sm:$0xff] }
 0x237   :  { %v6599_v47 = vpop.eup %6598  ;;  %v1000_v50 = vadd.f32 1.0, %v6597_v43 }
 0x238   :  { %v1004_v0 = vmul.f32 %v6599_v47, %v999_v33  ;;  %6600 = vpow2.f32 %v6116_v45  ;;  %vm1009_vm7 = vweird.f32 %v6599_v47 }
 0x239   :  { %6602 = vrcp.f32 %v1000_v50  ;;  %vm1010_vm9 = vmor %vm1008_vm8, %vm1009_vm7  ;;  %v1029_v42 = vand.u32 2147483648, %v1000_v50  ;;  %v1027_v8 = vand.u32 2147483647, %v1000_v50  ;;  %vm1023_vm12 = vweird.f32 %v1000_v50 }
 0x23a   :  { %v1005_v30 = vsub.f32 1.0, %v1004_v0  ;;  %v430_v0 = vpop.f32.mrf.mxu1 }
 0x23b   :  { %v980_v49 = vpop.f32.mrf.mxu3  ;;  %v1030_v13 = vor.u32 1.1754944e-38, %v1029_v42  ;;  %vm1028_vm14 = vcmp.eq.f32.partialorder %v1027_v8, 8.507059e+37  ;;  %v431_v53 = vadd.f32 %v7910_v16, %v430_v0 }
 0x23c   :  { %v1006_v48 = vmul.f32 %v6599_v47, %v1005_v30  ;;  %v986_v38 = vadd.f32 %v980_v49, %v310_v5  ;;  %v7197_v5 = vld [vmem:[%s10635_s19 + $0xf8] sm:$0xff] }
 0x23e   :  { %v6601_v11 = vpop.eup %6600  ;;  %v1007_v10 = vadd.f32 %v6599_v47, %v1006_v48  ;;  %v6117_v6 = vmul.f32 -1.442695, %v986_v38  ;;  %v425_v38 = vadd.f32 %v7910_v16, %v424_v21 }
 0x23f   :  { %v6603_v24 = vpop.eup %6602  ;;  %v1001_v52 = vadd.f32 1.0, %v6601_v11 }
 0x240   :  { %v1011_v59 = vsel %vm1010_vm9, %v6599_v47, %v1007_v10  ;;  %v1019_v56 = vmul.f32 %v6603_v24, %v1000_v50  ;;  %6604 = vpow2.f32 %v6117_v6  ;;  %vm1024_vm11 = vweird.f32 %v6603_v24 }
 0x241   :  { %6606 = vrcp.f32 %v1001_v52  ;;  %v1016_v57 = vsel %vm1013_vm10, %v1015_v54, %v1011_v59  ;;  %vm1025_vm13 = vmor %vm1023_vm12, %vm1024_vm11  ;;  %v1044_v2 = vand.u32 2147483648, %v1001_v52  ;;  %v1042_v4 = vand.u32 2147483647, %v1001_v52 }
 0x242   :  { %v1020_v51 = vsub.f32 1.0, %v1019_v56  ;;  %v1172_v60 = vmul.f32 %v1016_v57, %v7997_v18  ;;  %vm1038_vm0 = vweird.f32 %v1001_v52  ;;  %v545_v56 = vpop.f32.mrf.mxu2 }
 0x243   :  { %v1045_v19 = vor.u32 1.1754944e-38, %v1044_v2  ;;  %vm1043_vm4 = vcmp.eq.f32.partialorder %v1042_v4, 8.507059e+37  ;;  %v1080_v30 = vpop.f32.mrf.mxu3  ;;  %v543_v2 = vadd.f32 %v7943_v61, %v542_v36 }
 0x244   :  { %6126 = vmatmul.msk.f32.vlgmr.msra.gmra.mxu3 %vm642_vm2, %v1172_v60  ;;  %v1021_v46 = vmul.f32 %v6603_v24, %v1020_v51  ;;  %v1092_v49 = vadd.f32 %v1080_v30, %v422_v63 }
 0x245   :  { %1374 = vmatpush.msra.mxu3 %v7692_v31 }
 0x246   :  { %v6605_v17 = vpop.eup %6604  ;;  %v1022_v15 = vadd.f32 %v6603_v24, %v1021_v46  ;;  %v6122_v28 = vmul.f32 -1.442695, %v1092_v49 }
 0x247   :  { %v6607_v14 = vpop.eup %6606  ;;  %v1002_v44 = vadd.f32 1.0, %v6605_v17  ;;  %1375 = vmatpush.msra.mxu3 %v7715_v35  ;;  %v7194_v35 = vld [vmem:[%s10635_s19 + $0xe8] sm:$0xff] }
 0x248   :  { %v1034_v34 = vmul.f32 %v6607_v14, %v1001_v52  ;;  %v1026_v62 = vsel %vm1025_vm13, %v6603_v24, %v1022_v15  ;;  %vm1039_vm15 = vweird.f32 %v6607_v14  ;;  %6054 = vmatmul.msk.f32.gmra.mxu1 %vm170_vm1, %v7194_v35  ;;  %v428_v24 = vadd.f32 %v7910_v16, %v427_v27  ;;  %6087 = vmatmul.msk.f32.gmra.mxu2 %vm170_vm1, %v7194_v35 }
 0x249   :  { %6608 = vrcp.f32 %v1002_v44  ;;  %v1031_v55 = vsel %vm1028_vm14, %v1030_v13, %v1026_v62  ;;  %1376 = vmatpush.msra.mxu3 %v7738_v39  ;;  %vm1040_vm3 = vmor %vm1038_vm0, %vm1039_vm15  ;;  %v1059_v29 = vand.u32 2147483648, %v1002_v44  ;;  %v1057_v33 = vand.u32 2147483647, %v1002_v44 }
 0x24a   :  { %v1035_v31 = vsub.f32 1.0, %v1034_v34  ;;  %v1173_v9 = vmul.f32 %v1031_v55, %v8022_v20  ;;  %vm1053_vm6 = vweird.f32 %v1002_v44  ;;  %6610 = vpow2.f32 %v6122_v28  ;;  %v548_v17 = vpop.f32.mrf.mxu2 }
 0x24b   :  { %1377 = vmatpush.msra.mxu3 %v7744_v40  ;;  %v1060_v43 = vor.u32 1.1754944e-38, %v1059_v29  ;;  %vm1058_vm8 = vcmp.eq.f32.partialorder %v1057_v33, 8.507059e+37  ;;  %v1083_v48 = vpop.f32.mrf.mxu3  ;;  %v546_v29 = vadd.f32 %v7943_v61, %v545_v56 }
 0x24c   :  { %6127 = vmatmul.msk.f32.gmra.mxu3 %vm642_vm2, %v1173_v9  ;;  %v1036_v3 = vmul.f32 %v6607_v14, %v1035_v31  ;;  %v1093_v11 = vadd.f32 %v1083_v48, %v425_v38  ;;  %v549_v38 = vadd.f32 %v7943_v61, %v548_v17  ;;  %v8225_v17 = vld [vmem:[%s10588_s9 + $0x8] sm:$0xff] }
 0x24e   :  { %v1037_v7 = vadd.f32 %v6607_v14, %v1036_v3  ;;  %v6123_v6 = vmul.f32 -1.442695, %v1093_v11 }
 0x24f   :  { %v6609_v39 = vpop.eup %6608 }
 0x250   :  { %v1049_v22 = vmul.f32 %v6609_v39, %v1002_v44  ;;  %v1041_v23 = vsel %vm1040_vm3, %v6607_v14, %v1037_v7  ;;  %vm1054_vm5 = vweird.f32 %v6609_v39  ;;  %6055 = vmatmul.msk.f32.gmra.mxu1 %vm170_vm1, %v7196_v37  ;;  %v6611_v54 = vpop.eup %6610  ;;  %6612 = vpow2.f32 %v6123_v6  ;;  %6088 = vmatmul.msk.f32.gmra.mxu2 %vm170_vm1, %v7196_v37 }
 0x251   :  { %v1046_v40 = vsel %vm1043_vm4, %v1045_v19, %v1041_v23  ;;  %vm1055_vm7 = vmor %vm1053_vm6, %vm1054_vm5  ;;  %v1108_v59 = vadd.f32 1.0, %v6611_v54 }
 0x252   :  { %v1050_v25 = vsub.f32 1.0, %v1049_v22  ;;  %v1174_v26 = vmul.f32 %v1046_v40, %v8038_v58  ;;  %v8178_v16 = vpop.f32.mrf.mxu2 }
 0x253   :  { %v1086_v10 = vpop.f32.mrf.mxu3  ;;  %6614 = vrcp.f32 %v1108_v59  ;;  %v1123_v7 = vand.u32 2147483648, %v1108_v59  ;;  %vm1117_vm10 = vweird.f32 %v1108_v59 }
 0x254   :  { %6128 = vmatmul.msk.f32.gmra.mxu3 %vm642_vm2, %v1174_v26  ;;  %v1051_v32 = vmul.f32 %v6609_v39, %v1050_v25  ;;  %v1094_v52 = vadd.f32 %v1086_v10, %v428_v24  ;;  %v8208_v24 = vld [vmem:[%s10588_s9 + $0x18] sm:$0xff] }
 0x255   :  { %v1124_v26 = vor.u32 1.1754944e-38, %v1123_v7 }
 0x256   :  { %v1052_v41 = vadd.f32 %v6609_v39, %v1051_v32  ;;  %v6124_v57 = vmul.f32 -1.442695, %v1094_v52  ;;  %v6613_v60 = vpop.eup %6612 }
 0x257   :  { %v1109_v46 = vadd.f32 1.0, %v6613_v60 }
 0x258   :  { %v1056_v45 = vsel %vm1055_vm7, %v6609_v39, %v1052_v41  ;;  %6056 = vmatmul.msk.f32.gmra.mxu1 %vm170_vm1, %v7197_v5  ;;  %6616 = vpow2.f32 %v6124_v57  ;;  %6089 = vmatmul.msk.f32.gmra.mxu2 %vm170_vm1, %v7197_v5  ;;  %v1121_v39 = vand.u32 2147483647, %v1108_v59 }
 0x259   :  { %v1061_v47 = vsel %vm1058_vm8, %v1060_v43, %v1056_v45  ;;  %v6615_v8 = vpop.eup %6614  ;;  %6618 = vrcp.f32 %v1109_v46  ;;  %v1138_v1 = vand.u32 2147483648, %v1109_v46  ;;  %vm1132_vm13 = vweird.f32 %v1109_v46 }
 0x25a   :  { %v1175_v50 = vmul.f32 %v1061_v47, %v8047_v12  ;;  %v1113_v44 = vmul.f32 %v6615_v8, %v1108_v59  ;;  %vm1118_vm9 = vweird.f32 %v6615_v8  ;;  %vm1122_vm11 = vcmp.eq.f32.partialorder %v1121_v39, 8.507059e+37 }
 0x25b   :  { %v1089_v51 = vpop.f32.mrf.mxu3  ;;  %vm1119_vm1 = vmor %vm1117_vm10, %vm1118_vm9  ;;  %v1136_v41 = vand.u32 2147483647, %v1109_v46  ;;  %v1139_v49 = vor.u32 1.1754944e-38, %v1138_v1 }
 0x25c   :  { %6129 = vmatmul.msk.f32.gmra.mxu3 %vm642_vm2, %v1175_v50  ;;  %v1095_v42 = vadd.f32 %v1089_v51, %v431_v53  ;;  %v1114_v34 = vsub.f32 1.0, %v1113_v44  ;;  %v8216_v53 = vld [vmem:[%s10588_s9 + $0x10] sm:$0xff]  ;;  %v552_v44 = vadd.f32 %v7943_v61, %v8178_v16 }
 0x25d   :  { %vm1137_vm15 = vcmp.eq.f32.partialorder %v1136_v41, 8.507059e+37 }
 0x25e   :  { %v6125_v15 = vmul.f32 -1.442695, %v1095_v42  ;;  %v6617_v14 = vpop.eup %6616  ;;  %v1115_v55 = vmul.f32 %v6615_v8, %v1114_v34 }
 0x25f   :  { %v8176_v13 = vadd.f32 1.0, %v6617_v14  ;;  %v6619_v62 = vpop.eup %6618 }
 0x260   :  { %6620 = vpow2.f32 %v6125_v15  ;;  %v1128_v31 = vmul.f32 %v6619_v62, %v1109_v46  ;;  %v1116_v4 = vadd.f32 %v6615_v8, %v1115_v55  ;;  %vm1133_vm12 = vweird.f32 %v6619_v62 }
 0x261   :  { %6622 = vrcp.f32 %v8176_v13  ;;  %vm1134_vm14 = vmor %vm1132_vm13, %vm1133_vm12  ;;  %v1153_v6 = vand.u32 2147483648, %v8176_v13  ;;  %vm1147_vm3 = vweird.f32 %v8176_v13  ;;  %v1151_v52 = vand.u32 2147483647, %v8176_v13 }
 0x262   :  { %v1129_v3 = vsub.f32 1.0, %v1128_v31  ;;  %v1120_v25 = vsel %vm1119_vm1, %v6615_v8, %v1116_v4 }
 0x263   :  { %v1125_v27 = vsel %vm1122_vm11, %v1124_v26, %v1120_v25  ;;  %v1154_v8 = vor.u32 1.1754944e-38, %v1153_v6  ;;  %vm1152_vm5 = vcmp.eq.f32.partialorder %v1151_v52, 8.507059e+37  ;;  %v8261_v25 = vld [vmem:[%s10636_s28 + $0x18] sm:$0xff]  ;;  %v8267_v26 = vld [vmem:[%s10636_s28 + $0x10] sm:$0xff] }
 0x264   :  { %v1130_v23 = vmul.f32 %v6619_v62, %v1129_v3  ;;  %v1229_v37 = vsub.f32 1.0, %v1125_v27  ;;  %v1225_v47 = vmul.f32 %v1125_v27, %v7997_v18  ;;  %v8273_v27 = vld [vmem:[%s10636_s28 + $0x8] sm:$0xff] }
 0x266   :  { %v6621_v21 = vpop.eup %6620  ;;  %v1131_v33 = vadd.f32 %v6619_v62, %v1130_v23 }
 0x267   :  { %v8182_v9 = vadd.f32 1.0, %v6621_v21  ;;  %v8185_v35 = vpop.eup %6622 }
 0x268   :  { %v1143_v40 = vmul.f32 %v8185_v35, %v8176_v13  ;;  %v1135_v63 = vsel %vm1134_vm14, %v6619_v62, %v1131_v33  ;;  %vm1148_vm0 = vweird.f32 %v8185_v35  ;;  %v8235_v13 = vld [vmem:[%s10588_s9] sm:$0xff]  ;;  %v10674_v33 = vld [vmem:[#allocation20_spill] sm:$0xff] }
 0x269   :  { %6624 = vrcp.f32 %v8182_v9  ;;  %v1140_v28 = vsel %vm1137_vm15, %v1139_v49, %v1135_v63  ;;  %vm1149_vm4 = vmor %vm1147_vm3, %vm1148_vm0  ;;  %v1168_v62 = vand.u32 2147483648, %v8182_v9  ;;  %vm1162_vm7 = vweird.f32 %v8182_v9  ;;  %v10676_v63 = vld [vmem:[#allocation22_spill] sm:$0xff] }
 0x26a   :  { %v1144_v32 = vsub.f32 1.0, %v1143_v40  ;;  %v1230_v54 = vsub.f32 1.0, %v1140_v28  ;;  %v1226_v60 = vmul.f32 %v1140_v28, %v8022_v20  ;;  %v1166_v61 = vand.u32 2147483647, %v8182_v9 }
 0x26c   :  { %v1145_v0 = vmul.f32 %v8185_v35, %v1144_v32  ;;  %vm1167_vm9 = vcmp.eq.f32.partialorder %v1166_v61, 8.507059e+37  ;;  %v8291_v32 = vld [vmem:[%s10647_s30] ss:$0 sm:$0xff] }
 0x26d   :  { %v319_v49 = vadd.f32 %v8291_v32, %v10676_v63 }
 0x26e   :  { %v1146_v10 = vadd.f32 %v8185_v35, %v1145_v0 }
 0x26f   :  { %v8191_v36 = vpop.eup %6624 }
 0x270   :  { %v1158_v5 = vmul.f32 %v8191_v36, %v8182_v9  ;;  %v1150_v46 = vsel %vm1149_vm4, %v8185_v35, %v1146_v10  ;;  %vm1163_vm6 = vweird.f32 %v8191_v36  ;;  %v1169_v35 = vor.u32 1.1754944e-38, %v1168_v62 }
 0x271   :  { %v1155_v14 = vsel %vm1152_vm5, %v1154_v8, %v1150_v46  ;;  %vm1164_vm8 = vmor %vm1162_vm7, %vm1163_vm6 }
 0x272   :  { %v1159_v11 = vsub.f32 1.0, %v1158_v5  ;;  %v1231_v21 = vsub.f32 1.0, %v1155_v14 }
 0x274   :  { %v1160_v51 = vmul.f32 %v8191_v36, %v1159_v11 }
 0x276   :  { %v1161_v34 = vadd.f32 %v8191_v36, %v1160_v51 }
 0x278   :  { %v1165_v4 = vsel %vm1164_vm8, %v8191_v36, %v1161_v34  ;;  %v313_v36 = vadd.f32 %v8291_v32, %v10674_v33 }
 0x279   :  { %v1170_v39 = vsel %vm1167_vm9, %v1169_v35, %v1165_v4 }
 0x2c7   :  { %v1205_v19 = vpop.f32.mrf.mxu3 }
 0x2c8   :  { %v1217_v22 = vadd.f32 %v1205_v19, %v543_v2  ;;  %v1227_v2 = vmul.f32 %v1155_v14, %v8038_v58  ;;  %v1232_v19 = vsub.f32 1.0, %v1170_v39 }
 0x2ca   :  { %6626 = vtanh.f32 %v1217_v22  ;;  %v1228_v22 = vmul.f32 %v1170_v39, %v8047_v12 }
 0x2cf   :  { %v1208_v43 = vpop.f32.mrf.mxu3 }
 0x2d0   :  { %v6627_v45 = vpop.eup %6626  ;;  %v1218_v50 = vadd.f32 %v1208_v43, %v546_v29  ;;  %v8279_v29 = vld [vmem:[%s10636_s28] sm:$0xff]  ;;  %v10675_v43 = vld [vmem:[#allocation21_spill] sm:$0xff] }
 0x2d1   :  { %v1233_v30 = vmul.f32 %v6627_v45, %v1229_v37  ;;  %v316_v45 = vadd.f32 %v8291_v32, %v10675_v43 }
 0x2d2   :  { %6628 = vtanh.f32 %v1218_v50 }
 0x2d3   :  { %v8197_v48 = vadd.f32 %v1233_v30, %v1225_v47 }
 0x2d5   :  { %6130 = vmatmul.msk.f32.vlgmr.msrb.gmra.mxu3 %vm642_vm2, %v8197_v48 }
 0x2d6   :  { %1798 = vmatpush.msrb.mxu3 %v8208_v24 }
 0x2d7   :  { %v1211_v59 = vpop.f32.mrf.mxu3 }
 0x2d8   :  { %v6629_v56 = vpop.eup %6628  ;;  %v1219_v57 = vadd.f32 %v1211_v59, %v549_v38  ;;  %1799 = vmatpush.msrb.mxu3 %v8216_v53  ;;  %v10677_v59 = vld [vmem:[#allocation23_spill] sm:$0xff] }
 0x2d9   :  { %v1234_v42 = vmul.f32 %v6629_v56, %v1230_v54  ;;  %v322_v56 = vadd.f32 %v8291_v32, %v10677_v59 }
 0x2da   :  { %6630 = vtanh.f32 %v1219_v57  ;;  %1800 = vmatpush.msrb.mxu3 %v8225_v17 }
 0x2db   :  { %v8228_v15 = vadd.f32 %v1234_v42, %v1226_v60 }
 0x2dc   :  { %1801 = vmatpush.msrb.mxu3 %v8235_v13 }
 0x2dd   :  { %10671 = vst [vmem:[#allocation36_spill] sm:$0xff] %v8228_v15  ;;  %6131 = vmatmul.msk.f32.gmra.mxu3 %vm642_vm2, %v8228_v15 }
 0x2df   :  { %v1214_v16 = vpop.f32.mrf.mxu3 }
 0x2e0   :  { %v6631_v55 = vpop.eup %6630  ;;  %v1220_v31 = vadd.f32 %v1214_v16, %v552_v44 }
 0x2e1   :  { %v1235_v3 = vmul.f32 %v6631_v55, %v1231_v21 }
 0x2e2   :  { %6632 = vtanh.f32 %v1220_v31 }
 0x2e3   :  { %v8247_v7 = vadd.f32 %v1235_v3, %v1227_v2 }
 0x2e5   :  { %10672 = vst [vmem:[#allocation37_spill] sm:$0xff] %v8247_v7  ;;  %6132 = vmatmul.msk.f32.gmra.mxu3 %vm642_vm2, %v8247_v7 }
 0x2e8   :  { %v6633_v9 = vpop.eup %6632 }
 0x2e9   :  { %v1236_v23 = vmul.f32 %v6633_v9, %v1232_v19  ;;  %v8306_v19 = vld [vmem:[%s10639_s5 + $0x18] sm:$0xff] }
 0x2eb   :  { %v8252_v40 = vadd.f32 %v1236_v23, %v1228_v22 }
 0x2ed   :  { %10673 = vst [vmem:[#allocation38_spill] sm:$0xff] %v8252_v40  ;;  %6133 = vmatmul.msk.f32.gmra.mxu3 %vm642_vm2, %v8252_v40 }
 0x2f5   :  { %6138 = vmatmul.msk.f32.vlgmr.msra.gmra.mxu3 %vm642_vm2, %v8197_v48 }
 0x2f6   :  { %2162 = vmatpush.msra.mxu3 %v8261_v25 }
 0x2f8   :  { %2163 = vmatpush.msra.mxu3 %v8267_v26 }
 0x2fa   :  { %2164 = vmatpush.msra.mxu3 %v8273_v27 }
 0x2fc   :  { %2165 = vmatpush.msra.mxu3 %v8279_v29 }
 0x2fd   :  { %6139 = vmatmul.msk.f32.gmra.mxu3 %vm642_vm2, %v8228_v15 }
 0x305   :  { %6140 = vmatmul.msk.f32.gmra.mxu3 %vm642_vm2, %v8247_v7 }
 0x30d   :  { %6141 = vmatmul.msk.f32.gmra.mxu3 %vm642_vm2, %v8252_v40 }
 0x358   :  { %v1270_v1 = vpop.f32.mrf.mxu3 }
 0x359   :  { %v1282_v37 = vadd.f32 %v1270_v1, %v313_v36  ;;  %v8312_v1 = vld [vmem:[%s10639_s5 + $0x10] sm:$0xff] }
 0x35b   :  { %v6134_v41 = vmul.f32 -1.442695, %v1282_v37 }
 0x35d   :  { %6634 = vpow2.f32 %v6134_v41 }
 0x360   :  { %v1273_v47 = vpop.f32.mrf.mxu3 }
 0x361   :  { %v1283_v50 = vadd.f32 %v1273_v47, %v316_v45  ;;  %v8318_v45 = vld [vmem:[%s10639_s5 + $0x8] sm:$0xff] }
 0x363   :  { %v6635_v0 = vpop.eup %6634  ;;  %v6135_v5 = vmul.f32 -1.442695, %v1283_v50 }
 0x364   :  { %v1298_v30 = vadd.f32 1.0, %v6635_v0 }
 0x365   :  { %6636 = vpow2.f32 %v6135_v5  ;;  %v8325_v5 = vld [vmem:[%s10639_s5] sm:$0xff] }
 0x366   :  { %6638 = vrcp.f32 %v1298_v30  ;;  %v1313_v60 = vand.u32 2147483648, %v1298_v30  ;;  %v1311_v8 = vand.u32 2147483647, %v1298_v30  ;;  %vm1307_vm1 = vweird.f32 %v1298_v30 }
 0x368   :  { %v1276_v28 = vpop.f32.mrf.mxu3  ;;  %v1314_v61 = vor.u32 1.1754944e-38, %v1313_v60  ;;  %vm1312_vm12 = vcmp.eq.f32.partialorder %v1311_v8, 8.507059e+37 }
 0x369   :  { %v1284_v38 = vadd.f32 %v1276_v28, %v319_v49 }
 0x36b   :  { %v6637_v11 = vpop.eup %6636  ;;  %v6136_v10 = vmul.f32 -1.442695, %v1284_v38 }
 0x36c   :  { %v6639_v6 = vpop.eup %6638  ;;  %v1299_v54 = vadd.f32 1.0, %v6637_v11 }
 0x36d   :  { %v1303_v52 = vmul.f32 %v6639_v6, %v1298_v30  ;;  %6640 = vpow2.f32 %v6136_v10  ;;  %vm1308_vm10 = vweird.f32 %v6639_v6 }
 0x36e   :  { %6642 = vrcp.f32 %v1299_v54  ;;  %vm1309_vm11 = vmor %vm1307_vm1, %vm1308_vm10  ;;  %v1328_v4 = vand.u32 2147483648, %v1299_v54  ;;  %v1326_v39 = vand.u32 2147483647, %v1299_v54  ;;  %vm1322_vm14 = vweird.f32 %v1299_v54 }
 0x36f   :  { %v1304_v57 = vsub.f32 1.0, %v1303_v52 }
 0x370   :  { %v1279_v51 = vpop.f32.mrf.mxu3  ;;  %v1329_v36 = vor.u32 1.1754944e-38, %v1328_v4  ;;  %vm1327_vm0 = vcmp.eq.f32.partialorder %v1326_v39, 8.507059e+37 }
 0x371   :  { %v1285_v42 = vadd.f32 %v1279_v51, %v322_v56  ;;  %v1305_v46 = vmul.f32 %v6639_v6, %v1304_v57 }
 0x373   :  { %v6641_v14 = vpop.eup %6640  ;;  %v6137_v44 = vmul.f32 -1.442695, %v1285_v42  ;;  %v1306_v34 = vadd.f32 %v6639_v6, %v1305_v46 }
 0x374   :  { %v6643_v62 = vpop.eup %6642  ;;  %v1300_v21 = vadd.f32 1.0, %v6641_v14  ;;  %v433_v14 = vpop.f32.mrf.mxu1 }
 0x375   :  { %6644 = vpow2.f32 %v6137_v44  ;;  %v1310_v16 = vsel %vm1309_vm11, %v6639_v6, %v1306_v34  ;;  %v1318_v55 = vmul.f32 %v6643_v62, %v1299_v54  ;;  %vm1323_vm13 = vweird.f32 %v6643_v62 }
 0x376   :  { %6646 = vrcp.f32 %v1300_v21  ;;  %v1315_v31 = vsel %vm1312_vm12, %v1314_v61, %v1310_v16  ;;  %vm1324_vm15 = vmor %vm1322_vm14, %vm1323_vm13  ;;  %v1343_v0 = vand.u32 2147483648, %v1300_v21  ;;  %v1341_v63 = vand.u32 2147483647, %v1300_v21  ;;  %v8338_v16 = vld [vmem:[%s10660_s18] ss:$0 sm:$0xff] }
 0x377   :  { %v1471_v2 = vmul.f32 %v1315_v31, %v8197_v48  ;;  %v1319_v3 = vsub.f32 1.0, %v1318_v55  ;;  %vm1337_vm4 = vweird.f32 %v1300_v21  ;;  %v434_v55 = vadd.f32 %v8338_v16, %v433_v14 }
 0x378   :  { %v1344_v38 = vor.u32 1.1754944e-38, %v1343_v0  ;;  %vm1342_vm6 = vcmp.eq.f32.partialorder %v1341_v63, 8.507059e+37  ;;  %v1379_v61 = vpop.f32.mrf.mxu3 }
 0x379   :  { %6146 = vmatmul.msk.f32.vlgmr.msrb.gmra.mxu0 %vm642_vm2, %v1471_v2  ;;  %v1320_v35 = vmul.f32 %v6643_v62, %v1319_v3  ;;  %v1391_v2 = vadd.f32 %v1379_v61, %v434_v55 }
 0x37a   :  { %2271 = vmatpush.msrb.mxu0 %v8306_v19 }
 0x37b   :  { %v6645_v9 = vpop.eup %6644  ;;  %v1321_v22 = vadd.f32 %v6643_v62, %v1320_v35  ;;  %v6142_v4 = vmul.f32 -1.442695, %v1391_v2 }
 0x37c   :  { %v6647_v23 = vpop.eup %6646  ;;  %v1301_v33 = vadd.f32 1.0, %v6645_v9  ;;  %2272 = vmatpush.msrb.mxu0 %v8312_v1  ;;  %v436_v44 = vpop.f32.mrf.mxu1 }
 0x37d   :  { %v1325_v37 = vsel %vm1324_vm15, %v6643_v62, %v1321_v22  ;;  %v1333_v41 = vmul.f32 %v6647_v23, %v1300_v21  ;;  %vm1338_vm3 = vweird.f32 %v6647_v23  ;;  %v437_v35 = vadd.f32 %v8338_v16, %v436_v44 }
 0x37e   :  { %6648 = vrcp.f32 %v1301_v33  ;;  %v1330_v43 = vsel %vm1327_vm0, %v1329_v36, %v1325_v37  ;;  %2273 = vmatpush.msrb.mxu0 %v8318_v45  ;;  %vm1339_vm5 = vmor %vm1337_vm4, %vm1338_vm3  ;;  %v1358_v59 = vand.u32 2147483648, %v1301_v33  ;;  %v1356_v57 = vand.u32 2147483647, %v1301_v33 }
 0x37f   :  { %v1472_v47 = vmul.f32 %v1330_v43, %v8228_v15  ;;  %v1334_v50 = vsub.f32 1.0, %v1333_v41  ;;  %vm1352_vm8 = vweird.f32 %v1301_v33  ;;  %6650 = vpow2.f32 %v6142_v4 }
 0x380   :  { %2274 = vmatpush.msrb.mxu0 %v8325_v5  ;;  %v1359_v60 = vor.u32 1.1754944e-38, %v1358_v59  ;;  %vm1357_vm10 = vcmp.eq.f32.partialorder %v1356_v57, 8.507059e+37  ;;  %v1382_v3 = vpop.f32.mrf.mxu3 }
 0x381   :  { %6147 = vmatmul.msk.f32.gmra.mxu0 %vm642_vm2, %v1472_v47  ;;  %v1335_v30 = vmul.f32 %v6647_v23, %v1334_v50  ;;  %v1392_v9 = vadd.f32 %v1382_v3, %v437_v35 }
 0x383   :  { %v1336_v49 = vadd.f32 %v6647_v23, %v1335_v30 }
 0x384   :  { %v6649_v28 = vpop.eup %6648  ;;  %v439_v34 = vpop.f32.mrf.mxu1 }
 0x385   :  { %v1340_v11 = vsel %vm1339_vm5, %v6647_v23, %v1336_v49  ;;  %v1348_v10 = vmul.f32 %v6649_v28, %v1301_v33  ;;  %vm1353_vm7 = vweird.f32 %v6649_v28  ;;  %v6143_v23 = vmul.f32 -1.442695, %v1392_v9  ;;  %v6651_v36 = vpop.eup %6650 }
 0x386   :  { %v1345_v6 = vsel %vm1342_vm6, %v1344_v38, %v1340_v11  ;;  %vm1354_vm9 = vmor %vm1352_vm8, %vm1353_vm7  ;;  %v440_v33 = vadd.f32 %v8338_v16, %v439_v34  ;;  %v1407_v43 = vadd.f32 1.0, %v6651_v36 }
 0x387   :  { %v1473_v54 = vmul.f32 %v1345_v6, %v8247_v7  ;;  %v1349_v52 = vsub.f32 1.0, %v1348_v10  ;;  %6652 = vpow2.f32 %v6143_v23 }
 0x388   :  { %v1385_v22 = vpop.f32.mrf.mxu3  ;;  %6654 = vrcp.f32 %v1407_v43  ;;  %v1422_v61 = vand.u32 2147483648, %v1407_v43  ;;  %vm1416_vm11 = vweird.f32 %v1407_v43  ;;  %v1420_v3 = vand.u32 2147483647, %v1407_v43 }
 0x389   :  { %6148 = vmatmul.msk.f32.gmra.mxu0 %vm642_vm2, %v1473_v54  ;;  %v1350_v56 = vmul.f32 %v6649_v28, %v1349_v52  ;;  %v1393_v37 = vadd.f32 %v1385_v22, %v440_v33 }
 0x38a   :  { %v1423_v33 = vor.u32 1.1754944e-38, %v1422_v61  ;;  %vm1421_vm13 = vcmp.eq.f32.partialorder %v1420_v3, 8.507059e+37 }
 0x38b   :  { %v1351_v51 = vadd.f32 %v6649_v28, %v1350_v56  ;;  %v6144_v47 = vmul.f32 -1.442695, %v1393_v37  ;;  %v554_v56 = vpop.f32.mrf.mxu2 }
 0x38c   :  { %v442_v62 = vpop.f32.mrf.mxu1 }
 0x38d   :  { %v1355_v42 = vsel %vm1354_vm9, %v6649_v28, %v1351_v51  ;;  %v443_v50 = vadd.f32 %v8338_v16, %v442_v62  ;;  %v6653_v30 = vpop.eup %6652  ;;  %6656 = vpow2.f32 %v6144_v47 }
 0x38e   :  { %v1360_v46 = vsel %vm1357_vm10, %v1359_v60, %v1355_v42  ;;  %v1408_v28 = vadd.f32 1.0, %v6653_v30  ;;  %v6655_v38 = vpop.eup %6654 }
 0x38f   :  { %v1474_v8 = vmul.f32 %v1360_v46, %v8252_v40  ;;  %v1412_v6 = vmul.f32 %v6655_v38, %v1407_v43  ;;  %vm1417_vm1 = vweird.f32 %v6655_v38 }
 0x390   :  { %v1388_v0 = vpop.f32.mrf.mxu3  ;;  %6658 = vrcp.f32 %v1408_v28  ;;  %vm1418_vm12 = vmor %vm1416_vm11, %vm1417_vm1  ;;  %vm1431_vm15 = vweird.f32 %v1408_v28 }
 0x391   :  { %6149 = vmatmul.msk.f32.gmra.mxu0 %vm642_vm2, %v1474_v8  ;;  %v1394_v63 = vadd.f32 %v1388_v0, %v443_v50  ;;  %v1413_v59 = vsub.f32 1.0, %v1412_v6  ;;  %v8362_v8 = vld [vmem:[%s10589_s10] ss:$0 sm:$0xff]  ;;  %v1437_v0 = vand.u32 2147483648, %v1408_v28 }
 0x392   :  { %v555_v14 = vadd.f32 %v8362_v8, %v554_v56 }
 0x393   :  { %v6145_v11 = vmul.f32 -1.442695, %v1394_v63  ;;  %v6657_v10 = vpop.eup %6656  ;;  %v1414_v60 = vmul.f32 %v6655_v38, %v1413_v59  ;;  %v557_v2 = vpop.f32.mrf.mxu2  ;;  %v1435_v63 = vand.u32 2147483647, %v1408_v28 }
 0x394   :  { %v8333_v21 = vpop.f32.mrf.mxu1  ;;  %v8352_v54 = vadd.f32 1.0, %v6657_v10  ;;  %v558_v36 = vadd.f32 %v8362_v8, %v557_v2 }
 0x395   :  { %6660 = vpow2.f32 %v6145_v11  ;;  %v1415_v34 = vadd.f32 %v6655_v38, %v1414_v60  ;;  %vm1436_vm3 = vcmp.eq.f32.partialorder %v1435_v63, 8.507059e+37 }
 0x396   :  { %v6659_v57 = vpop.eup %6658  ;;  %6662 = vrcp.f32 %v8352_v54  ;;  %vm1446_vm5 = vweird.f32 %v8352_v54 }
 0x397   :  { %v1427_v42 = vmul.f32 %v6659_v57, %v1408_v28  ;;  %v1419_v23 = vsel %vm1418_vm12, %v6655_v38, %v1415_v34  ;;  %vm1432_vm14 = vweird.f32 %v6659_v57 }
 0x398   :  { %v1424_v37 = vsel %vm1421_vm13, %v1423_v33, %v1419_v23  ;;  %vm1433_vm0 = vmor %vm1431_vm15, %vm1432_vm14 }
 0x399   :  { %v1428_v44 = vsub.f32 1.0, %v1427_v42  ;;  %v1528_v30 = vsub.f32 1.0, %v1424_v37  ;;  %v1524_v6 = vmul.f32 %v1424_v37, %v8197_v48 }
 0x39b   :  { %v6661_v51 = vpop.eup %6660  ;;  %v1429_v9 = vmul.f32 %v6659_v57, %v1428_v44  ;;  %v560_v60 = vpop.f32.mrf.mxu2  ;;  %v1438_v44 = vor.u32 1.1754944e-38, %v1437_v0 }
 0x39c   :  { %v8341_v31 = vpop.f32.mrf.mxu1  ;;  %v8357_v46 = vadd.f32 1.0, %v6661_v51  ;;  %v8365_v62 = vpop.eup %6662  ;;  %v561_v28 = vadd.f32 %v8362_v8, %v560_v60 }
 0x39d   :  { %v1442_v22 = vmul.f32 %v8365_v62, %v8352_v54  ;;  %v1430_v50 = vadd.f32 %v6659_v57, %v1429_v9  ;;  %vm1447_vm4 = vweird.f32 %v8365_v62 }
 0x39e   :  { %6664 = vrcp.f32 %v8357_v46  ;;  %vm8395_vm6 = vmor %vm1446_vm5, %vm1447_vm4  ;;  %vm1461_vm9 = vweird.f32 %v8357_v46 }
 0x39f   :  { %v1443_v47 = vsub.f32 1.0, %v1442_v22 }
 0x3a1   :  { %v1444_v56 = vmul.f32 %v8365_v62, %v1443_v47 }
 0x3a3   :  { %v1445_v3 = vadd.f32 %v8365_v62, %v1444_v56 }
 0x3a4   :  { %v8344_v39 = vpop.f32.mrf.mxu1  ;;  %v8373_v43 = vpop.eup %6664 }
 0x3a5   :  { %v1457_v51 = vmul.f32 %v8373_v43, %v8357_v46  ;;  %vm1462_vm8 = vweird.f32 %v8373_v43 }
 0x3a6   :  { %vm1463_vm10 = vmor %vm1461_vm9, %vm1462_vm8 }
 0x3a7   :  { %v1458_v2 = vsub.f32 1.0, %v1457_v51 }
 0x3ac   :  { %v8347_v41 = vpop.f32.mrf.mxu1 }
 0x3b4   :  { %v8350_v49 = vpop.f32.mrf.mxu1 }
 0x3bc   :  { %v8354_v52 = vpop.f32.mrf.mxu1 }
 0x3c4   :  { %v8367_v55 = vpop.f32.mrf.mxu1 }
 0x3cc   :  { %v8376_v59 = vpop.f32.mrf.mxu1 }
 0x3f6   :  { %v1504_v4 = vpop.f32.mrf.mxu0 }
 0x3f7   :  { %v1516_v35 = vadd.f32 %v1504_v4, %v555_v14  ;;  %v1434_v14 = vsel %vm1433_vm0, %v6659_v57, %v1430_v50  ;;  %v1452_v57 = vand.u32 2147483648, %v8352_v54  ;;  %v8406_v50 = vpop.f32.mrf.mxu1 }
 0x3f8   :  { %v1439_v61 = vsel %vm1436_vm3, %v1438_v44, %v1434_v14 }
 0x3f9   :  { %6666 = vtanh.f32 %v1516_v35  ;;  %v1529_v4 = vsub.f32 1.0, %v1439_v61  ;;  %v1450_v35 = vand.u32 2147483647, %v8352_v54  ;;  %v1449_v54 = vsel %vm8395_vm6, %v8365_v62, %v1445_v3 }
 0x3fa   :  { %v1453_v47 = vor.u32 1.1754944e-38, %v1452_v57  ;;  %v1467_v62 = vand.u32 2147483648, %v8357_v46 }
 0x3fb   :  { %vm1451_vm7 = vcmp.eq.f32.partialorder %v1450_v35, 8.507059e+37 }
 0x3fc   :  { %v1454_v63 = vsel %vm1451_vm7, %v1453_v47, %v1449_v54 }
 0x3fd   :  { %v1526_v56 = vmul.f32 %v1454_v63, %v8247_v7 }
 0x3fe   :  { %v1507_v11 = vpop.f32.mrf.mxu0 }
 0x3ff   :  { %v6667_v10 = vpop.eup %6666  ;;  %v1517_v38 = vadd.f32 %v1507_v11, %v558_v36  ;;  %v1525_v36 = vmul.f32 %v1439_v61, %v8228_v15  ;;  %v1530_v11 = vsub.f32 1.0, %v1454_v63 }
 0x400   :  { %v1532_v42 = vmul.f32 %v6667_v10, %v1528_v30  ;;  %v1465_v10 = vand.u32 2147483647, %v8357_v46 }
 0x401   :  { %6668 = vtanh.f32 %v1517_v38 }
 0x402   :  { %v8381_v34 = vadd.f32 %v1532_v42, %v1524_v6  ;;  %v1468_v42 = vor.u32 1.1754944e-38, %v1467_v62  ;;  %vm1466_vm1 = vcmp.eq.f32.partialorder %v1465_v10, 8.507059e+37 }
 0x404   :  { %6150 = vmatmul.msk.f32.vlgmr.msra.gmra.mxu1 %vm642_vm2, %v8381_v34  ;;  %6158 = vmatmul.msk.f32.vlgmr.msra.gmra.mxu2 %vm642_vm2, %v8381_v34 }
 0x405   :  { %2396 = vmatpush.msra.mxu1 %v8208_v24  ;;  %2461 = vmatpush.msra.mxu2 %v8261_v25  ;;  %v1459_v24 = vmul.f32 %v8373_v43, %v1458_v2 }
 0x406   :  { %v1510_v9 = vpop.f32.mrf.mxu0 }
 0x407   :  { %v6669_v22 = vpop.eup %6668  ;;  %v1518_v33 = vadd.f32 %v1510_v9, %v561_v28  ;;  %2397 = vmatpush.msra.mxu1 %v8216_v53  ;;  %2462 = vmatpush.msra.mxu2 %v8267_v26  ;;  %v563_v53 = vpop.f32.mrf.mxu2 }
 0x408   :  { %v1533_v37 = vmul.f32 %v6669_v22, %v1529_v4  ;;  %v564_v30 = vadd.f32 %v8362_v8, %v563_v53  ;;  %v8428_v28 = vpop.f32.mrf.mxu1 }
 0x409   :  { %6670 = vtanh.f32 %v1518_v33  ;;  %2398 = vmatpush.msra.mxu1 %v8225_v17  ;;  %2463 = vmatpush.msra.mxu2 %v8273_v27  ;;  %v1460_v17 = vadd.f32 %v8373_v43, %v1459_v24 }
 0x40a   :  { %v8410_v0 = vadd.f32 %v1533_v37, %v1525_v36 }
 0x40b   :  { %2399 = vmatpush.msra.mxu1 %v8235_v13  ;;  %2464 = vmatpush.msra.mxu2 %v8279_v29  ;;  %v1464_v60 = vsel %vm1463_vm10, %v8373_v43, %v1460_v17 }
 0x40c   :  { %6151 = vmatmul.msk.f32.gmra.mxu1 %vm642_vm2, %v8410_v0  ;;  %6159 = vmatmul.msk.f32.gmra.mxu2 %vm642_vm2, %v8410_v0  ;;  %v1469_v44 = vsel %vm1466_vm1, %v1468_v42, %v1464_v60  ;;  %v10689_v42 = vld [vmem:[#allocation26_spill] sm:$0xff] }
 0x40d   :  { %v1531_v46 = vsub.f32 1.0, %v1469_v44  ;;  %v1527_v2 = vmul.f32 %v1469_v44, %v8252_v40  ;;  %v328_v44 = vadd.f32 %v8291_v32, %v10689_v42 }
 0x40e   :  { %v1513_v13 = vpop.f32.mrf.mxu0 }
 0x40f   :  { %v6671_v6 = vpop.eup %6670  ;;  %v1519_v38 = vadd.f32 %v1513_v13, %v564_v30  ;;  %v8445_v35 = vpop.f32.mrf.mxu2  ;;  %v10688_v13 = vld [vmem:[#allocation24_spill] sm:$0xff] }
 0x410   :  { %v1534_v51 = vmul.f32 %v6671_v6, %v1530_v11  ;;  %v8441_v57 = vpop.f32.mrf.mxu1  ;;  %v325_v6 = vadd.f32 %v8291_v32, %v10688_v13 }
 0x411   :  { %6672 = vtanh.f32 %v1519_v38 }
 0x412   :  { %v8426_v14 = vadd.f32 %v1534_v51, %v1526_v56 }
 0x414   :  { %6152 = vmatmul.msk.f32.gmra.mxu1 %vm642_vm2, %v8426_v14  ;;  %6160 = vmatmul.msk.f32.gmra.mxu2 %vm642_vm2, %v8426_v14 }
 0x417   :  { %v6673_v61 = vpop.eup %6672  ;;  %v8449_v22 = vpop.f32.mrf.mxu2 }
 0x418   :  { %v1535_v3 = vmul.f32 %v6673_v61, %v1531_v46  ;;  %v8443_v4 = vpop.f32.mrf.mxu1 }
 0x41a   :  { %v8435_v43 = vadd.f32 %v1535_v3, %v1527_v2 }
 0x41c   :  { %6153 = vmatmul.msk.f32.gmra.mxu1 %vm642_vm2, %v8435_v43  ;;  %6161 = vmatmul.msk.f32.gmra.mxu2 %vm642_vm2, %v8435_v43 }
 0x41f   :  { %v8453_v33 = vpop.f32.mrf.mxu2 }
 0x420   :  { %v8447_v9 = vpop.f32.mrf.mxu1 }
 0x421   :  { %10680 = vst [vmem:[#allocation20_spill] sm:$0xff] %v8447_v9 }
 0x427   :  { %v8457_v36 = vpop.f32.mrf.mxu2 }
 0x428   :  { %v8451_v23 = vpop.f32.mrf.mxu1 }
 0x429   :  { %10681 = vst [vmem:[#allocation21_spill] sm:$0xff] %v8451_v23 }
 0x42f   :  { %v8461_v54 = vpop.f32.mrf.mxu2 }
 0x430   :  { %v8455_v24 = vpop.f32.mrf.mxu1 }
 0x431   :  { %10682 = vst [vmem:[#allocation22_spill] sm:$0xff] %v8455_v24 }
 0x437   :  { %v8465_v53 = vpop.f32.mrf.mxu2 }
 0x438   :  { %v8459_v37 = vpop.f32.mrf.mxu1 }
 0x439   :  { %10683 = vst [vmem:[#allocation23_spill] sm:$0xff] %v8459_v37 }
 0x43f   :  { %v8469_v63 = vpop.f32.mrf.mxu2 }
 0x440   :  { %v8463_v47 = vpop.f32.mrf.mxu1 }
 0x441   :  { %10684 = vst [vmem:[#allocation39_spill] sm:$0xff] %v8463_v47 }
 0x447   :  { %v8473_v62 = vpop.f32.mrf.mxu2 }
 0x448   :  { %v8467_v30 = vpop.f32.mrf.mxu1 }
 0x449   :  { %10685 = vst [vmem:[#allocation40_spill] sm:$0xff] %v8467_v30  ;;  %v10690_v30 = vld [vmem:[#allocation28_spill] sm:$0xff] }
 0x44a   :  { %v331_v13 = vadd.f32 %v8291_v32, %v10690_v30 }
 0x44f   :  { %v8477_v10 = vpop.f32.mrf.mxu2 }
 0x450   :  { %v8471_v17 = vpop.f32.mrf.mxu1 }
 0x451   :  { %10686 = vst [vmem:[#allocation41_spill] sm:$0xff] %v8471_v17 }
 0x457   :  { %v8481_v56 = vpop.f32.mrf.mxu2 }
 0x458   :  { %v8475_v11 = vpop.f32.mrf.mxu1 }
 0x459   :  { %10687 = vst [vmem:[#allocation42_spill] sm:$0xff] %v8475_v11 }
 0x45f   :  { %v8485_v3 = vpop.f32.mrf.mxu2 }
 0x467   :  { %v8489_v24 = vpop.f32.mrf.mxu2 }
 0x481   :  { %v1569_v38 = vpop.f32.mrf.mxu1 }
 0x482   :  { %v1581_v51 = vadd.f32 %v1569_v38, %v325_v6 }
 0x484   :  { %v6154_v60 = vmul.f32 -1.442695, %v1581_v51 }
 0x486   :  { %6674 = vpow2.f32 %v6154_v60 }
 0x489   :  { %v1572_v46 = vpop.f32.mrf.mxu1 }
 0x48a   :  { %v1582_v61 = vadd.f32 %v1572_v46, %v328_v44  ;;  %v10691_v44 = vld [vmem:[#allocation30_spill] sm:$0xff] }
 0x48b   :  { %v334_v46 = vadd.f32 %v8291_v32, %v10691_v44 }
 0x48c   :  { %v6675_v2 = vpop.eup %6674  ;;  %v6155_v11 = vmul.f32 -1.442695, %v1582_v61 }
 0x48d   :  { %v1597_v17 = vadd.f32 1.0, %v6675_v2 }
 0x48e   :  { %6676 = vpow2.f32 %v6155_v11 }
 0x48f   :  { %6678 = vrcp.f32 %v1597_v17  ;;  %v1612_v11 = vand.u32 2147483648, %v1597_v17  ;;  %v1610_v30 = vand.u32 2147483647, %v1597_v17  ;;  %vm1606_vm12 = vweird.f32 %v1597_v17 }
 0x491   :  { %v1575_v47 = vpop.f32.mrf.mxu1  ;;  %v1613_v7 = vor.u32 1.1754944e-38, %v1612_v11  ;;  %vm1611_vm14 = vcmp.eq.f32.partialorder %v1610_v30, 8.507059e+37 }
 0x492   :  { %v1583_v37 = vadd.f32 %v1575_v47, %v331_v13 }
 0x494   :  { %v6677_v6 = vpop.eup %6676  ;;  %v6156_v38 = vmul.f32 -1.442695, %v1583_v37 }
 0x495   :  { %v6679_v51 = vpop.eup %6678  ;;  %v1598_v60 = vadd.f32 1.0, %v6677_v6 }
 0x496   :  { %v1602_v42 = vmul.f32 %v6679_v51, %v1597_v17  ;;  %6680 = vpow2.f32 %v6156_v38  ;;  %vm1607_vm11 = vweird.f32 %v6679_v51 }
 0x497   :  { %6682 = vrcp.f32 %v1598_v60  ;;  %vm1608_vm13 = vmor %vm1606_vm12, %vm1607_vm11  ;;  %vm1621_vm0 = vweird.f32 %v1598_v60 }
 0x498   :  { %v1603_v61 = vsub.f32 1.0, %v1602_v42  ;;  %v8493_v42 = vpop.f32.mrf.mxu2 }
 0x499   :  { %v1578_v2 = vpop.f32.mrf.mxu1 }
 0x49a   :  { %v1604_v40 = vmul.f32 %v6679_v51, %v1603_v61  ;;  %v1584_v23 = vadd.f32 %v1578_v2, %v334_v46  ;;  %v1627_v46 = vand.u32 2147483648, %v1598_v60 }
 0x49c   :  { %v6681_v47 = vpop.eup %6680  ;;  %v1605_v13 = vadd.f32 %v6679_v51, %v1604_v40  ;;  %v6157_v37 = vmul.f32 -1.442695, %v1584_v23  ;;  %v1625_v23 = vand.u32 2147483647, %v1598_v60 }
 0x49d   :  { %v6683_v6 = vpop.eup %6682  ;;  %v1599_v9 = vadd.f32 1.0, %v6681_v47 }
 0x49e   :  { %v1609_v38 = vsel %vm1608_vm13, %v6679_v51, %v1605_v13  ;;  %v1617_v15 = vmul.f32 %v6683_v6, %v1598_v60  ;;  %6684 = vpow2.f32 %v6157_v37  ;;  %vm1622_vm15 = vweird.f32 %v6683_v6 }
 0x49f   :  { %6686 = vrcp.f32 %v1599_v9  ;;  %v1614_v32 = vsel %vm1611_vm14, %v1613_v7, %v1609_v38  ;;  %vm1623_vm3 = vmor %vm1621_vm0, %vm1622_vm15  ;;  %v1628_v7 = vor.u32 1.1754944e-38, %v1627_v46  ;;  %vm1626_vm4 = vcmp.eq.f32.partialorder %v1625_v23, 8.507059e+37 }
 0x4a0   :  { %v1618_v44 = vsub.f32 1.0, %v1617_v15  ;;  %v1770_v61 = vmul.f32 %v1614_v32, %v8381_v34  ;;  %v8502_v60 = vpop.f32.mrf.mxu2  ;;  %vm1636_vm6 = vweird.f32 %v1599_v9 }
 0x4a2   :  { %6166 = vmatmul.msk.f32.vlgmr.msrb.gmra.mxu3 %vm642_vm2, %v1770_v61  ;;  %v1619_v40 = vmul.f32 %v6683_v6, %v1618_v44 }
 0x4a3   :  { %2570 = vmatpush.msrb.mxu3 %v8306_v19  ;;  %v1642_v19 = vand.u32 2147483648, %v1599_v9 }
 0x4a4   :  { %v6685_v17 = vpop.eup %6684  ;;  %v1620_v51 = vadd.f32 %v6683_v6, %v1619_v40 }
 0x4a5   :  { %v6687_v11 = vpop.eup %6686  ;;  %v1600_v2 = vadd.f32 1.0, %v6685_v17  ;;  %2571 = vmatpush.msrb.mxu3 %v8312_v1  ;;  %v1640_v1 = vand.u32 2147483647, %v1599_v9  ;;  %v1643_v44 = vor.u32 1.1754944e-38, %v1642_v19 }
 0x4a6   :  { %v1632_v15 = vmul.f32 %v6687_v11, %v1599_v9  ;;  %v1624_v30 = vsel %vm1623_vm3, %v6683_v6, %v1620_v51  ;;  %vm1637_vm5 = vweird.f32 %v6687_v11 }
 0x4a7   :  { %6688 = vrcp.f32 %v1600_v2  ;;  %v1629_v47 = vsel %vm1626_vm4, %v1628_v7, %v1624_v30  ;;  %2572 = vmatpush.msrb.mxu3 %v8318_v45  ;;  %vm1638_vm7 = vmor %vm1636_vm6, %vm1637_vm5  ;;  %vm1641_vm8 = vcmp.eq.f32.partialorder %v1640_v1, 8.507059e+37  ;;  %v1655_v51 = vand.u32 2147483647, %v1600_v2 }
 0x4a8   :  { %v1633_v13 = vsub.f32 1.0, %v1632_v15  ;;  %v1771_v37 = vmul.f32 %v1629_v47, %v8410_v0  ;;  %v8507_v7 = vpop.f32.mrf.mxu2  ;;  %vm1651_vm10 = vweird.f32 %v1600_v2 }
 0x4a9   :  { %2573 = vmatpush.msrb.mxu3 %v8325_v5  ;;  %v1657_v5 = vand.u32 2147483648, %v1600_v2  ;;  %vm1656_vm11 = vcmp.eq.f32.partialorder %v1655_v51, 8.507059e+37 }
 0x4aa   :  { %6167 = vmatmul.msk.f32.gmra.mxu3 %vm642_vm2, %v1771_v37  ;;  %v1634_v38 = vmul.f32 %v6687_v11, %v1633_v13 }
 0x4ab   :  { %v1658_v9 = vor.u32 1.1754944e-38, %v1657_v5 }
 0x4ac   :  { %v1635_v32 = vadd.f32 %v6687_v11, %v1634_v38 }
 0x4ad   :  { %v6689_v6 = vpop.eup %6688 }
 0x4ae   :  { %v1647_v61 = vmul.f32 %v6689_v6, %v1600_v2  ;;  %v1639_v45 = vsel %vm1638_vm7, %v6687_v11, %v1635_v32  ;;  %vm1652_vm9 = vweird.f32 %v6689_v6  ;;  %v446_v32 = vadd.f32 %v8338_v16, %v8333_v21 }
 0x4af   :  { %v1644_v46 = vsel %vm1641_vm8, %v1643_v44, %v1639_v45  ;;  %vm1653_vm1 = vmor %vm1651_vm10, %vm1652_vm9  ;;  %v449_v45 = vadd.f32 %v8338_v16, %v8341_v31 }
 0x4b0   :  { %v1648_v40 = vsub.f32 1.0, %v1647_v61  ;;  %v1772_v23 = vmul.f32 %v1644_v46, %v8426_v14  ;;  %v8511_v13 = vpop.f32.mrf.mxu2 }
 0x4b2   :  { %6168 = vmatmul.msk.f32.gmra.mxu3 %vm642_vm2, %v1772_v23  ;;  %v1649_v17 = vmul.f32 %v6689_v6, %v1648_v40 }
 0x4b4   :  { %v1650_v15 = vadd.f32 %v6689_v6, %v1649_v17  ;;  %v452_v17 = vadd.f32 %v8338_v16, %v8344_v39 }
 0x4b6   :  { %v1654_v30 = vsel %vm1653_vm1, %v6689_v6, %v1650_v15 }
 0x4b7   :  { %v1659_v11 = vsel %vm1656_vm11, %v1658_v9, %v1654_v30 }
 0x4b8   :  { %v1773_v47 = vmul.f32 %v1659_v11, %v8435_v43  ;;  %v8513_v37 = vpop.f32.mrf.mxu2  ;;  %v455_v11 = vadd.f32 %v8338_v16, %v8347_v41 }
 0x4ba   :  { %6169 = vmatmul.msk.f32.gmra.mxu3 %vm642_vm2, %v1773_v47 }
 0x4c0   :  { %v8515_v19 = vpop.f32.mrf.mxu2 }
 0x4c8   :  { %v8517_v38 = vpop.f32.mrf.mxu2 }
 0x4d0   :  { %v8519_v1 = vpop.f32.mrf.mxu2 }
 0x4d1   :  { %10692 = vst [vmem:[#allocation24_spill] sm:$0xff] %v8519_v1 }
 0x4d8   :  { %v1678_v2 = vpop.f32.mrf.mxu2 }
 0x4d9   :  { %v1690_v6 = vadd.f32 %v1678_v2, %v446_v32 }
 0x4db   :  { %v6162_v61 = vmul.f32 -1.442695, %v1690_v6 }
 0x4dd   :  { %6690 = vpow2.f32 %v6162_v61 }
 0x4e0   :  { %v1681_v44 = vpop.f32.mrf.mxu2 }
 0x4e1   :  { %v1691_v46 = vadd.f32 %v1681_v44, %v449_v45 }
 0x4e3   :  { %v6163_v23 = vmul.f32 -1.442695, %v1691_v46  ;;  %v6691_v5 = vpop.eup %6690 }
 0x4e4   :  { %v1706_v15 = vadd.f32 1.0, %v6691_v5 }
 0x4e5   :  { %6692 = vpow2.f32 %v6163_v23 }
 0x4e6   :  { %6694 = vrcp.f32 %v1706_v15  ;;  %vm1715_vm13 = vweird.f32 %v1706_v15 }
 0x4e8   :  { %v1684_v40 = vpop.f32.mrf.mxu2 }
 0x4e9   :  { %v1692_v51 = vadd.f32 %v1684_v40, %v452_v17 }
 0x4eb   :  { %v6164_v9 = vmul.f32 -1.442695, %v1692_v51  ;;  %v6693_v30 = vpop.eup %6692  ;;  %v567_v51 = vadd.f32 %v8362_v8, %v8445_v35 }
 0x4ec   :  { %v1707_v47 = vadd.f32 1.0, %v6693_v30  ;;  %v6695_v2 = vpop.eup %6694 }
 0x4ed   :  { %6696 = vpow2.f32 %v6164_v9  ;;  %v1711_v44 = vmul.f32 %v6695_v2, %v1706_v15  ;;  %vm1716_vm12 = vweird.f32 %v6695_v2  ;;  %v1721_v9 = vand.u32 2147483648, %v1706_v15 }
 0x4ee   :  { %6698 = vrcp.f32 %v1707_v47  ;;  %vm1717_vm14 = vmor %vm1715_vm13, %vm1716_vm12  ;;  %vm1730_vm3 = vweird.f32 %v1707_v47 }
 0x4ef   :  { %v1712_v61 = vsub.f32 1.0, %v1711_v44  ;;  %v1722_v44 = vor.u32 1.1754944e-38, %v1721_v9 }
 0x4f0   :  { %v1687_v21 = vpop.f32.mrf.mxu2 }
 0x4f1   :  { %v1693_v31 = vadd.f32 %v1687_v21, %v455_v11  ;;  %v1713_v40 = vmul.f32 %v6695_v2, %v1712_v61  ;;  %v1719_v21 = vand.u32 2147483647, %v1706_v15  ;;  %v570_v15 = vadd.f32 %v8362_v8, %v8449_v22 }
 0x4f3   :  { %v6165_v32 = vmul.f32 -1.442695, %v1693_v31  ;;  %v6697_v6 = vpop.eup %6696  ;;  %v1714_v41 = vadd.f32 %v6695_v2, %v1713_v40  ;;  %vm1720_vm15 = vcmp.eq.f32.partialorder %v1719_v21, 8.507059e+37 }
 0x4f4   :  { %v8529_v39 = vadd.f32 1.0, %v6697_v6  ;;  %v6699_v45 = vpop.eup %6698 }
 0x4f5   :  { %6700 = vpow2.f32 %v6165_v32  ;;  %v1726_v23 = vmul.f32 %v6699_v45, %v1707_v47  ;;  %v1718_v6 = vsel %vm1717_vm14, %v6695_v2, %v1714_v41  ;;  %vm1731_vm0 = vweird.f32 %v6699_v45 }
 0x4f6   :  { %6702 = vrcp.f32 %v8529_v39  ;;  %v1723_v61 = vsel %vm1720_vm15, %v1722_v44, %v1718_v6  ;;  %vm1732_vm4 = vmor %vm1730_vm3, %vm1731_vm0  ;;  %vm1745_vm7 = vweird.f32 %v8529_v39 }
 0x4f7   :  { %v1727_v16 = vsub.f32 1.0, %v1726_v23  ;;  %v1736_v23 = vand.u32 2147483648, %v1707_v47  ;;  %v1823_v2 = vmul.f32 %v1723_v61, %v8381_v34 }
 0x4f9   :  { %v1728_v31 = vmul.f32 %v6699_v45, %v1727_v16  ;;  %v1734_v16 = vand.u32 2147483647, %v1707_v47 }
 0x4fb   :  { %v6701_v46 = vpop.eup %6700  ;;  %v1729_v40 = vadd.f32 %v6699_v45, %v1728_v31  ;;  %vm1735_vm5 = vcmp.eq.f32.partialorder %v1734_v16, 8.507059e+37  ;;  %v8576_v16 = vld [vmem:[%s10588_s9 + $0x10] sm:$0xff] }
 0x4fc   :  { %v8532_v5 = vadd.f32 1.0, %v6701_v46  ;;  %v8534_v17 = vpop.eup %6702 }
 0x4fd   :  { %v1741_v32 = vmul.f32 %v8534_v17, %v8529_v39  ;;  %v1733_v31 = vsel %vm1732_vm4, %v6699_v45, %v1729_v40  ;;  %vm1746_vm6 = vweird.f32 %v8534_v17  ;;  %v1751_v45 = vand.u32 2147483648, %v8529_v39 }
 0x4fe   :  { %6704 = vrcp.f32 %v8532_v5  ;;  %v1749_v40 = vand.u32 2147483647, %v8529_v39  ;;  %vm8569_vm8 = vmor %vm1745_vm7, %vm1746_vm6  ;;  %vm1760_vm1 = vweird.f32 %v8532_v5 }
 0x4ff   :  { %v1742_v46 = vsub.f32 1.0, %v1741_v32  ;;  %v1737_v32 = vor.u32 1.1754944e-38, %v1736_v23 }
 0x500   :  { %vm1750_vm9 = vcmp.eq.f32.partialorder %v1749_v40, 8.507059e+37 }
 0x501   :  { %v1743_v9 = vmul.f32 %v8534_v17, %v1742_v46  ;;  %v1738_v6 = vsel %vm1735_vm5, %v1737_v32, %v1733_v31  ;;  %v1766_v31 = vand.u32 2147483648, %v8532_v5 }
 0x502   :  { %v1828_v46 = vsub.f32 1.0, %v1738_v6  ;;  %v1824_v39 = vmul.f32 %v1738_v6, %v8410_v0 }
 0x503   :  { %v1744_v44 = vadd.f32 %v8534_v17, %v1743_v9  ;;  %v8588_v9 = vld [vmem:[%s10588_s9 + $0x8] sm:$0xff]  ;;  %v1767_v40 = vor.u32 1.1754944e-38, %v1766_v31 }
 0x504   :  { %v8541_v35 = vpop.eup %6704 }
 0x505   :  { %v1756_v21 = vmul.f32 %v8541_v35, %v8532_v5  ;;  %vm1761_vm10 = vweird.f32 %v8541_v35 }
 0x506   :  { %vm1762_vm11 = vmor %vm1760_vm1, %vm1761_vm10 }
 0x507   :  { %v1757_v47 = vsub.f32 1.0, %v1756_v21 }
 0x525   :  { %v1803_v30 = vpop.f32.mrf.mxu3 }
 0x526   :  { %v1815_v11 = vadd.f32 %v1803_v30, %v567_v51  ;;  %v1827_v51 = vsub.f32 1.0, %v1723_v61  ;;  %v8563_v61 = vld [vmem:[%s10588_s9 + $0x18] sm:$0xff] }
 0x528   :  { %6706 = vtanh.f32 %v1815_v11 }
 0x52d   :  { %v1806_v30 = vpop.f32.mrf.mxu3 }
 0x52e   :  { %v6707_v1 = vpop.eup %6706  ;;  %v1816_v41 = vadd.f32 %v1806_v30, %v570_v15 }
 0x52f   :  { %v1831_v11 = vmul.f32 %v6707_v1, %v1827_v51  ;;  %v573_v1 = vadd.f32 %v8362_v8, %v8453_v33 }
 0x530   :  { %6708 = vtanh.f32 %v1816_v41  ;;  %v1752_v41 = vor.u32 1.1754944e-38, %v1751_v45 }
 0x531   :  { %v8549_v22 = vadd.f32 %v1831_v11, %v1823_v2  ;;  %v1748_v2 = vsel %vm8569_vm8, %v8534_v17, %v1744_v44  ;;  %v8597_v11 = vld [vmem:[%s10588_s9] sm:$0xff]  ;;  %v576_v17 = vadd.f32 %v8362_v8, %v8457_v36 }
 0x532   :  { %v1753_v21 = vsel %vm1750_vm9, %v1752_v41, %v1748_v2 }
 0x533   :  { %6170 = vmatmul.msk.f32.vlgmr.msra.gmra.mxu0 %vm642_vm2, %v8549_v22  ;;  %6178 = vmatmul.msk.f32.vlgmr.msrb.gmra.mxu1 %vm642_vm2, %v8549_v22  ;;  %v1829_v32 = vsub.f32 1.0, %v1753_v21 }
 0x534   :  { %2695 = vmatpush.msra.mxu0 %v8563_v61  ;;  %2760 = vmatpush.msrb.mxu1 %v8261_v25  ;;  %v1758_v25 = vmul.f32 %v8541_v35, %v1757_v47 }
 0x535   :  { %v1809_v15 = vpop.f32.mrf.mxu3 }
 0x536   :  { %v6709_v23 = vpop.eup %6708  ;;  %v1817_v51 = vadd.f32 %v1809_v15, %v573_v1  ;;  %2696 = vmatpush.msra.mxu0 %v8576_v16  ;;  %2761 = vmatpush.msrb.mxu1 %v8267_v26  ;;  %v1825_v1 = vmul.f32 %v1753_v21, %v8426_v14  ;;  %v10696_v21 = vld [vmem:[#allocation27_spill] sm:$0xff] }
 0x537   :  { %v1832_v30 = vmul.f32 %v6709_v23, %v1828_v46 }
 0x538   :  { %6710 = vtanh.f32 %v1817_v51  ;;  %2697 = vmatpush.msra.mxu0 %v8588_v9  ;;  %2762 = vmatpush.msrb.mxu1 %v8273_v27  ;;  %v1759_v27 = vadd.f32 %v8541_v35, %v1758_v25  ;;  %v10695_v25 = vld [vmem:[#allocation25_spill] sm:$0xff] }
 0x539   :  { %v8592_v26 = vadd.f32 %v1832_v30, %v1824_v39 }
 0x53a   :  { %2698 = vmatpush.msra.mxu0 %v8597_v11  ;;  %2763 = vmatpush.msrb.mxu1 %v8279_v29  ;;  %v1764_v29 = vand.u32 2147483647, %v8532_v5  ;;  %v1763_v46 = vsel %vm1762_vm11, %v8541_v35, %v1759_v27  ;;  %v8630_v35 = vld [vmem:[%s10647_s30] ss:$0 sm:$0xff] }
 0x53b   :  { %6171 = vmatmul.msk.f32.gmra.mxu0 %vm642_vm2, %v8592_v26  ;;  %6179 = vmatmul.msk.f32.gmra.mxu1 %vm642_vm2, %v8592_v26  ;;  %v337_v39 = vadd.f32 %v8630_v35, %v10695_v25  ;;  %v340_v27 = vadd.f32 %v8630_v35, %v10696_v21 }
 0x53c   :  { %vm1765_vm12 = vcmp.eq.f32.partialorder %v1764_v29, 8.507059e+37 }
 0x53d   :  { %v1812_v6 = vpop.f32.mrf.mxu3  ;;  %v1768_v8 = vsel %vm1765_vm12, %v1767_v40, %v1763_v46 }
 0x53e   :  { %v6711_v47 = vpop.eup %6710  ;;  %v1818_v44 = vadd.f32 %v1812_v6, %v576_v17  ;;  %v1830_v36 = vsub.f32 1.0, %v1768_v8  ;;  %v1826_v23 = vmul.f32 %v1768_v8, %v8435_v43 }
 0x53f   :  { %v1833_v45 = vmul.f32 %v6711_v47, %v1829_v32  ;;  %v10697_v47 = vld [vmem:[#allocation29_spill] sm:$0xff] }
 0x540   :  { %6712 = vtanh.f32 %v1818_v44  ;;  %v343_v44 = vadd.f32 %v8630_v35, %v10697_v47 }
 0x541   :  { %v8614_v15 = vadd.f32 %v1833_v45, %v1825_v1 }
 0x543   :  { %6172 = vmatmul.msk.f32.gmra.mxu0 %vm642_vm2, %v8614_v15  ;;  %6180 = vmatmul.msk.f32.gmra.mxu1 %vm642_vm2, %v8614_v15 }
 0x546   :  { %v6713_v5 = vpop.eup %6712 }
 0x547   :  { %v1834_v33 = vmul.f32 %v6713_v5, %v1830_v36 }
 0x549   :  { %v8621_v51 = vadd.f32 %v1834_v33, %v1826_v23  ;;  %v10698_v33 = vld [vmem:[#allocation31_spill] sm:$0xff] }
 0x54a   :  { %v346_v25 = vadd.f32 %v8630_v35, %v10698_v33  ;;  %v7218_v33 = vld [vmem:[%s10639_s5 + $0x18] sm:$0xff] }
 0x54b   :  { %6173 = vmatmul.msk.f32.gmra.mxu0 %vm642_vm2, %v8621_v51  ;;  %6181 = vmatmul.msk.f32.gmra.mxu1 %vm642_vm2, %v8621_v51 }
 0x5b0   :  { %v1868_v30 = vpop.f32.mrf.mxu0 }
 0x5b1   :  { %v1880_v2 = vadd.f32 %v1868_v30, %v337_v39 }
 0x5b3   :  { %v6174_v41 = vmul.f32 -1.442695, %v1880_v2 }
 0x5b5   :  { %6714 = vpow2.f32 %v6174_v41 }
 0x5b8   :  { %v1871_v17 = vpop.f32.mrf.mxu0 }
 0x5b9   :  { %v1881_v31 = vadd.f32 %v1871_v17, %v340_v27 }
 0x5bb   :  { %v6715_v32 = vpop.eup %6714  ;;  %v6175_v29 = vmul.f32 -1.442695, %v1881_v31 }
 0x5bc   :  { %v1896_v6 = vadd.f32 1.0, %v6715_v32 }
 0x5bd   :  { %6716 = vpow2.f32 %v6175_v29 }
 0x5be   :  { %6718 = vrcp.f32 %v1896_v6  ;;  %v1911_v39 = vand.u32 2147483648, %v1896_v6  ;;  %v1909_v41 = vand.u32 2147483647, %v1896_v6  ;;  %vm1905_vm14 = vweird.f32 %v1896_v6 }
 0x5c0   :  { %v1874_v1 = vpop.f32.mrf.mxu0  ;;  %v1912_v32 = vor.u32 1.1754944e-38, %v1911_v39  ;;  %vm1910_vm0 = vcmp.eq.f32.partialorder %v1909_v41, 8.507059e+37 }
 0x5c1   :  { %v1882_v45 = vadd.f32 %v1874_v1, %v343_v44 }
 0x5c3   :  { %v6717_v46 = vpop.eup %6716  ;;  %v6176_v40 = vmul.f32 -1.442695, %v1882_v45 }
 0x5c4   :  { %v6719_v8 = vpop.eup %6718  ;;  %v1897_v36 = vadd.f32 1.0, %v6717_v46 }
 0x5c5   :  { %v1901_v5 = vmul.f32 %v6719_v8, %v1896_v6  ;;  %6720 = vpow2.f32 %v6176_v40  ;;  %vm1906_vm13 = vweird.f32 %v6719_v8 }
 0x5c6   :  { %6722 = vrcp.f32 %v1897_v36  ;;  %vm1907_vm15 = vmor %vm1905_vm14, %vm1906_vm13  ;;  %v1924_v6 = vand.u32 2147483647, %v1897_v36  ;;  %vm1920_vm4 = vweird.f32 %v1897_v36 }
 0x5c7   :  { %v1902_v23 = vsub.f32 1.0, %v1901_v5  ;;  %v1926_v5 = vand.u32 2147483648, %v1897_v36 }
 0x5c8   :  { %v1877_v30 = vpop.f32.mrf.mxu0  ;;  %vm1925_vm6 = vcmp.eq.f32.partialorder %v1924_v6, 8.507059e+37 }
 0x5c9   :  { %v1903_v2 = vmul.f32 %v6719_v8, %v1902_v23  ;;  %v1883_v21 = vadd.f32 %v1877_v30, %v346_v25  ;;  %v1927_v39 = vor.u32 1.1754944e-38, %v1926_v5  ;;  %v7219_v30 = vld [vmem:[%s10639_s5 + $0x10] sm:$0xff] }
 0x5cb   :  { %v6721_v27 = vpop.eup %6720  ;;  %v1904_v17 = vadd.f32 %v6719_v8, %v1903_v2  ;;  %v6177_v47 = vmul.f32 -1.442695, %v1883_v21 }
 0x5cc   :  { %v6723_v31 = vpop.eup %6722  ;;  %v1898_v29 = vadd.f32 1.0, %v6721_v27 }
 0x5cd   :  { %v1908_v44 = vsel %vm1907_vm15, %v6719_v8, %v1904_v17  ;;  %v1916_v1 = vmul.f32 %v6723_v31, %v1897_v36  ;;  %vm1921_vm3 = vweird.f32 %v6723_v31 }
 0x5ce   :  { %6724 = vrcp.f32 %v1898_v29  ;;  %v1913_v45 = vsel %vm1910_vm0, %v1912_v32, %v1908_v44  ;;  %vm1922_vm5 = vmor %vm1920_vm4, %vm1921_vm3  ;;  %v7220_v32 = vld [vmem:[%s10639_s5 + $0x8] sm:$0xff]  ;;  %v1941_v44 = vand.u32 2147483648, %v1898_v29  ;;  %vm1935_vm8 = vweird.f32 %v1898_v29 }
 0x5cf   :  { %v1917_v46 = vsub.f32 1.0, %v1916_v1  ;;  %6726 = vpow2.f32 %v6177_v47  ;;  %v2069_v40 = vmul.f32 %v1913_v45, %v8549_v22  ;;  %v7221_v1 = vld [vmem:[%s10639_s5] sm:$0xff]  ;;  %v1939_v45 = vand.u32 2147483647, %v1898_v29 }
 0x5d1   :  { %6186 = vmatmul.msk.f32.vlgmr.msrb.gmra.mxu2 %vm642_vm2, %v2069_v40  ;;  %v1918_v23 = vmul.f32 %v6723_v31, %v1917_v46  ;;  %v1942_v40 = vor.u32 1.1754944e-38, %v1941_v44  ;;  %vm1940_vm10 = vcmp.eq.f32.partialorder %v1939_v45, 8.507059e+37 }
 0x5d2   :  { %2869 = vmatpush.msrb.mxu2 %v7218_v33 }
 0x5d3   :  { %v1919_v8 = vadd.f32 %v6723_v31, %v1918_v23 }
 0x5d4   :  { %v6725_v25 = vpop.eup %6724  ;;  %2870 = vmatpush.msrb.mxu2 %v7219_v30 }
 0x5d5   :  { %v6727_v2 = vpop.eup %6726  ;;  %v1931_v41 = vmul.f32 %v6725_v25, %v1898_v29  ;;  %v1923_v21 = vsel %vm1922_vm5, %v6723_v31, %v1919_v8  ;;  %vm1936_vm7 = vweird.f32 %v6725_v25 }
 0x5d6   :  { %v1899_v27 = vadd.f32 1.0, %v6727_v2  ;;  %v1928_v17 = vsel %vm1925_vm6, %v1927_v39, %v1923_v21  ;;  %2871 = vmatpush.msrb.mxu2 %v7220_v32  ;;  %vm1937_vm9 = vmor %vm1935_vm8, %vm1936_vm7 }
 0x5d7   :  { %v1932_v36 = vsub.f32 1.0, %v1931_v41  ;;  %v2070_v47 = vmul.f32 %v1928_v17, %v8592_v26 }
 0x5d8   :  { %6728 = vrcp.f32 %v1899_v27  ;;  %2872 = vmatpush.msrb.mxu2 %v7221_v1  ;;  %v1956_v30 = vand.u32 2147483648, %v1899_v27  ;;  %v1954_v41 = vand.u32 2147483647, %v1899_v27  ;;  %vm1950_vm11 = vweird.f32 %v1899_v27 }
 0x5d9   :  { %6187 = vmatmul.msk.f32.gmra.mxu2 %vm642_vm2, %v2070_v47  ;;  %v1933_v31 = vmul.f32 %v6725_v25, %v1932_v36  ;;  %v1977_v36 = vpop.f32.mrf.mxu1  ;;  %v8663_v47 = vld [vmem:[%s10660_s18] ss:$0 sm:$0xff] }
 0x5da   :  { %v1957_v29 = vor.u32 1.1754944e-38, %v1956_v30  ;;  %vm1955_vm13 = vcmp.eq.f32.partialorder %v1954_v41, 8.507059e+37  ;;  %v458_v44 = vadd.f32 %v8663_v47, %v8350_v49  ;;  %v461_v45 = vadd.f32 %v8663_v47, %v8354_v52 }
 0x5db   :  { %v1934_v46 = vadd.f32 %v6725_v25, %v1933_v31 }
 0x5dc   :  { %v1989_v1 = vadd.f32 %v1977_v36, %v458_v44 }
 0x5dd   :  { %v1938_v5 = vsel %vm1937_vm9, %v6725_v25, %v1934_v46 }
 0x5de   :  { %v6729_v23 = vpop.eup %6728  ;;  %v1943_v6 = vsel %vm1940_vm10, %v1942_v40, %v1938_v5  ;;  %v6182_v31 = vmul.f32 -1.442695, %v1989_v1 }
 0x5df   :  { %v1946_v33 = vmul.f32 %v6729_v23, %v1899_v27  ;;  %v2071_v8 = vmul.f32 %v1943_v6, %v8614_v15  ;;  %vm1951_vm1 = vweird.f32 %v6729_v23  ;;  %v464_v6 = vadd.f32 %v8663_v47, %v8367_v55 }
 0x5e0   :  { %vm1952_vm12 = vmor %vm1950_vm11, %vm1951_vm1  ;;  %6730 = vpow2.f32 %v6182_v31 }
 0x5e1   :  { %v1947_v39 = vsub.f32 1.0, %v1946_v33  ;;  %6188 = vmatmul.msk.f32.gmra.mxu2 %vm642_vm2, %v2071_v8  ;;  %v1980_v27 = vpop.f32.mrf.mxu1 }
 0x5e2   :  { %v1990_v46 = vadd.f32 %v1980_v27, %v461_v45 }
 0x5e3   :  { %v1948_v2 = vmul.f32 %v6729_v23, %v1947_v39 }
 0x5e4   :  { %v6183_v40 = vmul.f32 -1.442695, %v1990_v46 }
 0x5e5   :  { %v1949_v21 = vadd.f32 %v6729_v23, %v1948_v2  ;;  %v467_v2 = vadd.f32 %v8663_v47, %v8376_v59 }
 0x5e6   :  { %6732 = vpow2.f32 %v6183_v40  ;;  %v8683_v40 = vld [vmem:[%s10589_s10] ss:$0 sm:$0xff] }
 0x5e7   :  { %v1953_v17 = vsel %vm1952_vm12, %v6729_v23, %v1949_v21  ;;  %v6731_v23 = vpop.eup %6730 }
 0x5e8   :  { %v1958_v25 = vsel %vm1955_vm13, %v1957_v29, %v1953_v17  ;;  %v2005_v8 = vadd.f32 1.0, %v6731_v23 }
 0x5e9   :  { %v2072_v32 = vmul.f32 %v1958_v25, %v8621_v51  ;;  %v1983_v5 = vpop.f32.mrf.mxu1 }
 0x5ea   :  { %v1991_v33 = vadd.f32 %v1983_v5, %v464_v6  ;;  %6734 = vrcp.f32 %v2005_v8  ;;  %v579_v5 = vadd.f32 %v8683_v40, %v8461_v54  ;;  %v2020_v23 = vand.u32 2147483648, %v2005_v8 }
 0x5eb   :  { %6189 = vmatmul.msk.f32.gmra.mxu2 %vm642_vm2, %v2072_v32  ;;  %vm2014_vm15 = vweird.f32 %v2005_v8  ;;  %v2018_v6 = vand.u32 2147483647, %v2005_v8  ;;  %v582_v54 = vadd.f32 %v8683_v40, %v8465_v53 }
 0x5ec   :  { %v6184_v39 = vmul.f32 -1.442695, %v1991_v33  ;;  %v6733_v49 = vpop.eup %6732 }
 0x5ed   :  { %v2006_v52 = vadd.f32 1.0, %v6733_v49  ;;  %vm2019_vm3 = vcmp.eq.f32.partialorder %v2018_v6, 8.507059e+37 }
 0x5ee   :  { %6736 = vpow2.f32 %v6184_v39 }
 0x5ef   :  { %6738 = vrcp.f32 %v2006_v52  ;;  %vm2029_vm5 = vweird.f32 %v2006_v52 }
 0x5f0   :  { %v6735_v21 = vpop.eup %6734 }
 0x5f1   :  { %v1986_v30 = vpop.f32.mrf.mxu1  ;;  %v2010_v25 = vmul.f32 %v6735_v21, %v2005_v8  ;;  %vm2015_vm14 = vweird.f32 %v6735_v21  ;;  %v2035_v8 = vand.u32 2147483648, %v2006_v52 }
 0x5f2   :  { %v1992_v41 = vadd.f32 %v1986_v30, %v467_v2  ;;  %vm2016_vm0 = vmor %vm2014_vm15, %vm2015_vm14 }
 0x5f3   :  { %v2011_v55 = vsub.f32 1.0, %v2010_v25 }
 0x5f4   :  { %v6185_v29 = vmul.f32 -1.442695, %v1992_v41  ;;  %v6737_v17 = vpop.eup %6736  ;;  %v2021_v41 = vor.u32 1.1754944e-38, %v2020_v23 }
 0x5f5   :  { %v8673_v32 = vadd.f32 1.0, %v6737_v17  ;;  %v6739_v36 = vpop.eup %6738  ;;  %v2012_v44 = vmul.f32 %v6735_v21, %v2011_v55 }
 0x5f6   :  { %6740 = vpow2.f32 %v6185_v29  ;;  %v2025_v1 = vmul.f32 %v6739_v36, %v2006_v52  ;;  %vm2030_vm4 = vweird.f32 %v6739_v36 }
 0x5f7   :  { %6742 = vrcp.f32 %v8673_v32  ;;  %v2013_v45 = vadd.f32 %v6735_v21, %v2012_v44  ;;  %vm2031_vm6 = vmor %vm2029_vm5, %vm2030_vm4  ;;  %vm2044_vm9 = vweird.f32 %v8673_v32 }
 0x5f8   :  { %v2026_v31 = vsub.f32 1.0, %v2025_v1  ;;  %v2033_v1 = vand.u32 2147483647, %v2006_v52 }
 0x5f9   :  { %v2017_v2 = vsel %vm2016_vm0, %v6735_v21, %v2013_v45 }
 0x5fa   :  { %v2027_v49 = vmul.f32 %v6739_v36, %v2026_v31  ;;  %v2022_v29 = vsel %vm2019_vm3, %v2021_v41, %v2017_v2  ;;  %vm2034_vm7 = vcmp.eq.f32.partialorder %v2033_v1, 8.507059e+37 }
 0x5fb   :  { %v2126_v44 = vsub.f32 1.0, %v2022_v29 }
 0x5fc   :  { %v6741_v27 = vpop.eup %6740  ;;  %v2028_v25 = vadd.f32 %v6739_v36, %v2027_v49 }
 0x5fd   :  { %v8676_v59 = vadd.f32 1.0, %v6741_v27  ;;  %v8678_v46 = vpop.eup %6742 }
 0x5fe   :  { %v2040_v30 = vmul.f32 %v8678_v46, %v8673_v32  ;;  %v2032_v6 = vsel %vm2031_vm6, %v6739_v36, %v2028_v25  ;;  %vm2045_vm8 = vweird.f32 %v8678_v46  ;;  %v585_v36 = vadd.f32 %v8683_v40, %v8469_v63 }
 0x5ff   :  { %6744 = vrcp.f32 %v8676_v59  ;;  %vm2046_vm10 = vmor %vm2044_vm9, %vm2045_vm8  ;;  %vm2059_vm12 = vweird.f32 %v8676_v59 }
 0x600   :  { %v2041_v17 = vsub.f32 1.0, %v2040_v30  ;;  %v2050_v30 = vand.u32 2147483648, %v8673_v32 }
 0x602   :  { %v2042_v45 = vmul.f32 %v8678_v46, %v2041_v17  ;;  %v2051_v1 = vor.u32 1.1754944e-38, %v2050_v30 }
 0x604   :  { %v2043_v52 = vadd.f32 %v8678_v46, %v2042_v45 }
 0x605   :  { %v8692_v55 = vpop.eup %6744 }
 0x606   :  { %v2055_v53 = vmul.f32 %v8692_v55, %v8676_v59  ;;  %v2047_v63 = vsel %vm2046_vm10, %v8678_v46, %v2043_v52  ;;  %vm2060_vm11 = vweird.f32 %v8692_v55 }
 0x607   :  { %vm2061_vm13 = vmor %vm2059_vm12, %vm2060_vm11 }
 0x608   :  { %v2056_v2 = vsub.f32 1.0, %v2055_v53 }
 0x654   :  { %v2102_v33 = vpop.f32.mrf.mxu2 }
 0x655   :  { %v2114_v39 = vadd.f32 %v2102_v33, %v579_v5  ;;  %v2122_v5 = vmul.f32 %v2022_v29, %v8549_v22  ;;  %v2036_v33 = vor.u32 1.1754944e-38, %v2035_v8  ;;  %v2048_v29 = vand.u32 2147483647, %v8673_v32 }
 0x657   :  { %6746 = vtanh.f32 %v2114_v39  ;;  %v2037_v49 = vsel %vm2034_vm7, %v2036_v33, %v2032_v6  ;;  %vm2049_vm1 = vcmp.eq.f32.partialorder %v2048_v29, 8.507059e+37 }
 0x658   :  { %v2127_v41 = vsub.f32 1.0, %v2037_v49  ;;  %v2123_v8 = vmul.f32 %v2037_v49, %v8592_v26  ;;  %v2052_v32 = vsel %vm2049_vm1, %v2051_v1, %v2047_v63 }
 0x65c   :  { %v2105_v27 = vpop.f32.mrf.mxu2 }
 0x65d   :  { %v6747_v31 = vpop.eup %6746  ;;  %v2115_v21 = vadd.f32 %v2105_v27, %v582_v54 }
 0x65e   :  { %v2130_v23 = vmul.f32 %v6747_v31, %v2126_v44  ;;  %v588_v31 = vadd.f32 %v8683_v40, %v8473_v62 }
 0x65f   :  { %6748 = vtanh.f32 %v2115_v21  ;;  %v2065_v21 = vand.u32 2147483648, %v8676_v59 }
 0x660   :  { %v8698_v39 = vadd.f32 %v2130_v23, %v2122_v5  ;;  %v2063_v5 = vand.u32 2147483647, %v8676_v59 }
 0x661   :  { %v2066_v49 = vor.u32 1.1754944e-38, %v2065_v21 }
 0x662   :  { %6190 = vmatmul.msk.f32.vlgmr.msra.gmra.mxu3 %vm642_vm2, %v8698_v39  ;;  %6198 = vmatmul.msk.f32.vlgmr.msrb.gmra.mxu0 %vm642_vm2, %v8698_v39  ;;  %vm2064_vm14 = vcmp.eq.f32.partialorder %v2063_v5, 8.507059e+37 }
 0x663   :  { %2994 = vmatpush.msra.mxu3 %v8563_v61  ;;  %v2057_v61 = vmul.f32 %v8692_v55, %v2056_v2 }
 0x664   :  { %v2108_v17 = vpop.f32.mrf.mxu2 }
 0x665   :  { %v6749_v25 = vpop.eup %6748  ;;  %v2116_v54 = vadd.f32 %v2108_v17, %v585_v36  ;;  %2995 = vmatpush.msra.mxu3 %v8576_v16  ;;  %v2128_v16 = vsub.f32 1.0, %v2052_v32  ;;  %v2058_v46 = vadd.f32 %v8692_v55, %v2057_v61 }
 0x666   :  { %v2131_v44 = vmul.f32 %v6749_v25, %v2127_v41 }
 0x667   :  { %6750 = vtanh.f32 %v2116_v54  ;;  %2996 = vmatpush.msra.mxu3 %v8588_v9  ;;  %v2062_v53 = vsel %vm2061_vm13, %v8692_v55, %v2058_v46  ;;  %v10699_v55 = vld [vmem:[#allocation32_spill] sm:$0xff]  ;;  %v10700_v54 = vld [vmem:[#allocation33_spill] sm:$0xff] }
 0x668   :  { %v8717_v27 = vadd.f32 %v2131_v44, %v2123_v8  ;;  %v2067_v62 = vsel %vm2064_vm14, %v2066_v49, %v2062_v53  ;;  %v349_v41 = vadd.f32 %v8630_v35, %v10699_v55  ;;  %v352_v8 = vadd.f32 %v8630_v35, %v10700_v54  ;;  %v10702_v49 = vld [vmem:[#allocation35_spill] sm:$0xff] }
 0x669   :  { %2997 = vmatpush.msra.mxu3 %v8597_v11  ;;  %v2124_v11 = vmul.f32 %v2052_v32, %v8614_v15  ;;  %v2129_v52 = vsub.f32 1.0, %v2067_v62  ;;  %v2125_v59 = vmul.f32 %v2067_v62, %v8621_v51  ;;  %v358_v62 = vadd.f32 %v8630_v35, %v10702_v49 }
 0x66a   :  { %6191 = vmatmul.msk.f32.gmra.mxu3 %vm642_vm2, %v8717_v27  ;;  %6199 = vmatmul.msk.f32.gmra.mxu0 %vm642_vm2, %v8717_v27 }
 0x66d   :  { %v6751_v9 = vpop.eup %6750 }
 0x66e   :  { %v2132_v45 = vmul.f32 %v6751_v9, %v2128_v16  ;;  %v2111_v23 = vpop.f32.mrf.mxu2  ;;  %v10701_v16 = vld [vmem:[#allocation34_spill] sm:$0xff] }
 0x66f   :  { %v2117_v6 = vadd.f32 %v2111_v23, %v588_v31  ;;  %v355_v46 = vadd.f32 %v8630_v35, %v10701_v16 }
 0x670   :  { %v8732_v33 = vadd.f32 %v2132_v45, %v2124_v11 }
 0x671   :  { %6752 = vtanh.f32 %v2117_v6 }
 0x672   :  { %6192 = vmatmul.msk.f32.gmra.mxu3 %vm642_vm2, %v8732_v33  ;;  %6200 = vmatmul.msk.f32.gmra.mxu0 %vm642_vm2, %v8732_v33 }
 0x677   :  { %v6753_v36 = vpop.eup %6752 }
 0x678   :  { %v2133_v30 = vmul.f32 %v6753_v36, %v2129_v52 }
 0x67a   :  { %v8740_v2 = vadd.f32 %v2133_v30, %v2125_v59 }
 0x67c   :  { %6193 = vmatmul.msk.f32.gmra.mxu3 %vm642_vm2, %v8740_v2  ;;  %6201 = vmatmul.msk.f32.gmra.mxu0 %vm642_vm2, %v8740_v2 }
 0x6e5   :  { %v2167_v29 = vpop.f32.mrf.mxu3 }
 0x6e6   :  { %v2179_v17 = vadd.f32 %v2167_v29, %v349_v41 }
 0x6e8   :  { %v6194_v25 = vmul.f32 -1.442695, %v2179_v17 }
 0x6ea   :  { %6754 = vpow2.f32 %v6194_v25 }
 0x6ed   :  { %v2170_v44 = vpop.f32.mrf.mxu3 }
 0x6ee   :  { %v2180_v63 = vadd.f32 %v2170_v44, %v352_v8 }
 0x6f0   :  { %v6755_v1 = vpop.eup %6754  ;;  %v6195_v61 = vmul.f32 -1.442695, %v2180_v63 }
 0x6f1   :  { %v2195_v32 = vadd.f32 1.0, %v6755_v1 }
 0x6f2   :  { %6756 = vpow2.f32 %v6195_v61 }
 0x6f3   :  { %6758 = vrcp.f32 %v2195_v32  ;;  %v2210_v53 = vand.u32 2147483648, %v2195_v32  ;;  %v2208_v36 = vand.u32 2147483647, %v2195_v32  ;;  %vm2204_vm0 = vweird.f32 %v2195_v32 }
 0x6f5   :  { %v2173_v9 = vpop.f32.mrf.mxu3  ;;  %v2211_v29 = vor.u32 1.1754944e-38, %v2210_v53  ;;  %vm2209_vm4 = vcmp.eq.f32.partialorder %v2208_v36, 8.507059e+37 }
 0x6f6   :  { %v2181_v31 = vadd.f32 %v2173_v9, %v355_v46 }
 0x6f8   :  { %v6757_v21 = vpop.eup %6756  ;;  %v6196_v5 = vmul.f32 -1.442695, %v2181_v31 }
 0x6f9   :  { %v6759_v11 = vpop.eup %6758  ;;  %v2196_v45 = vadd.f32 1.0, %v6757_v21 }
 0x6fa   :  { %v2200_v23 = vmul.f32 %v6759_v11, %v2195_v32  ;;  %vm2205_vm15 = vweird.f32 %v6759_v11 }
 0x6fb   :  { %6760 = vrcp.f32 %v2196_v45  ;;  %vm2206_vm3 = vmor %vm2204_vm0, %vm2205_vm15  ;;  %v2225_v16 = vand.u32 2147483648, %v2196_v45  ;;  %v2223_v46 = vand.u32 2147483647, %v2196_v45  ;;  %vm2219_vm6 = vweird.f32 %v2196_v45 }
 0x6fc   :  { %v2201_v6 = vsub.f32 1.0, %v2200_v23  ;;  %6762 = vpow2.f32 %v6196_v5 }
 0x6fd   :  { %v2226_v31 = vor.u32 1.1754944e-38, %v2225_v16  ;;  %vm2224_vm8 = vcmp.eq.f32.partialorder %v2223_v46, 8.507059e+37 }
 0x6fe   :  { %v2202_v52 = vmul.f32 %v6759_v11, %v2201_v6 }
 0x6ff   :  { %v2176_v59 = vpop.f32.mrf.mxu3 }
 0x700   :  { %v2203_v30 = vadd.f32 %v6759_v11, %v2202_v52  ;;  %v2182_v55 = vadd.f32 %v2176_v59, %v358_v62 }
 0x701   :  { %v6761_v41 = vpop.eup %6760 }
 0x702   :  { %v6763_v17 = vpop.eup %6762  ;;  %v2207_v25 = vsel %vm2206_vm3, %v6759_v11, %v2203_v30  ;;  %v2215_v54 = vmul.f32 %v6761_v41, %v2196_v45  ;;  %v6197_v8 = vmul.f32 -1.442695, %v2182_v55  ;;  %vm2220_vm5 = vweird.f32 %v6761_v41 }
 0x703   :  { %v2197_v44 = vadd.f32 1.0, %v6763_v17  ;;  %v2212_v63 = vsel %vm2209_vm4, %v2211_v29, %v2207_v25  ;;  %vm2221_vm7 = vmor %vm2219_vm6, %vm2220_vm5 }
 0x704   :  { %v2216_v1 = vsub.f32 1.0, %v2215_v54  ;;  %6764 = vpow2.f32 %v6197_v8  ;;  %v2368_v61 = vmul.f32 %v2212_v63, %v8698_v39 }
 0x705   :  { %6766 = vrcp.f32 %v2197_v44  ;;  %v2240_v52 = vand.u32 2147483648, %v2197_v44  ;;  %v2238_v59 = vand.u32 2147483647, %v2197_v44  ;;  %vm2234_vm10 = vweird.f32 %v2197_v44 }
 0x706   :  { %6206 = vmatmul.msk.f32.vlgmr.msra.gmra.mxu1 %vm642_vm2, %v2368_v61  ;;  %v2217_v32 = vmul.f32 %v6761_v41, %v2216_v1 }
 0x707   :  { %v2241_v55 = vor.u32 1.1754944e-38, %v2240_v52  ;;  %vm2239_vm11 = vcmp.eq.f32.partialorder %v2238_v59, 8.507059e+37  ;;  %v476_v52 = vadd.f32 %v8663_v47, %v8441_v57 }
 0x708   :  { %v2218_v9 = vadd.f32 %v6761_v41, %v2217_v32 }
 0x70a   :  { %v6765_v21 = vpop.eup %6764  ;;  %v2222_v11 = vsel %vm2221_vm7, %v6761_v41, %v2218_v9  ;;  %v2276_v9 = vpop.f32.mrf.mxu0 }
 0x70b   :  { %v6767_v5 = vpop.eup %6766  ;;  %v2198_v23 = vadd.f32 1.0, %v6765_v21  ;;  %v2227_v6 = vsel %vm2224_vm8, %v2226_v31, %v2222_v11  ;;  %v470_v31 = vadd.f32 %v8663_v47, %v8406_v50 }
 0x70c   :  { %v2230_v53 = vmul.f32 %v6767_v5, %v2197_v44  ;;  %v2369_v49 = vmul.f32 %v2227_v6, %v8717_v27  ;;  %vm2235_vm9 = vweird.f32 %v6767_v5  ;;  %v473_v6 = vadd.f32 %v8663_v47, %v8428_v28 }
 0x70d   :  { %6768 = vrcp.f32 %v2198_v23  ;;  %vm2236_vm1 = vmor %vm2234_vm10, %vm2235_vm9  ;;  %v2255_v8 = vand.u32 2147483648, %v2198_v23  ;;  %v2253_v1 = vand.u32 2147483647, %v2198_v23  ;;  %vm2249_vm13 = vweird.f32 %v2198_v23 }
 0x70e   :  { %v2231_v62 = vsub.f32 1.0, %v2230_v53  ;;  %6207 = vmatmul.msk.f32.gmra.mxu1 %vm642_vm2, %v2369_v49  ;;  %v2288_v21 = vadd.f32 %v2276_v9, %v470_v31 }
 0x70f   :  { %v2256_v44 = vor.u32 1.1754944e-38, %v2255_v8  ;;  %vm2254_vm15 = vcmp.eq.f32.partialorder %v2253_v1, 8.507059e+37 }
 0x710   :  { %v2232_v36 = vmul.f32 %v6767_v5, %v2231_v62 }
 0x712   :  { %v2233_v45 = vadd.f32 %v6767_v5, %v2232_v36  ;;  %v2279_v11 = vpop.f32.mrf.mxu0 }
 0x713   :  { %v6769_v30 = vpop.eup %6768 }
 0x714   :  { %v2245_v41 = vmul.f32 %v6769_v30, %v2198_v23  ;;  %v2237_v29 = vsel %vm2236_vm1, %v6767_v5, %v2233_v45  ;;  %vm2250_vm12 = vweird.f32 %v6769_v30  ;;  %v6202_v5 = vmul.f32 -1.442695, %v2288_v21 }
 0x715   :  { %v2242_v17 = vsel %vm2239_vm11, %v2241_v55, %v2237_v29  ;;  %vm2251_vm14 = vmor %vm2249_vm13, %vm2250_vm12  ;;  %v2289_v23 = vadd.f32 %v2279_v11, %v473_v6  ;;  %v479_v55 = vadd.f32 %v8663_v47, %v8443_v4 }
 0x716   :  { %v2246_v25 = vsub.f32 1.0, %v2245_v41  ;;  %v2370_v54 = vmul.f32 %v2242_v17, %v8732_v33  ;;  %6770 = vpow2.f32 %v6202_v5 }
 0x717   :  { %v6203_v53 = vmul.f32 -1.442695, %v2289_v23 }
 0x718   :  { %6208 = vmatmul.msk.f32.gmra.mxu1 %vm642_vm2, %v2370_v54  ;;  %v2247_v63 = vmul.f32 %v6769_v30, %v2246_v25 }
 0x719   :  { %6772 = vpow2.f32 %v6203_v53 }
 0x71a   :  { %v2248_v61 = vadd.f32 %v6769_v30, %v2247_v63  ;;  %v2282_v49 = vpop.f32.mrf.mxu0 }
 0x71b   :  { %v2290_v59 = vadd.f32 %v2282_v49, %v476_v52 }
 0x71c   :  { %v2252_v16 = vsel %vm2251_vm14, %v6769_v30, %v2248_v61  ;;  %v6771_v62 = vpop.eup %6770 }
 0x71d   :  { %v2257_v32 = vsel %vm2254_vm15, %v2256_v44, %v2252_v16  ;;  %v2304_v36 = vadd.f32 1.0, %v6771_v62  ;;  %v6204_v50 = vmul.f32 -1.442695, %v2290_v59 }
 0x71e   :  { %v2371_v46 = vmul.f32 %v2257_v32, %v8740_v2 }
 0x71f   :  { %6774 = vrcp.f32 %v2304_v36  ;;  %v6773_v45 = vpop.eup %6772  ;;  %v2319_v9 = vand.u32 2147483648, %v2304_v36  ;;  %vm2313_vm3 = vweird.f32 %v2304_v36  ;;  %v2317_v31 = vand.u32 2147483647, %v2304_v36 }
 0x720   :  { %6209 = vmatmul.msk.f32.gmra.mxu1 %vm642_vm2, %v2371_v46  ;;  %v2305_v41 = vadd.f32 1.0, %v6773_v45  ;;  %6776 = vpow2.f32 %v6204_v50  ;;  %v591_v46 = vadd.f32 %v8683_v40, %v8477_v10  ;;  %v594_v10 = vadd.f32 %v8683_v40, %v8481_v56 }
 0x721   :  { %v2320_v53 = vor.u32 1.1754944e-38, %v2319_v9  ;;  %vm2318_vm5 = vcmp.eq.f32.partialorder %v2317_v31, 8.507059e+37 }
 0x722   :  { %v2285_v30 = vpop.f32.mrf.mxu0  ;;  %6778 = vrcp.f32 %v2305_v41  ;;  %vm2328_vm7 = vweird.f32 %v2305_v41 }
 0x723   :  { %v2291_v28 = vadd.f32 %v2285_v30, %v479_v55  ;;  %v2332_v30 = vand.u32 2147483647, %v2305_v41 }
 0x725   :  { %v6775_v29 = vpop.eup %6774  ;;  %v6205_v17 = vmul.f32 -1.442695, %v2291_v28  ;;  %vm2333_vm9 = vcmp.eq.f32.partialorder %v2332_v30, 8.507059e+37 }
 0x726   :  { %v2309_v25 = vmul.f32 %v6775_v29, %v2304_v36  ;;  %v6777_v54 = vpop.eup %6776  ;;  %vm2314_vm0 = vweird.f32 %v6775_v29  ;;  %v2334_v36 = vand.u32 2147483648, %v2305_v41 }
 0x727   :  { %6780 = vpow2.f32 %v6205_v17  ;;  %v8770_v63 = vadd.f32 1.0, %v6777_v54  ;;  %vm2315_vm4 = vmor %vm2313_vm3, %vm2314_vm0 }
 0x728   :  { %v2310_v57 = vsub.f32 1.0, %v2309_v25  ;;  %v6779_v8 = vpop.eup %6778 }
 0x729   :  { %v2324_v61 = vmul.f32 %v6779_v8, %v2305_v41  ;;  %6782 = vrcp.f32 %v8770_v63  ;;  %vm2329_vm6 = vweird.f32 %v6779_v8  ;;  %v2349_v9 = vand.u32 2147483648, %v8770_v63 }
 0x72a   :  { %v2311_v1 = vmul.f32 %v6775_v29, %v2310_v57  ;;  %vm2330_vm8 = vmor %vm2328_vm7, %vm2329_vm6  ;;  %v2335_v57 = vor.u32 1.1754944e-38, %v2334_v36  ;;  %vm2343_vm1 = vweird.f32 %v8770_v63 }
 0x72b   :  { %v2325_v16 = vsub.f32 1.0, %v2324_v61 }
 0x72c   :  { %v2312_v32 = vadd.f32 %v6775_v29, %v2311_v1 }
 0x72d   :  { %v6781_v44 = vpop.eup %6780  ;;  %v2326_v6 = vmul.f32 %v6779_v8, %v2325_v16 }
 0x72e   :  { %v8773_v4 = vadd.f32 1.0, %v6781_v44  ;;  %v2316_v23 = vsel %vm2315_vm4, %v6775_v29, %v2312_v32 }
 0x72f   :  { %v6783_v11 = vpop.eup %6782  ;;  %v2321_v62 = vsel %vm2318_vm5, %v2320_v53, %v2316_v23  ;;  %v2327_v52 = vadd.f32 %v6779_v8, %v2326_v6 }
 0x730   :  { %6784 = vrcp.f32 %v8773_v4  ;;  %v2339_v49 = vmul.f32 %v6783_v11, %v8770_v63  ;;  %v2425_v50 = vsub.f32 1.0, %v2321_v62  ;;  %v2421_v17 = vmul.f32 %v2321_v62, %v8698_v39 }
 0x731   :  { %v2331_v54 = vsel %vm2330_vm8, %v6779_v8, %v2327_v52  ;;  %vm2344_vm10 = vweird.f32 %v6783_v11  ;;  %v2350_v52 = vor.u32 1.1754944e-38, %v2349_v9  ;;  %v2364_v36 = vand.u32 2147483648, %v8773_v4 }
 0x732   :  { %v2340_v45 = vsub.f32 1.0, %v2339_v49  ;;  %v2336_v44 = vsel %vm2333_vm9, %v2335_v57, %v2331_v54  ;;  %vm2345_vm11 = vmor %vm2343_vm1, %vm2344_vm10  ;;  %vm2358_vm14 = vweird.f32 %v8773_v4 }
 0x733   :  { %v2426_v16 = vsub.f32 1.0, %v2336_v44  ;;  %v2422_v31 = vmul.f32 %v2336_v44, %v8717_v27 }
 0x734   :  { %v2341_v1 = vmul.f32 %v6783_v11, %v2340_v45  ;;  %v2362_v45 = vand.u32 2147483647, %v8773_v4 }
 0x736   :  { %v8781_v59 = vpop.eup %6784  ;;  %v2342_v32 = vadd.f32 %v6783_v11, %v2341_v1  ;;  %vm2363_vm0 = vcmp.eq.f32.partialorder %v2362_v45, 8.507059e+37 }
 0x737   :  { %v2354_v56 = vmul.f32 %v8781_v59, %v8773_v4  ;;  %vm2359_vm13 = vweird.f32 %v8781_v59 }
 0x738   :  { %v2346_v62 = vsel %vm2345_vm11, %v6783_v11, %v2342_v32  ;;  %vm2360_vm15 = vmor %vm2358_vm14, %vm2359_vm13 }
 0x739   :  { %v2355_v41 = vsub.f32 1.0, %v2354_v56 }
 0x73b   :  { %v2356_v53 = vmul.f32 %v8781_v59, %v2355_v41 }
 0x783   :  { %v2401_v21 = vpop.f32.mrf.mxu1 }
 0x784   :  { %v2413_v5 = vadd.f32 %v2401_v21, %v591_v46  ;;  %v597_v46 = vadd.f32 %v8683_v40, %v8485_v3 }
 0x786   :  { %6786 = vtanh.f32 %v2413_v5  ;;  %v2347_v5 = vand.u32 2147483647, %v8770_v63  ;;  %v2357_v63 = vadd.f32 %v8781_v59, %v2356_v53  ;;  %v10705_v53 = vld [vmem:[#allocation14_spill] sm:$0xff] }
 0x788   :  { %vm2348_vm12 = vcmp.eq.f32.partialorder %v2347_v5, 8.507059e+37 }
 0x789   :  { %v2351_v3 = vsel %vm2348_vm12, %v2350_v52, %v2346_v62  ;;  %v367_v62 = vadd.f32 %v8630_v35, %v10705_v53 }
 0x78a   :  { %v2427_v11 = vsub.f32 1.0, %v2351_v3 }
 0x78b   :  { %v2404_v55 = vpop.f32.mrf.mxu1 }
 0x78c   :  { %v6787_v28 = vpop.eup %6786  ;;  %v2414_v29 = vadd.f32 %v2404_v55, %v594_v10  ;;  %v600_v10 = vadd.f32 %v8683_v40, %v8489_v24 }
 0x78d   :  { %v2429_v25 = vmul.f32 %v6787_v28, %v2425_v50  ;;  %v2423_v28 = vmul.f32 %v2351_v3, %v8732_v33 }
 0x78e   :  { %6788 = vtanh.f32 %v2414_v29 }
 0x78f   :  { %v8786_v61 = vadd.f32 %v2429_v25, %v2421_v17  ;;  %v2361_v17 = vsel %vm2360_vm15, %v8781_v59, %v2357_v63  ;;  %v2365_v25 = vor.u32 1.1754944e-38, %v2364_v36  ;;  %v10703_v59 = vld [vmem:[#allocation12_spill] sm:$0xff] }
 0x790   :  { %v361_v41 = vadd.f32 %v8630_v35, %v10703_v59 }
 0x791   :  { %6210 = vmatmul.msk.f32.vlgmr.msra.gmra.mxu2 %vm642_vm2, %v8786_v61  ;;  %6218 = vmatmul.msk.f32.vlgmr.msrb.gmra.mxu3 %vm642_vm2, %v8786_v61  ;;  %v2366_v24 = vsel %vm2363_vm0, %v2365_v25, %v2361_v17 }
 0x792   :  { %v2428_v4 = vsub.f32 1.0, %v2366_v24  ;;  %v2424_v1 = vmul.f32 %v2366_v24, %v8740_v2 }
 0x794   :  { %v6789_v8 = vpop.eup %6788 }
 0x795   :  { %v2430_v21 = vmul.f32 %v6789_v8, %v2426_v16  ;;  %v2407_v6 = vpop.f32.mrf.mxu1 }
 0x796   :  { %v2415_v23 = vadd.f32 %v2407_v6, %v597_v46  ;;  %v10704_v46 = vld [vmem:[#allocation13_spill] sm:$0xff] }
 0x797   :  { %v8799_v49 = vadd.f32 %v2430_v21, %v2422_v31  ;;  %v364_v9 = vadd.f32 %v8630_v35, %v10704_v46 }
 0x798   :  { %6790 = vtanh.f32 %v2415_v23 }
 0x799   :  { %6211 = vmatmul.msk.f32.gmra.mxu2 %vm642_vm2, %v8799_v49  ;;  %6219 = vmatmul.msk.f32.gmra.mxu3 %vm642_vm2, %v8799_v49 }
 0x79d   :  { %v2410_v50 = vpop.f32.mrf.mxu1 }
 0x79e   :  { %v6791_v30 = vpop.eup %6790  ;;  %v2416_v55 = vadd.f32 %v2410_v50, %v600_v10 }
 0x79f   :  { %v2431_v29 = vmul.f32 %v6791_v30, %v2427_v11 }
 0x7a0   :  { %6792 = vtanh.f32 %v2416_v55  ;;  %v10706_v55 = vld [vmem:[#allocation15_spill] sm:$0xff] }
 0x7a1   :  { %v8814_v54 = vadd.f32 %v2431_v29, %v2423_v28  ;;  %v370_v28 = vadd.f32 %v8630_v35, %v10706_v55 }
 0x7a3   :  { %6212 = vmatmul.msk.f32.gmra.mxu2 %vm642_vm2, %v8814_v54  ;;  %6220 = vmatmul.msk.f32.gmra.mxu3 %vm642_vm2, %v8814_v54 }
 0x7a6   :  { %v6793_v57 = vpop.eup %6792 }
 0x7a7   :  { %v2432_v56 = vmul.f32 %v6793_v57, %v2428_v4  ;;  %v3038_v57 = vld [vmem:[%s10591_s12 + $0x18] sm:$0xff] }
 0x7a8   :  { %3067 = vmatpush.msrb.mxu0 %v3038_v57 }
 0x7a9   :  { %v8821_v44 = vadd.f32 %v2432_v56, %v2424_v1  ;;  %v3037_v1 = vld [vmem:[%s10591_s12 + $0x10] sm:$0xff] }
 0x7aa   :  { %3068 = vmatpush.msrb.mxu0 %v3037_v1 }
 0x7ab   :  { %6213 = vmatmul.msk.f32.gmra.mxu2 %vm642_vm2, %v8821_v44  ;;  %6221 = vmatmul.msk.f32.gmra.mxu3 %vm642_vm2, %v8821_v44 }
 0x814   :  { %v2466_v16 = vpop.f32.mrf.mxu2 }
 0x815   :  { %v2478_v32 = vadd.f32 %v2466_v16, %v361_v41 }
 0x817   :  { %v6214_v8 = vmul.f32 -1.442695, %v2478_v32 }
 0x819   :  { %6794 = vpow2.f32 %v6214_v8  ;;  %v3036_v8 = vld [vmem:[%s10591_s12 + $0x8] sm:$0xff] }
 0x81a   :  { %3069 = vmatpush.msrb.mxu0 %v3036_v8 }
 0x81c   :  { %v2469_v31 = vpop.f32.mrf.mxu2 }
 0x81d   :  { %v2479_v21 = vadd.f32 %v2469_v31, %v364_v9 }
 0x81f   :  { %v6795_v5 = vpop.eup %6794  ;;  %v6215_v6 = vmul.f32 -1.442695, %v2479_v21 }
 0x820   :  { %v2494_v23 = vadd.f32 1.0, %v6795_v5  ;;  %v3035_v5 = vld [vmem:[%s10591_s12] sm:$0xff] }
 0x821   :  { %6796 = vpow2.f32 %v6215_v6  ;;  %3070 = vmatpush.msrb.mxu0 %v3035_v5  ;;  %v10707_v5 = vld [vmem:[#allocation36_spill] sm:$0xff] }
 0x822   :  { %6798 = vrcp.f32 %v2494_v23  ;;  %v2509_v30 = vand.u32 2147483648, %v2494_v23  ;;  %v2507_v17 = vand.u32 2147483647, %v2494_v23  ;;  %vm2503_vm4 = vweird.f32 %v2494_v23 }
 0x824   :  { %v2510_v59 = vor.u32 1.1754944e-38, %v2509_v30  ;;  %vm2508_vm6 = vcmp.eq.f32.partialorder %v2507_v17, 8.507059e+37 }
 0x826   :  { %v2472_v52 = vpop.f32.mrf.mxu2 }
 0x827   :  { %v6797_v3 = vpop.eup %6796  ;;  %v2480_v63 = vadd.f32 %v2472_v52, %v367_v62 }
 0x828   :  { %v6799_v10 = vpop.eup %6798  ;;  %v2495_v36 = vadd.f32 1.0, %v6797_v3 }
 0x829   :  { %v2499_v11 = vmul.f32 %v6799_v10, %v2494_v23  ;;  %v6216_v45 = vmul.f32 -1.442695, %v2480_v63  ;;  %vm2504_vm3 = vweird.f32 %v6799_v10 }
 0x82a   :  { %6800 = vrcp.f32 %v2495_v36  ;;  %vm2505_vm5 = vmor %vm2503_vm4, %vm2504_vm3  ;;  %v2524_v6 = vand.u32 2147483648, %v2495_v36  ;;  %v2522_v53 = vand.u32 2147483647, %v2495_v36  ;;  %vm2518_vm8 = vweird.f32 %v2495_v36 }
 0x82b   :  { %v2500_v50 = vsub.f32 1.0, %v2499_v11  ;;  %6802 = vpow2.f32 %v6216_v45 }
 0x82c   :  { %v2525_v52 = vor.u32 1.1754944e-38, %v2524_v6  ;;  %vm2523_vm10 = vcmp.eq.f32.partialorder %v2522_v53, 8.507059e+37  ;;  %v10708_v6 = vld [vmem:[#allocation20_spill] sm:$0xff] }
 0x82d   :  { %v2501_v29 = vmul.f32 %v6799_v10, %v2500_v50 }
 0x82e   :  { %v2475_v25 = vpop.f32.mrf.mxu2 }
 0x82f   :  { %v2481_v24 = vadd.f32 %v2475_v25, %v370_v28  ;;  %v2502_v4 = vadd.f32 %v6799_v10, %v2501_v29 }
 0x830   :  { %v6801_v56 = vpop.eup %6800 }
 0x831   :  { %v6803_v35 = vpop.eup %6802  ;;  %v6217_v41 = vmul.f32 -1.442695, %v2481_v24  ;;  %v2506_v16 = vsel %vm2505_vm5, %v6799_v10, %v2502_v4  ;;  %v2514_v32 = vmul.f32 %v6801_v56, %v2495_v36  ;;  %vm2519_vm7 = vweird.f32 %v6801_v56 }
 0x832   :  { %v2496_v46 = vadd.f32 1.0, %v6803_v35  ;;  %v2511_v9 = vsel %vm2508_vm6, %v2510_v59, %v2506_v16  ;;  %vm2520_vm9 = vmor %vm2518_vm8, %vm2519_vm7 }
 0x833   :  { %6804 = vpow2.f32 %v6217_v41  ;;  %v2667_v31 = vmul.f32 %v2511_v9, %v8786_v61  ;;  %v2515_v21 = vsub.f32 1.0, %v2514_v32 }
 0x834   :  { %6806 = vrcp.f32 %v2496_v46  ;;  %v2539_v28 = vand.u32 2147483648, %v2496_v46  ;;  %v2537_v17 = vand.u32 2147483647, %v2496_v46  ;;  %vm2533_vm11 = vweird.f32 %v2496_v46 }
 0x835   :  { %6226 = vmatmul.msk.f32.vlgmr.msra.gmra.mxu0 %vm642_vm2, %v2667_v31  ;;  %v2516_v23 = vmul.f32 %v6801_v56, %v2515_v21  ;;  %v2575_v21 = vpop.f32.mrf.mxu3 }
 0x836   :  { %v2540_v24 = vor.u32 1.1754944e-38, %v2539_v28  ;;  %vm2538_vm13 = vcmp.eq.f32.partialorder %v2537_v17, 8.507059e+37  ;;  %v10712_v28 = vld [vmem:[#allocation22_spill] sm:$0xff] }
 0x837   :  { %v2517_v62 = vadd.f32 %v6801_v56, %v2516_v23  ;;  %v482_v23 = vadd.f32 %v8663_v47, %v10708_v6 }
 0x839   :  { %v6805_v3 = vpop.eup %6804  ;;  %v2521_v63 = vsel %vm2520_vm9, %v6801_v56, %v2517_v62  ;;  %v2587_v53 = vadd.f32 %v2575_v21, %v482_v23  ;;  %v10709_v62 = vld [vmem:[#allocation37_spill] sm:$0xff] }
 0x83a   :  { %v6807_v10 = vpop.eup %6806  ;;  %v2497_v11 = vadd.f32 1.0, %v6805_v3  ;;  %v2526_v45 = vsel %vm2523_vm10, %v2525_v52, %v2521_v63  ;;  %v10710_v63 = vld [vmem:[#allocation21_spill] sm:$0xff] }
 0x83b   :  { %v2668_v50 = vmul.f32 %v2526_v45, %v8799_v49  ;;  %v2529_v30 = vmul.f32 %v6807_v10, %v2496_v46  ;;  %vm2534_vm1 = vweird.f32 %v6807_v10  ;;  %v6222_v3 = vmul.f32 -1.442695, %v2587_v53  ;;  %v10711_v45 = vld [vmem:[#allocation38_spill] sm:$0xff] }
 0x83c   :  { %6808 = vrcp.f32 %v2497_v11  ;;  %vm2535_vm12 = vmor %vm2533_vm11, %vm2534_vm1  ;;  %v2554_v35 = vand.u32 2147483648, %v2497_v11  ;;  %v2552_v16 = vand.u32 2147483647, %v2497_v11  ;;  %vm2548_vm15 = vweird.f32 %v2497_v11 }
 0x83d   :  { %6227 = vmatmul.msk.f32.gmra.mxu0 %vm642_vm2, %v2668_v50  ;;  %v2530_v55 = vsub.f32 1.0, %v2529_v30  ;;  %v2578_v52 = vpop.f32.mrf.mxu3  ;;  %6810 = vpow2.f32 %v6222_v3 }
 0x83e   :  { %v2555_v8 = vor.u32 1.1754944e-38, %v2554_v35  ;;  %vm2553_vm3 = vcmp.eq.f32.partialorder %v2552_v16, 8.507059e+37 }
 0x83f   :  { %v2531_v29 = vmul.f32 %v6807_v10, %v2530_v55 }
 0x841   :  { %v2532_v36 = vadd.f32 %v6807_v10, %v2531_v29  ;;  %v488_v29 = vadd.f32 %v8663_v47, %v10712_v28 }
 0x842   :  { %v6809_v25 = vpop.eup %6808 }
 0x843   :  { %v2536_v4 = vsel %vm2535_vm12, %v6807_v10, %v2532_v36  ;;  %v2544_v57 = vmul.f32 %v6809_v25, %v2497_v11  ;;  %vm2549_vm14 = vweird.f32 %v6809_v25  ;;  %v485_v10 = vadd.f32 %v8663_v47, %v10710_v63  ;;  %v6811_v55 = vpop.eup %6810 }
 0x844   :  { %v2541_v1 = vsel %vm2538_vm13, %v2540_v24, %v2536_v4  ;;  %vm2550_vm0 = vmor %vm2548_vm15, %vm2549_vm14  ;;  %v2603_v17 = vadd.f32 1.0, %v6811_v55 }
 0x845   :  { %v2669_v56 = vmul.f32 %v2541_v1, %v8814_v54  ;;  %v2545_v59 = vsub.f32 1.0, %v2544_v57  ;;  %v2588_v11 = vadd.f32 %v2578_v52, %v485_v10  ;;  %v2581_v30 = vpop.f32.mrf.mxu3  ;;  %v10713_v57 = vld [vmem:[#allocation23_spill] sm:$0xff]  ;;  %v603_v52 = vadd.f32 %v8683_v40, %v8493_v42 }
 0x846   :  { %v2589_v36 = vadd.f32 %v2581_v30, %v488_v29  ;;  %v491_v1 = vadd.f32 %v8663_v47, %v10713_v57  ;;  %v2618_v3 = vand.u32 2147483648, %v2603_v17  ;;  %vm2612_vm5 = vweird.f32 %v2603_v17 }
 0x847   :  { %6228 = vmatmul.msk.f32.gmra.mxu0 %vm642_vm2, %v2669_v56  ;;  %v2546_v41 = vmul.f32 %v6809_v25, %v2545_v59  ;;  %v6223_v50 = vmul.f32 -1.442695, %v2588_v11  ;;  %v2616_v63 = vand.u32 2147483647, %v2603_v17 }
 0x848   :  { %v6224_v24 = vmul.f32 -1.442695, %v2589_v36  ;;  %v2619_v28 = vor.u32 1.1754944e-38, %v2618_v3 }
 0x849   :  { %v2547_v32 = vadd.f32 %v6809_v25, %v2546_v41  ;;  %6812 = vpow2.f32 %v6223_v50  ;;  %vm2617_vm7 = vcmp.eq.f32.partialorder %v2616_v63, 8.507059e+37  ;;  %v3290_v63 = vld [vmem:[#allocation6 + $0x8] sm:$0xff] }
 0x84a   :  { %6814 = vrcp.f32 %v2603_v17 }
 0x84b   :  { %v2551_v46 = vsel %vm2550_vm0, %v6809_v25, %v2547_v32  ;;  %6816 = vpow2.f32 %v6224_v24 }
 0x84c   :  { %v2556_v9 = vsel %vm2553_vm3, %v2555_v8, %v2551_v46 }
 0x84d   :  { %v2670_v31 = vmul.f32 %v2556_v9, %v8821_v44  ;;  %v2584_v4 = vpop.f32.mrf.mxu3 }
 0x84e   :  { %v2590_v59 = vadd.f32 %v2584_v4, %v491_v1 }
 0x84f   :  { %6229 = vmatmul.msk.f32.gmra.mxu0 %vm642_vm2, %v2670_v31  ;;  %v6813_v25 = vpop.eup %6812 }
 0x850   :  { %v8881_v56 = vadd.f32 1.0, %v6813_v25  ;;  %v6815_v35 = vpop.eup %6814  ;;  %v6225_v41 = vmul.f32 -1.442695, %v2590_v59 }
 0x851   :  { %v2608_v16 = vmul.f32 %v6815_v35, %v2603_v17  ;;  %v6817_v32 = vpop.eup %6816  ;;  %vm2613_vm4 = vweird.f32 %v6815_v35  ;;  %v606_v17 = vadd.f32 %v8683_v40, %v8502_v60 }
 0x852   :  { %6818 = vrcp.f32 %v8881_v56  ;;  %v8888_v47 = vadd.f32 1.0, %v6817_v32  ;;  %vm2614_vm6 = vmor %vm2612_vm5, %vm2613_vm4  ;;  %v2633_v25 = vand.u32 2147483648, %v8881_v56  ;;  %vm2627_vm9 = vweird.f32 %v8881_v56 }
 0x853   :  { %6820 = vpow2.f32 %v6225_v41  ;;  %v2609_v8 = vsub.f32 1.0, %v2608_v16  ;;  %v2631_v1 = vand.u32 2147483647, %v8881_v56  ;;  %v3292_v41 = vld [vmem:[#allocation6 + $0x18] sm:$0xff] }
 0x854   :  { %6822 = vrcp.f32 %v8888_v47  ;;  %3309 = vmatpush.msra.mxu2 %v3292_v41  ;;  %vm2642_vm12 = vweird.f32 %v8888_v47 }
 0x855   :  { %v2610_v9 = vmul.f32 %v6815_v35, %v2609_v8  ;;  %vm2632_vm1 = vcmp.eq.f32.partialorder %v2631_v1, 8.507059e+37 }
 0x857   :  { %6250 = vmatmul.msk.f32.vlgmr.msrb.gmra.mxu0 %vm642_vm2, %v7997_v18  ;;  %v2611_v53 = vadd.f32 %v6815_v35, %v2610_v9  ;;  %v2634_v9 = vor.u32 1.1754944e-38, %v2633_v25 }
 0x858   :  { %v6819_v46 = vpop.eup %6818 }
 0x859   :  { %v2623_v31 = vmul.f32 %v6819_v46, %v8881_v56  ;;  %v6821_v21 = vpop.eup %6820  ;;  %v2615_v55 = vsel %vm2614_vm6, %v6815_v35, %v2611_v53  ;;  %vm2628_vm8 = vweird.f32 %v6819_v46  ;;  %v3171_v35 = vld [vmem:[%s10594_s15 + $0x18] sm:$0xff] }
 0x85a   :  { %v8894_v23 = vadd.f32 1.0, %v6821_v21  ;;  %v8898_v11 = vpop.eup %6822  ;;  %v2620_v36 = vsel %vm2617_vm7, %v2619_v28, %v2615_v55  ;;  %vm8915_vm10 = vmor %vm2627_vm9, %vm2628_vm8  ;;  %3188 = vmatpush.msra.mxu1 %v3171_v35  ;;  %v3291_v21 = vld [vmem:[#allocation6 + $0x10] sm:$0xff] }
 0x85b   :  { %v2624_v6 = vsub.f32 1.0, %v2623_v31  ;;  %v2638_v29 = vmul.f32 %v8898_v11, %v8888_v47  ;;  %v2724_v57 = vsub.f32 1.0, %v2620_v36  ;;  %v2720_v40 = vmul.f32 %v2620_v36, %v8786_v61  ;;  %v3170_v31 = vld [vmem:[%s10594_s15 + $0x10] sm:$0xff]  ;;  %3310 = vmatpush.msra.mxu2 %v3291_v21  ;;  %v8947_v36 = vld [vmem:[%s10589_s10] ss:$0 sm:$0xff] }
 0x85c   :  { %6824 = vrcp.f32 %v8894_v23  ;;  %3189 = vmatpush.msra.mxu1 %v3170_v31  ;;  %vm2643_vm11 = vweird.f32 %v8898_v11  ;;  %vm2657_vm0 = vweird.f32 %v8894_v23 }
 0x85d   :  { %v2625_v30 = vmul.f32 %v6819_v46, %v2624_v6  ;;  %v2639_v4 = vsub.f32 1.0, %v2638_v29  ;;  %3311 = vmatpush.msra.mxu2 %v3290_v63  ;;  %vm2644_vm13 = vmor %vm2642_vm12, %vm2643_vm11 }
 0x85f   :  { %6251 = vmatmul.msk.f32.gmra.mxu0 %vm642_vm2, %v8022_v20  ;;  %v2626_v42 = vadd.f32 %v6819_v46, %v2625_v30  ;;  %v2640_v6 = vmul.f32 %v8898_v11, %v2639_v4 }
 0x861   :  { %v2630_v56 = vsel %vm8915_vm10, %v6819_v46, %v2626_v42  ;;  %v3169_v46 = vld [vmem:[%s10594_s15 + $0x8] sm:$0xff]  ;;  %v2641_v28 = vadd.f32 %v8898_v11, %v2640_v6  ;;  %v609_v42 = vadd.f32 %v8947_v36, %v8507_v7 }
 0x862   :  { %v8908_v24 = vpop.eup %6824  ;;  %v2635_v3 = vsel %vm2632_vm1, %v2634_v9, %v2630_v56  ;;  %3190 = vmatpush.msra.mxu1 %v3169_v46 }
 0x863   :  { %v2653_v53 = vmul.f32 %v8908_v24, %v8894_v23  ;;  %v2725_v55 = vsub.f32 1.0, %v2635_v3  ;;  %v2721_v25 = vmul.f32 %v2635_v3, %v8799_v49  ;;  %v2645_v7 = vsel %vm2644_vm13, %v8898_v11, %v2641_v28 }
 0x864   :  { %vm2658_vm15 = vweird.f32 %v8908_v24  ;;  %v612_v11 = vadd.f32 %v8947_v36, %v8511_v13 }
 0x865   :  { %v2654_v30 = vsub.f32 1.0, %v2653_v53  ;;  %vm2659_vm3 = vmor %vm2657_vm0, %vm2658_vm15 }
 0x867   :  { %6252 = vmatmul.msk.f32.gmra.mxu0 %vm642_vm2, %v8038_v58  ;;  %v2655_v35 = vmul.f32 %v8908_v24, %v2654_v30 }
 0x869   :  { %v2656_v32 = vadd.f32 %v8908_v24, %v2655_v35 }
 0x86b   :  { %v2660_v53 = vsel %vm2659_vm3, %v8908_v24, %v2656_v32 }
 0x86f   :  { %6253 = vmatmul.msk.f32.gmra.mxu0 %vm642_vm2, %v8047_v12 }
 0x877   :  { %6254 = vmatmul.msk.f32.gmra.mxu0 %vm642_vm2, %v8197_v48 }
 0x87f   :  { %6255 = vmatmul.msk.f32.gmra.mxu0 %vm642_vm2, %v10707_v5 }
 0x887   :  { %6256 = vmatmul.msk.f32.gmra.mxu0 %vm642_vm2, %v10709_v62 }
 0x88f   :  { %6257 = vmatmul.msk.f32.gmra.mxu0 %vm642_vm2, %v10711_v45 }
 0x897   :  { %6258 = vmatmul.msk.f32.gmra.mxu0 %vm642_vm2, %v8381_v34 }
 0x89f   :  { %6259 = vmatmul.msk.f32.gmra.mxu0 %vm642_vm2, %v8410_v0 }
 0x8a7   :  { %6260 = vmatmul.msk.f32.gmra.mxu0 %vm642_vm2, %v8426_v14 }
 0x8af   :  { %6261 = vmatmul.msk.f32.gmra.mxu0 %vm642_vm2, %v8435_v43 }
 0x8b2   :  { %v2700_v10 = vpop.f32.mrf.mxu0 }
 0x8b3   :  { %v2712_v50 = vadd.f32 %v2700_v10, %v603_v52  ;;  %v3168_v10 = vld [vmem:[%s10594_s15] sm:$0xff] }
 0x8b4   :  { %3191 = vmatpush.msra.mxu1 %v3168_v10 }
 0x8b5   :  { %6826 = vtanh.f32 %v2712_v50  ;;  %v3289_v50 = vld [vmem:[#allocation6] sm:$0xff] }
 0x8b6   :  { %3312 = vmatpush.msra.mxu2 %v3289_v50 }
 0x8b7   :  { %6262 = vmatmul.msk.f32.gmra.mxu0 %vm642_vm2, %v8549_v22 }
 0x8ba   :  { %v2703_v59 = vpop.f32.mrf.mxu0 }
 0x8bb   :  { %v6827_v16 = vpop.eup %6826  ;;  %v2713_v60 = vadd.f32 %v2703_v59, %v606_v17  ;;  %v2648_v17 = vand.u32 2147483648, %v8888_v47 }
 0x8bc   :  { %v2728_v8 = vmul.f32 %v6827_v16, %v2724_v57  ;;  %v2646_v57 = vand.u32 2147483647, %v8888_v47 }
 0x8bd   :  { %6828 = vtanh.f32 %v2713_v60  ;;  %v2649_v16 = vor.u32 1.1754944e-38, %v2648_v17  ;;  %v2663_v60 = vand.u32 2147483648, %v8894_v23  ;;  %v10718_v17 = vld [vmem:[#allocation18_spill] sm:$0xff] }
 0x8be   :  { %v8928_v52 = vadd.f32 %v2728_v8, %v2720_v40  ;;  %vm2647_vm14 = vcmp.eq.f32.partialorder %v2646_v57, 8.507059e+37  ;;  %v2661_v8 = vand.u32 2147483647, %v8894_v23 }
 0x8bf   :  { %6263 = vmatmul.msk.f32.gmra.mxu0 %vm642_vm2, %v8592_v26  ;;  %v2650_v47 = vsel %vm2647_vm14, %v2649_v16, %v2645_v7  ;;  %v2664_v3 = vor.u32 1.1754944e-38, %v2663_v60 }
 0x8c0   :  { %6230 = vmatmul.msk.f32.vlgmr.msrb.gmra.mxu1 %vm642_vm2, %v8928_v52  ;;  %6238 = vmatmul.msk.f32.vlgmr.msrb.gmra.mxu2 %vm642_vm2, %v8928_v52  ;;  %v2726_v40 = vsub.f32 1.0, %v2650_v47  ;;  %v2722_v21 = vmul.f32 %v2650_v47, %v8814_v54  ;;  %vm2662_vm4 = vcmp.eq.f32.partialorder %v2661_v8, 8.507059e+37  ;;  %v10719_v47 = vld [vmem:[#allocation19_spill] sm:$0xff]  ;;  %v9096_v8 = vld [vmem:[%s10592_s13 + $0x10] sm:$0xff] }
 0x8c1   :  { %v2665_v46 = vsel %vm2662_vm4, %v2664_v3, %v2660_v53 }
 0x8c2   :  { %v2727_v23 = vsub.f32 1.0, %v2665_v46  ;;  %v2723_v10 = vmul.f32 %v2665_v46, %v8821_v44 }
 0x8c3   :  { %v6829_v29 = vpop.eup %6828 }
 0x8c4   :  { %v2729_v4 = vmul.f32 %v6829_v29, %v2725_v55  ;;  %v2706_v1 = vpop.f32.mrf.mxu0 }
 0x8c5   :  { %v2714_v59 = vadd.f32 %v2706_v1, %v609_v42 }
 0x8c6   :  { %v8956_v41 = vadd.f32 %v2729_v4, %v2721_v25 }
 0x8c7   :  { %6830 = vtanh.f32 %v2714_v59  ;;  %6264 = vmatmul.msk.f32.gmra.mxu0 %vm642_vm2, %v8614_v15 }
 0x8c8   :  { %6231 = vmatmul.msk.f32.gmra.mxu1 %vm642_vm2, %v8956_v41  ;;  %6239 = vmatmul.msk.f32.gmra.mxu2 %vm642_vm2, %v8956_v41 }
 0x8cc   :  { %v2709_v56 = vpop.f32.mrf.mxu0 }
 0x8cd   :  { %v6831_v9 = vpop.eup %6830  ;;  %v2715_v31 = vadd.f32 %v2709_v56, %v612_v11 }
 0x8ce   :  { %v2730_v6 = vmul.f32 %v6831_v9, %v2726_v40  ;;  %v9091_v40 = vld [vmem:[%s10592_s13 + $0x18] sm:$0xff] }
 0x8cf   :  { %6832 = vtanh.f32 %v2715_v31  ;;  %6265 = vmatmul.msk.f32.gmra.mxu0 %vm642_vm2, %v8621_v51  ;;  %3450 = vmatpush.msrb.mxu3 %v9091_v40  ;;  %v9103_v31 = vld [vmem:[%s10592_s13 + $0x8] sm:$0xff] }
 0x8d0   :  { %v8976_v13 = vadd.f32 %v2730_v6, %v2722_v21  ;;  %4347 = vmatpush.msrb.mxu1 %v9091_v40 }
 0x8d1   :  { %3451 = vmatpush.msrb.mxu3 %v9096_v8 }
 0x8d2   :  { %6232 = vmatmul.msk.f32.gmra.mxu1 %vm642_vm2, %v8976_v13  ;;  %6240 = vmatmul.msk.f32.gmra.mxu2 %vm642_vm2, %v8976_v13 }
 0x8d3   :  { %4348 = vmatpush.msrb.mxu1 %v9096_v8  ;;  %3452 = vmatpush.msrb.mxu3 %v9103_v31 }
 0x8d5   :  { %v6833_v63 = vpop.eup %6832  ;;  %4349 = vmatpush.msrb.mxu1 %v9103_v31 }
 0x8d6   :  { %v2731_v24 = vmul.f32 %v6833_v63, %v2727_v23  ;;  %v9114_v23 = vld [vmem:[%s10592_s13] sm:$0xff] }
 0x8d7   :  { %6266 = vmatmul.msk.f32.gmra.mxu0 %vm642_vm2, %v8698_v39  ;;  %3453 = vmatpush.msrb.mxu3 %v9114_v23 }
 0x8d8   :  { %v8985_v50 = vadd.f32 %v2731_v24, %v2723_v10  ;;  %4350 = vmatpush.msrb.mxu1 %v9114_v23 }
 0x8da   :  { %6233 = vmatmul.msk.f32.gmra.mxu1 %vm642_vm2, %v8985_v50  ;;  %6241 = vmatmul.msk.f32.gmra.mxu2 %vm642_vm2, %v8985_v50 }
 0x8df   :  { %6267 = vmatmul.msk.f32.gmra.mxu0 %vm642_vm2, %v8717_v27 }
 0x8e2   :  { %6282 = vmatmul.msk.f32.vlgmr.msra.gmra.mxu1 %vm642_vm2, %v7997_v18  ;;  %6314 = vmatmul.msk.f32.vlgmr.msra.gmra.mxu2 %vm642_vm2, %v7997_v18  ;;  %v9029_v18 = vpop.f32.mrf.mxu0 }
 0x8e7   :  { %6268 = vmatmul.msk.f32.gmra.mxu0 %vm642_vm2, %v8732_v33 }
 0x8ea   :  { %6283 = vmatmul.msk.f32.gmra.mxu1 %vm642_vm2, %v8022_v20  ;;  %6315 = vmatmul.msk.f32.gmra.mxu2 %vm642_vm2, %v8022_v20  ;;  %v9041_v20 = vpop.f32.mrf.mxu0 }
 0x8ef   :  { %6269 = vmatmul.msk.f32.gmra.mxu0 %vm642_vm2, %v8740_v2 }
 0x8f2   :  { %6284 = vmatmul.msk.f32.gmra.mxu1 %vm642_vm2, %v8038_v58  ;;  %6316 = vmatmul.msk.f32.gmra.mxu2 %vm642_vm2, %v8038_v58  ;;  %v9049_v58 = vpop.f32.mrf.mxu0 }
 0x8f7   :  { %6270 = vmatmul.msk.f32.gmra.mxu0 %vm642_vm2, %v8786_v61 }
 0x8fa   :  { %6285 = vmatmul.msk.f32.gmra.mxu1 %vm642_vm2, %v8047_v12  ;;  %6317 = vmatmul.msk.f32.gmra.mxu2 %vm642_vm2, %v8047_v12  ;;  %v9057_v12 = vpop.f32.mrf.mxu0 }
 0x8ff   :  { %6271 = vmatmul.msk.f32.gmra.mxu0 %vm642_vm2, %v8799_v49 }
 0x902   :  { %6286 = vmatmul.msk.f32.gmra.mxu1 %vm642_vm2, %v8197_v48  ;;  %6318 = vmatmul.msk.f32.gmra.mxu2 %vm642_vm2, %v8197_v48  ;;  %v7225_v48 = vld [vmem:[%s10647_s30] ss:$0 sm:$0xff] }
 0x903   :  { %v379_v25 = vadd.f32 %v7225_v48, %v10718_v17  ;;  %v382_v32 = vadd.f32 %v7225_v48, %v10719_v47 }
 0x907   :  { %6272 = vmatmul.msk.f32.gmra.mxu0 %vm642_vm2, %v8814_v54 }
 0x90a   :  { %6287 = vmatmul.msk.f32.gmra.mxu1 %vm642_vm2, %v10707_v5  ;;  %6319 = vmatmul.msk.f32.gmra.mxu2 %vm642_vm2, %v10707_v5 }
 0x90f   :  { %6273 = vmatmul.msk.f32.gmra.mxu0 %vm642_vm2, %v8821_v44 }
 0x912   :  { %6288 = vmatmul.msk.f32.gmra.mxu1 %vm642_vm2, %v10709_v62  ;;  %6320 = vmatmul.msk.f32.gmra.mxu2 %vm642_vm2, %v10709_v62 }
 0x917   :  { %6274 = vmatmul.msk.f32.gmra.mxu0 %vm642_vm2, %v8928_v52 }
 0x91a   :  { %6289 = vmatmul.msk.f32.gmra.mxu1 %vm642_vm2, %v10711_v45  ;;  %6321 = vmatmul.msk.f32.gmra.mxu2 %vm642_vm2, %v10711_v45 }
 0x91f   :  { %6275 = vmatmul.msk.f32.gmra.mxu0 %vm642_vm2, %v8956_v41 }
 0x922   :  { %6290 = vmatmul.msk.f32.gmra.mxu1 %vm642_vm2, %v8381_v34  ;;  %6322 = vmatmul.msk.f32.gmra.mxu2 %vm642_vm2, %v8381_v34  ;;  %v10716_v34 = vld [vmem:[#allocation16_spill] sm:$0xff] }
 0x927   :  { %6276 = vmatmul.msk.f32.gmra.mxu0 %vm642_vm2, %v8976_v13 }
 0x92a   :  { %6291 = vmatmul.msk.f32.gmra.mxu1 %vm642_vm2, %v8410_v0  ;;  %6323 = vmatmul.msk.f32.gmra.mxu2 %vm642_vm2, %v8410_v0  ;;  %v373_v0 = vadd.f32 %v7225_v48, %v10716_v34 }
 0x92f   :  { %6277 = vmatmul.msk.f32.gmra.mxu0 %vm642_vm2, %v8985_v50 }
 0x932   :  { %6292 = vmatmul.msk.f32.gmra.mxu1 %vm642_vm2, %v8426_v14  ;;  %6324 = vmatmul.msk.f32.gmra.mxu2 %vm642_vm2, %v8426_v14  ;;  %v10717_v14 = vld [vmem:[#allocation17_spill] sm:$0xff] }
 0x933   :  { %v376_v30 = vadd.f32 %v7225_v48, %v10717_v14 }
 0x93a   :  { %6293 = vmatmul.msk.f32.gmra.mxu1 %vm642_vm2, %v8435_v43  ;;  %6325 = vmatmul.msk.f32.gmra.mxu2 %vm642_vm2, %v8435_v43 }
 0x93d   :  { %v2765_v5 = vpop.f32.mrf.mxu1 }
 0x93e   :  { %v2777_v62 = vadd.f32 %v2765_v5, %v373_v0 }
 0x940   :  { %v6234_v45 = vmul.f32 -1.442695, %v2777_v62 }
 0x942   :  { %6834 = vpow2.f32 %v6234_v45  ;;  %6294 = vmatmul.msk.f32.gmra.mxu1 %vm642_vm2, %v8549_v22  ;;  %6326 = vmatmul.msk.f32.gmra.mxu2 %vm642_vm2, %v8549_v22 }
 0x945   :  { %v2768_v55 = vpop.f32.mrf.mxu1 }
 0x946   :  { %v2778_v43 = vadd.f32 %v2768_v55, %v376_v30 }
 0x948   :  { %v6835_v28 = vpop.eup %6834  ;;  %v6235_v29 = vmul.f32 -1.442695, %v2778_v43 }
 0x949   :  { %v2793_v42 = vadd.f32 1.0, %v6835_v28 }
 0x94a   :  { %6836 = vpow2.f32 %v6235_v29  ;;  %6295 = vmatmul.msk.f32.gmra.mxu1 %vm642_vm2, %v8592_v26  ;;  %6327 = vmatmul.msk.f32.gmra.mxu2 %vm642_vm2, %v8592_v26 }
 0x94b   :  { %6838 = vrcp.f32 %v2793_v42  ;;  %v2808_v26 = vand.u32 2147483648, %v2793_v42  ;;  %v2806_v60 = vand.u32 2147483647, %v2793_v42  ;;  %vm2802_vm6 = vweird.f32 %v2793_v42 }
 0x94d   :  { %v2809_v6 = vor.u32 1.1754944e-38, %v2808_v26  ;;  %vm2807_vm8 = vcmp.eq.f32.partialorder %v2806_v60, 8.507059e+37  ;;  %v2874_v60 = vpop.f32.mrf.mxu2 }
 0x94f   :  { %v2771_v4 = vpop.f32.mrf.mxu1 }
 0x950   :  { %v6837_v57 = vpop.eup %6836  ;;  %v2779_v22 = vadd.f32 %v2771_v4, %v379_v25 }
 0x951   :  { %v6839_v1 = vpop.eup %6838  ;;  %v2794_v59 = vadd.f32 1.0, %v6837_v57 }
 0x952   :  { %v2798_v35 = vmul.f32 %v6839_v1, %v2793_v42  ;;  %v6236_v7 = vmul.f32 -1.442695, %v2779_v22  ;;  %6296 = vmatmul.msk.f32.gmra.mxu1 %vm642_vm2, %v8614_v15  ;;  %6328 = vmatmul.msk.f32.gmra.mxu2 %vm642_vm2, %v8614_v15  ;;  %vm2803_vm5 = vweird.f32 %v6839_v1 }
 0x953   :  { %6840 = vrcp.f32 %v2794_v59  ;;  %vm2804_vm7 = vmor %vm2802_vm6, %vm2803_vm5  ;;  %v2823_v0 = vand.u32 2147483648, %v2794_v59  ;;  %v2821_v5 = vand.u32 2147483647, %v2794_v59  ;;  %vm2817_vm10 = vweird.f32 %v2794_v59 }
 0x954   :  { %v2799_v16 = vsub.f32 1.0, %v2798_v35  ;;  %6842 = vpow2.f32 %v6236_v7 }
 0x955   :  { %v2824_v45 = vor.u32 1.1754944e-38, %v2823_v0  ;;  %vm2822_vm11 = vcmp.eq.f32.partialorder %v2821_v5, 8.507059e+37  ;;  %v7226_v5 = vld [vmem:[%s10660_s18] ss:$0 sm:$0xff] }
 0x956   :  { %v2800_v11 = vmul.f32 %v6839_v1, %v2799_v16 }
 0x957   :  { %v2774_v15 = vpop.f32.mrf.mxu1 }
 0x958   :  { %v2801_v56 = vadd.f32 %v6839_v1, %v2800_v11  ;;  %v2780_v9 = vadd.f32 %v2774_v15, %v382_v32 }
 0x959   :  { %v6841_v21 = vpop.eup %6840 }
 0x95a   :  { %v6843_v53 = vpop.eup %6842  ;;  %v2805_v3 = vsel %vm2804_vm7, %v6839_v1, %v2801_v56  ;;  %v2813_v46 = vmul.f32 %v6841_v21, %v2794_v59  ;;  %6297 = vmatmul.msk.f32.gmra.mxu1 %vm642_vm2, %v8621_v51  ;;  %6329 = vmatmul.msk.f32.gmra.mxu2 %vm642_vm2, %v8621_v51  ;;  %v6237_v10 = vmul.f32 -1.442695, %v2780_v9  ;;  %vm2818_vm9 = vweird.f32 %v6841_v21 }
 0x95b   :  { %v2795_v63 = vadd.f32 1.0, %v6843_v53  ;;  %v2810_v24 = vsel %vm2807_vm8, %v2809_v6, %v2805_v3  ;;  %vm2819_vm1 = vmor %vm2817_vm10, %vm2818_vm9  ;;  %v9153_v6 = vld [vmem:[%s10595_s16 + $0x10] sm:$0xff]  ;;  %v9161_v53 = vld [vmem:[%s10595_s16 + $0x8] sm:$0xff] }
 0x95c   :  { %v2814_v48 = vsub.f32 1.0, %v2813_v46  ;;  %v2966_v34 = vmul.f32 %v2810_v24, %v8928_v52  ;;  %v9168_v3 = vld [vmem:[%s10590_s11] sm:$0xff] }
 0x95d   :  { %6844 = vrcp.f32 %v2795_v63  ;;  %v2838_v25 = vand.u32 2147483648, %v2795_v63  ;;  %v2836_v57 = vand.u32 2147483647, %v2795_v63  ;;  %vm2832_vm13 = vweird.f32 %v2795_v63  ;;  %v9174_v46 = vld [vmem:[%s10595_s16] sm:$0xff] }
 0x95e   :  { %6846 = vpow2.f32 %v6237_v10  ;;  %6246 = vmatmul.msk.f32.vlgmr.msra.gmra.mxu3 %vm642_vm2, %v2966_v34  ;;  %v2815_v51 = vmul.f32 %v6841_v21, %v2814_v48  ;;  %v9212_v48 = vld [vmem:[%s10590_s11 + $0x18] sm:$0xff] }
 0x95f   :  { %v2839_v22 = vor.u32 1.1754944e-38, %v2838_v25  ;;  %vm2837_vm15 = vcmp.eq.f32.partialorder %v2836_v57, 8.507059e+37 }
 0x960   :  { %v2816_v62 = vadd.f32 %v6841_v21, %v2815_v51 }
 0x962   :  { %6298 = vmatmul.msk.f32.gmra.mxu1 %vm642_vm2, %v8698_v39  ;;  %6330 = vmatmul.msk.f32.gmra.mxu2 %vm642_vm2, %v8698_v39  ;;  %v2820_v14 = vsel %vm2819_vm1, %v6841_v21, %v2816_v62  ;;  %v10720_v62 = vld [vmem:[#allocation39_spill] sm:$0xff] }
 0x963   :  { %v6845_v30 = vpop.eup %6844  ;;  %v2825_v55 = vsel %vm2822_vm11, %v2824_v45, %v2820_v14  ;;  %v494_v45 = vadd.f32 %v7226_v5, %v10720_v62 }
 0x964   :  { %v6847_v43 = vpop.eup %6846  ;;  %v2828_v28 = vmul.f32 %v6845_v30, %v2795_v63  ;;  %v2967_v29 = vmul.f32 %v2825_v55, %v8956_v41  ;;  %vm2833_vm12 = vweird.f32 %v6845_v30  ;;  %v9190_v63 = vld [vmem:[%s10590_s11 + $0x8] sm:$0xff] }
 0x965   :  { %v2796_v42 = vadd.f32 1.0, %v6847_v43  ;;  %vm2834_vm14 = vmor %vm2832_vm13, %vm2833_vm12  ;;  %v2886_v14 = vadd.f32 %v2874_v60, %v494_v45  ;;  %v10721_v43 = vld [vmem:[#allocation40_spill] sm:$0xff] }
 0x966   :  { %v2829_v17 = vsub.f32 1.0, %v2828_v28  ;;  %6247 = vmatmul.msk.f32.gmra.mxu3 %vm642_vm2, %v2967_v29  ;;  %v497_v28 = vadd.f32 %v7226_v5, %v10721_v43 }
 0x967   :  { %6848 = vrcp.f32 %v2796_v42  ;;  %v2853_v47 = vand.u32 2147483648, %v2796_v42  ;;  %v2851_v32 = vand.u32 2147483647, %v2796_v42  ;;  %vm2847_vm3 = vweird.f32 %v2796_v42 }
 0x968   :  { %v2830_v4 = vmul.f32 %v6845_v30, %v2829_v17 }
 0x969   :  { %v2854_v15 = vor.u32 1.1754944e-38, %v2853_v47  ;;  %vm2852_vm5 = vcmp.eq.f32.partialorder %v2851_v32, 8.507059e+37 }
 0x96a   :  { %6299 = vmatmul.msk.f32.gmra.mxu1 %vm642_vm2, %v8717_v27  ;;  %6331 = vmatmul.msk.f32.gmra.mxu2 %vm642_vm2, %v8717_v27  ;;  %v2831_v39 = vadd.f32 %v6845_v30, %v2830_v4  ;;  %v10722_v4 = vld [vmem:[#allocation41_spill] sm:$0xff] }
 0x96b   :  { %v500_v57 = vadd.f32 %v7226_v5, %v10722_v4 }
 0x96c   :  { %v2835_v1 = vsel %vm2834_vm14, %v6845_v30, %v2831_v39  ;;  %v6242_v30 = vmul.f32 -1.442695, %v2886_v14 }
 0x96d   :  { %v6849_v59 = vpop.eup %6848  ;;  %v2840_v35 = vsel %vm2837_vm15, %v2839_v22, %v2835_v1 }
 0x96e   :  { %v2843_v7 = vmul.f32 %v6849_v59, %v2796_v42  ;;  %v2968_v16 = vmul.f32 %v2840_v35, %v8976_v13  ;;  %vm2848_vm0 = vweird.f32 %v6849_v59  ;;  %6850 = vpow2.f32 %v6242_v30 }
 0x96f   :  { %vm2849_vm4 = vmor %vm2847_vm3, %vm2848_vm0 }
 0x970   :  { %v2844_v26 = vsub.f32 1.0, %v2843_v7  ;;  %6248 = vmatmul.msk.f32.gmra.mxu3 %vm642_vm2, %v2968_v16  ;;  %v10723_v7 = vld [vmem:[#allocation42_spill] sm:$0xff] }
 0x971   :  { %v503_v16 = vadd.f32 %v7226_v5, %v10723_v7 }
 0x972   :  { %6300 = vmatmul.msk.f32.gmra.mxu1 %vm642_vm2, %v8732_v33  ;;  %6332 = vmatmul.msk.f32.gmra.mxu2 %vm642_vm2, %v8732_v33  ;;  %v2845_v27 = vmul.f32 %v6849_v59, %v2844_v26  ;;  %v9145_v33 = vld [vmem:[%s10595_s16 + $0x18] sm:$0xff] }
 0x973   :  { %3559 = vmatpush.msra.mxu3 %v9145_v33  ;;  %4456 = vmatpush.msrb.mxu2 %v9145_v33 }
 0x974   :  { %v2846_v11 = vadd.f32 %v6849_v59, %v2845_v27  ;;  %4755 = vmatpush.msra.mxu1 %v9145_v33  ;;  %v6851_v25 = vpop.eup %6850 }
 0x975   :  { %3560 = vmatpush.msra.mxu3 %v9153_v6  ;;  %4457 = vmatpush.msrb.mxu2 %v9153_v6  ;;  %v2902_v39 = vadd.f32 1.0, %v6851_v25 }
 0x976   :  { %v2850_v56 = vsel %vm2849_vm4, %v6849_v59, %v2846_v11  ;;  %4756 = vmatpush.msra.mxu1 %v9153_v6 }
 0x977   :  { %v2855_v9 = vsel %vm2852_vm5, %v2854_v15, %v2850_v56  ;;  %3561 = vmatpush.msra.mxu3 %v9161_v53  ;;  %4458 = vmatpush.msrb.mxu2 %v9161_v53  ;;  %v2917_v5 = vand.u32 2147483648, %v2902_v39  ;;  %vm2911_vm7 = vweird.f32 %v2902_v39  ;;  %v2915_v45 = vand.u32 2147483647, %v2902_v39 }
 0x978   :  { %v2969_v21 = vmul.f32 %v2855_v9, %v8985_v50  ;;  %4757 = vmatpush.msra.mxu1 %v9161_v53 }
 0x979   :  { %3562 = vmatpush.msra.mxu3 %v9174_v46  ;;  %4459 = vmatpush.msrb.mxu2 %v9174_v46  ;;  %v2918_v25 = vor.u32 1.1754944e-38, %v2917_v5  ;;  %vm2916_vm9 = vcmp.eq.f32.partialorder %v2915_v45, 8.507059e+37  ;;  %v621_v45 = vadd.f32 %v8947_v36, %v8517_v38 }
 0x97a   :  { %6249 = vmatmul.msk.f32.gmra.mxu3 %vm642_vm2, %v2969_v21  ;;  %6301 = vmatmul.msk.f32.gmra.mxu1 %vm642_vm2, %v8740_v2 }
 0x97b   :  { %6333 = vmatmul.msk.f32.gmra.mxu2 %vm642_vm2, %v8740_v2  ;;  %v2877_v2 = vpop.f32.mrf.mxu2  ;;  %4758 = vmatpush.msra.mxu1 %v9174_v46 }
 0x97c   :  { %v2887_v42 = vadd.f32 %v2877_v2, %v497_v28 }
 0x97e   :  { %v6243_v17 = vmul.f32 -1.442695, %v2887_v42 }
 0x980   :  { %6852 = vpow2.f32 %v6243_v17 }
 0x981   :  { %6854 = vrcp.f32 %v2902_v39 }
 0x982   :  { %6346 = vmatmul.msk.f32.vlgmr.msrb.gmra.mxu3 %vm642_vm2, %v9168_v3  ;;  %6302 = vmatmul.msk.f32.gmra.mxu1 %vm642_vm2, %v8786_v61 }
 0x983   :  { %6334 = vmatmul.msk.f32.gmra.mxu2 %vm642_vm2, %v8786_v61  ;;  %v2880_v10 = vpop.f32.mrf.mxu2  ;;  %v9201_v61 = vld [vmem:[%s10590_s11 + $0x10] sm:$0xff] }
 0x984   :  { %v2888_v22 = vadd.f32 %v2880_v10, %v500_v57 }
 0x986   :  { %v6853_v1 = vpop.eup %6852  ;;  %v6244_v59 = vmul.f32 -1.442695, %v2888_v22 }
 0x987   :  { %v2903_v35 = vadd.f32 1.0, %v6853_v1  ;;  %v6855_v26 = vpop.eup %6854 }
 0x988   :  { %6856 = vpow2.f32 %v6244_v59  ;;  %v2907_v27 = vmul.f32 %v6855_v26, %v2902_v39  ;;  %vm2912_vm6 = vweird.f32 %v6855_v26  ;;  %v618_v39 = vadd.f32 %v8947_v36, %v8515_v19 }
 0x989   :  { %6858 = vrcp.f32 %v2903_v35  ;;  %vm2913_vm8 = vmor %vm2911_vm7, %vm2912_vm6  ;;  %v2932_v22 = vand.u32 2147483648, %v2903_v35  ;;  %vm2926_vm1 = vweird.f32 %v2903_v35  ;;  %v2930_v7 = vand.u32 2147483647, %v2903_v35 }
 0x98a   :  { %6347 = vmatmul.msk.f32.gmra.mxu3 %vm642_vm2, %v9190_v63  ;;  %6303 = vmatmul.msk.f32.gmra.mxu1 %vm642_vm2, %v8799_v49  ;;  %v2908_v60 = vsub.f32 1.0, %v2907_v27 }
 0x98b   :  { %6335 = vmatmul.msk.f32.gmra.mxu2 %vm642_vm2, %v8799_v49  ;;  %v2883_v24 = vpop.f32.mrf.mxu2  ;;  %v9220_v49 = vpop.f32.mrf.mxu1  ;;  %vm2931_vm12 = vcmp.eq.f32.partialorder %v2930_v7, 8.507059e+37 }
 0x98c   :  { %v2889_v47 = vadd.f32 %v2883_v24, %v503_v16  ;;  %v2909_v9 = vmul.f32 %v6855_v26, %v2908_v60  ;;  %v615_v24 = vadd.f32 %v8947_v36, %v8513_v37 }
 0x98e   :  { %v6857_v32 = vpop.eup %6856  ;;  %v6245_v11 = vmul.f32 -1.442695, %v2889_v47  ;;  %v2910_v62 = vadd.f32 %v6855_v26, %v2909_v9  ;;  %v2933_v9 = vor.u32 1.1754944e-38, %v2932_v22 }
 0x98f   :  { %v6859_v15 = vpop.eup %6858  ;;  %v9267_v56 = vadd.f32 1.0, %v6857_v32 }
 0x990   :  { %6860 = vpow2.f32 %v6245_v11  ;;  %v2922_v21 = vmul.f32 %v6859_v15, %v2903_v35  ;;  %v2914_v17 = vsel %vm2913_vm8, %v6855_v26, %v2910_v62  ;;  %vm2927_vm10 = vweird.f32 %v6859_v15 }
 0x991   :  { %6862 = vrcp.f32 %v9267_v56  ;;  %v2919_v37 = vsel %vm2916_vm9, %v2918_v25, %v2914_v17  ;;  %vm2928_vm11 = vmor %vm2926_vm1, %vm2927_vm10  ;;  %vm2941_vm14 = vweird.f32 %v9267_v56  ;;  %v2945_v17 = vand.u32 2147483647, %v9267_v56 }
 0x992   :  { %6348 = vmatmul.msk.f32.gmra.mxu3 %vm642_vm2, %v9201_v61  ;;  %6304 = vmatmul.msk.f32.gmra.mxu1 %vm642_vm2, %v8814_v54  ;;  %v2923_v10 = vsub.f32 1.0, %v2922_v21  ;;  %v3023_v59 = vsub.f32 1.0, %v2919_v37  ;;  %v3019_v11 = vmul.f32 %v2919_v37, %v8928_v52  ;;  %v9284_v21 = vpop.f32.mrf.mxu0 }
 0x993   :  { %6336 = vmatmul.msk.f32.gmra.mxu2 %vm642_vm2, %v8814_v54  ;;  %v9222_v34 = vpop.f32.mrf.mxu2  ;;  %v9230_v54 = vpop.f32.mrf.mxu1  ;;  %vm2946_vm0 = vcmp.eq.f32.partialorder %v2945_v17, 8.507059e+37 }
 0x994   :  { %v2924_v42 = vmul.f32 %v6859_v15, %v2923_v10 }
 0x996   :  { %v6861_v2 = vpop.eup %6860  ;;  %v2925_v57 = vadd.f32 %v6859_v15, %v2924_v42 }
 0x997   :  { %v9272_v30 = vpop.eup %6862  ;;  %v9274_v43 = vadd.f32 1.0, %v6861_v2 }
 0x998   :  { %v2937_v4 = vmul.f32 %v9272_v30, %v9267_v56  ;;  %v2929_v32 = vsel %vm2928_vm11, %v6859_v15, %v2925_v57  ;;  %vm2942_vm13 = vweird.f32 %v9272_v30 }
 0x999   :  { %v2934_v62 = vsel %vm2931_vm12, %v2933_v9, %v2929_v32  ;;  %vm2943_vm15 = vmor %vm2941_vm14, %vm2942_vm13  ;;  %vm2956_vm4 = vweird.f32 %v9274_v43 }
 0x99a   :  { %6349 = vmatmul.msk.f32.gmra.mxu3 %vm642_vm2, %v9212_v48  ;;  %6305 = vmatmul.msk.f32.gmra.mxu1 %vm642_vm2, %v8821_v44  ;;  %v2938_v1 = vsub.f32 1.0, %v2937_v4  ;;  %v3020_v4 = vmul.f32 %v2934_v62, %v8956_v41 }
 0x99b   :  { %6337 = vmatmul.msk.f32.gmra.mxu2 %vm642_vm2, %v8821_v44  ;;  %v9232_v0 = vpop.f32.mrf.mxu2  ;;  %v9240_v44 = vpop.f32.mrf.mxu1 }
 0x99c   :  { %v2939_v19 = vmul.f32 %v9272_v30, %v2938_v1  ;;  %v9305_v1 = vpop.f32.mrf.mxu0 }
 0x9a2   :  { %6354 = vmatmul.msk.f32.vlgmr.msra.gmra.mxu3 %vm642_vm2, %v9168_v3  ;;  %6306 = vmatmul.msk.f32.gmra.mxu1 %vm642_vm2, %v8928_v52 }
 0x9a3   :  { %6338 = vmatmul.msk.f32.gmra.mxu2 %vm642_vm2, %v8928_v52  ;;  %v9242_v51 = vpop.f32.mrf.mxu2  ;;  %v9254_v55 = vpop.f32.mrf.mxu1  ;;  %v3024_v52 = vsub.f32 1.0, %v2934_v62 }
 0x9aa   :  { %6355 = vmatmul.msk.f32.gmra.mxu3 %vm642_vm2, %v9190_v63  ;;  %6307 = vmatmul.msk.f32.gmra.mxu1 %vm642_vm2, %v8956_v41 }
 0x9ab   :  { %6339 = vmatmul.msk.f32.gmra.mxu2 %vm642_vm2, %v8956_v41  ;;  %v9261_v29 = vpop.f32.mrf.mxu2  ;;  %v9287_v2 = vpop.f32.mrf.mxu1 }
 0x9b2   :  { %6356 = vmatmul.msk.f32.gmra.mxu3 %vm642_vm2, %v9201_v61  ;;  %6308 = vmatmul.msk.f32.gmra.mxu1 %vm642_vm2, %v8976_v13 }
 0x9b3   :  { %6340 = vmatmul.msk.f32.gmra.mxu2 %vm642_vm2, %v8976_v13  ;;  %v9289_v10 = vpop.f32.mrf.mxu2 }
 0x9ba   :  { %6357 = vmatmul.msk.f32.gmra.mxu3 %vm642_vm2, %v9212_v48  ;;  %6309 = vmatmul.msk.f32.gmra.mxu1 %vm642_vm2, %v8985_v50 }
 0x9bb   :  { %6341 = vmatmul.msk.f32.gmra.mxu2 %vm642_vm2, %v8985_v50 }
 0x9e1   :  { %v2999_v14 = vpop.f32.mrf.mxu3 }
 0x9e2   :  { %v3011_v28 = vadd.f32 %v2999_v14, %v615_v24  ;;  %v2940_v24 = vadd.f32 %v9272_v30, %v2939_v19  ;;  %v2947_v14 = vand.u32 2147483648, %v9267_v56  ;;  %v9312_v56 = vpop.f32.mrf.mxu2 }
 0x9e4   :  { %6864 = vtanh.f32 %v3011_v28  ;;  %v2944_v57 = vsel %vm2943_vm15, %v9272_v30, %v2940_v24  ;;  %v2948_v22 = vor.u32 1.1754944e-38, %v2947_v14  ;;  %v9329_v24 = vpop.f32.mrf.mxu0  ;;  %v9344_v14 = vld [vmem:[#allocation7 + $0x10] sm:$0xff] }
 0x9e5   :  { %6866 = vrcp.f32 %v9274_v43 }
 0x9e6   :  { %v2949_v41 = vsel %vm2946_vm0, %v2948_v22, %v2944_v57 }
 0x9e7   :  { %v3025_v30 = vsub.f32 1.0, %v2949_v41  ;;  %v3021_v19 = vmul.f32 %v2949_v41, %v8976_v13 }
 0x9e9   :  { %v3002_v16 = vpop.f32.mrf.mxu3 }
 0x9ea   :  { %v6865_v26 = vpop.eup %6864  ;;  %v3012_v47 = vadd.f32 %v3002_v16, %v618_v39  ;;  %v9335_v13 = vpop.f32.mrf.mxu2 }
 0x9eb   :  { %v3027_v27 = vmul.f32 %v6865_v26, %v3023_v59  ;;  %v9282_v60 = vpop.eup %6866  ;;  %v9308_v59 = vpop.f32.mrf.mxu1  ;;  %v10724_v26 = vld [vmem:[#allocation24_spill] sm:$0xff] }
 0x9ec   :  { %6868 = vtanh.f32 %v3012_v47  ;;  %v2952_v15 = vmul.f32 %v9282_v60, %v9274_v43  ;;  %vm2957_vm3 = vweird.f32 %v9282_v60  ;;  %v624_v47 = vadd.f32 %v8947_v36, %v10724_v26 }
 0x9ed   :  { %v3031_v35 = vadd.f32 %v3027_v27, %v3019_v11  ;;  %v2962_v27 = vand.u32 2147483648, %v9274_v43  ;;  %v2960_v11 = vand.u32 2147483647, %v9274_v43  ;;  %vm2958_vm5 = vmor %vm2956_vm4, %vm2957_vm3 }
 0x9ee   :  { %v2953_v28 = vsub.f32 1.0, %v2952_v15 }
 0x9ef   :  { %6278 = vmatmul.msk.f32.gmra.mxu0 %vm642_vm2, %v3031_v35  ;;  %6310 = vmatmul.msk.f32.gmra.mxu1 %vm642_vm2, %v3031_v35  ;;  %v2963_v36 = vor.u32 1.1754944e-38, %v2962_v27  ;;  %vm2961_vm6 = vcmp.eq.f32.partialorder %v2960_v11, 8.507059e+37 }
 0x9f0   :  { %6342 = vmatmul.msk.f32.gmra.mxu2 %vm642_vm2, %v3031_v35  ;;  %v2954_v38 = vmul.f32 %v9282_v60, %v2953_v28 }
 0x9f2   :  { %v6869_v5 = vpop.eup %6868  ;;  %v2955_v7 = vadd.f32 %v9282_v60, %v2954_v38 }
 0x9f3   :  { %v3028_v42 = vmul.f32 %v6869_v5, %v3024_v52  ;;  %v3005_v25 = vpop.f32.mrf.mxu3  ;;  %v9327_v52 = vld [vmem:[%s10593_s14] ss:$0 sm:$0xff]  ;;  %v9331_v5 = vpop.f32.mrf.mxu1 }
 0x9f4   :  { %v3013_v37 = vadd.f32 %v3005_v25, %v621_v45  ;;  %v2959_v62 = vsel %vm2958_vm5, %v9282_v60, %v2955_v7  ;;  %v9338_v60 = vld [vmem:[#allocation7 + $0x18] sm:$0xff]  ;;  %v3073_v45 = vadd.f32 %v9327_v52, %v9029_v18  ;;  %v3076_v41 = vadd.f32 %v9327_v52, %v9041_v20 }
 0x9f5   :  { %v3032_v39 = vadd.f32 %v3028_v42, %v3020_v4  ;;  %v2964_v43 = vsel %vm2961_vm6, %v2963_v36, %v2959_v62  ;;  %3684 = vmatpush.msrb.mxu3 %v9338_v60  ;;  %4282 = vmatpush.msra.mxu0 %v9338_v60  ;;  %v9349_v4 = vld [vmem:[#allocation7 + $0x8] sm:$0xff] }
 0x9f6   :  { %6870 = vtanh.f32 %v3013_v37  ;;  %4880 = vmatpush.msra.mxu2 %v9338_v60  ;;  %v3026_v28 = vsub.f32 1.0, %v2964_v43  ;;  %v3022_v57 = vmul.f32 %v2964_v43, %v8985_v50  ;;  %v9362_v50 = vpop.f32.mrf.mxu0 }
 0x9f7   :  { %6279 = vmatmul.msk.f32.gmra.mxu0 %vm642_vm2, %v3032_v39  ;;  %6311 = vmatmul.msk.f32.gmra.mxu1 %vm642_vm2, %v3032_v39 }
 0x9f8   :  { %6343 = vmatmul.msk.f32.gmra.mxu2 %vm642_vm2, %v3032_v39  ;;  %3685 = vmatpush.msrb.mxu3 %v9344_v14  ;;  %v9355_v39 = vld [vmem:[#allocation7] sm:$0xff] }
 0x9f9   :  { %4283 = vmatpush.msra.mxu0 %v9344_v14  ;;  %4881 = vmatpush.msra.mxu2 %v9344_v14 }
 0x9fa   :  { %3686 = vmatpush.msrb.mxu3 %v9349_v4 }
 0x9fb   :  { %4284 = vmatpush.msra.mxu0 %v9349_v4  ;;  %4882 = vmatpush.msra.mxu2 %v9349_v4  ;;  %v9364_v38 = vpop.f32.mrf.mxu1 }
 0x9fc   :  { %v6871_v16 = vpop.eup %6870  ;;  %3687 = vmatpush.msrb.mxu3 %v9355_v39 }
 0x9fd   :  { %v3029_v32 = vmul.f32 %v6871_v16, %v3025_v30  ;;  %v3008_v9 = vpop.f32.mrf.mxu3  ;;  %4285 = vmatpush.msra.mxu0 %v9355_v39  ;;  %v9370_v30 = vpop.f32.mrf.mxu2  ;;  %4883 = vmatpush.msra.mxu2 %v9355_v39 }
 0x9fe   :  { %v3014_v35 = vadd.f32 %v3008_v9, %v624_v47  ;;  %3749 = vmatpush.msra.mxu3 %v9091_v40  ;;  %v3079_v47 = vadd.f32 %v9327_v52, %v9049_v58 }
 0x9ff   :  { %v3033_v15 = vadd.f32 %v3029_v32, %v3021_v19  ;;  %4646 = vmatpush.msrb.mxu0 %v9091_v40 }
 0xa00   :  { %6872 = vtanh.f32 %v3014_v35  ;;  %3750 = vmatpush.msra.mxu3 %v9096_v8 }
 0xa01   :  { %6280 = vmatmul.msk.f32.gmra.mxu0 %vm642_vm2, %v3033_v15  ;;  %6312 = vmatmul.msk.f32.gmra.mxu1 %vm642_vm2, %v3033_v15 }
 0xa02   :  { %6344 = vmatmul.msk.f32.gmra.mxu2 %vm642_vm2, %v3033_v15  ;;  %4647 = vmatpush.msrb.mxu0 %v9096_v8 }
 0xa03   :  { %3751 = vmatpush.msra.mxu3 %v9103_v31 }
 0xa04   :  { %4648 = vmatpush.msrb.mxu0 %v9103_v31  ;;  %v3082_v31 = vadd.f32 %v9327_v52, %v9057_v12 }
 0xa05   :  { %v3455_v42 = vpop.f32.mrf.mxu3  ;;  %3752 = vmatpush.msra.mxu3 %v9114_v23 }
 0xa06   :  { %v6873_v17 = vpop.eup %6872  ;;  %v3467_v25 = vadd.f32 %v3455_v42, %v3073_v45  ;;  %4649 = vmatpush.msrb.mxu0 %v9114_v23 }
 0xa07   :  { %v3030_v37 = vmul.f32 %v6873_v17, %v3026_v28 }
 0xa08   :  { %v6350_v18 = vmul.f32 -1.442695, %v3467_v25 }
 0xa09   :  { %v3034_v22 = vadd.f32 %v3030_v37, %v3022_v57 }
 0xa0a   :  { %6874 = vpow2.f32 %v6350_v18 }
 0xa0b   :  { %6281 = vmatmul.msk.f32.gmra.mxu0 %vm642_vm2, %v3034_v22  ;;  %6313 = vmatmul.msk.f32.gmra.mxu1 %vm642_vm2, %v3034_v22 }
 0xa0c   :  { %6345 = vmatmul.msk.f32.gmra.mxu2 %vm642_vm2, %v3034_v22 }
 0xa0d   :  { %v3458_v7 = vpop.f32.mrf.mxu3 }
 0xa0e   :  { %v3468_v40 = vadd.f32 %v3458_v7, %v3076_v41 }
 0xa10   :  { %v6875_v16 = vpop.eup %6874  ;;  %v6351_v26 = vmul.f32 -1.442695, %v3468_v40 }
 0xa11   :  { %v3483_v20 = vadd.f32 1.0, %v6875_v16 }
 0xa12   :  { %6876 = vpow2.f32 %v6351_v26 }
 0xa13   :  { %6878 = vrcp.f32 %v3483_v20  ;;  %v3498_v15 = vand.u32 2147483648, %v3483_v20  ;;  %v3496_v43 = vand.u32 2147483647, %v3483_v20  ;;  %vm3492_vm8 = vweird.f32 %v3483_v20 }
 0xa15   :  { %v3461_v8 = vpop.f32.mrf.mxu3  ;;  %v3499_v25 = vor.u32 1.1754944e-38, %v3498_v15  ;;  %vm3497_vm10 = vcmp.eq.f32.partialorder %v3496_v43, 8.507059e+37 }
 0xa16   :  { %v3469_v27 = vadd.f32 %v3461_v8, %v3079_v47 }
 0xa18   :  { %v6877_v32 = vpop.eup %6876  ;;  %v6352_v11 = vmul.f32 -1.442695, %v3469_v27 }
 0xa19   :  { %v6879_v9 = vpop.eup %6878  ;;  %v3484_v19 = vadd.f32 1.0, %v6877_v32 }
 0xa1a   :  { %v3488_v35 = vmul.f32 %v6879_v9, %v3483_v20  ;;  %6880 = vpow2.f32 %v6352_v11  ;;  %vm3493_vm7 = vweird.f32 %v6879_v9 }
 0xa1b   :  { %6882 = vrcp.f32 %v3484_v19  ;;  %vm3494_vm9 = vmor %vm3492_vm8, %vm3493_vm7  ;;  %v3513_v7 = vand.u32 2147483648, %v3484_v19  ;;  %v3511_v16 = vand.u32 2147483647, %v3484_v19  ;;  %vm3507_vm11 = vweird.f32 %v3484_v19 }
 0xa1c   :  { %v3489_v62 = vsub.f32 1.0, %v3488_v35 }
 0xa1d   :  { %v3464_v23 = vpop.f32.mrf.mxu3  ;;  %v3514_v27 = vor.u32 1.1754944e-38, %v3513_v7  ;;  %vm3512_vm13 = vcmp.eq.f32.partialorder %v3511_v16, 8.507059e+37 }
 0xa1e   :  { %v3490_v36 = vmul.f32 %v6879_v9, %v3489_v62  ;;  %v3470_v45 = vadd.f32 %v3464_v23, %v3082_v31 }
 0xa20   :  { %v6881_v58 = vpop.eup %6880  ;;  %v3491_v28 = vadd.f32 %v6879_v9, %v3490_v36  ;;  %v6353_v42 = vmul.f32 -1.442695, %v3470_v45 }
 0xa21   :  { %v6883_v17 = vpop.eup %6882  ;;  %v3485_v37 = vadd.f32 1.0, %v6881_v58 }
 0xa22   :  { %v3495_v57 = vsel %vm3494_vm9, %v6879_v9, %v3491_v28  ;;  %v3503_v18 = vmul.f32 %v6883_v17, %v3484_v19  ;;  %6884 = vpow2.f32 %v6353_v42  ;;  %vm3508_vm1 = vweird.f32 %v6883_v17 }
 0xa23   :  { %6886 = vrcp.f32 %v3485_v37  ;;  %v3500_v12 = vsel %vm3497_vm10, %v3499_v25, %v3495_v57  ;;  %vm3509_vm12 = vmor %vm3507_vm11, %vm3508_vm1  ;;  %v3526_v62 = vand.u32 2147483647, %v3485_v37  ;;  %vm3522_vm15 = vweird.f32 %v3485_v37 }
 0xa24   :  { %v3504_v22 = vsub.f32 1.0, %v3503_v18  ;;  %v3656_v41 = vmul.f32 %v3500_v12, %v9168_v3 }
 0xa25   :  { %vm3527_vm3 = vcmp.eq.f32.partialorder %v3526_v62, 8.507059e+37  ;;  %v3564_v12 = vpop.f32.mrf.mxu3 }
 0xa26   :  { %6362 = vmatmul.msk.f32.vlgmr.msrb.gmra.mxu3 %vm642_vm2, %v3656_v41  ;;  %v3505_v40 = vmul.f32 %v6883_v17, %v3504_v22  ;;  %v9399_v22 = vld [vmem:[%s10596_s17] ss:$0 sm:$0xff] }
 0xa27   :  { %3858 = vmatpush.msrb.mxu3 %v9145_v33  ;;  %v3528_v33 = vand.u32 2147483648, %v3485_v37  ;;  %v3194_v41 = vadd.f32 %v9399_v22, %v9220_v49 }
 0xa28   :  { %v6885_v26 = vpop.eup %6884  ;;  %v3506_v20 = vadd.f32 %v6883_v17, %v3505_v40 }
 0xa29   :  { %v6887_v47 = vpop.eup %6886  ;;  %v3486_v8 = vadd.f32 1.0, %v6885_v26  ;;  %3859 = vmatpush.msrb.mxu3 %v9153_v6  ;;  %v3529_v23 = vor.u32 1.1754944e-38, %v3528_v33  ;;  %v3576_v7 = vadd.f32 %v3564_v12, %v3194_v41  ;;  %v3197_v26 = vadd.f32 %v9399_v22, %v9230_v54 }
 0xa2a   :  { %v3518_v32 = vmul.f32 %v6887_v47, %v3485_v37  ;;  %v3510_v11 = vsel %vm3509_vm12, %v6883_v17, %v3506_v20  ;;  %vm3523_vm14 = vweird.f32 %v6887_v47  ;;  %v3203_v33 = vadd.f32 %v9399_v22, %v9254_v55  ;;  %v9415_v55 = vld [vmem:[%s10599_s20] ss:$0 sm:$0xff] }
 0xa2b   :  { %6888 = vrcp.f32 %v3486_v8  ;;  %v3515_v9 = vsel %vm3512_vm13, %v3514_v27, %v3510_v11  ;;  %3860 = vmatpush.msrb.mxu3 %v9161_v53  ;;  %vm3524_vm0 = vmor %vm3522_vm15, %vm3523_vm14  ;;  %v3543_v28 = vand.u32 2147483648, %v3486_v8  ;;  %v3541_v42 = vand.u32 2147483647, %v3486_v8 }
 0xa2c   :  { %v3519_v35 = vsub.f32 1.0, %v3518_v32  ;;  %v3657_v31 = vmul.f32 %v3515_v9, %v9190_v63  ;;  %vm3537_vm5 = vweird.f32 %v3486_v8  ;;  %v6358_v16 = vmul.f32 -1.442695, %v3576_v7 }
 0xa2d   :  { %3861 = vmatpush.msrb.mxu3 %v9174_v46  ;;  %v3544_v25 = vor.u32 1.1754944e-38, %v3543_v28  ;;  %vm3542_vm7 = vcmp.eq.f32.partialorder %v3541_v42, 8.507059e+37  ;;  %v3567_v40 = vpop.f32.mrf.mxu3  ;;  %v3200_v32 = vadd.f32 %v9399_v22, %v9240_v44 }
 0xa2e   :  { %6363 = vmatmul.msk.f32.gmra.mxu3 %vm642_vm2, %v3657_v31  ;;  %v3520_v19 = vmul.f32 %v6887_v47, %v3519_v35  ;;  %6890 = vpow2.f32 %v6358_v16  ;;  %v3577_v20 = vadd.f32 %v3567_v40, %v3197_v26 }
 0xa30   :  { %v3521_v15 = vadd.f32 %v6887_v47, %v3520_v19 }
 0xa31   :  { %v6889_v6 = vpop.eup %6888 }
 0xa32   :  { %v3533_v36 = vmul.f32 %v6889_v6, %v3486_v8  ;;  %v3525_v43 = vsel %vm3524_vm0, %v6887_v47, %v3521_v15  ;;  %vm3538_vm4 = vweird.f32 %v6889_v6  ;;  %v6359_v8 = vmul.f32 -1.442695, %v3577_v20 }
 0xa33   :  { %v3530_v53 = vsel %vm3527_vm3, %v3529_v23, %v3525_v43  ;;  %vm3539_vm6 = vmor %vm3537_vm5, %vm3538_vm4 }
 0xa34   :  { %v3534_v45 = vsub.f32 1.0, %v3533_v36  ;;  %v3658_v58 = vmul.f32 %v3530_v53, %v9201_v61  ;;  %v6891_v27 = vpop.eup %6890  ;;  %6892 = vpow2.f32 %v6359_v8  ;;  %v3318_v8 = vadd.f32 %v9415_v55, %v9232_v0 }
 0xa35   :  { %v3570_v47 = vpop.f32.mrf.mxu3  ;;  %v3592_v9 = vadd.f32 1.0, %v6891_v27 }
 0xa36   :  { %6364 = vmatmul.msk.f32.gmra.mxu3 %vm642_vm2, %v3658_v58  ;;  %v3535_v46 = vmul.f32 %v6889_v6, %v3534_v45  ;;  %v3578_v11 = vadd.f32 %v3570_v47, %v3200_v32 }
 0xa37   :  { %6894 = vrcp.f32 %v3592_v9  ;;  %vm3601_vm9 = vweird.f32 %v3592_v9 }
 0xa38   :  { %v3536_v17 = vadd.f32 %v6889_v6, %v3535_v46  ;;  %v6360_v35 = vmul.f32 -1.442695, %v3578_v11 }
 0xa3a   :  { %v3540_v37 = vsel %vm3539_vm6, %v6889_v6, %v3536_v17  ;;  %v6893_v31 = vpop.eup %6892  ;;  %6896 = vpow2.f32 %v6360_v35 }
 0xa3b   :  { %v3545_v57 = vsel %vm3542_vm7, %v3544_v25, %v3540_v37  ;;  %v3593_v19 = vadd.f32 1.0, %v6893_v31  ;;  %v3315_v25 = vadd.f32 %v9415_v55, %v9222_v34  ;;  %v3607_v37 = vand.u32 2147483648, %v3592_v9 }
 0xa3c   :  { %v3659_v18 = vmul.f32 %v3545_v57, %v9212_v48  ;;  %v3605_v57 = vand.u32 2147483647, %v3592_v9 }
 0xa3d   :  { %v3573_v49 = vpop.f32.mrf.mxu3  ;;  %v6895_v62 = vpop.eup %6894  ;;  %6898 = vrcp.f32 %v3593_v19  ;;  %v3608_v16 = vor.u32 1.1754944e-38, %v3607_v37  ;;  %v3622_v27 = vand.u32 2147483648, %v3593_v19  ;;  %vm3616_vm12 = vweird.f32 %v3593_v19 }
 0xa3e   :  { %6365 = vmatmul.msk.f32.gmra.mxu3 %vm642_vm2, %v3659_v18  ;;  %v3579_v54 = vadd.f32 %v3573_v49, %v3203_v33  ;;  %v3597_v23 = vmul.f32 %v6895_v62, %v3592_v9  ;;  %vm3602_vm8 = vweird.f32 %v6895_v62  ;;  %vm3606_vm1 = vcmp.eq.f32.partialorder %v3605_v57, 8.507059e+37 }
 0xa3f   :  { %vm3603_vm10 = vmor %vm3601_vm9, %vm3602_vm8  ;;  %v3620_v11 = vand.u32 2147483647, %v3593_v19 }
 0xa40   :  { %v6361_v15 = vmul.f32 -1.442695, %v3579_v54  ;;  %v6897_v6 = vpop.eup %6896  ;;  %v3598_v36 = vsub.f32 1.0, %v3597_v23 }
 0xa41   :  { %v9409_v44 = vadd.f32 1.0, %v6897_v6  ;;  %v3623_v6 = vor.u32 1.1754944e-38, %v3622_v27  ;;  %vm3621_vm14 = vcmp.eq.f32.partialorder %v3620_v11, 8.507059e+37 }
 0xa42   :  { %6900 = vpow2.f32 %v6361_v15  ;;  %v3599_v45 = vmul.f32 %v6895_v62, %v3598_v36  ;;  %v3321_v36 = vadd.f32 %v9415_v55, %v9242_v51 }
 0xa43   :  { %v6899_v43 = vpop.eup %6898  ;;  %6902 = vrcp.f32 %v9409_v44  ;;  %vm3631_vm0 = vweird.f32 %v9409_v44 }
 0xa44   :  { %v3612_v58 = vmul.f32 %v6899_v43, %v3593_v19  ;;  %v3600_v42 = vadd.f32 %v6895_v62, %v3599_v45  ;;  %vm3617_vm11 = vweird.f32 %v6899_v43  ;;  %v3635_v45 = vand.u32 2147483647, %v9409_v44 }
 0xa45   :  { %vm3618_vm13 = vmor %vm3616_vm12, %vm3617_vm11 }
 0xa46   :  { %v3613_v46 = vsub.f32 1.0, %v3612_v58  ;;  %v3604_v40 = vsel %vm3603_vm10, %v6895_v62, %v3600_v42  ;;  %vm3636_vm4 = vcmp.eq.f32.partialorder %v3635_v45, 8.507059e+37  ;;  %v3091_v45 = vadd.f32 %v9327_v52, %v9329_v24 }
 0xa47   :  { %v3609_v26 = vsel %vm3606_vm1, %v3608_v16, %v3604_v40 }
 0xa48   :  { %v6901_v53 = vpop.eup %6900  ;;  %v3614_v41 = vmul.f32 %v6899_v43, %v3613_v46  ;;  %v3713_v32 = vsub.f32 1.0, %v3609_v26  ;;  %v3709_v49 = vmul.f32 %v3609_v26, %v9168_v3 }
 0xa49   :  { %v9417_v28 = vadd.f32 1.0, %v6901_v53  ;;  %v9419_v17 = vpop.eup %6902  ;;  %v3637_v53 = vand.u32 2147483648, %v9409_v44 }
 0xa4a   :  { %v3627_v7 = vmul.f32 %v9419_v17, %v9409_v44  ;;  %v3615_v47 = vadd.f32 %v6899_v43, %v3614_v41  ;;  %vm3632_vm15 = vweird.f32 %v9419_v17 }
 0xa4b   :  { %6904 = vrcp.f32 %v9417_v28  ;;  %vm3633_vm3 = vmor %vm3631_vm0, %vm3632_vm15  ;;  %vm3646_vm6 = vweird.f32 %v9417_v28  ;;  %v3650_v40 = vand.u32 2147483647, %v9417_v28 }
 0xa4c   :  { %v3628_v20 = vsub.f32 1.0, %v3627_v7  ;;  %v3619_v15 = vsel %vm3618_vm13, %v6899_v43, %v3615_v47 }
 0xa4d   :  { %v3624_v23 = vsel %vm3621_vm14, %v3623_v6, %v3619_v15  ;;  %vm3651_vm8 = vcmp.eq.f32.partialorder %v3650_v40, 8.507059e+37 }
 0xa4e   :  { %v3629_v33 = vmul.f32 %v9419_v17, %v3628_v20  ;;  %v3714_v43 = vsub.f32 1.0, %v3624_v23  ;;  %v3710_v37 = vmul.f32 %v3624_v23, %v9190_v63  ;;  %v3324_v63 = vadd.f32 %v9415_v55, %v9261_v29 }
 0xa4f   :  { %v3088_v23 = vadd.f32 %v9327_v52, %v9305_v1  ;;  %v3094_v1 = vadd.f32 %v9327_v52, %v9362_v50 }
 0xa50   :  { %v3630_v3 = vadd.f32 %v9419_v17, %v3629_v33  ;;  %v9497_v33 = vld [vmem:[%s10592_s13] sm:$0xff] }
 0xa51   :  { %v9426_v34 = vpop.eup %6904 }
 0xa52   :  { %v3642_v54 = vmul.f32 %v9426_v34, %v9417_v28  ;;  %v3634_v57 = vsel %vm3633_vm3, %v9419_v17, %v3630_v3  ;;  %vm3647_vm5 = vweird.f32 %v9426_v34  ;;  %v3652_v17 = vand.u32 2147483648, %v9417_v28 }
 0xa53   :  { %vm3648_vm7 = vmor %vm3646_vm6, %vm3647_vm5 }
 0xa54   :  { %v3643_v19 = vsub.f32 1.0, %v3642_v54  ;;  %v3085_v54 = vadd.f32 %v9327_v52, %v9284_v21 }
 0xaa9   :  { %v3689_v18 = vpop.f32.mrf.mxu3 }
 0xaaa   :  { %v3701_v12 = vadd.f32 %v3689_v18, %v3315_v25  ;;  %v3644_v25 = vmul.f32 %v9426_v34, %v3643_v19  ;;  %v3638_v18 = vor.u32 1.1754944e-38, %v3637_v53 }
 0xaac   :  { %6906 = vtanh.f32 %v3701_v12  ;;  %v3639_v44 = vsel %vm3636_vm4, %v3638_v18, %v3634_v57  ;;  %v3645_v41 = vadd.f32 %v9426_v34, %v3644_v25 }
 0xaad   :  { %v3715_v7 = vsub.f32 1.0, %v3639_v44  ;;  %v3711_v47 = vmul.f32 %v3639_v44, %v9201_v61  ;;  %v9479_v61 = vld [vmem:[%s10592_s13 + $0x18] sm:$0xff] }
 0xaae   :  { %v3649_v27 = vsel %vm3648_vm7, %v9426_v34, %v3645_v41  ;;  %v9491_v34 = vld [vmem:[%s10592_s13 + $0x8] sm:$0xff] }
 0xab1   :  { %v3692_v9 = vpop.f32.mrf.mxu3 }
 0xab2   :  { %v6907_v35 = vpop.eup %6906  ;;  %v3702_v31 = vadd.f32 %v3692_v9, %v3318_v8 }
 0xab3   :  { %v3717_v62 = vmul.f32 %v6907_v35, %v3713_v32  ;;  %v3653_v32 = vor.u32 1.1754944e-38, %v3652_v17 }
 0xab4   :  { %6908 = vtanh.f32 %v3702_v31 }
 0xab5   :  { %v9434_v0 = vadd.f32 %v3717_v62, %v3709_v49  ;;  %v3654_v29 = vsel %vm3651_vm8, %v3653_v32, %v3649_v27 }
 0xab6   :  { %v3716_v9 = vsub.f32 1.0, %v3654_v29  ;;  %v3712_v35 = vmul.f32 %v3654_v29, %v9212_v48  ;;  %v9485_v48 = vld [vmem:[%s10592_s13 + $0x10] sm:$0xff] }
 0xab7   :  { %10725 = vst [vmem:[#allocation26_spill] sm:$0xff] %v9434_v0  ;;  %6366 = vmatmul.msk.f32.vlgmr.msra.gmra.mxu3 %vm642_vm2, %v9434_v0 }
 0xab8   :  { %3983 = vmatpush.msra.mxu3 %v9338_v60 }
 0xab9   :  { %v3695_v58 = vpop.f32.mrf.mxu3 }
 0xaba   :  { %v6909_v46 = vpop.eup %6908  ;;  %v3703_v42 = vadd.f32 %v3695_v58, %v3321_v36  ;;  %3984 = vmatpush.msra.mxu3 %v9344_v14 }
 0xabb   :  { %v3718_v51 = vmul.f32 %v6909_v46, %v3714_v43 }
 0xabc   :  { %6910 = vtanh.f32 %v3703_v42  ;;  %3985 = vmatpush.msra.mxu3 %v9349_v4 }
 0xabd   :  { %v9451_v12 = vadd.f32 %v3718_v51, %v3710_v37 }
 0xabe   :  { %3986 = vmatpush.msra.mxu3 %v9355_v39 }
 0xabf   :  { %10726 = vst [vmem:[#allocation28_spill] sm:$0xff] %v9451_v12  ;;  %6367 = vmatmul.msk.f32.gmra.mxu3 %vm642_vm2, %v9451_v12 }
 0xac1   :  { %v3698_v16 = vpop.f32.mrf.mxu3 }
 0xac2   :  { %v6911_v26 = vpop.eup %6910  ;;  %v3704_v20 = vadd.f32 %v3698_v16, %v3324_v63 }
 0xac3   :  { %v3719_v8 = vmul.f32 %v6911_v26, %v3715_v7 }
 0xac4   :  { %6912 = vtanh.f32 %v3704_v20 }
 0xac5   :  { %v9465_v11 = vadd.f32 %v3719_v8, %v3711_v47 }
 0xac7   :  { %10727 = vst [vmem:[#allocation30_spill] sm:$0xff] %v9465_v11  ;;  %6368 = vmatmul.msk.f32.gmra.mxu3 %vm642_vm2, %v9465_v11 }
 0xaca   :  { %v6913_v28 = vpop.eup %6912 }
 0xacb   :  { %v3720_v49 = vmul.f32 %v6913_v28, %v3716_v9  ;;  %v9519_v28 = vld [vmem:[%s10595_s16 + $0x18] sm:$0xff] }
 0xacd   :  { %v9470_v31 = vadd.f32 %v3720_v49, %v3712_v35 }
 0xacf   :  { %10728 = vst [vmem:[#allocation25_spill] sm:$0xff] %v9470_v31  ;;  %6369 = vmatmul.msk.f32.gmra.mxu3 %vm642_vm2, %v9470_v31 }
 0xad7   :  { %6374 = vmatmul.msk.f32.vlgmr.msrb.gmra.mxu3 %vm642_vm2, %v9434_v0 }
 0xad8   :  { %4048 = vmatpush.msrb.mxu3 %v9479_v61 }
 0xada   :  { %4049 = vmatpush.msrb.mxu3 %v9485_v48 }
 0xadc   :  { %4050 = vmatpush.msrb.mxu3 %v9491_v34 }
 0xade   :  { %4051 = vmatpush.msrb.mxu3 %v9497_v33 }
 0xadf   :  { %6375 = vmatmul.msk.f32.gmra.mxu3 %vm642_vm2, %v9451_v12 }
 0xae7   :  { %6376 = vmatmul.msk.f32.gmra.mxu3 %vm642_vm2, %v9465_v11 }
 0xaef   :  { %6377 = vmatmul.msk.f32.gmra.mxu3 %vm642_vm2, %v9470_v31 }
 0xb3a   :  { %v3754_v62 = vpop.f32.mrf.mxu3 }
 0xb3b   :  { %v3766_v15 = vadd.f32 %v3754_v62, %v3085_v54 }
 0xb3d   :  { %v6370_v6 = vmul.f32 -1.442695, %v3766_v15 }
 0xb3f   :  { %6914 = vpow2.f32 %v6370_v6  ;;  %v9525_v6 = vld [vmem:[%s10595_s16 + $0x10] sm:$0xff] }
 0xb42   :  { %v3757_v19 = vpop.f32.mrf.mxu3 }
 0xb43   :  { %v3767_v3 = vadd.f32 %v3757_v19, %v3088_v23 }
 0xb45   :  { %v6915_v36 = vpop.eup %6914  ;;  %v6371_v53 = vmul.f32 -1.442695, %v3767_v3 }
 0xb46   :  { %v3782_v43 = vadd.f32 1.0, %v6915_v36  ;;  %v9531_v36 = vld [vmem:[%s10595_s16 + $0x8] sm:$0xff] }
 0xb47   :  { %6916 = vpow2.f32 %v6371_v53 }
 0xb48   :  { %6918 = vrcp.f32 %v3782_v43  ;;  %v3797_v18 = vand.u32 2147483648, %v3782_v43  ;;  %v3795_v63 = vand.u32 2147483647, %v3782_v43  ;;  %vm3791_vm10 = vweird.f32 %v3782_v43 }
 0xb4a   :  { %v3760_v58 = vpop.f32.mrf.mxu3  ;;  %v3798_v26 = vor.u32 1.1754944e-38, %v3797_v18  ;;  %vm3796_vm11 = vcmp.eq.f32.partialorder %v3795_v63, 8.507059e+37 }
 0xb4b   :  { %v3768_v46 = vadd.f32 %v3760_v58, %v3091_v45  ;;  %v9538_v58 = vld [vmem:[%s10595_s16] sm:$0xff] }
 0xb4d   :  { %v6917_v21 = vpop.eup %6916  ;;  %v6372_v42 = vmul.f32 -1.442695, %v3768_v46 }
 0xb4e   :  { %v6919_v25 = vpop.eup %6918  ;;  %v3783_v37 = vadd.f32 1.0, %v6917_v21 }
 0xb4f   :  { %v3787_v51 = vmul.f32 %v6919_v25, %v3782_v43  ;;  %6920 = vpow2.f32 %v6372_v42  ;;  %vm3792_vm9 = vweird.f32 %v6919_v25 }
 0xb50   :  { %6922 = vrcp.f32 %v3783_v37  ;;  %vm3793_vm1 = vmor %vm3791_vm10, %vm3792_vm9  ;;  %v3812_v32 = vand.u32 2147483648, %v3783_v37  ;;  %v3810_v9 = vand.u32 2147483647, %v3783_v37  ;;  %vm3806_vm13 = vweird.f32 %v3783_v37 }
 0xb51   :  { %v3788_v57 = vsub.f32 1.0, %v3787_v51 }
 0xb52   :  { %v3763_v44 = vpop.f32.mrf.mxu3  ;;  %v3813_v15 = vor.u32 1.1754944e-38, %v3812_v32  ;;  %vm3811_vm15 = vcmp.eq.f32.partialorder %v3810_v9, 8.507059e+37 }
 0xb53   :  { %v3789_v41 = vmul.f32 %v6919_v25, %v3788_v57  ;;  %v3769_v17 = vadd.f32 %v3763_v44, %v3094_v1 }
 0xb55   :  { %v6921_v24 = vpop.eup %6920  ;;  %v3790_v7 = vadd.f32 %v6919_v25, %v3789_v41  ;;  %v6373_v40 = vmul.f32 -1.442695, %v3769_v17 }
 0xb56   :  { %v6923_v16 = vpop.eup %6922  ;;  %v3784_v20 = vadd.f32 1.0, %v6921_v24 }
 0xb57   :  { %v3794_v47 = vsel %vm3793_vm1, %v6919_v25, %v3790_v7  ;;  %v3802_v8 = vmul.f32 %v6923_v16, %v3783_v37  ;;  %6924 = vpow2.f32 %v6373_v40  ;;  %vm3807_vm12 = vweird.f32 %v6923_v16 }
 0xb58   :  { %6926 = vrcp.f32 %v3784_v20  ;;  %v3799_v52 = vsel %vm3796_vm11, %v3798_v26, %v3794_v47  ;;  %vm3808_vm14 = vmor %vm3806_vm13, %vm3807_vm12  ;;  %v3827_v45 = vand.u32 2147483648, %v3784_v20  ;;  %v3825_v21 = vand.u32 2147483647, %v3784_v20 }
 0xb59   :  { %v3803_v50 = vsub.f32 1.0, %v3802_v8  ;;  %v3955_v27 = vmul.f32 %v3799_v52, %v9434_v0  ;;  %vm3821_vm3 = vweird.f32 %v3784_v20  ;;  %v3206_v47 = vadd.f32 %v9399_v22, %v9287_v2 }
 0xb5a   :  { %v3828_v37 = vor.u32 1.1754944e-38, %v3827_v45  ;;  %vm3826_vm5 = vcmp.eq.f32.partialorder %v3825_v21, 8.507059e+37 }
 0xb5b   :  { %6382 = vmatmul.msk.f32.vlgmr.msra.gmra.mxu3 %vm642_vm2, %v3955_v27  ;;  %v3804_v29 = vmul.f32 %v6923_v16, %v3803_v50  ;;  %v3209_v27 = vadd.f32 %v9399_v22, %v9308_v59 }
 0xb5c   :  { %4157 = vmatpush.msra.mxu3 %v9519_v28 }
 0xb5d   :  { %v6925_v35 = vpop.eup %6924  ;;  %v3805_v49 = vadd.f32 %v6923_v16, %v3804_v29 }
 0xb5e   :  { %v6927_v54 = vpop.eup %6926  ;;  %v3785_v62 = vadd.f32 1.0, %v6925_v35  ;;  %4158 = vmatpush.msra.mxu3 %v9525_v6 }
 0xb5f   :  { %v3817_v23 = vmul.f32 %v6927_v54, %v3784_v20  ;;  %v3809_v19 = vsel %vm3808_vm14, %v6923_v16, %v3805_v49  ;;  %vm3822_vm0 = vweird.f32 %v6927_v54  ;;  %v3863_v20 = vpop.f32.mrf.mxu3  ;;  %v3212_v49 = vadd.f32 %v9399_v22, %v9331_v5 }
 0xb60   :  { %6928 = vrcp.f32 %v3785_v62  ;;  %v3814_v3 = vsel %vm3811_vm15, %v3813_v15, %v3809_v19  ;;  %4159 = vmatpush.msra.mxu3 %v9531_v36  ;;  %vm3823_vm4 = vmor %vm3821_vm3, %vm3822_vm0  ;;  %v3842_v41 = vand.u32 2147483648, %v3785_v62  ;;  %v3840_v17 = vand.u32 2147483647, %v3785_v62 }
 0xb61   :  { %v3818_v53 = vsub.f32 1.0, %v3817_v23  ;;  %v3956_v43 = vmul.f32 %v3814_v3, %v9451_v12  ;;  %vm3836_vm7 = vweird.f32 %v3785_v62  ;;  %v3875_v8 = vadd.f32 %v3863_v20, %v3206_v47 }
 0xb62   :  { %4160 = vmatpush.msra.mxu3 %v9538_v58  ;;  %v3843_v7 = vor.u32 1.1754944e-38, %v3842_v41  ;;  %vm3841_vm9 = vcmp.eq.f32.partialorder %v3840_v17, 8.507059e+37  ;;  %v3215_v19 = vadd.f32 %v9399_v22, %v9364_v38 }
 0xb63   :  { %6383 = vmatmul.msk.f32.gmra.mxu3 %vm642_vm2, %v3956_v43  ;;  %v3819_v46 = vmul.f32 %v6927_v54, %v3818_v53  ;;  %v6378_v50 = vmul.f32 -1.442695, %v3875_v8 }
 0xb65   :  { %v3820_v42 = vadd.f32 %v6927_v54, %v3819_v46  ;;  %6930 = vpow2.f32 %v6378_v50 }
 0xb66   :  { %v6929_v25 = vpop.eup %6928 }
 0xb67   :  { %v3832_v51 = vmul.f32 %v6929_v25, %v3785_v62  ;;  %v3824_v1 = vsel %vm3823_vm4, %v6927_v54, %v3820_v42  ;;  %vm3837_vm6 = vweird.f32 %v6929_v25  ;;  %v3866_v52 = vpop.f32.mrf.mxu3 }
 0xb68   :  { %v3829_v57 = vsel %vm3826_vm5, %v3828_v37, %v3824_v1  ;;  %vm3838_vm8 = vmor %vm3836_vm7, %vm3837_vm6  ;;  %v3876_v32 = vadd.f32 %v3866_v52, %v3209_v27  ;;  %v3330_v52 = vadd.f32 %v9415_v55, %v9312_v56 }
 0xb69   :  { %v3833_v18 = vsub.f32 1.0, %v3832_v51  ;;  %v3957_v44 = vmul.f32 %v3829_v57, %v9465_v11 }
 0xb6a   :  { %v6379_v9 = vmul.f32 -1.442695, %v3876_v32 }
 0xb6b   :  { %6384 = vmatmul.msk.f32.gmra.mxu3 %vm642_vm2, %v3957_v44  ;;  %v3834_v63 = vmul.f32 %v6929_v25, %v3833_v18  ;;  %v6931_v35 = vpop.eup %6930  ;;  %v3327_v44 = vadd.f32 %v9415_v55, %v9289_v10 }
 0xb6c   :  { %6932 = vpow2.f32 %v6379_v9  ;;  %v3891_v62 = vadd.f32 1.0, %v6931_v35 }
 0xb6d   :  { %v3835_v24 = vadd.f32 %v6929_v25, %v3834_v63 }
 0xb6e   :  { %6934 = vrcp.f32 %v3891_v62  ;;  %v3906_v41 = vand.u32 2147483648, %v3891_v62  ;;  %vm3900_vm1 = vweird.f32 %v3891_v62  ;;  %v3904_v63 = vand.u32 2147483647, %v3891_v62 }
 0xb6f   :  { %v3839_v40 = vsel %vm3838_vm8, %v6929_v25, %v3835_v24  ;;  %v3869_v29 = vpop.f32.mrf.mxu3 }
 0xb70   :  { %v3844_v16 = vsel %vm3841_vm9, %v3843_v7, %v3839_v40  ;;  %v3877_v54 = vadd.f32 %v3869_v29, %v3212_v49  ;;  %vm3905_vm12 = vcmp.eq.f32.partialorder %v3904_v63, 8.507059e+37 }
 0xb71   :  { %v3958_v26 = vmul.f32 %v3844_v16, %v9470_v31 }
 0xb72   :  { %v6380_v15 = vmul.f32 -1.442695, %v3877_v54  ;;  %v6933_v23 = vpop.eup %6932 }
 0xb73   :  { %6385 = vmatmul.msk.f32.gmra.mxu3 %vm642_vm2, %v3958_v26  ;;  %v3892_v3 = vadd.f32 1.0, %v6933_v23  ;;  %v3907_v26 = vor.u32 1.1754944e-38, %v3906_v41 }
 0xb74   :  { %6936 = vpow2.f32 %v6380_v15  ;;  %v6935_v53 = vpop.eup %6934 }
 0xb75   :  { %6938 = vrcp.f32 %v3892_v3  ;;  %v3896_v46 = vmul.f32 %v6935_v53, %v3891_v62  ;;  %vm3901_vm10 = vweird.f32 %v6935_v53  ;;  %v3921_v50 = vand.u32 2147483648, %v3892_v3 }
 0xb76   :  { %vm3902_vm11 = vmor %vm3900_vm1, %vm3901_vm10  ;;  %vm3915_vm14 = vweird.f32 %v3892_v3  ;;  %v3919_v32 = vand.u32 2147483647, %v3892_v3 }
 0xb77   :  { %v3872_v2 = vpop.f32.mrf.mxu3  ;;  %v3897_v21 = vsub.f32 1.0, %v3896_v46  ;;  %v3922_v23 = vor.u32 1.1754944e-38, %v3921_v50 }
 0xb78   :  { %v3878_v59 = vadd.f32 %v3872_v2, %v3215_v19  ;;  %vm3920_vm0 = vcmp.eq.f32.partialorder %v3919_v32, 8.507059e+37 }
 0xb79   :  { %v3898_v37 = vmul.f32 %v6935_v53, %v3897_v21 }
 0xb7a   :  { %v6381_v43 = vmul.f32 -1.442695, %v3878_v59  ;;  %v6937_v45 = vpop.eup %6936 }
 0xb7b   :  { %v9554_v5 = vadd.f32 1.0, %v6937_v45  ;;  %v6939_v42 = vpop.eup %6938  ;;  %v3899_v57 = vadd.f32 %v6935_v53, %v3898_v37 }
 0xb7c   :  { %6940 = vpow2.f32 %v6381_v43  ;;  %v3911_v51 = vmul.f32 %v6939_v42, %v3892_v3  ;;  %vm3916_vm13 = vweird.f32 %v6939_v42 }
 0xb7d   :  { %6942 = vrcp.f32 %v9554_v5  ;;  %v3903_v16 = vsel %vm3902_vm11, %v6935_v53, %v3899_v57  ;;  %vm3917_vm15 = vmor %vm3915_vm14, %vm3916_vm13  ;;  %v3333_v53 = vadd.f32 %v9415_v55, %v9335_v13  ;;  %v3936_v43 = vand.u32 2147483648, %v9554_v5 }
 0xb7e   :  { %v3912_v38 = vsub.f32 1.0, %v3911_v51  ;;  %v3908_v20 = vsel %vm3905_vm12, %v3907_v26, %v3903_v16  ;;  %vm3930_vm4 = vweird.f32 %v9554_v5  ;;  %v3934_v46 = vand.u32 2147483647, %v9554_v5 }
 0xb7f   :  { %v4012_v27 = vsub.f32 1.0, %v3908_v20  ;;  %v4008_v35 = vmul.f32 %v3908_v20, %v9434_v0  ;;  %v3937_v57 = vor.u32 1.1754944e-38, %v3936_v43 }
 0xb80   :  { %v3913_v7 = vmul.f32 %v6939_v42, %v3912_v38  ;;  %vm3935_vm6 = vcmp.eq.f32.partialorder %v3934_v46, 8.507059e+37 }
 0xb82   :  { %v6941_v25 = vpop.eup %6940  ;;  %v3914_v8 = vadd.f32 %v6939_v42, %v3913_v7 }
 0xb83   :  { %v9557_v1 = vadd.f32 1.0, %v6941_v25  ;;  %v9559_v18 = vpop.eup %6942 }
 0xb84   :  { %v3926_v40 = vmul.f32 %v9559_v18, %v9554_v5  ;;  %v3918_v2 = vsel %vm3917_vm15, %v6939_v42, %v3914_v8  ;;  %vm3931_vm3 = vweird.f32 %v9559_v18 }
 0xb85   :  { %6944 = vrcp.f32 %v9557_v1  ;;  %v3923_v19 = vsel %vm3920_vm0, %v3922_v23, %v3918_v2  ;;  %vm3932_vm5 = vmor %vm3930_vm4, %vm3931_vm3  ;;  %vm3945_vm8 = vweird.f32 %v9557_v1  ;;  %v3949_v41 = vand.u32 2147483647, %v9557_v1 }
 0xb86   :  { %v3927_v47 = vsub.f32 1.0, %v3926_v40  ;;  %v4013_v45 = vsub.f32 1.0, %v3923_v19  ;;  %v4009_v51 = vmul.f32 %v3923_v19, %v9451_v12 }
 0xb87   :  { %vm3950_vm10 = vcmp.eq.f32.partialorder %v3949_v41, 8.507059e+37 }
 0xb88   :  { %v3928_v54 = vmul.f32 %v9559_v18, %v3927_v47 }
 0xb8a   :  { %v3929_v3 = vadd.f32 %v9559_v18, %v3928_v54 }
 0xb8b   :  { %v9566_v10 = vpop.eup %6944 }
 0xb8c   :  { %v3941_v62 = vmul.f32 %v9566_v10, %v9557_v1  ;;  %v3933_v38 = vsel %vm3932_vm5, %v9559_v18, %v3929_v3  ;;  %vm3946_vm7 = vweird.f32 %v9566_v10  ;;  %v3336_v18 = vadd.f32 %v9415_v55, %v9370_v30 }
 0xb8d   :  { %v3938_v5 = vsel %vm3935_vm6, %v3937_v57, %v3933_v38  ;;  %vm3947_vm9 = vmor %vm3945_vm8, %vm3946_vm7 }
 0xb8e   :  { %v3942_v59 = vsub.f32 1.0, %v3941_v62 }
 0xb90   :  { %v3943_v37 = vmul.f32 %v9566_v10, %v3942_v59 }
 0xbde   :  { %v3988_v17 = vpop.f32.mrf.mxu3 }
 0xbdf   :  { %v4000_v24 = vadd.f32 %v3988_v17, %v3327_v44  ;;  %v3951_v44 = vand.u32 2147483648, %v9557_v1 }
 0xbe1   :  { %6946 = vtanh.f32 %v4000_v24  ;;  %v4010_v24 = vmul.f32 %v3938_v5, %v9465_v11  ;;  %v3952_v16 = vor.u32 1.1754944e-38, %v3951_v44 }
 0xbe6   :  { %v3991_v29 = vpop.f32.mrf.mxu3 }
 0xbe7   :  { %v6947_v9 = vpop.eup %6946  ;;  %v4001_v49 = vadd.f32 %v3991_v29, %v3330_v52 }
 0xbe8   :  { %v4016_v15 = vmul.f32 %v6947_v9, %v4012_v27 }
 0xbe9   :  { %6948 = vtanh.f32 %v4001_v49  ;;  %v9637_v49 = vld [vmem:[%s10593_s14] ss:$0 sm:$0xff] }
 0xbea   :  { %v9574_v56 = vadd.f32 %v4016_v15, %v4008_v35 }
 0xbec   :  { %10729 = vst [vmem:[#allocation27_spill] sm:$0xff] %v9574_v56  ;;  %6386 = vmatmul.msk.f32.vlgmr.msrb.gmra.mxu3 %vm642_vm2, %v9574_v56 }
 0xbed   :  { %4581 = vmatpush.msrb.mxu3 %v9338_v60 }
 0xbee   :  { %v3994_v21 = vpop.f32.mrf.mxu3 }
 0xbef   :  { %v6949_v42 = vpop.eup %6948  ;;  %v4002_v25 = vadd.f32 %v3994_v21, %v3333_v53  ;;  %4582 = vmatpush.msrb.mxu3 %v9344_v14  ;;  %v3944_v14 = vadd.f32 %v9566_v10, %v3943_v37 }
 0xbf0   :  { %v4017_v13 = vmul.f32 %v6949_v42, %v4013_v45 }
 0xbf1   :  { %6950 = vtanh.f32 %v4002_v25  ;;  %4583 = vmatpush.msrb.mxu3 %v9349_v4  ;;  %v4014_v4 = vsub.f32 1.0, %v3938_v5  ;;  %v3948_v40 = vsel %vm3947_vm9, %v9566_v10, %v3944_v14  ;;  %v3096_v10 = vpop.f32.mrf.mxu0 }
 0xbf2   :  { %v9591_v60 = vadd.f32 %v4017_v13, %v4009_v51  ;;  %v3953_v30 = vsel %vm3950_vm10, %v3952_v16, %v3948_v40  ;;  %v3097_v54 = vadd.f32 %v9637_v49, %v3096_v10 }
 0xbf3   :  { %4584 = vmatpush.msrb.mxu3 %v9355_v39  ;;  %v4015_v55 = vsub.f32 1.0, %v3953_v30  ;;  %v4011_v20 = vmul.f32 %v3953_v30, %v9470_v31 }
 0xbf4   :  { %10730 = vst [vmem:[#allocation29_spill] sm:$0xff] %v9591_v60  ;;  %6387 = vmatmul.msk.f32.gmra.mxu3 %vm642_vm2, %v9591_v60 }
 0xbf6   :  { %v3997_v63 = vpop.f32.mrf.mxu3 }
 0xbf7   :  { %v6951_v17 = vpop.eup %6950  ;;  %v4003_v39 = vadd.f32 %v3997_v63, %v3336_v18 }
 0xbf8   :  { %v4018_v7 = vmul.f32 %v6951_v17, %v4014_v4 }
 0xbf9   :  { %6952 = vtanh.f32 %v4003_v39  ;;  %v3099_v52 = vpop.f32.mrf.mxu0 }
 0xbfa   :  { %v9605_v26 = vadd.f32 %v4018_v7, %v4010_v24  ;;  %v3100_v19 = vadd.f32 %v9637_v49, %v3099_v52 }
 0xbfc   :  { %10731 = vst [vmem:[#allocation31_spill] sm:$0xff] %v9605_v26  ;;  %6388 = vmatmul.msk.f32.gmra.mxu3 %vm642_vm2, %v9605_v26 }
 0xbff   :  { %v6953_v1 = vpop.eup %6952 }
 0xc00   :  { %v4019_v47 = vmul.f32 %v6953_v1, %v4015_v55 }
 0xc01   :  { %v3102_v50 = vpop.f32.mrf.mxu0 }
 0xc02   :  { %v9610_v8 = vadd.f32 %v4019_v47, %v4011_v20  ;;  %v3103_v21 = vadd.f32 %v9637_v49, %v3102_v50 }
 0xc04   :  { %10732 = vst [vmem:[#allocation32_spill] sm:$0xff] %v9610_v8  ;;  %6389 = vmatmul.msk.f32.gmra.mxu3 %vm642_vm2, %v9610_v8 }
 0xc09   :  { %v3105_v27 = vpop.f32.mrf.mxu0 }
 0xc0a   :  { %v3106_v14 = vadd.f32 %v9637_v49, %v3105_v27 }
 0xc0c   :  { %6394 = vmatmul.msk.f32.vlgmr.msra.gmra.mxu3 %vm642_vm2, %v9574_v56 }
 0xc0d   :  { %4945 = vmatpush.msra.mxu3 %v9479_v61 }
 0xc0f   :  { %4946 = vmatpush.msra.mxu3 %v9485_v48 }
 0xc11   :  { %4947 = vmatpush.msra.mxu3 %v9491_v34  ;;  %v9626_v32 = vpop.f32.mrf.mxu0 }
 0xc13   :  { %4948 = vmatpush.msra.mxu3 %v9497_v33 }
 0xc14   :  { %6395 = vmatmul.msk.f32.gmra.mxu3 %vm642_vm2, %v9591_v60 }
 0xc19   :  { %v9628_v29 = vpop.f32.mrf.mxu0 }
 0xc1c   :  { %6396 = vmatmul.msk.f32.gmra.mxu3 %vm642_vm2, %v9605_v26 }
 0xc21   :  { %v9630_v9 = vpop.f32.mrf.mxu0 }
 0xc24   :  { %6397 = vmatmul.msk.f32.gmra.mxu3 %vm642_vm2, %v9610_v8 }
 0xc29   :  { %v9632_v35 = vpop.f32.mrf.mxu0 }
 0xc31   :  { %v9640_v2 = vpop.f32.mrf.mxu0 }
 0xc39   :  { %v9643_v45 = vpop.f32.mrf.mxu0 }
 0xc41   :  { %v9646_v5 = vpop.f32.mrf.mxu0 }
 0xc49   :  { %v9650_v52 = vpop.f32.mrf.mxu0 }
 0xc6f   :  { %v4053_v62 = vpop.f32.mrf.mxu3 }
 0xc70   :  { %v4065_v15 = vadd.f32 %v4053_v62, %v3097_v54 }
 0xc72   :  { %v6390_v23 = vmul.f32 -1.442695, %v4065_v15 }
 0xc74   :  { %6954 = vpow2.f32 %v6390_v23 }
 0xc77   :  { %v4056_v59 = vpop.f32.mrf.mxu3 }
 0xc78   :  { %v4066_v3 = vadd.f32 %v4056_v59, %v3100_v19 }
 0xc7a   :  { %v6955_v53 = vpop.eup %6954  ;;  %v6391_v43 = vmul.f32 -1.442695, %v4066_v3 }
 0xc7b   :  { %v4081_v46 = vadd.f32 1.0, %v6955_v53 }
 0xc7c   :  { %6956 = vpow2.f32 %v6391_v43 }
 0xc7d   :  { %6958 = vrcp.f32 %v4081_v46  ;;  %v4096_v44 = vand.u32 2147483648, %v4081_v46  ;;  %v4094_v63 = vand.u32 2147483647, %v4081_v46  ;;  %vm4090_vm11 = vweird.f32 %v4081_v46 }
 0xc7f   :  { %v4059_v42 = vpop.f32.mrf.mxu3  ;;  %v4097_v16 = vor.u32 1.1754944e-38, %v4096_v44  ;;  %vm4095_vm13 = vcmp.eq.f32.partialorder %v4094_v63, 8.507059e+37 }
 0xc80   :  { %v4067_v25 = vadd.f32 %v4059_v42, %v3103_v21 }
 0xc82   :  { %v6957_v37 = vpop.eup %6956  ;;  %v6392_v51 = vmul.f32 -1.442695, %v4067_v25 }
 0xc83   :  { %v6959_v13 = vpop.eup %6958  ;;  %v4082_v38 = vadd.f32 1.0, %v6957_v37  ;;  %v9659_v37 = vpop.f32.mrf.mxu0 }
 0xc84   :  { %v4086_v57 = vmul.f32 %v6959_v13, %v4081_v46  ;;  %6960 = vpow2.f32 %v6392_v51  ;;  %vm4091_vm1 = vweird.f32 %v6959_v13 }
 0xc85   :  { %6962 = vrcp.f32 %v4082_v38  ;;  %vm4092_vm12 = vmor %vm4090_vm11, %vm4091_vm1  ;;  %v4111_v50 = vand.u32 2147483648, %v4082_v38  ;;  %v4109_v54 = vand.u32 2147483647, %v4082_v38  ;;  %vm4105_vm15 = vweird.f32 %v4082_v38 }
 0xc86   :  { %v4087_v18 = vsub.f32 1.0, %v4086_v57 }
 0xc87   :  { %v4062_v4 = vpop.f32.mrf.mxu3  ;;  %v4112_v59 = vor.u32 1.1754944e-38, %v4111_v50  ;;  %vm4110_vm3 = vcmp.eq.f32.partialorder %v4109_v54, 8.507059e+37 }
 0xc88   :  { %v4088_v41 = vmul.f32 %v6959_v13, %v4087_v18  ;;  %v4068_v17 = vadd.f32 %v4062_v4, %v3106_v14 }
 0xc8a   :  { %v6961_v39 = vpop.eup %6960  ;;  %v4089_v24 = vadd.f32 %v6959_v13, %v4088_v41  ;;  %v6393_v7 = vmul.f32 -1.442695, %v4068_v17 }
 0xc8b   :  { %v6963_v40 = vpop.eup %6962  ;;  %v4083_v30 = vadd.f32 1.0, %v6961_v39  ;;  %v9663_v63 = vpop.f32.mrf.mxu0 }
 0xc8c   :  { %v4093_v55 = vsel %vm4092_vm12, %v6959_v13, %v4089_v24  ;;  %v4101_v1 = vmul.f32 %v6963_v40, %v4082_v38  ;;  %6964 = vpow2.f32 %v6393_v7  ;;  %vm4106_vm14 = vweird.f32 %v6963_v40 }
 0xc8d   :  { %6966 = vrcp.f32 %v4083_v30  ;;  %v4098_v20 = vsel %vm4095_vm13, %v4097_v16, %v4093_v55  ;;  %vm4107_vm0 = vmor %vm4105_vm15, %vm4106_vm14  ;;  %v4124_v25 = vand.u32 2147483647, %v4083_v30  ;;  %vm4120_vm5 = vweird.f32 %v4083_v30 }
 0xc8e   :  { %v4102_v47 = vsub.f32 1.0, %v4101_v1  ;;  %v4254_v10 = vmul.f32 %v4098_v20, %v9574_v56 }
 0xc8f   :  { %vm4125_vm7 = vcmp.eq.f32.partialorder %v4124_v25, 8.507059e+37  ;;  %v4162_v54 = vpop.f32.mrf.mxu3 }
 0xc90   :  { %6402 = vmatmul.msk.f32.vlgmr.msra.gmra.mxu0 %vm642_vm2, %v4254_v10  ;;  %v4103_v27 = vmul.f32 %v6963_v40, %v4102_v47 }
 0xc91   :  { %5054 = vmatpush.msra.mxu0 %v9519_v28  ;;  %v4126_v28 = vand.u32 2147483648, %v4083_v30 }
 0xc92   :  { %v6965_v62 = vpop.eup %6964  ;;  %v4104_v15 = vadd.f32 %v6963_v40, %v4103_v27 }
 0xc93   :  { %v6967_v23 = vpop.eup %6966  ;;  %v4084_v19 = vadd.f32 1.0, %v6965_v62  ;;  %5055 = vmatpush.msra.mxu0 %v9525_v6  ;;  %v4127_v13 = vor.u32 1.1754944e-38, %v4126_v28  ;;  %v9667_v16 = vpop.f32.mrf.mxu0 }
 0xc94   :  { %v4116_v3 = vmul.f32 %v6967_v23, %v4083_v30  ;;  %v4108_v53 = vsel %vm4107_vm0, %v6963_v40, %v4104_v15  ;;  %vm4121_vm4 = vweird.f32 %v6967_v23  ;;  %v3217_v40 = vpop.f32.mrf.mxu1 }
 0xc95   :  { %6968 = vrcp.f32 %v4084_v19  ;;  %v4113_v43 = vsel %vm4110_vm3, %v4112_v59, %v4108_v53  ;;  %5056 = vmatpush.msra.mxu0 %v9531_v36  ;;  %vm4122_vm6 = vmor %vm4120_vm5, %vm4121_vm4  ;;  %v4139_v4 = vand.u32 2147483647, %v4084_v19  ;;  %vm4135_vm9 = vweird.f32 %v4084_v19  ;;  %v9687_v53 = vld [vmem:[%s10596_s17] ss:$0 sm:$0xff] }
 0xc96   :  { %v4117_v46 = vsub.f32 1.0, %v4116_v3  ;;  %v4255_v21 = vmul.f32 %v4113_v43, %v9591_v60  ;;  %v3218_v15 = vadd.f32 %v9399_v22, %v3217_v40 }
 0xc97   :  { %5057 = vmatpush.msra.mxu0 %v9538_v58  ;;  %v4141_v58 = vand.u32 2147483648, %v4084_v19  ;;  %vm4140_vm1 = vcmp.eq.f32.partialorder %v4139_v4, 8.507059e+37  ;;  %v4165_v59 = vpop.f32.mrf.mxu3 }
 0xc98   :  { %6403 = vmatmul.msk.f32.gmra.mxu0 %vm642_vm2, %v4255_v21  ;;  %v4118_v42 = vmul.f32 %v6967_v23, %v4117_v46 }
 0xc99   :  { %v4142_v17 = vor.u32 1.1754944e-38, %v4141_v58 }
 0xc9a   :  { %v4119_v6 = vadd.f32 %v6967_v23, %v4118_v42 }
 0xc9b   :  { %v6969_v51 = vpop.eup %6968  ;;  %v9669_v55 = vpop.f32.mrf.mxu0 }
 0xc9c   :  { %v4131_v38 = vmul.f32 %v6969_v51, %v4084_v19  ;;  %v4123_v36 = vsel %vm4122_vm6, %v6967_v23, %v4119_v6  ;;  %vm4136_vm8 = vweird.f32 %v6969_v51  ;;  %v3220_v30 = vpop.f32.mrf.mxu1  ;;  %v4174_v19 = vadd.f32 %v4162_v54, %v3218_v15 }
 0xc9d   :  { %v4128_v57 = vsel %vm4125_vm7, %v4127_v13, %v4123_v36  ;;  %vm4137_vm10 = vmor %vm4135_vm9, %vm4136_vm8  ;;  %v3221_v43 = vadd.f32 %v9687_v53, %v3220_v30 }
 0xc9e   :  { %v4132_v14 = vsub.f32 1.0, %v4131_v38  ;;  %v4256_v18 = vmul.f32 %v4128_v57, %v9605_v26  ;;  %v6398_v3 = vmul.f32 -1.442695, %v4174_v19 }
 0xc9f   :  { %v4175_v28 = vadd.f32 %v4165_v59, %v3221_v43  ;;  %v4168_v42 = vpop.f32.mrf.mxu3 }
 0xca0   :  { %6404 = vmatmul.msk.f32.gmra.mxu0 %vm642_vm2, %v4256_v18  ;;  %v4133_v44 = vmul.f32 %v6969_v51, %v4132_v14  ;;  %6970 = vpow2.f32 %v6398_v3 }
 0xca1   :  { %v6399_v22 = vmul.f32 -1.442695, %v4175_v28 }
 0xca2   :  { %v4134_v41 = vadd.f32 %v6969_v51, %v4133_v44 }
 0xca3   :  { %v9671_v20 = vpop.f32.mrf.mxu0  ;;  %6972 = vpow2.f32 %v6399_v22 }
 0xca4   :  { %v4138_v39 = vsel %vm4137_vm10, %v6969_v51, %v4134_v41  ;;  %v3223_v1 = vpop.f32.mrf.mxu1  ;;  %10733 = vst [vmem:[#allocation33_spill] sm:$0xff] %v9671_v20 }
 0xca5   :  { %v4143_v24 = vsel %vm4140_vm1, %v4142_v17, %v4138_v39  ;;  %v3224_v6 = vadd.f32 %v9687_v53, %v3223_v1  ;;  %v3338_v1 = vpop.f32.mrf.mxu2 }
 0xca6   :  { %v4257_v7 = vmul.f32 %v4143_v24, %v9610_v8  ;;  %v6971_v25 = vpop.eup %6970 }
 0xca7   :  { %v4176_v13 = vadd.f32 %v4168_v42, %v3224_v6  ;;  %v4190_v36 = vadd.f32 1.0, %v6971_v25  ;;  %v4171_v14 = vpop.f32.mrf.mxu3  ;;  %v9722_v6 = vld [vmem:[%s10599_s20] ss:$0 sm:$0xff] }
 0xca8   :  { %6405 = vmatmul.msk.f32.gmra.mxu0 %vm642_vm2, %v4257_v7 }
 0xca9   :  { %v6400_v57 = vmul.f32 -1.442695, %v4176_v13  ;;  %6974 = vrcp.f32 %v4190_v36  ;;  %v6973_v18 = vpop.eup %6972  ;;  %v3339_v13 = vadd.f32 %v9722_v6, %v3338_v1  ;;  %vm4199_vm12 = vweird.f32 %v4190_v36 }
 0xcaa   :  { %v9700_v4 = vadd.f32 1.0, %v6973_v18  ;;  %v4203_v18 = vand.u32 2147483647, %v4190_v36 }
 0xcab   :  { %v9673_v10 = vpop.f32.mrf.mxu0  ;;  %6976 = vpow2.f32 %v6400_v57  ;;  %v4205_v57 = vand.u32 2147483648, %v4190_v36 }
 0xcac   :  { %v3226_v47 = vpop.f32.mrf.mxu1  ;;  %10734 = vst [vmem:[#allocation34_spill] sm:$0xff] %v9673_v10  ;;  %6978 = vrcp.f32 %v9700_v4  ;;  %vm4204_vm14 = vcmp.eq.f32.partialorder %v4203_v18, 8.507059e+37  ;;  %vm4214_vm0 = vweird.f32 %v9700_v4 }
 0xcad   :  { %v3227_v58 = vadd.f32 %v9687_v53, %v3226_v47 }
 0xcaf   :  { %v4177_v44 = vadd.f32 %v4171_v14, %v3227_v58  ;;  %v6975_v17 = vpop.eup %6974  ;;  %v3341_v14 = vpop.f32.mrf.mxu2 }
 0xcb0   :  { %v4195_v40 = vmul.f32 %v6975_v17, %v4190_v36  ;;  %vm4200_vm11 = vweird.f32 %v6975_v17 }
 0xcb1   :  { %v6401_v24 = vmul.f32 -1.442695, %v4177_v44  ;;  %v6977_v7 = vpop.eup %6976  ;;  %vm4201_vm13 = vmor %vm4199_vm12, %vm4200_vm11 }
 0xcb2   :  { %v9707_v30 = vadd.f32 1.0, %v6977_v7  ;;  %v4196_v54 = vsub.f32 1.0, %v4195_v40  ;;  %v6979_v47 = vpop.eup %6978 }
 0xcb3   :  { %v9677_v27 = vpop.f32.mrf.mxu0  ;;  %6980 = vpow2.f32 %v6401_v24  ;;  %v4210_v43 = vmul.f32 %v6979_v47, %v9700_v4  ;;  %vm4215_vm15 = vweird.f32 %v6979_v47 }
 0xcb4   :  { %v9675_v50 = vpop.f32.mrf.mxu1  ;;  %10735 = vst [vmem:[#allocation35_spill] sm:$0xff] %v9677_v27  ;;  %6982 = vrcp.f32 %v9707_v30  ;;  %v4197_v3 = vmul.f32 %v6975_v17, %v4196_v54  ;;  %vm4216_vm3 = vmor %vm4214_vm0, %vm4215_vm15  ;;  %vm4229_vm6 = vweird.f32 %v9707_v30 }
 0xcb5   :  { %v4211_v42 = vsub.f32 1.0, %v4210_v43 }
 0xcb6   :  { %v4198_v22 = vadd.f32 %v6975_v17, %v4197_v3 }
 0xcb7   :  { %v4212_v24 = vmul.f32 %v6979_v47, %v4211_v42 }
 0xcb8   :  { %v4202_v40 = vsel %vm4201_vm13, %v6975_v17, %v4198_v22  ;;  %v4218_v17 = vand.u32 2147483647, %v9700_v4 }
 0xcb9   :  { %v6981_v59 = vpop.eup %6980  ;;  %v4213_v43 = vadd.f32 %v6979_v47, %v4212_v24 }
 0xcba   :  { %v9715_v28 = vadd.f32 1.0, %v6981_v59  ;;  %v9717_v25 = vpop.eup %6982  ;;  %v4206_v59 = vor.u32 1.1754944e-38, %v4205_v57  ;;  %vm4219_vm4 = vcmp.eq.f32.partialorder %v4218_v17, 8.507059e+37 }
 0xcbb   :  { %v9682_v23 = vpop.f32.mrf.mxu0  ;;  %v4225_v7 = vmul.f32 %v9717_v25, %v9707_v30  ;;  %vm4230_vm5 = vweird.f32 %v9717_v25 }
 0xcbc   :  { %v9679_v62 = vpop.f32.mrf.mxu1  ;;  %10736 = vst [vmem:[#allocation12_spill] sm:$0xff] %v9682_v23  ;;  %6984 = vrcp.f32 %v9715_v28  ;;  %v4207_v1 = vsel %vm4204_vm14, %v4206_v59, %v4202_v40  ;;  %v4217_v40 = vsel %vm4216_vm3, %v6979_v47, %v4213_v43  ;;  %vm9758_vm7 = vmor %vm4229_vm6, %vm4230_vm5  ;;  %vm4244_vm10 = vweird.f32 %v9715_v28 }
 0xcbd   :  { %v4226_v3 = vsub.f32 1.0, %v4225_v7  ;;  %v4311_v42 = vsub.f32 1.0, %v4207_v1  ;;  %v4307_v57 = vmul.f32 %v4207_v1, %v9574_v56  ;;  %v4235_v1 = vand.u32 2147483648, %v9707_v30 }
 0xcbf   :  { %v4227_v24 = vmul.f32 %v9717_v25, %v4226_v3  ;;  %v9752_v3 = vld [vmem:[#allocation7 + $0x18] sm:$0xff] }
 0xcc2   :  { %v9730_v36 = vpop.eup %6984 }
 0xcc3   :  { %v9690_v46 = vpop.f32.mrf.mxu0  ;;  %v4240_v7 = vmul.f32 %v9730_v36, %v9715_v28  ;;  %vm4245_vm9 = vweird.f32 %v9730_v36 }
 0xcc4   :  { %10737 = vst [vmem:[#allocation13_spill] sm:$0xff] %v9690_v46  ;;  %v9692_v21 = vpop.f32.mrf.mxu1  ;;  %vm4246_vm1 = vmor %vm4244_vm10, %vm4245_vm9 }
 0xcc5   :  { %v4241_v46 = vsub.f32 1.0, %v4240_v7  ;;  %v9771_v7 = vld [vmem:[#allocation7 + $0x8] sm:$0xff] }
 0xccb   :  { %v9695_v51 = vpop.f32.mrf.mxu0 }
 0xccc   :  { %10738 = vst [vmem:[#allocation14_spill] sm:$0xff] %v9695_v51  ;;  %v9697_v38 = vpop.f32.mrf.mxu1 }
 0xcd3   :  { %v9702_v41 = vpop.f32.mrf.mxu0 }
 0xcd4   :  { %10739 = vst [vmem:[#allocation15_spill] sm:$0xff] %v9702_v41  ;;  %v9704_v39 = vpop.f32.mrf.mxu1 }
 0xcdb   :  { %v9709_v15 = vpop.f32.mrf.mxu0 }
 0xcdc   :  { %10740 = vst [vmem:[#allocation36_spill] sm:$0xff] %v9709_v15  ;;  %v9711_v19 = vpop.f32.mrf.mxu1  ;;  %v3342_v15 = vadd.f32 %v9722_v6, %v3341_v14 }
 0xce4   :  { %v9728_v54 = vpop.f32.mrf.mxu1 }
 0xd0d   :  { %v4287_v58 = vpop.f32.mrf.mxu0 }
 0xd0e   :  { %v4299_v44 = vadd.f32 %v4287_v58, %v3339_v13  ;;  %v4220_v13 = vand.u32 2147483648, %v9700_v4  ;;  %v9742_v4 = vpop.f32.mrf.mxu1 }
 0xd10   :  { %6986 = vtanh.f32 %v4299_v44  ;;  %v3344_v44 = vpop.f32.mrf.mxu2  ;;  %v4221_v59 = vor.u32 1.1754944e-38, %v4220_v13  ;;  %v4233_v13 = vand.u32 2147483647, %v9707_v30 }
 0xd11   :  { %v3345_v47 = vadd.f32 %v9722_v6, %v3344_v44 }
 0xd12   :  { %v4222_v51 = vsel %vm4219_vm4, %v4221_v59, %v4217_v40  ;;  %vm4234_vm8 = vcmp.eq.f32.partialorder %v4233_v13, 8.507059e+37  ;;  %v4250_v59 = vand.u32 2147483648, %v9715_v28 }
 0xd13   :  { %v4312_v43 = vsub.f32 1.0, %v4222_v51 }
 0xd15   :  { %v4290_v22 = vpop.f32.mrf.mxu0 }
 0xd16   :  { %v6987_v58 = vpop.eup %6986  ;;  %v4300_v18 = vadd.f32 %v4290_v22, %v3342_v15  ;;  %v4228_v15 = vadd.f32 %v9717_v25, %v4227_v24  ;;  %v4236_v24 = vor.u32 1.1754944e-38, %v4235_v1  ;;  %v4251_v22 = vor.u32 1.1754944e-38, %v4250_v59 }
 0xd17   :  { %v4315_v14 = vmul.f32 %v6987_v58, %v4311_v42 }
 0xd18   :  { %6988 = vtanh.f32 %v4300_v18  ;;  %v4308_v18 = vmul.f32 %v4222_v51, %v9591_v60  ;;  %v4232_v30 = vsel %vm9758_vm7, %v9717_v25, %v4228_v15  ;;  %v9788_v25 = vpop.f32.mrf.mxu1 }
 0xd19   :  { %v9740_v41 = vadd.f32 %v4315_v14, %v4307_v57  ;;  %v9762_v57 = vld [vmem:[#allocation7 + $0x10] sm:$0xff]  ;;  %v3347_v14 = vpop.f32.mrf.mxu2 }
 0xd1b   :  { %6406 = vmatmul.msk.f32.vlgmr.msrb.gmra.mxu1 %vm642_vm2, %v9740_v41  ;;  %6414 = vmatmul.msk.f32.vlgmr.msrb.gmra.mxu2 %vm642_vm2, %v9740_v41 }
 0xd1c   :  { %5179 = vmatpush.msrb.mxu1 %v9752_v3  ;;  %5244 = vmatpush.msrb.mxu2 %v9479_v61  ;;  %v4242_v61 = vmul.f32 %v9730_v36, %v4241_v46  ;;  %v9777_v46 = vld [vmem:[#allocation7] sm:$0xff] }
 0xd1d   :  { %v4293_v42 = vpop.f32.mrf.mxu0 }
 0xd1e   :  { %v6989_v17 = vpop.eup %6988  ;;  %v4301_v58 = vadd.f32 %v4293_v42, %v3345_v47  ;;  %5180 = vmatpush.msrb.mxu1 %v9762_v57  ;;  %5245 = vmatpush.msrb.mxu2 %v9485_v48  ;;  %v4237_v48 = vsel %vm4234_vm8, %v4236_v24, %v4232_v30  ;;  %v4243_v51 = vadd.f32 %v9730_v36, %v4242_v61 }
 0xd1f   :  { %v4316_v44 = vmul.f32 %v6989_v17, %v4312_v43  ;;  %v4313_v15 = vsub.f32 1.0, %v4237_v48  ;;  %v4309_v13 = vmul.f32 %v4237_v48, %v9605_v26 }
 0xd20   :  { %6990 = vtanh.f32 %v4301_v58  ;;  %5181 = vmatpush.msrb.mxu1 %v9771_v7  ;;  %5246 = vmatpush.msrb.mxu2 %v9491_v34  ;;  %v3348_v34 = vadd.f32 %v9722_v6, %v3347_v14  ;;  %v4247_v17 = vsel %vm4246_vm1, %v9730_v36, %v4243_v51 }
 0xd21   :  { %v9775_v40 = vadd.f32 %v4316_v44, %v4308_v18  ;;  %v9801_v44 = vpop.f32.mrf.mxu1  ;;  %v9814_v51 = vpop.f32.mrf.mxu2 }
 0xd22   :  { %5182 = vmatpush.msrb.mxu1 %v9777_v46  ;;  %5247 = vmatpush.msrb.mxu2 %v9497_v33  ;;  %v4248_v33 = vand.u32 2147483647, %v9715_v28 }
 0xd23   :  { %6407 = vmatmul.msk.f32.gmra.mxu1 %vm642_vm2, %v9775_v40  ;;  %6415 = vmatmul.msk.f32.gmra.mxu2 %vm642_vm2, %v9775_v40 }
 0xd24   :  { %vm4249_vm11 = vcmp.eq.f32.partialorder %v4248_v33, 8.507059e+37 }
 0xd25   :  { %v4296_v47 = vpop.f32.mrf.mxu0  ;;  %v4252_v61 = vsel %vm4249_vm11, %v4251_v22, %v4247_v17 }
 0xd26   :  { %v6991_v1 = vpop.eup %6990  ;;  %v4302_v43 = vadd.f32 %v4296_v47, %v3348_v34  ;;  %v4314_v28 = vsub.f32 1.0, %v4252_v61  ;;  %v4310_v30 = vmul.f32 %v4252_v61, %v9610_v8 }
 0xd27   :  { %v4317_v42 = vmul.f32 %v6991_v1, %v4313_v15 }
 0xd28   :  { %6992 = vtanh.f32 %v4302_v43 }
 0xd29   :  { %v9795_v58 = vadd.f32 %v4317_v42, %v4309_v13  ;;  %v9810_v14 = vpop.f32.mrf.mxu1  ;;  %v9818_v59 = vpop.f32.mrf.mxu2 }
 0xd2b   :  { %6408 = vmatmul.msk.f32.gmra.mxu1 %vm642_vm2, %v9795_v58  ;;  %6416 = vmatmul.msk.f32.gmra.mxu2 %vm642_vm2, %v9795_v58 }
 0xd2e   :  { %v6993_v18 = vpop.eup %6992 }
 0xd2f   :  { %v4318_v24 = vmul.f32 %v6993_v18, %v4314_v28 }
 0xd31   :  { %v9804_v36 = vadd.f32 %v4318_v24, %v4310_v30  ;;  %v9812_v48 = vpop.f32.mrf.mxu1  ;;  %v9822_v33 = vpop.f32.mrf.mxu2 }
 0xd33   :  { %6409 = vmatmul.msk.f32.gmra.mxu1 %vm642_vm2, %v9804_v36  ;;  %6417 = vmatmul.msk.f32.gmra.mxu2 %vm642_vm2, %v9804_v36 }
 0xd39   :  { %v9816_v34 = vpop.f32.mrf.mxu1  ;;  %v9826_v1 = vpop.f32.mrf.mxu2 }
 0xd3a   :  { %10743 = vst [vmem:[#allocation20_spill] sm:$0xff] %v9816_v34 }
 0xd41   :  { %v9820_v15 = vpop.f32.mrf.mxu1  ;;  %v9830_v13 = vpop.f32.mrf.mxu2 }
 0xd42   :  { %10744 = vst [vmem:[#allocation37_spill] sm:$0xff] %v9820_v15 }
 0xd49   :  { %v9824_v47 = vpop.f32.mrf.mxu1  ;;  %v9834_v17 = vpop.f32.mrf.mxu2 }
 0xd4a   :  { %10745 = vst [vmem:[#allocation21_spill] sm:$0xff] %v9824_v47 }
 0xd51   :  { %v9828_v43 = vpop.f32.mrf.mxu1  ;;  %v9838_v61 = vpop.f32.mrf.mxu2 }
 0xd52   :  { %10746 = vst [vmem:[#allocation38_spill] sm:$0xff] %v9828_v43  ;;  %v3109_v43 = vadd.f32 %v9637_v49, %v9626_v32 }
 0xd59   :  { %v9832_v42 = vpop.f32.mrf.mxu1  ;;  %v9842_v18 = vpop.f32.mrf.mxu2 }
 0xd5a   :  { %10747 = vst [vmem:[#allocation22_spill] sm:$0xff] %v9832_v42 }
 0xd61   :  { %v9836_v22 = vpop.f32.mrf.mxu1  ;;  %v9846_v24 = vpop.f32.mrf.mxu2 }
 0xd62   :  { %10748 = vst [vmem:[#allocation23_spill] sm:$0xff] %v9836_v22  ;;  %v3112_v22 = vadd.f32 %v9637_v49, %v9628_v29 }
 0xd69   :  { %v9840_v28 = vpop.f32.mrf.mxu1  ;;  %v9850_v15 = vpop.f32.mrf.mxu2 }
 0xd6a   :  { %10749 = vst [vmem:[#allocation16_spill] sm:$0xff] %v9840_v28 }
 0xd71   :  { %v9844_v30 = vpop.f32.mrf.mxu1  ;;  %v9856_v32 = vpop.f32.mrf.mxu2 }
 0xd72   :  { %10750 = vst [vmem:[#allocation17_spill] sm:$0xff] %v9844_v30  ;;  %v3115_v30 = vadd.f32 %v9637_v49, %v9630_v9 }
 0xd98   :  { %v4352_v47 = vpop.f32.mrf.mxu1 }
 0xd99   :  { %v4364_v8 = vadd.f32 %v4352_v47, %v3109_v43 }
 0xd9b   :  { %v6410_v42 = vmul.f32 -1.442695, %v4364_v8 }
 0xd9d   :  { %6994 = vpow2.f32 %v6410_v42 }
 0xda0   :  { %v4355_v26 = vpop.f32.mrf.mxu1 }
 0xda1   :  { %v4365_v28 = vadd.f32 %v4355_v26, %v3112_v22  ;;  %v3118_v26 = vadd.f32 %v9637_v49, %v9632_v35  ;;  %v9860_v22 = vpop.f32.mrf.mxu2 }
 0xda2   :  { %10751 = vst [vmem:[#allocation18_spill] sm:$0xff] %v9860_v22 }
 0xda3   :  { %v6995_v34 = vpop.eup %6994  ;;  %v6411_v60 = vmul.f32 -1.442695, %v4365_v28 }
 0xda4   :  { %v4380_v56 = vadd.f32 1.0, %v6995_v34 }
 0xda5   :  { %6996 = vpow2.f32 %v6411_v60 }
 0xda6   :  { %6998 = vrcp.f32 %v4380_v56  ;;  %v4395_v60 = vand.u32 2147483648, %v4380_v56  ;;  %v4393_v28 = vand.u32 2147483647, %v4380_v56  ;;  %vm4389_vm13 = vweird.f32 %v4380_v56 }
 0xda8   :  { %v4358_v47 = vpop.f32.mrf.mxu1  ;;  %vm4394_vm15 = vcmp.eq.f32.partialorder %v4393_v28, 8.507059e+37 }
 0xda9   :  { %v4366_v8 = vadd.f32 %v4358_v47, %v3115_v30 }
 0xdab   :  { %v6997_v43 = vpop.eup %6996  ;;  %v6412_v31 = vmul.f32 -1.442695, %v4366_v8 }
 0xdac   :  { %v6999_v42 = vpop.eup %6998  ;;  %v4381_v11 = vadd.f32 1.0, %v6997_v43 }
 0xdad   :  { %v4385_v12 = vmul.f32 %v6999_v42, %v4380_v56  ;;  %7000 = vpow2.f32 %v6412_v31  ;;  %vm4390_vm12 = vweird.f32 %v6999_v42  ;;  %v4396_v31 = vor.u32 1.1754944e-38, %v4395_v60  ;;  %v9870_v60 = vpop.f32.mrf.mxu2 }
 0xdae   :  { %7002 = vrcp.f32 %v4381_v11  ;;  %vm4391_vm14 = vmor %vm4389_vm13, %vm4390_vm12  ;;  %v4410_v10 = vand.u32 2147483648, %v4381_v11  ;;  %v4408_v56 = vand.u32 2147483647, %v4381_v11  ;;  %10752 = vst [vmem:[#allocation19_spill] sm:$0xff] %v9870_v60  ;;  %vm4404_vm3 = vweird.f32 %v4381_v11 }
 0xdaf   :  { %v4386_v29 = vsub.f32 1.0, %v4385_v12 }
 0xdb0   :  { %v4361_v34 = vpop.f32.mrf.mxu1  ;;  %v4411_v28 = vor.u32 1.1754944e-38, %v4410_v10  ;;  %vm4409_vm5 = vcmp.eq.f32.partialorder %v4408_v56, 8.507059e+37 }
 0xdb1   :  { %v4387_v9 = vmul.f32 %v6999_v42, %v4386_v29  ;;  %v4367_v0 = vadd.f32 %v4361_v34, %v3118_v26 }
 0xdb3   :  { %v7001_v30 = vpop.eup %7000  ;;  %v4388_v47 = vadd.f32 %v6999_v42, %v4387_v9  ;;  %v6413_v8 = vmul.f32 -1.442695, %v4367_v0  ;;  %v9867_v0 = vld [vmem:[%s10595_s16 + $0x18] sm:$0xff] }
 0xdb4   :  { %v7003_v43 = vpop.eup %7002  ;;  %v4382_v23 = vadd.f32 1.0, %v7001_v30  ;;  %v9875_v30 = vld [vmem:[%s10595_s16 + $0x10] sm:$0xff] }
 0xdb5   :  { %v4392_v27 = vsel %vm4391_vm14, %v6999_v42, %v4388_v47  ;;  %v4400_v35 = vmul.f32 %v7003_v43, %v4381_v11  ;;  %7004 = vpow2.f32 %v6413_v8  ;;  %vm4405_vm0 = vweird.f32 %v7003_v43  ;;  %v9881_v11 = vld [vmem:[%s10595_s16 + $0x8] sm:$0xff] }
 0xdb6   :  { %7006 = vrcp.f32 %v4382_v23  ;;  %v4397_v12 = vsel %vm4394_vm15, %v4396_v31, %v4392_v27  ;;  %vm4406_vm4 = vmor %vm4404_vm3, %vm4405_vm0  ;;  %vm4419_vm7 = vweird.f32 %v4382_v23 }
 0xdb7   :  { %v4401_v49 = vsub.f32 1.0, %v4400_v35  ;;  %v4553_v29 = vmul.f32 %v4397_v12, %v9740_v41  ;;  %v4425_v12 = vand.u32 2147483648, %v4382_v23 }
 0xdb9   :  { %6422 = vmatmul.msk.f32.vlgmr.msrb.gmra.mxu3 %vm642_vm2, %v4553_v29  ;;  %v4402_v26 = vmul.f32 %v7003_v43, %v4401_v49  ;;  %v9888_v49 = vld [vmem:[%s10595_s16] sm:$0xff]  ;;  %v4423_v29 = vand.u32 2147483647, %v4382_v23  ;;  %s10781_s16 = sld [smem:[#allocation52_spill]] }
 0xdba   :  { %5353 = vmatpush.msrb.mxu3 %v9867_v0 }
 0xdbb   :  { %v7005_v42 = vpop.eup %7004  ;;  %v4403_v27 = vadd.f32 %v7003_v43, %v4402_v26  ;;  %vm4424_vm9 = vcmp.eq.f32.partialorder %v4423_v29, 8.507059e+37 }
 0xdbc   :  { %v7007_v34 = vpop.eup %7006  ;;  %v4383_v9 = vadd.f32 1.0, %v7005_v42  ;;  %5354 = vmatpush.msrb.mxu3 %v9875_v30  ;;  %v4426_v42 = vor.u32 1.1754944e-38, %v4425_v12 }
 0xdbd   :  { %v4415_v47 = vmul.f32 %v7007_v34, %v4382_v23  ;;  %v4407_v8 = vsel %vm4406_vm4, %v7003_v43, %v4403_v27  ;;  %vm4420_vm6 = vweird.f32 %v7007_v34  ;;  %v9892_v27 = vpop.f32.mrf.mxu2 }
 0xdbe   :  { %7008 = vrcp.f32 %v4383_v9  ;;  %v4412_v31 = vsel %vm4409_vm5, %v4411_v28, %v4407_v8  ;;  %5355 = vmatpush.msrb.mxu3 %v9881_v11  ;;  %vm4421_vm8 = vmor %vm4419_vm7, %vm4420_vm6  ;;  %10753 = vst [vmem:[#allocation39_spill] sm:$0xff] %v9892_v27  ;;  %v4440_v20 = vand.u32 2147483648, %v4383_v9  ;;  %vm4434_vm1 = vweird.f32 %v4383_v9 }
 0xdbf   :  { %v4416_v10 = vsub.f32 1.0, %v4415_v47  ;;  %v4554_v35 = vmul.f32 %v4412_v31, %v9775_v40 }
 0xdc0   :  { %5356 = vmatpush.msrb.mxu3 %v9888_v49  ;;  %v4441_v23 = vor.u32 1.1754944e-38, %v4440_v20 }
 0xdc1   :  { %6423 = vmatmul.msk.f32.gmra.mxu3 %vm642_vm2, %v4554_v35  ;;  %v4417_v43 = vmul.f32 %v7007_v34, %v4416_v10  ;;  %v4438_v35 = vand.u32 2147483647, %v4383_v9 }
 0xdc3   :  { %v4418_v26 = vadd.f32 %v7007_v34, %v4417_v43  ;;  %vm4439_vm12 = vcmp.eq.f32.partialorder %v4438_v35, 8.507059e+37 }
 0xdc4   :  { %v7009_v56 = vpop.eup %7008 }
 0xdc5   :  { %v4430_v28 = vmul.f32 %v7009_v56, %v4383_v9  ;;  %v4422_v47 = vsel %vm4421_vm8, %v7007_v34, %v4418_v26  ;;  %vm4435_vm10 = vweird.f32 %v7009_v56  ;;  %v9896_v22 = vpop.f32.mrf.mxu2 }
 0xdc6   :  { %v4427_v8 = vsel %vm4424_vm9, %v4426_v42, %v4422_v47  ;;  %vm4436_vm11 = vmor %vm4434_vm1, %vm4435_vm10 }
 0xdc7   :  { %v4431_v31 = vsub.f32 1.0, %v4430_v28  ;;  %v4555_v60 = vmul.f32 %v4427_v8, %v9795_v58 }
 0xdc9   :  { %6424 = vmatmul.msk.f32.gmra.mxu3 %vm642_vm2, %v4555_v60  ;;  %v4432_v10 = vmul.f32 %v7009_v56, %v4431_v31 }
 0xdcb   :  { %v4433_v43 = vadd.f32 %v7009_v56, %v4432_v10 }
 0xdcd   :  { %v4437_v12 = vsel %vm4436_vm11, %v7009_v56, %v4433_v43  ;;  %v9900_v29 = vpop.f32.mrf.mxu2  ;;  %v3230_v56 = vadd.f32 %v9687_v53, %v9675_v50 }
 0xdce   :  { %v4442_v27 = vsel %vm4439_vm12, %v4441_v23, %v4437_v12  ;;  %10754 = vst [vmem:[#allocation40_spill] sm:$0xff] %v9900_v29  ;;  %v3236_v23 = vadd.f32 %v9687_v53, %v9692_v21 }
 0xdcf   :  { %v4556_v34 = vmul.f32 %v4442_v27, %v9804_v36  ;;  %v3233_v27 = vadd.f32 %v9687_v53, %v9679_v62 }
 0xdd1   :  { %6425 = vmatmul.msk.f32.gmra.mxu3 %vm642_vm2, %v4556_v34 }
 0xdd5   :  { %v9902_v26 = vpop.f32.mrf.mxu2 }
 0xdd6   :  { %10755 = vst [vmem:[#allocation41_spill] sm:$0xff] %v9902_v26 }
 0xddd   :  { %v9904_v60 = vpop.f32.mrf.mxu2 }
 0xdde   :  { %10756 = vst [vmem:[#allocation42_spill] sm:$0xff] %v9904_v60 }
 0xde5   :  { %v9906_v42 = vpop.f32.mrf.mxu2 }
 0xde6   :  { %10757 = vst [vmem:[#allocation24_spill] sm:$0xff] %v9906_v42 }
 0xded   :  { %v9908_v9 = vpop.f32.mrf.mxu2 }
 0xdee   :  { %10758 = vst [vmem:[#allocation43_spill] sm:$0xff] %v9908_v9 }
 0xdf5   :  { %v4461_v20 = vpop.f32.mrf.mxu2 }
 0xdf6   :  { %v4473_v28 = vadd.f32 %v4461_v20, %v3230_v56  ;;  %v3239_v56 = vadd.f32 %v9687_v53, %v9697_v38 }
 0xdf8   :  { %v6418_v8 = vmul.f32 -1.442695, %v4473_v28 }
 0xdfa   :  { %7010 = vpow2.f32 %v6418_v8 }
 0xdfd   :  { %v4464_v47 = vpop.f32.mrf.mxu2 }
 0xdfe   :  { %v4474_v31 = vadd.f32 %v4464_v47, %v3233_v27 }
 0xe00   :  { %v6419_v35 = vmul.f32 -1.442695, %v4474_v31  ;;  %v7011_v43 = vpop.eup %7010 }
 0xe01   :  { %v4489_v34 = vadd.f32 1.0, %v7011_v43 }
 0xe02   :  { %7012 = vpow2.f32 %v6419_v35 }
 0xe03   :  { %7014 = vrcp.f32 %v4489_v34  ;;  %vm4498_vm14 = vweird.f32 %v4489_v34 }
 0xe05   :  { %v4467_v10 = vpop.f32.mrf.mxu2 }
 0xe06   :  { %v4475_v12 = vadd.f32 %v4467_v10, %v3236_v23 }
 0xe08   :  { %v6420_v9 = vmul.f32 -1.442695, %v4475_v12  ;;  %v7013_v20 = vpop.eup %7012 }
 0xe09   :  { %v4490_v28 = vadd.f32 1.0, %v7013_v20  ;;  %v7015_v47 = vpop.eup %7014  ;;  %v4504_v20 = vand.u32 2147483648, %v4489_v34 }
 0xe0a   :  { %7016 = vpow2.f32 %v6420_v9  ;;  %v4494_v31 = vmul.f32 %v7015_v47, %v4489_v34  ;;  %vm4499_vm13 = vweird.f32 %v7015_v47 }
 0xe0b   :  { %7018 = vrcp.f32 %v4490_v28  ;;  %vm4500_vm15 = vmor %vm4498_vm14, %vm4499_vm13  ;;  %v4519_v26 = vand.u32 2147483648, %v4490_v28  ;;  %vm4513_vm4 = vweird.f32 %v4490_v28 }
 0xe0c   :  { %v4495_v10 = vsub.f32 1.0, %v4494_v31 }
 0xe0d   :  { %v4470_v50 = vpop.f32.mrf.mxu2 }
 0xe0e   :  { %v4476_v62 = vadd.f32 %v4470_v50, %v3239_v56  ;;  %v4496_v23 = vmul.f32 %v7015_v47, %v4495_v10  ;;  %v3351_v50 = vadd.f32 %v9722_v6, %v9814_v51  ;;  %v4502_v56 = vand.u32 2147483647, %v4489_v34 }
 0xe0f   :  { %v3354_v34 = vadd.f32 %v9722_v6, %v9818_v59 }
 0xe10   :  { %v6421_v8 = vmul.f32 -1.442695, %v4476_v62  ;;  %v7017_v27 = vpop.eup %7016  ;;  %v4497_v38 = vadd.f32 %v7015_v47, %v4496_v23  ;;  %vm4503_vm0 = vcmp.eq.f32.partialorder %v4502_v56, 8.507059e+37 }
 0xe11   :  { %v9918_v21 = vadd.f32 1.0, %v7017_v27  ;;  %v7019_v35 = vpop.eup %7018 }
 0xe12   :  { %7020 = vpow2.f32 %v6421_v8  ;;  %v4509_v12 = vmul.f32 %v7019_v35, %v4490_v28  ;;  %v4501_v10 = vsel %vm4500_vm15, %v7015_v47, %v4497_v38  ;;  %vm4514_vm3 = vweird.f32 %v7019_v35 }
 0xe13   :  { %7022 = vrcp.f32 %v9918_v21  ;;  %vm4515_vm5 = vmor %vm4513_vm4, %vm4514_vm3  ;;  %vm4528_vm8 = vweird.f32 %v9918_v21 }
 0xe14   :  { %v4510_v53 = vsub.f32 1.0, %v4509_v12 }
 0xe16   :  { %v4511_v27 = vmul.f32 %v7019_v35, %v4510_v53  ;;  %v4517_v53 = vand.u32 2147483647, %v4490_v28 }
 0xe18   :  { %v7021_v43 = vpop.eup %7020  ;;  %v4512_v60 = vadd.f32 %v7019_v35, %v4511_v27  ;;  %vm4518_vm6 = vcmp.eq.f32.partialorder %v4517_v53, 8.507059e+37 }
 0xe19   :  { %v9921_v42 = vadd.f32 1.0, %v7021_v43  ;;  %v9923_v9 = vpop.eup %7022  ;;  %v4505_v43 = vor.u32 1.1754944e-38, %v4504_v20 }
 0xe1a   :  { %v4524_v31 = vmul.f32 %v9923_v9, %v9918_v21  ;;  %v4516_v27 = vsel %vm4515_vm5, %v7019_v35, %v4512_v60  ;;  %vm4529_vm7 = vweird.f32 %v9923_v9  ;;  %v7246_v60 = vld [vmem:[%s10592_s13 + $0x18] sm:$0xff] }
 0xe1b   :  { %7024 = vrcp.f32 %v9921_v42  ;;  %v4506_v23 = vsel %vm4503_vm0, %v4505_v43, %v4501_v10  ;;  %vm9955_vm9 = vmor %vm4528_vm8, %vm4529_vm7  ;;  %vm4543_vm11 = vweird.f32 %v9921_v42 }
 0xe1c   :  { %v4525_v12 = vsub.f32 1.0, %v4524_v31  ;;  %v4606_v47 = vmul.f32 %v4506_v23, %v9740_v41  ;;  %v4520_v31 = vor.u32 1.1754944e-38, %v4519_v26  ;;  %v4534_v26 = vand.u32 2147483648, %v9918_v21 }
 0xe1e   :  { %v4526_v20 = vmul.f32 %v9923_v9, %v4525_v12  ;;  %v4521_v10 = vsel %vm4518_vm6, %v4520_v31, %v4516_v27  ;;  %v3360_v27 = vadd.f32 %v9722_v6, %v9826_v1  ;;  %v4549_v31 = vand.u32 2147483648, %v9921_v42 }
 0xe1f   :  { %v4611_v35 = vsub.f32 1.0, %v4521_v10 }
 0xe20   :  { %v4527_v43 = vadd.f32 %v9923_v9, %v4526_v20 }
 0xe21   :  { %v9930_v51 = vpop.eup %7024 }
 0xe22   :  { %v4539_v56 = vmul.f32 %v9930_v51, %v9921_v42  ;;  %vm4544_vm1 = vweird.f32 %v9930_v51 }
 0xe23   :  { %vm4545_vm12 = vmor %vm4543_vm11, %vm4544_vm1 }
 0xe24   :  { %v4540_v28 = vsub.f32 1.0, %v4539_v56 }
 0xe26   :  { %v4541_v53 = vmul.f32 %v9930_v51, %v4540_v28  ;;  %v4547_v28 = vand.u32 2147483647, %v9921_v42 }
 0xe28   :  { %vm4548_vm13 = vcmp.eq.f32.partialorder %v4547_v28, 8.507059e+37 }
 0xe3c   :  { %v4586_v62 = vpop.f32.mrf.mxu3 }
 0xe3d   :  { %v4598_v8 = vadd.f32 %v4586_v62, %v3351_v50  ;;  %v4610_v50 = vsub.f32 1.0, %v4506_v23  ;;  %v4532_v23 = vand.u32 2147483647, %v9918_v21  ;;  %v4531_v21 = vsel %vm9955_vm9, %v9923_v9, %v4527_v43 }
 0xe3e   :  { %v4542_v9 = vadd.f32 %v9930_v51, %v4541_v53 }
 0xe3f   :  { %7026 = vtanh.f32 %v4598_v8  ;;  %vm4533_vm10 = vcmp.eq.f32.partialorder %v4532_v23, 8.507059e+37 }
 0xe40   :  { %v4546_v23 = vsel %vm4545_vm12, %v9930_v51, %v4542_v9  ;;  %v10007_v51 = vld [vmem:[%s10593_s14] ss:$0 sm:$0xff] }
 0xe41   :  { %v3121_v53 = vadd.f32 %v10007_v51, %v9640_v2 }
 0xe44   :  { %v4589_v62 = vpop.f32.mrf.mxu3 }
 0xe45   :  { %v7027_v29 = vpop.eup %7026  ;;  %v4599_v38 = vadd.f32 %v4589_v62, %v3354_v34  ;;  %v4607_v62 = vmul.f32 %v4521_v10, %v9775_v40 }
 0xe46   :  { %v4614_v8 = vmul.f32 %v7027_v29, %v4610_v50  ;;  %v3357_v29 = vadd.f32 %v9722_v6, %v9822_v33 }
 0xe47   :  { %7028 = vtanh.f32 %v4599_v38  ;;  %v4535_v38 = vor.u32 1.1754944e-38, %v4534_v26 }
 0xe48   :  { %v9938_v59 = vadd.f32 %v4614_v8, %v4606_v47  ;;  %v7249_v8 = vld [vmem:[%s10592_s13] sm:$0xff] }
 0xe49   :  { %v4536_v56 = vsel %vm4533_vm10, %v4535_v38, %v4531_v21  ;;  %v3124_v38 = vadd.f32 %v10007_v51, %v9643_v45 }
 0xe4a   :  { %6426 = vmatmul.msk.f32.vlgmr.msrb.gmra.mxu0 %vm642_vm2, %v9938_v59  ;;  %6434 = vmatmul.msk.f32.vlgmr.msra.gmra.mxu1 %vm642_vm2, %v9938_v59  ;;  %v4612_v10 = vsub.f32 1.0, %v4536_v56 }
 0xe4b   :  { %5478 = vmatpush.msrb.mxu0 %v9752_v3  ;;  %5543 = vmatpush.msra.mxu1 %v7246_v60  ;;  %v7247_v3 = vld [vmem:[%s10592_s13 + $0x10] sm:$0xff]  ;;  %v4608_v60 = vmul.f32 %v4536_v56, %v9795_v58 }
 0xe4c   :  { %v4592_v12 = vpop.f32.mrf.mxu3 }
 0xe4d   :  { %v7029_v34 = vpop.eup %7028  ;;  %v4600_v33 = vadd.f32 %v4592_v12, %v3357_v29  ;;  %5479 = vmatpush.msrb.mxu0 %v9762_v57  ;;  %5544 = vmatpush.msra.mxu1 %v7247_v3  ;;  %v7248_v57 = vld [vmem:[%s10592_s13 + $0x8] sm:$0xff]  ;;  %v4550_v12 = vor.u32 1.1754944e-38, %v4549_v31  ;;  %v3127_v31 = vadd.f32 %v10007_v51, %v9646_v5 }
 0xe4e   :  { %v4615_v47 = vmul.f32 %v7029_v34, %v4611_v35 }
 0xe4f   :  { %7030 = vtanh.f32 %v4600_v33  ;;  %5480 = vmatpush.msrb.mxu0 %v9771_v7  ;;  %5545 = vmatpush.msra.mxu1 %v7248_v57  ;;  %v4551_v6 = vsel %vm4548_vm13, %v4550_v12, %v4546_v23 }
 0xe50   :  { %v9972_v20 = vadd.f32 %v4615_v47, %v4607_v62  ;;  %v4613_v1 = vsub.f32 1.0, %v4551_v6  ;;  %v4609_v50 = vmul.f32 %v4551_v6, %v9804_v36 }
 0xe51   :  { %5481 = vmatpush.msrb.mxu0 %v9777_v46  ;;  %5546 = vmatpush.msra.mxu1 %v7249_v8 }
 0xe52   :  { %6427 = vmatmul.msk.f32.gmra.mxu0 %vm642_vm2, %v9972_v20  ;;  %6435 = vmatmul.msk.f32.gmra.mxu1 %vm642_vm2, %v9972_v20 }
 0xe54   :  { %v4595_v43 = vpop.f32.mrf.mxu3 }
 0xe55   :  { %v7031_v29 = vpop.eup %7030  ;;  %v4601_v26 = vadd.f32 %v4595_v43, %v3360_v27 }
 0xe56   :  { %v4616_v35 = vmul.f32 %v7031_v29, %v4612_v10 }
 0xe57   :  { %7032 = vtanh.f32 %v4601_v26 }
 0xe58   :  { %v9991_v34 = vadd.f32 %v4616_v35, %v4608_v60  ;;  %v3130_v35 = vadd.f32 %v10007_v51, %v9650_v52 }
 0xe5a   :  { %6428 = vmatmul.msk.f32.gmra.mxu0 %vm642_vm2, %v9991_v34  ;;  %6436 = vmatmul.msk.f32.gmra.mxu1 %vm642_vm2, %v9991_v34 }
 0xe5d   :  { %v7033_v42 = vpop.eup %7032 }
 0xe5e   :  { %v4617_v33 = vmul.f32 %v7033_v42, %v4613_v1 }
 0xe60   :  { %v9998_v3 = vadd.f32 %v4617_v33, %v4609_v50 }
 0xe62   :  { %6429 = vmatmul.msk.f32.gmra.mxu0 %vm642_vm2, %v9998_v3  ;;  %6437 = vmatmul.msk.f32.gmra.mxu1 %vm642_vm2, %v9998_v3 }
 0xec7   :  { %v4651_v62 = vpop.f32.mrf.mxu0 }
 0xec8   :  { %v4663_v47 = vadd.f32 %v4651_v62, %v3121_v53 }
 0xeca   :  { %v6430_v21 = vmul.f32 -1.442695, %v4663_v47 }
 0xecc   :  { %7034 = vpow2.f32 %v6430_v21 }
 0xecf   :  { %v4654_v57 = vpop.f32.mrf.mxu0 }
 0xed0   :  { %v4664_v56 = vadd.f32 %v4654_v57, %v3124_v38 }
 0xed2   :  { %v7035_v8 = vpop.eup %7034  ;;  %v6431_v9 = vmul.f32 -1.442695, %v4664_v56 }
 0xed3   :  { %v4679_v27 = vadd.f32 1.0, %v7035_v8 }
 0xed4   :  { %7036 = vpow2.f32 %v6431_v9 }
 0xed5   :  { %7038 = vrcp.f32 %v4679_v27  ;;  %v4694_v23 = vand.u32 2147483648, %v4679_v27  ;;  %v4692_v1 = vand.u32 2147483647, %v4679_v27  ;;  %vm4688_vm15 = vweird.f32 %v4679_v27 }
 0xed7   :  { %v4657_v10 = vpop.f32.mrf.mxu0  ;;  %v4695_v53 = vor.u32 1.1754944e-38, %v4694_v23  ;;  %vm4693_vm3 = vcmp.eq.f32.partialorder %v4692_v1, 8.507059e+37 }
 0xed8   :  { %v4665_v28 = vadd.f32 %v4657_v10, %v3127_v31 }
 0xeda   :  { %v7037_v2 = vpop.eup %7036  ;;  %v6432_v43 = vmul.f32 -1.442695, %v4665_v28 }
 0xedb   :  { %v7039_v29 = vpop.eup %7038  ;;  %v4680_v26 = vadd.f32 1.0, %v7037_v2 }
 0xedc   :  { %v4684_v60 = vmul.f32 %v7039_v29, %v4679_v27  ;;  %7040 = vpow2.f32 %v6432_v43  ;;  %vm4689_vm14 = vweird.f32 %v7039_v29 }
 0xedd   :  { %7042 = vrcp.f32 %v4680_v26  ;;  %vm4690_vm0 = vmor %vm4688_vm15, %vm4689_vm14  ;;  %v4709_v8 = vand.u32 2147483648, %v4680_v26  ;;  %v4707_v27 = vand.u32 2147483647, %v4680_v26  ;;  %vm4703_vm5 = vweird.f32 %v4680_v26 }
 0xede   :  { %v4685_v45 = vsub.f32 1.0, %v4684_v60 }
 0xedf   :  { %v4660_v12 = vpop.f32.mrf.mxu0  ;;  %v4710_v28 = vor.u32 1.1754944e-38, %v4709_v8  ;;  %vm4708_vm7 = vcmp.eq.f32.partialorder %v4707_v27, 8.507059e+37  ;;  %v10032_v8 = vld [vmem:[%s10596_s17] ss:$0 sm:$0xff] }
 0xee0   :  { %v4686_v6 = vmul.f32 %v7039_v29, %v4685_v45  ;;  %v4666_v42 = vadd.f32 %v4660_v12, %v3130_v35 }
 0xee2   :  { %v7041_v5 = vpop.eup %7040  ;;  %v4687_v50 = vadd.f32 %v7039_v29, %v4686_v6  ;;  %v6433_v47 = vmul.f32 -1.442695, %v4666_v42 }
 0xee3   :  { %v7043_v33 = vpop.eup %7042  ;;  %v4681_v62 = vadd.f32 1.0, %v7041_v5 }
 0xee4   :  { %v4691_v21 = vsel %vm4690_vm0, %v7039_v29, %v4687_v50  ;;  %v4699_v38 = vmul.f32 %v7043_v33, %v4680_v26  ;;  %vm4704_vm4 = vweird.f32 %v7043_v33 }
 0xee5   :  { %7044 = vrcp.f32 %v4681_v62  ;;  %v4696_v57 = vsel %vm4693_vm3, %v4695_v53, %v4691_v21  ;;  %vm4705_vm6 = vmor %vm4703_vm5, %vm4704_vm4  ;;  %vm4718_vm9 = vweird.f32 %v4681_v62 }
 0xee6   :  { %v4700_v52 = vsub.f32 1.0, %v4699_v38  ;;  %7046 = vpow2.f32 %v6433_v47  ;;  %v4852_v56 = vmul.f32 %v4696_v57, %v9938_v59 }
 0xee8   :  { %6442 = vmatmul.msk.f32.vlgmr.msra.gmra.mxu2 %vm642_vm2, %v4852_v56  ;;  %v4701_v9 = vmul.f32 %v7043_v33, %v4700_v52  ;;  %v4760_v56 = vpop.f32.mrf.mxu1 }
 0xee9   :  { %5652 = vmatpush.msra.mxu2 %v9867_v0  ;;  %v4724_v0 = vand.u32 2147483648, %v4681_v62 }
 0xeea   :  { %v4702_v31 = vadd.f32 %v7043_v33, %v4701_v9  ;;  %v3242_v9 = vadd.f32 %v10032_v8, %v9704_v39 }
 0xeeb   :  { %v7045_v10 = vpop.eup %7044  ;;  %5653 = vmatpush.msra.mxu2 %v9875_v30  ;;  %v4722_v30 = vand.u32 2147483647, %v4681_v62  ;;  %v4725_v6 = vor.u32 1.1754944e-38, %v4724_v0 }
 0xeec   :  { %v7047_v2 = vpop.eup %7046  ;;  %v4714_v43 = vmul.f32 %v7045_v10, %v4681_v62  ;;  %v4706_v29 = vsel %vm4705_vm6, %v7043_v33, %v4702_v31  ;;  %vm4719_vm8 = vweird.f32 %v7045_v10  ;;  %v4772_v27 = vadd.f32 %v4760_v56, %v3242_v9 }
 0xeed   :  { %v4682_v60 = vadd.f32 1.0, %v7047_v2  ;;  %v4711_v45 = vsel %vm4708_vm7, %v4710_v28, %v4706_v29  ;;  %5654 = vmatpush.msra.mxu2 %v9881_v11  ;;  %vm4720_vm10 = vmor %vm4718_vm9, %vm4719_vm8  ;;  %vm4723_vm1 = vcmp.eq.f32.partialorder %v4722_v30, 8.507059e+37  ;;  %v3245_v28 = vadd.f32 %v10032_v8, %v9711_v19 }
 0xeee   :  { %v4715_v35 = vsub.f32 1.0, %v4714_v43  ;;  %v4853_v23 = vmul.f32 %v4711_v45, %v9972_v20  ;;  %v3248_v45 = vadd.f32 %v10032_v8, %v9728_v54  ;;  %v3251_v30 = vadd.f32 %v10032_v8, %v9742_v4 }
 0xeef   :  { %7048 = vrcp.f32 %v4682_v60  ;;  %5655 = vmatpush.msra.mxu2 %v9888_v49  ;;  %v4739_v49 = vand.u32 2147483648, %v4682_v60  ;;  %v4737_v47 = vand.u32 2147483647, %v4682_v60  ;;  %vm4733_vm12 = vweird.f32 %v4682_v60 }
 0xef0   :  { %6443 = vmatmul.msk.f32.gmra.mxu2 %vm642_vm2, %v4853_v23  ;;  %v4716_v26 = vmul.f32 %v7045_v10, %v4715_v35  ;;  %v4763_v31 = vpop.f32.mrf.mxu1 }
 0xef1   :  { %v4740_v62 = vor.u32 1.1754944e-38, %v4739_v49  ;;  %vm4738_vm14 = vcmp.eq.f32.partialorder %v4737_v47, 8.507059e+37  ;;  %v4773_v2 = vadd.f32 %v4763_v31, %v3245_v28 }
 0xef2   :  { %v4717_v12 = vadd.f32 %v7045_v10, %v4716_v26 }
 0xef3   :  { %v6439_v43 = vmul.f32 -1.442695, %v4773_v2 }
 0xef4   :  { %v4721_v1 = vsel %vm4720_vm10, %v7045_v10, %v4717_v12  ;;  %v6438_v10 = vmul.f32 -1.442695, %v4772_v27 }
 0xef5   :  { %v7049_v42 = vpop.eup %7048  ;;  %v4726_v11 = vsel %vm4723_vm1, %v4725_v6, %v4721_v1 }
 0xef6   :  { %v4729_v5 = vmul.f32 %v7049_v42, %v4682_v60  ;;  %v4854_v50 = vmul.f32 %v4726_v11, %v9991_v34  ;;  %vm4734_vm11 = vweird.f32 %v7049_v42  ;;  %7050 = vpow2.f32 %v6438_v10 }
 0xef7   :  { %vm4735_vm13 = vmor %vm4733_vm12, %vm4734_vm11  ;;  %7052 = vpow2.f32 %v6439_v43 }
 0xef8   :  { %v4730_v33 = vsub.f32 1.0, %v4729_v5  ;;  %6444 = vmatmul.msk.f32.gmra.mxu2 %vm642_vm2, %v4854_v50  ;;  %v4766_v29 = vpop.f32.mrf.mxu1 }
 0xef9   :  { %v4774_v35 = vadd.f32 %v4766_v29, %v3248_v45 }
 0xefa   :  { %v4731_v53 = vmul.f32 %v7049_v42, %v4730_v33 }
 0xefb   :  { %v6440_v0 = vmul.f32 -1.442695, %v4774_v35 }
 0xefc   :  { %v4732_v21 = vadd.f32 %v7049_v42, %v4731_v53  ;;  %v7051_v60 = vpop.eup %7050 }
 0xefd   :  { %v4788_v23 = vadd.f32 1.0, %v7051_v60  ;;  %v7053_v39 = vpop.eup %7052 }
 0xefe   :  { %v4736_v38 = vsel %vm4735_vm13, %v7049_v42, %v4732_v21  ;;  %v4789_v19 = vadd.f32 1.0, %v7053_v39 }
 0xeff   :  { %v4741_v57 = vsel %vm4738_vm14, %v4740_v62, %v4736_v38  ;;  %7054 = vrcp.f32 %v4788_v23  ;;  %v10052_v38 = vld [vmem:[%s10599_s20] ss:$0 sm:$0xff]  ;;  %vm4797_vm0 = vweird.f32 %v4788_v23  ;;  %v4801_v56 = vand.u32 2147483647, %v4788_v23 }
 0xf00   :  { %v4855_v52 = vmul.f32 %v4741_v57, %v9998_v3  ;;  %v4769_v26 = vpop.f32.mrf.mxu1  ;;  %7056 = vpow2.f32 %v6440_v0  ;;  %v3363_v57 = vadd.f32 %v10052_v38, %v9830_v13  ;;  %v3366_v13 = vadd.f32 %v10052_v38, %v9834_v17 }
 0xf01   :  { %v4775_v12 = vadd.f32 %v4769_v26, %v3251_v30  ;;  %7058 = vrcp.f32 %v4789_v19  ;;  %vm4802_vm4 = vcmp.eq.f32.partialorder %v4801_v56, 8.507059e+37  ;;  %v4818_v45 = vand.u32 2147483648, %v4789_v19 }
 0xf02   :  { %6445 = vmatmul.msk.f32.gmra.mxu2 %vm642_vm2, %v4855_v52  ;;  %v4803_v52 = vand.u32 2147483648, %v4788_v23  ;;  %vm4812_vm6 = vweird.f32 %v4789_v19  ;;  %v4816_v0 = vand.u32 2147483647, %v4789_v19 }
 0xf03   :  { %v6441_v1 = vmul.f32 -1.442695, %v4775_v12 }
 0xf04   :  { %v4804_v2 = vor.u32 1.1754944e-38, %v4803_v52  ;;  %vm4817_vm8 = vcmp.eq.f32.partialorder %v4816_v0, 8.507059e+37 }
 0xf05   :  { %v7055_v6 = vpop.eup %7054  ;;  %7060 = vpow2.f32 %v6441_v1 }
 0xf06   :  { %v7057_v42 = vpop.eup %7056  ;;  %v4793_v11 = vmul.f32 %v7055_v6, %v4788_v23  ;;  %vm4798_vm15 = vweird.f32 %v7055_v6 }
 0xf07   :  { %v10042_v5 = vadd.f32 1.0, %v7057_v42  ;;  %v7059_v50 = vpop.eup %7058  ;;  %vm4799_vm3 = vmor %vm4797_vm0, %vm4798_vm15 }
 0xf08   :  { %v4794_v54 = vsub.f32 1.0, %v4793_v11  ;;  %v4808_v49 = vmul.f32 %v7059_v50, %v4789_v19  ;;  %vm4813_vm5 = vweird.f32 %v7059_v50  ;;  %v4819_v11 = vor.u32 1.1754944e-38, %v4818_v45 }
 0xf09   :  { %7062 = vrcp.f32 %v10042_v5  ;;  %vm4814_vm7 = vmor %vm4812_vm6, %vm4813_vm5  ;;  %vm4827_vm10 = vweird.f32 %v10042_v5 }
 0xf0a   :  { %v4795_v33 = vmul.f32 %v7055_v6, %v4794_v54  ;;  %v4809_v47 = vsub.f32 1.0, %v4808_v49  ;;  %v4833_v49 = vand.u32 2147483648, %v10042_v5 }
 0xf0b   :  { %v7061_v53 = vpop.eup %7060 }
 0xf0c   :  { %v10045_v4 = vadd.f32 1.0, %v7061_v53  ;;  %v4796_v21 = vadd.f32 %v7055_v6, %v4795_v33  ;;  %v4810_v31 = vmul.f32 %v7059_v50, %v4809_v47  ;;  %v7253_v53 = vld [vmem:[#allocation7 + $0x18] sm:$0xff] }
 0xf0e   :  { %7064 = vrcp.f32 %v10045_v4  ;;  %v4800_v28 = vsel %vm4799_vm3, %v7055_v6, %v4796_v21  ;;  %v4811_v60 = vadd.f32 %v7059_v50, %v4810_v31  ;;  %vm4842_vm13 = vweird.f32 %v10045_v4 }
 0xf0f   :  { %v10047_v62 = vpop.eup %7062  ;;  %v4805_v43 = vsel %vm4802_vm4, %v4804_v2, %v4800_v28  ;;  %v4834_v28 = vor.u32 1.1754944e-38, %v4833_v49 }
 0xf10   :  { %v4823_v10 = vmul.f32 %v10047_v62, %v10042_v5  ;;  %v4909_v23 = vsub.f32 1.0, %v4805_v43  ;;  %v4905_v6 = vmul.f32 %v4805_v43, %v9938_v59  ;;  %v4815_v42 = vsel %vm4814_vm7, %v7059_v50, %v4811_v60 }
 0xf11   :  { %v4820_v33 = vsel %vm4817_vm8, %v4819_v11, %v4815_v42  ;;  %vm4828_vm9 = vweird.f32 %v10047_v62  ;;  %v3369_v50 = vadd.f32 %v10052_v38, %v9838_v61  ;;  %v3372_v60 = vadd.f32 %v10052_v38, %v9842_v18 }
 0xf12   :  { %v4824_v29 = vsub.f32 1.0, %v4823_v10  ;;  %v4910_v21 = vsub.f32 1.0, %v4820_v33  ;;  %vm4829_vm1 = vmor %vm4827_vm10, %vm4828_vm9  ;;  %v4906_v31 = vmul.f32 %v4820_v33, %v9972_v20 }
 0xf14   :  { %v10061_v35 = vpop.eup %7064  ;;  %v4825_v12 = vmul.f32 %v10047_v62, %v4824_v29 }
 0xf15   :  { %v4838_v17 = vmul.f32 %v10061_v35, %v10045_v4  ;;  %vm4843_vm12 = vweird.f32 %v10061_v35 }
 0xf16   :  { %v4826_v19 = vadd.f32 %v10047_v62, %v4825_v12  ;;  %vm4844_vm14 = vmor %vm4842_vm13, %vm4843_vm12 }
 0xf17   :  { %v4839_v47 = vsub.f32 1.0, %v4838_v17 }
 0xf18   :  { %v4830_v61 = vsel %vm4829_vm1, %v10047_v62, %v4826_v19 }
 0xf19   :  { %v4840_v2 = vmul.f32 %v10061_v35, %v4839_v47 }
 0xf1b   :  { %v4841_v62 = vadd.f32 %v10061_v35, %v4840_v2  ;;  %v3142_v2 = vadd.f32 %v10007_v51, %v9669_v55 }
 0xf6b   :  { %v4885_v9 = vpop.f32.mrf.mxu2 }
 0xf6c   :  { %v4897_v27 = vadd.f32 %v4885_v9, %v3363_v57  ;;  %v4831_v57 = vand.u32 2147483647, %v10042_v5 }
 0xf6e   :  { %7066 = vtanh.f32 %v4897_v27  ;;  %v7254_v27 = vld [vmem:[#allocation7 + $0x10] sm:$0xff]  ;;  %vm4832_vm11 = vcmp.eq.f32.partialorder %v4831_v57, 8.507059e+37 }
 0xf6f   :  { %v4835_v5 = vsel %vm4832_vm11, %v4834_v28, %v4830_v61 }
 0xf70   :  { %v4911_v29 = vsub.f32 1.0, %v4835_v5 }
 0xf73   :  { %v4888_v39 = vpop.f32.mrf.mxu2 }
 0xf74   :  { %v7067_v26 = vpop.eup %7066  ;;  %v4898_v30 = vadd.f32 %v4888_v39, %v3366_v13  ;;  %v4848_v13 = vand.u32 2147483648, %v10045_v4 }
 0xf75   :  { %v4913_v1 = vmul.f32 %v7067_v26, %v4909_v23  ;;  %v4846_v23 = vand.u32 2147483647, %v10045_v4 }
 0xf76   :  { %7068 = vtanh.f32 %v4898_v30  ;;  %v4845_v30 = vsel %vm4844_vm14, %v10061_v35, %v4841_v62  ;;  %v4849_v12 = vor.u32 1.1754944e-38, %v4848_v13  ;;  %v3133_v35 = vadd.f32 %v10007_v51, %v9659_v37 }
 0xf77   :  { %v10067_v54 = vadd.f32 %v4913_v1, %v4905_v6  ;;  %vm4847_vm15 = vcmp.eq.f32.partialorder %v4846_v23, 8.507059e+37 }
 0xf78   :  { %v4850_v18 = vsel %vm4847_vm15, %v4849_v12, %v4845_v30 }
 0xf79   :  { %6446 = vmatmul.msk.f32.vlgmr.msra.gmra.mxu3 %vm642_vm2, %v10067_v54  ;;  %6454 = vmatmul.msk.f32.vlgmr.msra.gmra.mxu0 %vm642_vm2, %v10067_v54  ;;  %v4912_v6 = vsub.f32 1.0, %v4850_v18  ;;  %v4908_v4 = vmul.f32 %v4850_v18, %v9998_v3 }
 0xf7a   :  { %5777 = vmatpush.msra.mxu3 %v7253_v53 }
 0xf7b   :  { %v4891_v52 = vpop.f32.mrf.mxu2 }
 0xf7c   :  { %v7069_v56 = vpop.eup %7068  ;;  %v4899_v9 = vadd.f32 %v4891_v52, %v3369_v50  ;;  %5778 = vmatpush.msra.mxu3 %v7254_v27  ;;  %v3136_v50 = vadd.f32 %v10007_v51, %v9663_v63  ;;  %v3139_v52 = vadd.f32 %v10007_v51, %v9667_v16 }
 0xf7d   :  { %v4914_v10 = vmul.f32 %v7069_v56, %v4910_v21 }
 0xf7e   :  { %7070 = vtanh.f32 %v4899_v9  ;;  %5779 = vmatpush.msra.mxu3 %v9771_v7 }
 0xf7f   :  { %v10084_v43 = vadd.f32 %v4914_v10, %v4906_v31 }
 0xf80   :  { %5780 = vmatpush.msra.mxu3 %v9777_v46  ;;  %v4907_v46 = vmul.f32 %v4835_v5, %v9991_v34 }
 0xf81   :  { %6447 = vmatmul.msk.f32.gmra.mxu3 %vm642_vm2, %v10084_v43  ;;  %6455 = vmatmul.msk.f32.gmra.mxu0 %vm642_vm2, %v10084_v43 }
 0xf84   :  { %v7071_v7 = vpop.eup %7070 }
 0xf85   :  { %v4915_v45 = vmul.f32 %v7071_v7, %v4911_v29  ;;  %v4894_v0 = vpop.f32.mrf.mxu2 }
 0xf86   :  { %v4900_v39 = vadd.f32 %v4894_v0, %v3372_v60 }
 0xf87   :  { %v10099_v26 = vadd.f32 %v4915_v45, %v4907_v46 }
 0xf88   :  { %7072 = vtanh.f32 %v4900_v39 }
 0xf89   :  { %6448 = vmatmul.msk.f32.gmra.mxu3 %vm642_vm2, %v10099_v26  ;;  %6456 = vmatmul.msk.f32.gmra.mxu0 %vm642_vm2, %v10099_v26 }
 0xf8e   :  { %v7073_v1 = vpop.eup %7072 }
 0xf8f   :  { %v4916_v42 = vmul.f32 %v7073_v1, %v4912_v6 }
 0xf91   :  { %v10107_v11 = vadd.f32 %v4916_v42, %v4908_v4 }
 0xf93   :  { %6449 = vmatmul.msk.f32.gmra.mxu3 %vm642_vm2, %v10107_v11  ;;  %6457 = vmatmul.msk.f32.gmra.mxu0 %vm642_vm2, %v10107_v11 }
 0xffc   :  { %v4950_v17 = vpop.f32.mrf.mxu3 }
 0xffd   :  { %v4962_v33 = vadd.f32 %v4950_v17, %v3133_v35 }
 0xfff   :  { %v6450_v19 = vmul.f32 -1.442695, %v4962_v33 }
0x1001   :  { %7074 = vpow2.f32 %v6450_v19 }
0x1004   :  { %v4953_v49 = vpop.f32.mrf.mxu3 }
0x1005   :  { %v4963_v53 = vadd.f32 %v4953_v49, %v3136_v50 }
0x1007   :  { %v7075_v47 = vpop.eup %7074  ;;  %v6451_v21 = vmul.f32 -1.442695, %v4963_v53 }
0x1008   :  { %v4978_v57 = vadd.f32 1.0, %v7075_v47 }
0x1009   :  { %7076 = vpow2.f32 %v6451_v21 }
0x100a   :  { %7078 = vrcp.f32 %v4978_v57  ;;  %v4993_v28 = vand.u32 2147483648, %v4978_v57  ;;  %v4991_v29 = vand.u32 2147483647, %v4978_v57  ;;  %vm4987_vm3 = vweird.f32 %v4978_v57 }
0x100c   :  { %v4956_v56 = vpop.f32.mrf.mxu3  ;;  %v4994_v46 = vor.u32 1.1754944e-38, %v4993_v28  ;;  %vm4992_vm5 = vcmp.eq.f32.partialorder %v4991_v29, 8.507059e+37 }
0x100d   :  { %v4964_v9 = vadd.f32 %v4956_v56, %v3139_v52 }
0x100f   :  { %v7077_v37 = vpop.eup %7076  ;;  %v6452_v27 = vmul.f32 -1.442695, %v4964_v9 }
0x1010   :  { %v7079_v31 = vpop.eup %7078  ;;  %v4979_v10 = vadd.f32 1.0, %v7077_v37 }
0x1011   :  { %v4983_v61 = vmul.f32 %v7079_v31, %v4978_v57  ;;  %7080 = vpow2.f32 %v6452_v27  ;;  %vm4988_vm0 = vweird.f32 %v7079_v31 }
0x1012   :  { %7082 = vrcp.f32 %v4979_v10  ;;  %vm4989_vm4 = vmor %vm4987_vm3, %vm4988_vm0  ;;  %v5008_v18 = vand.u32 2147483648, %v4979_v10  ;;  %v5006_v1 = vand.u32 2147483647, %v4979_v10  ;;  %vm5002_vm7 = vweird.f32 %v4979_v10 }
0x1013   :  { %v4984_v63 = vsub.f32 1.0, %v4983_v61 }
0x1014   :  { %v5009_v35 = vor.u32 1.1754944e-38, %v5008_v18  ;;  %vm5007_vm9 = vcmp.eq.f32.partialorder %v5006_v1, 8.507059e+37 }
0x1015   :  { %v4985_v5 = vmul.f32 %v7079_v31, %v4984_v63 }
0x1016   :  { %v4959_v62 = vpop.f32.mrf.mxu3 }
0x1017   :  { %v7081_v7 = vpop.eup %7080  ;;  %v4986_v16 = vadd.f32 %v7079_v31, %v4985_v5  ;;  %v4965_v60 = vadd.f32 %v4959_v62, %v3142_v2 }
0x1018   :  { %v7083_v13 = vpop.eup %7082  ;;  %v4980_v45 = vadd.f32 1.0, %v7081_v7 }
0x1019   :  { %v4990_v23 = vsel %vm4989_vm4, %v7079_v31, %v4986_v16  ;;  %v4998_v0 = vmul.f32 %v7083_v13, %v4979_v10  ;;  %v6453_v39 = vmul.f32 -1.442695, %v4965_v60  ;;  %vm5003_vm6 = vweird.f32 %v7083_v13 }
0x101a   :  { %7084 = vrcp.f32 %v4980_v45  ;;  %v4995_v30 = vsel %vm4992_vm5, %v4994_v46, %v4990_v23  ;;  %vm5004_vm8 = vmor %vm5002_vm7, %vm5003_vm6  ;;  %v5023_v21 = vand.u32 2147483648, %v4980_v45  ;;  %v5021_v52 = vand.u32 2147483647, %v4980_v45 }
0x101b   :  { %v4999_v12 = vsub.f32 1.0, %v4998_v0  ;;  %7086 = vpow2.f32 %v6453_v39  ;;  %v5151_v55 = vmul.f32 %v4995_v30, %v10067_v54  ;;  %vm5017_vm1 = vweird.f32 %v4980_v45 }
0x101c   :  { %v5024_v9 = vor.u32 1.1754944e-38, %v5023_v21  ;;  %vm5022_vm12 = vcmp.eq.f32.partialorder %v5021_v52, 8.507059e+37  ;;  %v3254_v46 = vadd.f32 %v10032_v8, %v9788_v25  ;;  %v3257_v39 = vadd.f32 %v10032_v8, %v9801_v44 }
0x101d   :  { %6462 = vmatmul.msk.f32.vlgmr.msrb.gmra.mxu1 %vm642_vm2, %v5151_v55  ;;  %v5000_v6 = vmul.f32 %v7083_v13, %v4999_v12 }
0x101f   :  { %v5001_v4 = vadd.f32 %v7083_v13, %v5000_v6  ;;  %v3260_v6 = vadd.f32 %v10032_v8, %v9810_v14 }
0x1020   :  { %v7085_v42 = vpop.eup %7084 }
0x1021   :  { %v7087_v17 = vpop.eup %7086  ;;  %v5013_v33 = vmul.f32 %v7085_v42, %v4980_v45  ;;  %v5005_v19 = vsel %vm5004_vm8, %v7083_v13, %v5001_v4  ;;  %vm5018_vm10 = vweird.f32 %v7085_v42  ;;  %v5059_v13 = vpop.f32.mrf.mxu0 }
0x1022   :  { %v4981_v50 = vadd.f32 1.0, %v7087_v17  ;;  %v5010_v49 = vsel %vm5007_vm9, %v5009_v35, %v5005_v19  ;;  %vm5019_vm11 = vmor %vm5017_vm1, %vm5018_vm10  ;;  %v5071_v45 = vadd.f32 %v5059_v13, %v3254_v46  ;;  %v3263_v17 = vadd.f32 %v10032_v8, %v9812_v48 }
0x1023   :  { %v5014_v53 = vsub.f32 1.0, %v5013_v33  ;;  %v5152_v47 = vmul.f32 %v5010_v49, %v10084_v43 }
0x1024   :  { %7088 = vrcp.f32 %v4981_v50  ;;  %v5038_v28 = vand.u32 2147483648, %v4981_v50  ;;  %v5036_v5 = vand.u32 2147483647, %v4981_v50  ;;  %vm5032_vm14 = vweird.f32 %v4981_v50 }
0x1025   :  { %6463 = vmatmul.msk.f32.gmra.mxu1 %vm642_vm2, %v5152_v47  ;;  %v5015_v57 = vmul.f32 %v7085_v42, %v5014_v53  ;;  %v6458_v0 = vmul.f32 -1.442695, %v5071_v45 }
0x1026   :  { %v5039_v62 = vor.u32 1.1754944e-38, %v5038_v28  ;;  %vm5037_vm0 = vcmp.eq.f32.partialorder %v5036_v5, 8.507059e+37 }
0x1027   :  { %v5016_v56 = vadd.f32 %v7085_v42, %v5015_v57  ;;  %7090 = vpow2.f32 %v6458_v0 }
0x1029   :  { %v5020_v37 = vsel %vm5019_vm11, %v7085_v42, %v5016_v56  ;;  %v5062_v23 = vpop.f32.mrf.mxu0 }
0x102a   :  { %v7089_v27 = vpop.eup %7088  ;;  %v5025_v31 = vsel %vm5022_vm12, %v5024_v9, %v5020_v37  ;;  %v5072_v30 = vadd.f32 %v5062_v23, %v3257_v39 }
0x102b   :  { %v5028_v10 = vmul.f32 %v7089_v27, %v4981_v50  ;;  %v5153_v61 = vmul.f32 %v5025_v31, %v10099_v26  ;;  %vm5033_vm13 = vweird.f32 %v7089_v27  ;;  %v3375_v31 = vadd.f32 %v10052_v38, %v9846_v24 }
0x102c   :  { %vm5034_vm15 = vmor %vm5032_vm14, %vm5033_vm13  ;;  %v6459_v12 = vmul.f32 -1.442695, %v5072_v30  ;;  %v3378_v24 = vadd.f32 %v10052_v38, %v9850_v15 }
0x102d   :  { %v5029_v63 = vsub.f32 1.0, %v5028_v10  ;;  %6464 = vmatmul.msk.f32.gmra.mxu1 %vm642_vm2, %v5153_v61  ;;  %v7091_v18 = vpop.eup %7090 }
0x102e   :  { %7092 = vpow2.f32 %v6459_v12  ;;  %v5087_v4 = vadd.f32 1.0, %v7091_v18 }
0x102f   :  { %v5030_v2 = vmul.f32 %v7089_v27, %v5029_v63 }
0x1030   :  { %7094 = vrcp.f32 %v5087_v4  ;;  %v5102_v10 = vand.u32 2147483648, %v5087_v4  ;;  %vm5096_vm4 = vweird.f32 %v5087_v4  ;;  %v5100_v61 = vand.u32 2147483647, %v5087_v4 }
0x1031   :  { %v5031_v29 = vadd.f32 %v7089_v27, %v5030_v2  ;;  %v5065_v55 = vpop.f32.mrf.mxu0 }
0x1032   :  { %v5073_v1 = vadd.f32 %v5065_v55, %v3260_v6  ;;  %vm5101_vm6 = vcmp.eq.f32.partialorder %v5100_v61, 8.507059e+37 }
0x1033   :  { %v5035_v7 = vsel %vm5034_vm15, %v7089_v27, %v5031_v29 }
0x1034   :  { %v5040_v16 = vsel %vm5037_vm0, %v5039_v62, %v5035_v7  ;;  %v6460_v42 = vmul.f32 -1.442695, %v5073_v1  ;;  %v7093_v25 = vpop.eup %7092  ;;  %v5103_v62 = vor.u32 1.1754944e-38, %v5102_v10 }
0x1035   :  { %v5154_v60 = vmul.f32 %v5040_v16, %v10107_v11  ;;  %v5088_v44 = vadd.f32 1.0, %v7093_v25 }
0x1036   :  { %7096 = vpow2.f32 %v6460_v42  ;;  %v7095_v19 = vpop.eup %7094 }
0x1037   :  { %6465 = vmatmul.msk.f32.gmra.mxu1 %vm642_vm2, %v5154_v60  ;;  %7098 = vrcp.f32 %v5088_v44  ;;  %v5092_v53 = vmul.f32 %v7095_v19, %v5087_v4  ;;  %vm5097_vm3 = vweird.f32 %v7095_v19  ;;  %v5117_v13 = vand.u32 2147483648, %v5088_v44 }
0x1038   :  { %vm5098_vm5 = vmor %vm5096_vm4, %vm5097_vm3  ;;  %vm5111_vm8 = vweird.f32 %v5088_v44  ;;  %v5115_v23 = vand.u32 2147483647, %v5088_v44 }
0x1039   :  { %v5068_v35 = vpop.f32.mrf.mxu0  ;;  %v5093_v14 = vsub.f32 1.0, %v5092_v53  ;;  %v5118_v1 = vor.u32 1.1754944e-38, %v5117_v13 }
0x103a   :  { %v5074_v33 = vadd.f32 %v5068_v35, %v3263_v17  ;;  %vm5116_vm10 = vcmp.eq.f32.partialorder %v5115_v23, 8.507059e+37  ;;  %v3381_v35 = vadd.f32 %v10052_v38, %v9856_v32 }
0x103b   :  { %v5094_v57 = vmul.f32 %v7095_v19, %v5093_v14 }
0x103c   :  { %v6461_v50 = vmul.f32 -1.442695, %v5074_v33  ;;  %v7097_v49 = vpop.eup %7096 }
0x103d   :  { %v10137_v47 = vadd.f32 1.0, %v7097_v49  ;;  %v7099_v21 = vpop.eup %7098  ;;  %v5095_v37 = vadd.f32 %v7095_v19, %v5094_v57 }
0x103e   :  { %7100 = vpow2.f32 %v6461_v50  ;;  %v5107_v52 = vmul.f32 %v7099_v21, %v5088_v44  ;;  %vm5112_vm7 = vweird.f32 %v7099_v21 }
0x103f   :  { %7102 = vrcp.f32 %v10137_v47  ;;  %v5099_v29 = vsel %vm5098_vm5, %v7095_v19, %v5095_v37  ;;  %vm5113_vm9 = vmor %vm5111_vm8, %vm5112_vm7  ;;  %v5132_v17 = vand.u32 2147483648, %v10137_v47  ;;  %vm5126_vm11 = vweird.f32 %v10137_v47 }
0x1040   :  { %v5108_v9 = vsub.f32 1.0, %v5107_v52  ;;  %v5104_v7 = vsel %vm5101_vm6, %v5103_v62, %v5099_v29  ;;  %v5130_v19 = vand.u32 2147483647, %v10137_v47 }
0x1041   :  { %v5208_v45 = vsub.f32 1.0, %v5104_v7  ;;  %v5204_v55 = vmul.f32 %v5104_v7, %v10067_v54  ;;  %v5133_v52 = vor.u32 1.1754944e-38, %v5132_v17 }
0x1042   :  { %v5109_v2 = vmul.f32 %v7099_v21, %v5108_v9  ;;  %vm5131_vm13 = vcmp.eq.f32.partialorder %v5130_v19, 8.507059e+37 }
0x1044   :  { %v7101_v56 = vpop.eup %7100  ;;  %v5110_v60 = vadd.f32 %v7099_v21, %v5109_v2 }
0x1045   :  { %v10140_v48 = vadd.f32 1.0, %v7101_v56  ;;  %v10142_v27 = vpop.eup %7102 }
0x1046   :  { %v5122_v5 = vmul.f32 %v10142_v27, %v10137_v47  ;;  %v5114_v6 = vsel %vm5113_vm9, %v7099_v21, %v5110_v60  ;;  %vm5127_vm1 = vweird.f32 %v10142_v27 }
0x1047   :  { %7104 = vrcp.f32 %v10140_v48  ;;  %v5119_v42 = vsel %vm5116_vm10, %v5118_v1, %v5114_v6  ;;  %vm5128_vm12 = vmor %vm5126_vm11, %vm5127_vm1  ;;  %v5147_v61 = vand.u32 2147483648, %v10140_v48  ;;  %vm5141_vm15 = vweird.f32 %v10140_v48 }
0x1048   :  { %v5123_v16 = vsub.f32 1.0, %v5122_v5  ;;  %v5209_v33 = vsub.f32 1.0, %v5119_v42  ;;  %v5205_v14 = vmul.f32 %v5119_v42, %v10084_v43  ;;  %v5145_v2 = vand.u32 2147483647, %v10140_v48 }
0x104a   :  { %v5124_v12 = vmul.f32 %v10142_v27, %v5123_v16  ;;  %v5148_v16 = vor.u32 1.1754944e-38, %v5147_v61  ;;  %vm5146_vm3 = vcmp.eq.f32.partialorder %v5145_v2, 8.507059e+37  ;;  %v5821_v61 = vld [vmem:[%s10600_s21 + $0x18] sm:$0xff] }
0x104b   :  { %5850 = vmatpush.msra.mxu0 %v5821_v61  ;;  %v10766_v61 = vld [vmem:[#allocation26_spill] sm:$0xff] }
0x104c   :  { %v5125_v25 = vadd.f32 %v10142_v27, %v5124_v12 }
0x104d   :  { %v10151_v46 = vpop.eup %7104 }
0x104e   :  { %v5137_v15 = vmul.f32 %v10151_v46, %v10140_v48  ;;  %v5129_v57 = vsel %vm5128_vm12, %v10142_v27, %v5125_v25  ;;  %vm5142_vm14 = vweird.f32 %v10151_v46 }
0x104f   :  { %v5134_v9 = vsel %vm5131_vm13, %v5133_v52, %v5129_v57  ;;  %vm5143_vm0 = vmor %vm5141_vm15, %vm5142_vm14  ;;  %v10765_v52 = vld [vmem:[#allocation12_spill] sm:$0xff] }
0x1050   :  { %v5138_v44 = vsub.f32 1.0, %v5137_v15  ;;  %v5210_v47 = vsub.f32 1.0, %v5134_v9 }
0x1052   :  { %v5139_v32 = vmul.f32 %v10151_v46, %v5138_v44 }
0x1054   :  { %v5140_v37 = vadd.f32 %v10151_v46, %v5139_v32  ;;  %v3154_v32 = vadd.f32 %v10007_v51, %v10765_v52 }
0x1056   :  { %v5144_v7 = vsel %vm5143_vm0, %v10151_v46, %v5140_v37  ;;  %v10762_v46 = vld [vmem:[#allocation33_spill] sm:$0xff] }
0x1057   :  { %v5149_v60 = vsel %vm5146_vm3, %v5148_v16, %v5144_v7  ;;  %v5819_v16 = vld [vmem:[%s10600_s21 + $0x8] sm:$0xff] }
0x1058   :  { %v5207_v48 = vmul.f32 %v5149_v60, %v10107_v11 }
0x109a   :  { %v5184_v63 = vpop.f32.mrf.mxu1 }
0x109b   :  { %v5196_v28 = vadd.f32 %v5184_v63, %v3375_v31  ;;  %v10761_v31 = vld [vmem:[#allocation18_spill] sm:$0xff]  ;;  %v5206_v63 = vmul.f32 %v5134_v9, %v10099_v26 }
0x109c   :  { %v3384_v10 = vadd.f32 %v10052_v38, %v10761_v31 }
0x109d   :  { %7106 = vtanh.f32 %v5196_v28 }
0x10a2   :  { %v5187_v0 = vpop.f32.mrf.mxu1 }
0x10a3   :  { %v7107_v39 = vpop.eup %7106  ;;  %v5197_v30 = vadd.f32 %v5187_v0, %v3378_v24  ;;  %v5211_v24 = vsub.f32 1.0, %v5149_v60  ;;  %v3145_v0 = vadd.f32 %v10007_v51, %v10762_v46 }
0x10a4   :  { %v5212_v18 = vmul.f32 %v7107_v39, %v5208_v45 }
0x10a5   :  { %7108 = vtanh.f32 %v5197_v30 }
0x10a6   :  { %v10157_v4 = vadd.f32 %v5212_v18, %v5204_v55  ;;  %v10763_v55 = vld [vmem:[#allocation34_spill] sm:$0xff] }
0x10a7   :  { %v3148_v18 = vadd.f32 %v10007_v51, %v10763_v55 }
0x10a8   :  { %6466 = vmatmul.msk.f32.vlgmr.msrb.gmra.mxu2 %vm642_vm2, %v10157_v4  ;;  %6474 = vmatmul.msk.f32.vlgmr.msrb.gmra.mxu3 %vm642_vm2, %v10157_v4 }
0x10aa   :  { %v5190_v50 = vpop.f32.mrf.mxu1 }
0x10ab   :  { %v7109_v49 = vpop.eup %7108  ;;  %v5198_v53 = vadd.f32 %v5190_v50, %v3381_v35  ;;  %v10764_v35 = vld [vmem:[#allocation35_spill] sm:$0xff] }
0x10ac   :  { %v5213_v21 = vmul.f32 %v7109_v49, %v5209_v33  ;;  %v3151_v17 = vadd.f32 %v10007_v51, %v10764_v35 }
0x10ad   :  { %7110 = vtanh.f32 %v5198_v53 }
0x10ae   :  { %v10173_v56 = vadd.f32 %v5213_v21, %v5205_v14 }
0x10b0   :  { %6467 = vmatmul.msk.f32.gmra.mxu2 %vm642_vm2, %v10173_v56  ;;  %6475 = vmatmul.msk.f32.gmra.mxu3 %vm642_vm2, %v10173_v56 }
0x10b3   :  { %v7111_v27 = vpop.eup %7110 }
0x10b4   :  { %v5214_v28 = vmul.f32 %v7111_v27, %v5210_v47  ;;  %v5193_v5 = vpop.f32.mrf.mxu1 }
0x10b5   :  { %v5199_v29 = vadd.f32 %v5193_v5, %v3384_v10 }
0x10b6   :  { %v10187_v62 = vadd.f32 %v5214_v28, %v5206_v63  ;;  %v5820_v63 = vld [vmem:[%s10600_s21 + $0x10] sm:$0xff] }
0x10b7   :  { %7112 = vtanh.f32 %v5199_v29  ;;  %5851 = vmatpush.msra.mxu0 %v5820_v63  ;;  %v10767_v63 = vld [vmem:[#allocation28_spill] sm:$0xff] }
0x10b8   :  { %6468 = vmatmul.msk.f32.gmra.mxu2 %vm642_vm2, %v10187_v62  ;;  %6476 = vmatmul.msk.f32.gmra.mxu3 %vm642_vm2, %v10187_v62 }
0x10b9   :  { %5852 = vmatpush.msra.mxu0 %v5819_v16 }
0x10bd   :  { %v7113_v13 = vpop.eup %7112 }
0x10be   :  { %v5215_v45 = vmul.f32 %v7113_v13, %v5211_v24 }
0x10c0   :  { %v10195_v23 = vadd.f32 %v5215_v45, %v5207_v48  ;;  %v5818_v48 = vld [vmem:[%s10600_s21] sm:$0xff] }
0x10c1   :  { %5853 = vmatpush.msra.mxu0 %v5818_v48 }
0x10c2   :  { %6469 = vmatmul.msk.f32.gmra.mxu2 %vm642_vm2, %v10195_v23  ;;  %6477 = vmatmul.msk.f32.gmra.mxu3 %vm642_vm2, %v10195_v23 }
0x112b   :  { %v5249_v39 = vpop.f32.mrf.mxu2 }
0x112c   :  { %v5261_v30 = vadd.f32 %v5249_v39, %v3145_v0 }
0x112e   :  { %v6470_v12 = vmul.f32 -1.442695, %v5261_v30 }
0x1130   :  { %7114 = vpow2.f32 %v6470_v12 }
0x1133   :  { %v5252_v6 = vpop.f32.mrf.mxu2 }
0x1134   :  { %v5262_v1 = vadd.f32 %v5252_v6, %v3148_v18 }
0x1136   :  { %v7115_v15 = vpop.eup %7114  ;;  %v6471_v42 = vmul.f32 -1.442695, %v5262_v1 }
0x1137   :  { %v5277_v25 = vadd.f32 1.0, %v7115_v15 }
0x1138   :  { %7116 = vpow2.f32 %v6471_v42 }
0x1139   :  { %7118 = vrcp.f32 %v5277_v25  ;;  %v5292_v57 = vand.u32 2147483648, %v5277_v25  ;;  %v5290_v47 = vand.u32 2147483647, %v5277_v25  ;;  %vm5286_vm5 = vweird.f32 %v5277_v25 }
0x113b   :  { %v5255_v44 = vpop.f32.mrf.mxu2  ;;  %v5293_v2 = vor.u32 1.1754944e-38, %v5292_v57  ;;  %vm5291_vm7 = vcmp.eq.f32.partialorder %v5290_v47, 8.507059e+37 }
0x113c   :  { %v5263_v33 = vadd.f32 %v5255_v44, %v3151_v17 }
0x113e   :  { %v7117_v19 = vpop.eup %7116  ;;  %v6472_v50 = vmul.f32 -1.442695, %v5263_v33 }
0x113f   :  { %v7119_v49 = vpop.eup %7118  ;;  %v5278_v53 = vadd.f32 1.0, %v7117_v19 }
0x1140   :  { %v5282_v14 = vmul.f32 %v7119_v49, %v5277_v25  ;;  %7120 = vpow2.f32 %v6472_v50  ;;  %vm5287_vm4 = vweird.f32 %v7119_v49 }
0x1141   :  { %7122 = vrcp.f32 %v5278_v53  ;;  %vm5288_vm6 = vmor %vm5286_vm5, %vm5287_vm4  ;;  %v5307_v45 = vand.u32 2147483648, %v5278_v53  ;;  %v5305_v0 = vand.u32 2147483647, %v5278_v53  ;;  %vm5301_vm9 = vweird.f32 %v5278_v53 }
0x1142   :  { %v5283_v21 = vsub.f32 1.0, %v5282_v14 }
0x1143   :  { %v5308_v12 = vor.u32 1.1754944e-38, %v5307_v45  ;;  %vm5306_vm1 = vcmp.eq.f32.partialorder %v5305_v0, 8.507059e+37  ;;  %v10774_v45 = vld [vmem:[#allocation37_spill] sm:$0xff] }
0x1144   :  { %v5284_v9 = vmul.f32 %v7119_v49, %v5283_v21 }
0x1145   :  { %v5258_v37 = vpop.f32.mrf.mxu2 }
0x1146   :  { %v7121_v27 = vpop.eup %7120  ;;  %v5285_v31 = vadd.f32 %v7119_v49, %v5284_v9  ;;  %v5264_v10 = vadd.f32 %v5258_v37, %v3154_v32 }
0x1147   :  { %v7123_v28 = vpop.eup %7122  ;;  %v5279_v51 = vadd.f32 1.0, %v7121_v27 }
0x1148   :  { %v5289_v5 = vsel %vm5288_vm6, %v7119_v49, %v5285_v31  ;;  %v5297_v29 = vmul.f32 %v7123_v28, %v5278_v53  ;;  %v6473_v7 = vmul.f32 -1.442695, %v5264_v10  ;;  %vm5302_vm8 = vweird.f32 %v7123_v28 }
0x1149   :  { %7124 = vrcp.f32 %v5279_v51  ;;  %v5294_v60 = vsel %vm5291_vm7, %v5293_v2, %v5289_v5  ;;  %vm5303_vm10 = vmor %vm5301_vm9, %vm5302_vm8  ;;  %v5322_v35 = vand.u32 2147483648, %v5279_v51  ;;  %v5320_v44 = vand.u32 2147483647, %v5279_v51  ;;  %v10769_v2 = vld [vmem:[#allocation25_spill] sm:$0xff]  ;;  %v5358_v5 = vpop.f32.mrf.mxu3 }
0x114a   :  { %v5298_v24 = vsub.f32 1.0, %v5297_v29  ;;  %7126 = vpow2.f32 %v6473_v7  ;;  %v5450_v13 = vmul.f32 %v5294_v60, %v10157_v4  ;;  %vm5316_vm12 = vweird.f32 %v5279_v51  ;;  %v10771_v29 = vld [vmem:[#allocation29_spill] sm:$0xff]  ;;  %v10772_v7 = vld [vmem:[#allocation20_spill] sm:$0xff] }
0x114b   :  { %v5323_v19 = vor.u32 1.1754944e-38, %v5322_v35  ;;  %vm5321_vm14 = vcmp.eq.f32.partialorder %v5320_v44, 8.507059e+37  ;;  %v3266_v16 = vadd.f32 %v10032_v8, %v10772_v7 }
0x114c   :  { %6482 = vmatmul.msk.f32.vlgmr.msrb.gmra.mxu0 %vm642_vm2, %v5450_v13  ;;  %v5299_v46 = vmul.f32 %v7123_v28, %v5298_v24  ;;  %v10773_v24 = vld [vmem:[#allocation31_spill] sm:$0xff] }
0x114d   :  { %v5370_v60 = vadd.f32 %v5358_v5, %v3266_v16  ;;  %v10779_v16 = vld [vmem:[#allocation39_spill] sm:$0xff] }
0x114e   :  { %v5300_v39 = vadd.f32 %v7123_v28, %v5299_v46  ;;  %v3269_v46 = vadd.f32 %v10032_v8, %v10774_v45 }
0x114f   :  { %v7125_v30 = vpop.eup %7124  ;;  %v6478_v48 = vmul.f32 -1.442695, %v5370_v60  ;;  %v3390_v60 = vadd.f32 %v10052_v38, %v10779_v16 }
0x1150   :  { %v7127_v55 = vpop.eup %7126  ;;  %v5312_v18 = vmul.f32 %v7125_v30, %v5279_v51  ;;  %v5304_v6 = vsel %vm5303_vm10, %v7123_v28, %v5300_v39  ;;  %vm5317_vm11 = vweird.f32 %v7125_v30  ;;  %v10768_v28 = vld [vmem:[#allocation30_spill] sm:$0xff]  ;;  %v10770_v51 = vld [vmem:[#allocation27_spill] sm:$0xff]  ;;  %v10775_v39 = vld [vmem:[#allocation32_spill] sm:$0xff] }
0x1151   :  { %v5280_v1 = vadd.f32 1.0, %v7127_v55  ;;  %v5309_v15 = vsel %vm5306_vm1, %v5308_v12, %v5304_v6  ;;  %vm5318_vm13 = vmor %vm5316_vm12, %vm5317_vm11  ;;  %v5361_v13 = vpop.f32.mrf.mxu3 }
0x1152   :  { %v5313_v42 = vsub.f32 1.0, %v5312_v18  ;;  %v5451_v25 = vmul.f32 %v5309_v15, %v10173_v56  ;;  %v5371_v0 = vadd.f32 %v5361_v13, %v3269_v46  ;;  %v10776_v18 = vld [vmem:[#allocation21_spill] sm:$0xff] }
0x1153   :  { %7128 = vrcp.f32 %v5280_v1  ;;  %v5337_v52 = vand.u32 2147483648, %v5280_v1  ;;  %v5335_v9 = vand.u32 2147483647, %v5280_v1  ;;  %vm5331_vm0 = vweird.f32 %v5280_v1 }
0x1154   :  { %6483 = vmatmul.msk.f32.gmra.mxu0 %vm642_vm2, %v5451_v25  ;;  %v5314_v17 = vmul.f32 %v7125_v30, %v5313_v42  ;;  %7130 = vpow2.f32 %v6478_v48  ;;  %v3272_v6 = vadd.f32 %v10032_v8, %v10776_v18 }
0x1155   :  { %v5338_v37 = vor.u32 1.1754944e-38, %v5337_v52  ;;  %vm5336_vm4 = vcmp.eq.f32.partialorder %v5335_v9, 8.507059e+37 }
0x1156   :  { %v5315_v33 = vadd.f32 %v7125_v30, %v5314_v17  ;;  %v10777_v17 = vld [vmem:[#allocation38_spill] sm:$0xff] }
0x1157   :  { %v3275_v44 = vadd.f32 %v10032_v8, %v10777_v17 }
0x1158   :  { %v5319_v50 = vsel %vm5318_vm13, %v7125_v30, %v5315_v33  ;;  %v6479_v30 = vmul.f32 -1.442695, %v5371_v0 }
0x1159   :  { %v7129_v49 = vpop.eup %7128  ;;  %v5324_v53 = vsel %vm5321_vm14, %v5323_v19, %v5319_v50  ;;  %v5364_v12 = vpop.f32.mrf.mxu3 }
0x115a   :  { %v5327_v14 = vmul.f32 %v7129_v49, %v5280_v1  ;;  %v5452_v21 = vmul.f32 %v5324_v53, %v10187_v62  ;;  %vm5332_vm15 = vweird.f32 %v7129_v49  ;;  %v7131_v55 = vpop.eup %7130  ;;  %7132 = vpow2.f32 %v6479_v30 }
0x115b   :  { %vm5333_vm3 = vmor %vm5331_vm0, %vm5332_vm15  ;;  %v5372_v1 = vadd.f32 %v5364_v12, %v3272_v6  ;;  %v5386_v15 = vadd.f32 1.0, %v7131_v55 }
0x115c   :  { %v5328_v57 = vsub.f32 1.0, %v5327_v14  ;;  %6484 = vmatmul.msk.f32.gmra.mxu0 %vm642_vm2, %v5452_v21 }
0x115d   :  { %v6480_v42 = vmul.f32 -1.442695, %v5372_v1  ;;  %7134 = vrcp.f32 %v5386_v15  ;;  %vm5395_vm6 = vweird.f32 %v5386_v15 }
0x115e   :  { %v5329_v32 = vmul.f32 %v7129_v49, %v5328_v57 }
0x115f   :  { %7136 = vpow2.f32 %v6480_v42  ;;  %v10296_v42 = vld [vmem:[%s10599_s20] ss:$0 sm:$0xff] }
0x1160   :  { %v5330_v47 = vadd.f32 %v7129_v49, %v5329_v32  ;;  %v7133_v25 = vpop.eup %7132 }
0x1161   :  { %v5367_v35 = vpop.f32.mrf.mxu3  ;;  %v5387_v33 = vadd.f32 1.0, %v7133_v25  ;;  %v3393_v25 = vadd.f32 %v10296_v42, %v9896_v22 }
0x1162   :  { %v5334_v27 = vsel %vm5333_vm3, %v7129_v49, %v5330_v47  ;;  %v5373_v19 = vadd.f32 %v5367_v35, %v3275_v44 }
0x1163   :  { %v5339_v31 = vsel %vm5336_vm4, %v5338_v37, %v5334_v27  ;;  %v7135_v50 = vpop.eup %7134  ;;  %7138 = vrcp.f32 %v5387_v33  ;;  %v10778_v27 = vld [vmem:[#allocation19_spill] sm:$0xff]  ;;  %vm5410_vm10 = vweird.f32 %v5387_v33  ;;  %v5414_v45 = vand.u32 2147483647, %v5387_v33 }
0x1164   :  { %v5453_v10 = vmul.f32 %v5339_v31, %v10195_v23  ;;  %v6481_v49 = vmul.f32 -1.442695, %v5373_v19  ;;  %v5391_v14 = vmul.f32 %v7135_v50, %v5386_v15  ;;  %vm5396_vm5 = vweird.f32 %v7135_v50 }
0x1165   :  { %v7137_v53 = vpop.eup %7136  ;;  %v5401_v31 = vand.u32 2147483648, %v5386_v15  ;;  %vm5397_vm7 = vmor %vm5395_vm6, %vm5396_vm5  ;;  %vm5415_vm11 = vcmp.eq.f32.partialorder %v5414_v45, 8.507059e+37  ;;  %vm5951_vm6 = vcmask 15360  }
0x1166   :  { %6485 = vmatmul.msk.f32.gmra.mxu0 %vm642_vm2, %v5453_v10  ;;  %v10257_v21 = vadd.f32 1.0, %v7137_v53  ;;  %7140 = vpow2.f32 %v6481_v49  ;;  %v5399_v10 = vand.u32 2147483647, %v5386_v15 }
0x1168   :  { %7142 = vrcp.f32 %v10257_v21  ;;  %vm5400_vm8 = vcmp.eq.f32.partialorder %v5399_v10, 8.507059e+37  ;;  %vm5425_vm13 = vweird.f32 %v10257_v21  ;;  %v5429_v44 = vand.u32 2147483647, %v10257_v21 }
0x1169   :  { %v7139_v57 = vpop.eup %7138 }
0x116a   :  { %v5406_v52 = vmul.f32 %v7139_v57, %v5387_v33  ;;  %vm5411_vm9 = vweird.f32 %v7139_v57  ;;  %vm5430_vm15 = vcmp.eq.f32.partialorder %v5429_v44, 8.507059e+37 }
0x116b   :  { %vm5412_vm1 = vmor %vm5410_vm10, %vm5411_vm9 }
0x116c   :  { %v7141_v32 = vpop.eup %7140 }
0x116d   :  { %v10264_v9 = vadd.f32 1.0, %v7141_v32 }
0x116e   :  { %6506 = vmatmul.msk.f32.vlgmr.msra.gmra.mxu0 %vm642_vm2, %v10766_v61  ;;  %v10266_v37 = vpop.eup %7142 }
0x116f   :  { %7144 = vrcp.f32 %v10264_v9  ;;  %vm5426_vm12 = vweird.f32 %v10266_v37  ;;  %vm5440_vm3 = vweird.f32 %v10264_v9 }
0x1170   :  { %vm5427_vm14 = vmor %vm5425_vm13, %vm5426_vm12 }
0x1175   :  { %v10277_v13 = vpop.eup %7144 }
0x1176   :  { %6507 = vmatmul.msk.f32.gmra.mxu0 %vm642_vm2, %v10767_v63  ;;  %vm5441_vm0 = vweird.f32 %v10277_v13 }
0x1177   :  { %vm5442_vm4 = vmor %vm5440_vm3, %vm5441_vm0 }
0x117e   :  { %6508 = vmatmul.msk.f32.gmra.mxu0 %vm642_vm2, %v10768_v28 }
0x1186   :  { %6509 = vmatmul.msk.f32.gmra.mxu0 %vm642_vm2, %v10769_v2 }
0x118e   :  { %6510 = vmatmul.msk.f32.gmra.mxu0 %vm642_vm2, %v10770_v51  ;;  %v5402_v51 = vor.u32 1.1754944e-38, %v5401_v31 }
0x1196   :  { %6511 = vmatmul.msk.f32.gmra.mxu0 %vm642_vm2, %v10771_v29 }
0x119e   :  { %6512 = vmatmul.msk.f32.gmra.mxu0 %vm642_vm2, %v10773_v24  ;;  %v5416_v24 = vand.u32 2147483648, %v5387_v33 }
0x11a0   :  { %v5417_v18 = vor.u32 1.1754944e-38, %v5416_v24 }
0x11a6   :  { %6513 = vmatmul.msk.f32.gmra.mxu0 %vm642_vm2, %v10775_v39 }
0x11ae   :  { %6514 = vmatmul.msk.f32.gmra.mxu0 %vm642_vm2, %v9740_v41  ;;  %v5392_v41 = vsub.f32 1.0, %v5391_v14 }
0x11b0   :  { %v5393_v8 = vmul.f32 %v7135_v50, %v5392_v41 }
0x11b2   :  { %v5394_v47 = vadd.f32 %v7135_v50, %v5393_v8 }
0x11b4   :  { %v5398_v2 = vsel %vm5397_vm7, %v7135_v50, %v5394_v47 }
0x11b5   :  { %v5403_v5 = vsel %vm5400_vm8, %v5402_v51, %v5398_v2 }
0x11b6   :  { %6515 = vmatmul.msk.f32.gmra.mxu0 %vm642_vm2, %v9775_v40  ;;  %v5407_v40 = vsub.f32 1.0, %v5406_v52  ;;  %v5507_v48 = vsub.f32 1.0, %v5403_v5 }
0x11b8   :  { %v5408_v28 = vmul.f32 %v7139_v57, %v5407_v40  ;;  %v10780_v40 = vld [vmem:[#allocation40_spill] sm:$0xff] }
0x11b9   :  { %v3396_v47 = vadd.f32 %v10296_v42, %v10780_v40  ;;  %v10784_v40 = vld [vmem:[#allocation15_spill] sm:$0xff] }
0x11ba   :  { %v5409_v7 = vadd.f32 %v7139_v57, %v5408_v28 }
0x11bc   :  { %v5413_v55 = vsel %vm5412_vm1, %v7139_v57, %v5409_v7 }
0x11bd   :  { %v5418_v1 = vsel %vm5415_vm11, %v5417_v18, %v5413_v55 }
0x11be   :  { %6516 = vmatmul.msk.f32.gmra.mxu0 %vm642_vm2, %v9795_v58  ;;  %v3387_v58 = vadd.f32 %v10052_v38, %v10778_v27  ;;  %v5436_v38 = vmul.f32 %v10277_v13, %v10264_v9  ;;  %v5508_v17 = vsub.f32 1.0, %v5418_v1  ;;  %v5504_v49 = vmul.f32 %v5418_v1, %v10173_v56 }
0x11c0   :  { %v5437_v35 = vsub.f32 1.0, %v5436_v38 }
0x11c2   :  { %v5438_v22 = vmul.f32 %v10277_v13, %v5437_v35 }
0x11c4   :  { %v5439_v52 = vadd.f32 %v10277_v13, %v5438_v22 }
0x11c6   :  { %6517 = vmatmul.msk.f32.gmra.mxu0 %vm642_vm2, %v9804_v36  ;;  %v5421_v36 = vmul.f32 %v10266_v37, %v10257_v21 }
0x11c8   :  { %v5422_v29 = vsub.f32 1.0, %v5421_v36  ;;  %v10334_v36 = vld [vmem:[%s10601_s22] ss:$0 sm:$0xff] }
0x11c9   :  { %v5483_v61 = vpop.f32.mrf.mxu0 }
0x11ca   :  { %v5495_v63 = vadd.f32 %v5483_v61, %v3387_v58  ;;  %v5423_v30 = vmul.f32 %v10266_v37, %v5422_v29  ;;  %v5444_v58 = vand.u32 2147483647, %v10264_v9 }
0x11cc   :  { %7146 = vtanh.f32 %v5495_v63  ;;  %v5424_v15 = vadd.f32 %v10266_v37, %v5423_v30  ;;  %v5443_v63 = vsel %vm5442_vm4, %v10277_v13, %v5439_v52  ;;  %vm5445_vm5 = vcmp.eq.f32.partialorder %v5444_v58, 8.507059e+37 }
0x11ce   :  { %6518 = vmatmul.msk.f32.gmra.mxu0 %vm642_vm2, %v9938_v59  ;;  %v5503_v59 = vmul.f32 %v5403_v5, %v10157_v4  ;;  %v5428_v14 = vsel %vm5427_vm14, %v10266_v37, %v5424_v15  ;;  %v5446_v37 = vand.u32 2147483648, %v10264_v9 }
0x11d0   :  { %v5447_v28 = vor.u32 1.1754944e-38, %v5446_v37 }
0x11d1   :  { %v5486_v46 = vpop.f32.mrf.mxu0 }
0x11d2   :  { %v7147_v0 = vpop.eup %7146  ;;  %v5496_v39 = vadd.f32 %v5486_v46, %v3390_v60  ;;  %v5448_v9 = vsel %vm5445_vm5, %v5447_v28, %v5443_v63 }
0x11d3   :  { %v5511_v12 = vmul.f32 %v7147_v0, %v5507_v48  ;;  %v5510_v2 = vsub.f32 1.0, %v5448_v9 }
0x11d4   :  { %7148 = vtanh.f32 %v5496_v39 }
0x11d5   :  { %v10283_v6 = vadd.f32 %v5511_v12, %v5503_v59 }
0x11d6   :  { %6519 = vmatmul.msk.f32.gmra.mxu0 %vm642_vm2, %v9972_v20  ;;  %v5431_v20 = vand.u32 2147483648, %v10257_v21 }
0x11d7   :  { %6486 = vmatmul.msk.f32.vlgmr.msra.gmra.mxu1 %vm642_vm2, %v10283_v6  ;;  %6494 = vmatmul.msk.f32.vlgmr.msra.gmra.mxu2 %vm642_vm2, %v10283_v6 }
0x11d8   :  { %v5432_v41 = vor.u32 1.1754944e-38, %v5431_v20  ;;  %v10782_v20 = vld [vmem:[#allocation13_spill] sm:$0xff] }
0x11d9   :  { %v5489_v33 = vpop.f32.mrf.mxu0 }
0x11da   :  { %v7149_v19 = vpop.eup %7148  ;;  %v5497_v50 = vadd.f32 %v5489_v33, %v3393_v25  ;;  %v5433_v8 = vsel %vm5430_vm15, %v5432_v41, %v5428_v14  ;;  %v7256_v25 = vld [vmem:[%s10593_s14] ss:$0 sm:$0xff] }
0x11db   :  { %v5512_v53 = vmul.f32 %v7149_v19, %v5508_v17  ;;  %v5509_v21 = vsub.f32 1.0, %v5433_v8  ;;  %v3157_v35 = vadd.f32 %v7256_v25, %v10782_v20 }
0x11dc   :  { %7150 = vtanh.f32 %v5497_v50 }
0x11dd   :  { %v10306_v57 = vadd.f32 %v5512_v53, %v5504_v49  ;;  %v10783_v49 = vld [vmem:[#allocation14_spill] sm:$0xff] }
0x11de   :  { %6520 = vmatmul.msk.f32.gmra.mxu0 %vm642_vm2, %v9991_v34  ;;  %v5505_v34 = vmul.f32 %v5433_v8, %v10187_v62  ;;  %v3160_v53 = vadd.f32 %v7256_v25, %v10783_v49 }
0x11df   :  { %6487 = vmatmul.msk.f32.gmra.mxu1 %vm642_vm2, %v10306_v57  ;;  %6495 = vmatmul.msk.f32.gmra.mxu2 %vm642_vm2, %v10306_v57 }
0x11e2   :  { %v7151_v32 = vpop.eup %7150 }
0x11e3   :  { %v5513_v27 = vmul.f32 %v7151_v32, %v5509_v21  ;;  %v5492_v31 = vpop.f32.mrf.mxu0 }
0x11e4   :  { %v5498_v10 = vadd.f32 %v5492_v31, %v3396_v47  ;;  %v3163_v47 = vadd.f32 %v7256_v25, %v10784_v40 }
0x11e5   :  { %v10322_v61 = vadd.f32 %v5513_v27, %v5505_v34 }
0x11e6   :  { %7152 = vtanh.f32 %v5498_v10  ;;  %6521 = vmatmul.msk.f32.gmra.mxu0 %vm642_vm2, %v9998_v3  ;;  %v5506_v3 = vmul.f32 %v5448_v9, %v10195_v23 }
0x11e7   :  { %6488 = vmatmul.msk.f32.gmra.mxu1 %vm642_vm2, %v10322_v61  ;;  %6496 = vmatmul.msk.f32.gmra.mxu2 %vm642_vm2, %v10322_v61 }
0x11eb   :  { %v5855_v51 = vpop.f32.mrf.mxu0 }
0x11ec   :  { %v7153_v5 = vpop.eup %7152  ;;  %v5856_v29 = vadd.f32 %v10334_v36, %v5855_v51 }
0x11ed   :  { %v5514_v7 = vmul.f32 %v7153_v5, %v5510_v2 }
0x11ee   :  { %5952 = vst.msk [vmem:[%s10781_s16] sm:$0xff] %vm5951_vm6, %v5856_v29  ;;  %6522 = vmatmul.msk.f32.gmra.mxu0 %vm642_vm2, %v10067_v54 }
0x11ef   :  { %v10344_v16 = vadd.f32 %v5514_v7, %v5506_v3  ;;  %v10785_v3 = vld [vmem:[#allocation36_spill] sm:$0xff] }
0x11f0   :  { %v3166_v7 = vadd.f32 %v7256_v25, %v10785_v3 }
0x11f1   :  { %6489 = vmatmul.msk.f32.gmra.mxu1 %vm642_vm2, %v10344_v16  ;;  %6497 = vmatmul.msk.f32.gmra.mxu2 %vm642_vm2, %v10344_v16 }
0x11f3   :  { %v5858_v60 = vpop.f32.mrf.mxu0 }
0x11f4   :  { %v5859_v24 = vadd.f32 %v10334_v36, %v5858_v60 }
0x11f6   :  { %5953 = vst.msk [vmem:[%s10781_s16 + $0x8] sm:$0xff] %vm5951_vm6, %v5859_v24  ;;  %6523 = vmatmul.msk.f32.gmra.mxu0 %vm642_vm2, %v10084_v43 }
0x11fb   :  { %v5861_v54 = vpop.f32.mrf.mxu0 }
0x11fc   :  { %v5862_v13 = vadd.f32 %v10334_v36, %v5861_v54 }
0x11fe   :  { %5954 = vst.msk [vmem:[%s10781_s16 + $0x10] sm:$0xff] %vm5951_vm6, %v5862_v13  ;;  %6524 = vmatmul.msk.f32.gmra.mxu0 %vm642_vm2, %v10099_v26 }
0x1203   :  { %v5864_v48 = vpop.f32.mrf.mxu0 }
0x1204   :  { %v5865_v45 = vadd.f32 %v10334_v36, %v5864_v48 }
0x1206   :  { %5955 = vst.msk [vmem:[%s10781_s16 + $0x18] sm:$0xff] %vm5951_vm6, %v5865_v45  ;;  %6525 = vmatmul.msk.f32.gmra.mxu0 %vm642_vm2, %v10107_v11 }
0x120b   :  { %v5867_v43 = vpop.f32.mrf.mxu0 }
0x120c   :  { %v5868_v46 = vadd.f32 %v10334_v36, %v5867_v43 }
0x120e   :  { %5956 = vst.msk [vmem:[%s10781_s16 + $0x20] sm:$0xff] %vm5951_vm6, %v5868_v46  ;;  %6526 = vmatmul.msk.f32.gmra.mxu0 %vm642_vm2, %v10157_v4 }
0x1213   :  { %v5870_v26 = vpop.f32.mrf.mxu0 }
0x1214   :  { %v5871_v0 = vadd.f32 %v10334_v36, %v5870_v26 }
0x1216   :  { %5957 = vst.msk [vmem:[%s10781_s16 + $0x28] sm:$0xff] %vm5951_vm6, %v5871_v0  ;;  %6527 = vmatmul.msk.f32.gmra.mxu0 %vm642_vm2, %v10173_v56 }
0x121b   :  { %v5873_v11 = vpop.f32.mrf.mxu0 }
0x121c   :  { %v5874_v39 = vadd.f32 %v10334_v36, %v5873_v11 }
0x121e   :  { %5958 = vst.msk [vmem:[%s10781_s16 + $0x30] sm:$0xff] %vm5951_vm6, %v5874_v39  ;;  %6528 = vmatmul.msk.f32.gmra.mxu0 %vm642_vm2, %v10187_v62 }
0x1223   :  { %v5876_v4 = vpop.f32.mrf.mxu0 }
0x1224   :  { %v5877_v30 = vadd.f32 %v10334_v36, %v5876_v4 }
0x1226   :  { %5959 = vst.msk [vmem:[%s10781_s16 + $0x38] sm:$0xff] %vm5951_vm6, %v5877_v30  ;;  %6529 = vmatmul.msk.f32.gmra.mxu0 %vm642_vm2, %v10195_v23 }
0x122b   :  { %v5879_v56 = vpop.f32.mrf.mxu0 }
0x122c   :  { %v5880_v59 = vadd.f32 %v10334_v36, %v5879_v56 }
0x122e   :  { %5960 = vst.msk [vmem:[%s10781_s16 + $0x40] sm:$0xff] %vm5951_vm6, %v5880_v59  ;;  %6530 = vmatmul.msk.f32.gmra.mxu0 %vm642_vm2, %v10283_v6 }
0x1233   :  { %v5882_v62 = vpop.f32.mrf.mxu0 }
0x1234   :  { %v5883_v12 = vadd.f32 %v10334_v36, %v5882_v62 }
0x1236   :  { %5961 = vst.msk [vmem:[%s10781_s16 + $0x48] sm:$0xff] %vm5951_vm6, %v5883_v12  ;;  %6531 = vmatmul.msk.f32.gmra.mxu0 %vm642_vm2, %v10306_v57 }
0x123b   :  { %v5885_v23 = vpop.f32.mrf.mxu0 }
0x123c   :  { %v5886_v55 = vadd.f32 %v10334_v36, %v5885_v23 }
0x123e   :  { %5962 = vst.msk [vmem:[%s10781_s16 + $0x50] sm:$0xff] %vm5951_vm6, %v5886_v55  ;;  %6532 = vmatmul.msk.f32.gmra.mxu0 %vm642_vm2, %v10322_v61 }
0x1243   :  { %v5888_v18 = vpop.f32.mrf.mxu0 }
0x1244   :  { %v5889_v38 = vadd.f32 %v10334_v36, %v5888_v18 }
0x1246   :  { %5963 = vst.msk [vmem:[%s10781_s16 + $0x58] sm:$0xff] %vm5951_vm6, %v5889_v38  ;;  %6533 = vmatmul.msk.f32.gmra.mxu0 %vm642_vm2, %v10344_v16 }
0x124b   :  { %v5891_v1 = vpop.f32.mrf.mxu0 }
0x124c   :  { %v5892_v15 = vadd.f32 %v10334_v36, %v5891_v1 }
0x124e   :  { %5964 = vst.msk [vmem:[%s10781_s16 + $0x60] sm:$0xff] %vm5951_vm6, %v5892_v15 }
0x1253   :  { %v5894_v17 = vpop.f32.mrf.mxu0 }
0x1254   :  { %v5895_v44 = vadd.f32 %v10334_v36, %v5894_v17  ;;  %v5548_v33 = vpop.f32.mrf.mxu1 }
0x1255   :  { %v5560_v19 = vadd.f32 %v5548_v33, %v3157_v35 }
0x1256   :  { %5965 = vst.msk [vmem:[%s10781_s16 + $0x68] sm:$0xff] %vm5951_vm6, %v5895_v44 }
0x1257   :  { %v6490_v50 = vmul.f32 -1.442695, %v5560_v19 }
0x1259   :  { %7154 = vpow2.f32 %v6490_v50 }
0x125b   :  { %v5897_v14 = vpop.f32.mrf.mxu0 }
0x125c   :  { %v5898_v41 = vadd.f32 %v10334_v36, %v5897_v14  ;;  %v5551_v22 = vpop.f32.mrf.mxu1 }
0x125d   :  { %v5561_v8 = vadd.f32 %v5551_v22, %v3160_v53 }
0x125e   :  { %5966 = vst.msk [vmem:[%s10781_s16 + $0x70] sm:$0xff] %vm5951_vm6, %v5898_v41 }
0x125f   :  { %v7155_v21 = vpop.eup %7154  ;;  %v6491_v52 = vmul.f32 -1.442695, %v5561_v8 }
0x1260   :  { %v5576_v32 = vadd.f32 1.0, %v7155_v21 }
0x1261   :  { %7156 = vpow2.f32 %v6491_v52 }
0x1262   :  { %7158 = vrcp.f32 %v5576_v32  ;;  %v5591_v5 = vand.u32 2147483648, %v5576_v32  ;;  %v5589_v24 = vand.u32 2147483647, %v5576_v32  ;;  %vm5585_vm8 = vweird.f32 %v5576_v32 }
0x1263   :  { %v5900_v37 = vpop.f32.mrf.mxu0 }
0x1264   :  { %v5901_v34 = vadd.f32 %v10334_v36, %v5900_v37  ;;  %v5554_v27 = vpop.f32.mrf.mxu1  ;;  %v5592_v46 = vor.u32 1.1754944e-38, %v5591_v5  ;;  %vm5590_vm10 = vcmp.eq.f32.partialorder %v5589_v24, 8.507059e+37 }
0x1265   :  { %v5562_v58 = vadd.f32 %v5554_v27, %v3163_v47 }
0x1266   :  { %5967 = vst.msk [vmem:[%s10781_s16 + $0x78] sm:$0xff] %vm5951_vm6, %v5901_v34 }
0x1267   :  { %v7157_v31 = vpop.eup %7156  ;;  %v6492_v10 = vmul.f32 -1.442695, %v5562_v58 }
0x1268   :  { %v7159_v63 = vpop.eup %7158  ;;  %v5577_v28 = vadd.f32 1.0, %v7157_v31 }
0x1269   :  { %v5581_v9 = vmul.f32 %v7159_v63, %v5576_v32  ;;  %7160 = vpow2.f32 %v6492_v10  ;;  %vm5586_vm7 = vweird.f32 %v7159_v63 }
0x126a   :  { %7162 = vrcp.f32 %v5577_v28  ;;  %vm5587_vm9 = vmor %vm5585_vm8, %vm5586_vm7  ;;  %v5606_v12 = vand.u32 2147483648, %v5577_v28  ;;  %v5604_v55 = vand.u32 2147483647, %v5577_v28  ;;  %vm5600_vm11 = vweird.f32 %v5577_v28 }
0x126b   :  { %v5582_v2 = vsub.f32 1.0, %v5581_v9  ;;  %v5903_v51 = vpop.f32.mrf.mxu0 }
0x126c   :  { %v5904_v29 = vadd.f32 %v10334_v36, %v5903_v51  ;;  %v5607_v1 = vor.u32 1.1754944e-38, %v5606_v12  ;;  %vm5605_vm13 = vcmp.eq.f32.partialorder %v5604_v55, 8.507059e+37 }
0x126d   :  { %v5583_v60 = vmul.f32 %v7159_v63, %v5582_v2 }
0x126e   :  { %5968 = vst.msk [vmem:[%s10781_s16 + $0x80] sm:$0xff] %vm5951_vm6, %v5904_v29  ;;  %v5557_v54 = vpop.f32.mrf.mxu1 }
0x126f   :  { %v7161_v13 = vpop.eup %7160  ;;  %v5584_v48 = vadd.f32 %v7159_v63, %v5583_v60  ;;  %v5563_v45 = vadd.f32 %v5557_v54, %v3166_v7 }
0x1270   :  { %v7163_v43 = vpop.eup %7162  ;;  %v5578_v26 = vadd.f32 1.0, %v7161_v13 }
0x1271   :  { %v5588_v0 = vsel %vm5587_vm9, %v7159_v63, %v5584_v48  ;;  %v5596_v11 = vmul.f32 %v7163_v43, %v5577_v28  ;;  %v6493_v39 = vmul.f32 -1.442695, %v5563_v45  ;;  %vm5601_vm1 = vweird.f32 %v7163_v43 }
0x1272   :  { %7164 = vrcp.f32 %v5578_v26  ;;  %v5593_v4 = vsel %vm5590_vm10, %v5592_v46, %v5588_v0  ;;  %vm5602_vm12 = vmor %vm5600_vm11, %vm5601_vm1  ;;  %v5621_v49 = vand.u32 2147483648, %v5578_v26  ;;  %v5619_v14 = vand.u32 2147483647, %v5578_v26 }
0x1273   :  { %v5597_v30 = vsub.f32 1.0, %v5596_v11  ;;  %7166 = vpow2.f32 %v6493_v39  ;;  %v5906_v56 = vpop.f32.mrf.mxu0  ;;  %v5749_v59 = vmul.f32 %v5593_v4, %v10283_v6  ;;  %vm5615_vm15 = vweird.f32 %v5578_v26  ;;  %v5657_v11 = vpop.f32.mrf.mxu2  ;;  %v7257_v4 = vld [vmem:[%s10596_s17] ss:$0 sm:$0xff] }
0x1274   :  { %v5907_v62 = vadd.f32 %v10334_v36, %v5906_v56  ;;  %v5622_v22 = vor.u32 1.1754944e-38, %v5621_v49  ;;  %vm5620_vm3 = vcmp.eq.f32.partialorder %v5619_v14, 8.507059e+37 }
0x1275   :  { %6502 = vmatmul.msk.f32.vlgmr.msra.gmra.mxu3 %vm642_vm2, %v5749_v59  ;;  %v5598_v23 = vmul.f32 %v7163_v43, %v5597_v30  ;;  %v10786_v30 = vld [vmem:[#allocation22_spill] sm:$0xff] }
0x1276   :  { %5969 = vst.msk [vmem:[%s10781_s16 + $0x88] sm:$0xff] %vm5951_vm6, %v5907_v62  ;;  %v3278_v56 = vadd.f32 %v7257_v4, %v10786_v30 }
0x1277   :  { %v5599_v18 = vadd.f32 %v7163_v43, %v5598_v23  ;;  %v10787_v23 = vld [vmem:[#allocation23_spill] sm:$0xff] }
0x1278   :  { %v7165_v38 = vpop.eup %7164  ;;  %v5669_v59 = vadd.f32 %v5657_v11, %v3278_v56  ;;  %v3281_v55 = vadd.f32 %v7257_v4, %v10787_v23 }
0x1279   :  { %v7167_v15 = vpop.eup %7166  ;;  %v5611_v25 = vmul.f32 %v7165_v38, %v5578_v26  ;;  %v5603_v20 = vsel %vm5602_vm12, %v7163_v43, %v5599_v18  ;;  %vm5616_vm14 = vweird.f32 %v7165_v38 }
0x127a   :  { %v5579_v35 = vadd.f32 1.0, %v7167_v15  ;;  %v5608_v17 = vsel %vm5605_vm13, %v5607_v1, %v5603_v20  ;;  %vm5617_vm0 = vmor %vm5615_vm15, %vm5616_vm14  ;;  %v6498_v12 = vmul.f32 -1.442695, %v5669_v59 }
0x127b   :  { %v5612_v44 = vsub.f32 1.0, %v5611_v25  ;;  %v5909_v33 = vpop.f32.mrf.mxu0  ;;  %v5750_v19 = vmul.f32 %v5608_v17, %v10306_v57  ;;  %v5660_v62 = vpop.f32.mrf.mxu2  ;;  %v10788_v25 = vld [vmem:[#allocation16_spill] sm:$0xff] }
0x127c   :  { %7168 = vrcp.f32 %v5579_v35  ;;  %v5910_v50 = vadd.f32 %v10334_v36, %v5909_v33  ;;  %v5636_v27 = vand.u32 2147483648, %v5579_v35  ;;  %v5634_v31 = vand.u32 2147483647, %v5579_v35 }
0x127d   :  { %6503 = vmatmul.msk.f32.gmra.mxu3 %vm642_vm2, %v5750_v19  ;;  %v5613_v53 = vmul.f32 %v7165_v38, %v5612_v44  ;;  %vm5630_vm5 = vweird.f32 %v5579_v35  ;;  %7170 = vpow2.f32 %v6498_v12  ;;  %v5670_v18 = vadd.f32 %v5660_v62, %v3281_v55 }
0x127e   :  { %5970 = vst.msk [vmem:[%s10781_s16 + $0x90] sm:$0xff] %vm5951_vm6, %v5910_v50  ;;  %v5637_v63 = vor.u32 1.1754944e-38, %v5636_v27  ;;  %vm5635_vm8 = vcmp.eq.f32.partialorder %v5634_v31, 8.507059e+37  ;;  %v3284_v20 = vadd.f32 %v7257_v4, %v10788_v25  ;;  %v10789_v50 = vld [vmem:[#allocation17_spill] sm:$0xff] }
0x127f   :  { %v5614_v41 = vadd.f32 %v7165_v38, %v5613_v53  ;;  %v3287_v49 = vadd.f32 %v7257_v4, %v10789_v50 }
0x1281   :  { %v5618_v8 = vsel %vm5617_vm0, %v7165_v38, %v5614_v41  ;;  %v6499_v38 = vmul.f32 -1.442695, %v5670_v18 }
0x1282   :  { %v7169_v21 = vpop.eup %7168  ;;  %v5623_v52 = vsel %vm5620_vm3, %v5622_v22, %v5618_v8 }
0x1283   :  { %v5626_v32 = vmul.f32 %v7169_v21, %v5579_v35  ;;  %v5912_v40 = vpop.f32.mrf.mxu0  ;;  %v5751_v47 = vmul.f32 %v5623_v52, %v10322_v61  ;;  %vm5631_vm4 = vweird.f32 %v7169_v21  ;;  %v5663_v1 = vpop.f32.mrf.mxu2  ;;  %7172 = vpow2.f32 %v6499_v38 }
0x1284   :  { %v5913_v37 = vadd.f32 %v10334_v36, %v5912_v40  ;;  %vm5632_vm7 = vmor %vm5630_vm5, %vm5631_vm4  ;;  %v7171_v15 = vpop.eup %7170  ;;  %v5671_v35 = vadd.f32 %v5663_v1, %v3284_v20  ;;  %v10792_v1 = vld [vmem:[#allocation24_spill] sm:$0xff] }
0x1285   :  { %v5627_v34 = vsub.f32 1.0, %v5626_v32  ;;  %6504 = vmatmul.msk.f32.gmra.mxu3 %vm642_vm2, %v5751_v47  ;;  %v5685_v17 = vadd.f32 1.0, %v7171_v15  ;;  %v3405_v15 = vadd.f32 %v10296_v42, %v10792_v1 }
0x1286   :  { %5971 = vst.msk [vmem:[%s10781_s16 + $0x98] sm:$0xff] %vm5951_vm6, %v5913_v37  ;;  %v6500_v44 = vmul.f32 -1.442695, %v5671_v35 }
0x1287   :  { %v5628_v58 = vmul.f32 %v7169_v21, %v5627_v34  ;;  %7174 = vrcp.f32 %v5685_v17  ;;  %vm5694_vm10 = vweird.f32 %v5685_v17 }
0x1288   :  { %7176 = vpow2.f32 %v6500_v44 }
0x1289   :  { %v5629_v10 = vadd.f32 %v7169_v21, %v5628_v58  ;;  %v7173_v33 = vpop.eup %7172 }
0x128a   :  { %v5686_v53 = vadd.f32 1.0, %v7173_v33 }
0x128b   :  { %v5915_v28 = vpop.f32.mrf.mxu0  ;;  %v5633_v9 = vsel %vm5632_vm7, %v7169_v21, %v5629_v10  ;;  %v5666_v19 = vpop.f32.mrf.mxu2 }
0x128c   :  { %v5916_v2 = vadd.f32 %v10334_v36, %v5915_v28  ;;  %v5638_v51 = vsel %vm5635_vm8, %v5637_v63, %v5633_v9  ;;  %v5672_v14 = vadd.f32 %v5666_v19, %v3287_v49  ;;  %7178 = vrcp.f32 %v5686_v53  ;;  %v10790_v63 = vld [vmem:[#allocation41_spill] sm:$0xff] }
0x128d   :  { %v5752_v5 = vmul.f32 %v5638_v51, %v10344_v16  ;;  %v7175_v41 = vpop.eup %7174  ;;  %v3399_v28 = vadd.f32 %v10296_v42, %v10790_v63  ;;  %v5700_v9 = vand.u32 2147483648, %v5685_v17  ;;  %vm5709_vm13 = vweird.f32 %v5686_v53 }
0x128e   :  { %5972 = vst.msk [vmem:[%s10781_s16 + $0xa0] sm:$0xff] %vm5951_vm6, %v5916_v2  ;;  %v6501_v22 = vmul.f32 -1.442695, %v5672_v14  ;;  %v7177_v8 = vpop.eup %7176  ;;  %v5690_v21 = vmul.f32 %v7175_v41, %v5685_v17  ;;  %vm5695_vm9 = vweird.f32 %v7175_v41  ;;  %v5698_v2 = vand.u32 2147483647, %v5685_v17 }
0x128f   :  { %6505 = vmatmul.msk.f32.gmra.mxu3 %vm642_vm2, %v5752_v5  ;;  %v10529_v52 = vadd.f32 1.0, %v7177_v8  ;;  %vm5696_vm1 = vmor %vm5694_vm10, %vm5695_vm9 }
0x1290   :  { %7180 = vpow2.f32 %v6501_v22  ;;  %v5691_v32 = vsub.f32 1.0, %v5690_v21  ;;  %vm5699_vm11 = vcmp.eq.f32.partialorder %v5698_v2, 8.507059e+37 }
0x1291   :  { %7182 = vrcp.f32 %v10529_v52  ;;  %v5730_v25 = vand.u32 2147483648, %v10529_v52  ;;  %vm5724_vm3 = vweird.f32 %v10529_v52  ;;  %v5728_v35 = vand.u32 2147483647, %v10529_v52 }
0x1292   :  { %v7179_v40 = vpop.eup %7178  ;;  %v5692_v47 = vmul.f32 %v7175_v41, %v5691_v32  ;;  %v10793_v32 = vld [vmem:[#allocation43_spill] sm:$0xff] }
0x1293   :  { %v5918_v29 = vpop.f32.mrf.mxu0  ;;  %v5705_v37 = vmul.f32 %v7179_v40, %v5686_v53  ;;  %vm5710_vm12 = vweird.f32 %v7179_v40  ;;  %vm5729_vm5 = vcmp.eq.f32.partialorder %v5728_v35, 8.507059e+37 }
0x1294   :  { %v5919_v3 = vadd.f32 %v10334_v36, %v5918_v29  ;;  %v5693_v31 = vadd.f32 %v7175_v41, %v5692_v47  ;;  %vm5711_vm14 = vmor %vm5709_vm13, %vm5710_vm12 }
0x1295   :  { %v5706_v27 = vsub.f32 1.0, %v5705_v37 }
0x1296   :  { %5973 = vst.msk [vmem:[%s10781_s16 + $0xa8] sm:$0xff] %vm5951_vm6, %v5919_v3  ;;  %v7181_v34 = vpop.eup %7180 }
0x1297   :  { %v10532_v58 = vadd.f32 1.0, %v7181_v34  ;;  %v7183_v10 = vpop.eup %7182  ;;  %v5707_v29 = vmul.f32 %v7179_v40, %v5706_v27 }
0x1298   :  { %v5720_v3 = vmul.f32 %v7183_v10, %v10529_v52  ;;  %vm5725_vm0 = vweird.f32 %v7183_v10 }
0x1299   :  { %7184 = vrcp.f32 %v10532_v58  ;;  %vm5726_vm4 = vmor %vm5724_vm3, %vm5725_vm0  ;;  %v5745_v47 = vand.u32 2147483648, %v10532_v58  ;;  %vm5739_vm8 = vweird.f32 %v10532_v58  ;;  %v5743_v37 = vand.u32 2147483647, %v10532_v58 }
0x129b   :  { %v5921_v7 = vpop.f32.mrf.mxu0  ;;  %vm5744_vm10 = vcmp.eq.f32.partialorder %v5743_v37, 8.507059e+37 }
0x129c   :  { %v5922_v60 = vadd.f32 %v10334_v36, %v5921_v7  ;;  %v5697_v7 = vsel %vm5696_vm1, %v7175_v41, %v5693_v31 }
0x129e   :  { %5974 = vst.msk [vmem:[%s10781_s16 + $0xb0] sm:$0xff] %vm5951_vm6, %v5922_v60  ;;  %v5701_v60 = vor.u32 1.1754944e-38, %v5700_v9 }
0x12a3   :  { %v5924_v24 = vpop.f32.mrf.mxu0 }
0x12a4   :  { %v5925_v54 = vadd.f32 %v10334_v36, %v5924_v24  ;;  %v5702_v24 = vsel %vm5699_vm11, %v5701_v60, %v5697_v7 }
0x12a5   :  { %v5802_v62 = vmul.f32 %v5702_v24, %v10283_v6 }
0x12a6   :  { %5975 = vst.msk [vmem:[%s10781_s16 + $0xb8] sm:$0xff] %vm5951_vm6, %v5925_v54  ;;  %v5721_v54 = vsub.f32 1.0, %v5720_v3 }
0x12a8   :  { %v5722_v30 = vmul.f32 %v7183_v10, %v5721_v54 }
0x12aa   :  { %v5723_v38 = vadd.f32 %v7183_v10, %v5722_v30 }
0x12ab   :  { %v5927_v13 = vpop.f32.mrf.mxu0 }
0x12ac   :  { %v5928_v48 = vadd.f32 %v10334_v36, %v5927_v13  ;;  %v5708_v13 = vadd.f32 %v7179_v40, %v5707_v29  ;;  %v5727_v50 = vsel %vm5726_vm4, %v7183_v10, %v5723_v38 }
0x12ae   :  { %5976 = vst.msk [vmem:[%s10781_s16 + $0xc0] sm:$0xff] %vm5951_vm6, %v5928_v48  ;;  %v10791_v48 = vld [vmem:[#allocation42_spill] sm:$0xff]  ;;  %v5712_v59 = vsel %vm5711_vm14, %v7179_v40, %v5708_v13  ;;  %v3408_v40 = vadd.f32 %v10296_v42, %v10793_v32 }
0x12b3   :  { %v5930_v45 = vpop.f32.mrf.mxu0 }
0x12b4   :  { %v5931_v43 = vadd.f32 %v10334_v36, %v5930_v45  ;;  %v3402_v45 = vadd.f32 %v10296_v42, %v10791_v48 }
0x12b6   :  { %5977 = vst.msk [vmem:[%s10781_s16 + $0xc8] sm:$0xff] %vm5951_vm6, %v5931_v43  ;;  %v5715_v43 = vand.u32 2147483648, %v5686_v53 }
0x12b8   :  { %v5716_v12 = vor.u32 1.1754944e-38, %v5715_v43 }
0x12bb   :  { %v5933_v46 = vpop.f32.mrf.mxu0 }
0x12bc   :  { %v5934_v26 = vadd.f32 %v10334_v36, %v5933_v46  ;;  %v7185_v46 = vpop.eup %7184 }
0x12bd   :  { %v5735_v23 = vmul.f32 %v7185_v46, %v10532_v58  ;;  %vm5740_vm7 = vweird.f32 %v7185_v46 }
0x12be   :  { %5978 = vst.msk [vmem:[%s10781_s16 + $0xd0] sm:$0xff] %vm5951_vm6, %v5934_v26  ;;  %v5806_v26 = vsub.f32 1.0, %v5702_v24  ;;  %vm5741_vm9 = vmor %vm5739_vm8, %vm5740_vm7 }
0x12bf   :  { %v5736_v20 = vsub.f32 1.0, %v5735_v23 }
0x12c1   :  { %v5737_v14 = vmul.f32 %v7185_v46, %v5736_v20 }
0x12c3   :  { %v5936_v0 = vpop.f32.mrf.mxu0  ;;  %v5738_v21 = vadd.f32 %v7185_v46, %v5737_v14 }
0x12c4   :  { %v5937_v39 = vadd.f32 %v10334_v36, %v5936_v0  ;;  %v5713_v0 = vand.u32 2147483647, %v5686_v53  ;;  %v5731_v53 = vor.u32 1.1754944e-38, %v5730_v25 }
0x12c5   :  { %v5742_v10 = vsel %vm5741_vm9, %v7185_v46, %v5738_v21 }
0x12c6   :  { %5979 = vst.msk [vmem:[%s10781_s16 + $0xd8] sm:$0xff] %vm5951_vm6, %v5937_v39  ;;  %vm5714_vm15 = vcmp.eq.f32.partialorder %v5713_v0, 8.507059e+37  ;;  %v5732_v22 = vsel %vm5729_vm5, %v5731_v53, %v5727_v50 }
0x12c7   :  { %v5717_v18 = vsel %vm5714_vm15, %v5716_v12, %v5712_v59  ;;  %v5808_v8 = vsub.f32 1.0, %v5732_v22  ;;  %v5804_v27 = vmul.f32 %v5732_v22, %v10322_v61 }
0x12c8   :  { %v5807_v6 = vsub.f32 1.0, %v5717_v18  ;;  %v5803_v49 = vmul.f32 %v5717_v18, %v10306_v57 }
0x12f8   :  { %v5782_v51 = vpop.f32.mrf.mxu3 }
0x12f9   :  { %v5794_v5 = vadd.f32 %v5782_v51, %v3399_v28  ;;  %v5746_v28 = vor.u32 1.1754944e-38, %v5745_v47 }
0x12fb   :  { %7186 = vtanh.f32 %v5794_v5  ;;  %v5747_v42 = vsel %vm5744_vm10, %v5746_v28, %v5742_v10 }
0x12fc   :  { %v5809_v9 = vsub.f32 1.0, %v5747_v42  ;;  %v5805_v5 = vmul.f32 %v5747_v42, %v10344_v16 }
0x1300   :  { %v5785_v11 = vpop.f32.mrf.mxu3 }
0x1301   :  { %v7187_v39 = vpop.eup %7186  ;;  %v5795_v4 = vadd.f32 %v5785_v11, %v3402_v45 }
0x1302   :  { %v5810_v56 = vmul.f32 %v7187_v39, %v5806_v26 }
0x1303   :  { %7188 = vtanh.f32 %v5795_v4 }
0x1304   :  { %v5814_v55 = vadd.f32 %v5810_v56, %v5802_v62 }
0x1306   :  { %6534 = vmatmul.msk.f32.gmra.mxu0 %vm642_vm2, %v5814_v55 }
0x1308   :  { %v5788_v17 = vpop.f32.mrf.mxu3 }
0x1309   :  { %v7189_v44 = vpop.eup %7188  ;;  %v5796_v33 = vadd.f32 %v5788_v17, %v3405_v15 }
0x130a   :  { %v5811_v19 = vmul.f32 %v7189_v44, %v5807_v6 }
0x130b   :  { %7190 = vtanh.f32 %v5796_v33 }
0x130c   :  { %v5815_v41 = vadd.f32 %v5811_v19, %v5803_v49 }
0x130e   :  { %6535 = vmatmul.msk.f32.gmra.mxu0 %vm642_vm2, %v5815_v41 }
0x1311   :  { %v7191_v52 = vpop.eup %7190 }
0x1312   :  { %v5812_v57 = vmul.f32 %v7191_v52, %v5808_v8  ;;  %v5791_v34 = vpop.f32.mrf.mxu3 }
0x1313   :  { %v5797_v31 = vadd.f32 %v5791_v34, %v3408_v40 }
0x1314   :  { %v5816_v63 = vadd.f32 %v5812_v57, %v5804_v27 }
0x1315   :  { %7192 = vtanh.f32 %v5797_v31 }
0x1316   :  { %6536 = vmatmul.msk.f32.gmra.mxu0 %vm642_vm2, %v5816_v63 }
0x131b   :  { %v7193_v2 = vpop.eup %7192 }
0x131c   :  { %v5813_v51 = vmul.f32 %v7193_v2, %v5809_v9 }
0x131e   :  { %v5817_v29 = vadd.f32 %v5813_v51, %v5805_v5 }
0x1320   :  { %6537 = vmatmul.msk.f32.gmra.mxu0 %vm642_vm2, %v5817_v29 }
0x1383   :  { %v5939_v58 = vpop.f32.mrf.mxu0 }
0x1384   :  { %v5940_v61 = vadd.f32 %v10334_v36, %v5939_v58 }
0x1386   :  { %5980 = vst.msk [vmem:[%s10781_s16 + $0xe0] sm:$0xff] %vm5951_vm6, %v5940_v61 }
0x138b   :  { %v5942_v3 = vpop.f32.mrf.mxu0 }
0x138c   :  { %v5943_v7 = vadd.f32 %v10334_v36, %v5942_v3 }
0x138e   :  { %5981 = vst.msk [vmem:[%s10781_s16 + $0xe8] sm:$0xff] %vm5951_vm6, %v5943_v7 }
0x1393   :  { %v5945_v16 = vpop.f32.mrf.mxu0 }
0x1394   :  { %v5946_v60 = vadd.f32 %v10334_v36, %v5945_v16 }
0x1396   :  { %5982 = vst.msk [vmem:[%s10781_s16 + $0xf0] sm:$0xff] %vm5951_vm6, %v5946_v60 }
0x139d   :  { %v5948_v24 = vpop.f32.mrf.mxu0 }
0x139e   :  { %v5949_v54 = vadd.f32 %v10334_v36, %v5948_v24 }
0x13a0   :  { %5983 = vst.msk [vmem:[%s10781_s16 + $0xf8] sm:$0xff] %vm5951_vm6, %v5949_v54 }
0x13a1   :  { %5988 = vsyncpa [#allocation3], 1 }
0x13a2   :  { %5989 = vsyncpa [#allocation5], 1 }
0x13a3   :  { %5990 = vsyncpa [#allocation8], 1 }

</bundles_post_ra>
